<compile_context>
chip_gen: v6e
topology: v6e:2x2x1
jax: 0.10.0
libtpu: 0.0.40
codegen_flags: <defaults>
</compile_context>

<pallas_src>
import functools

import jax
import jax.numpy as jnp
from jax import lax
from jax.experimental import pallas as pl
from jax.experimental.pallas import tpu as pltpu

N_CLASS = 20
PRED_DIM = N_CLASS + 1 + 4  # 25


def _round_up(x, m):
    return ((x + m - 1) // m) * m


def _full_spec(shape):
    rank = len(shape)
    return pl.BlockSpec(shape, lambda i, _r=rank: (0,) * _r)


# --------------------------- Pallas kernel ----------------------------------


def _group_conv3x3_kernel(*refs, meta):
    """k independent 3x3 convs, each as im2col + a single MXU matmul.

    refs layout: x_0..x_{k-1}, w_0..w_{k-1}, b_0..b_{k-1}, o_0..o_{k-1}
      x_i: (N, H+2, Wp, C)   zero-padded NHWC input (Wp = round_up(W+2, 8))
      w_i: (9*C, O_pad)      tap-major (kh*3+kw) weights, O padded to 128k
      b_i: (1, O_pad)        bias (zero in the padded tail)
      o_i: (N*H*W, O_pad)    output rows ordered (n, h, w)
    """
    k = len(meta)
    x_refs = refs[0:k]
    w_refs = refs[k:2 * k]
    b_refs = refs[2 * k:3 * k]
    o_refs = refs[3 * k:4 * k]

    for idx, (N, H, W, C, normalize) in enumerate(meta):
        x = x_refs[idx][...]  # (N, H+2, Wp, C) f32

        if normalize:
            # F.normalize(p=2, dim=channel) * 20 via rsqrt (EUP slot),
            # *20 folded into the same multiply.  Zero-padded pixels stay 0.
            sq = jnp.sum(x * x, axis=-1, keepdims=True)
            x = x * (lax.rsqrt(jnp.maximum(sq, 1e-24)) * 20.0)

        # im2col: (N*H*W, 9*C) buffer, batch folded into M, taps into K.
        cols = []
        for kh in range(3):
            for kw in range(3):
                cols.append(
                    x[:, kh:kh + H, kw:kw + W, :].reshape(N * H * W, C))
        col = jnp.concatenate(cols, axis=-1)  # (N*H*W, 9*C)

        acc = lax.dot_general(
            col, w_refs[idx][...],
            (((1,), (0,)), ((), ())),
            preferred_element_type=jnp.float32)          # (N*H*W, O_pad)
        o_refs[idx][...] = acc + b_refs[idx][...]        # lane-dense store


def conv3x3_group(xs_nhwc, w_mats, b_pads, normalize_flags):
    """Run several 3x3/s1/p1 convs in ONE pallas_call (grid=(1,)).

    xs_nhwc[i]: (N, H_i, W_i, C_i) f32; w_mats[i]: (9*C_i, Opad_i);
    b_pads[i]: (1, Opad_i).  Returns tuple of (N*H_i*W_i, Opad_i) f32."""
    meta = []
    xs_pad = []
    in_specs = []
    out_specs = []
    out_shapes = []
    for x, w, nrm in zip(xs_nhwc, w_mats, normalize_flags):
        N, H, W, C = x.shape
        o_pad = w.shape[1]
        wp = _round_up(W + 2, 8)  # sublane-aligned padded width
        x_pad = jnp.pad(x, ((0, 0), (1, 1), (1, wp - W - 1), (0, 0)))
        xs_pad.append(x_pad)
        meta.append((N, H, W, C, bool(nrm)))
        in_specs.append(_full_spec(x_pad.shape))
        out_specs.append(_full_spec((N * H * W, o_pad)))
        out_shapes.append(
            jax.ShapeDtypeStruct((N * H * W, o_pad), jnp.float32))
    in_specs += [_full_spec(w.shape) for w in w_mats]
    in_specs += [_full_spec(b.shape) for b in b_pads]

    kernel = functools.partial(_group_conv3x3_kernel, meta=tuple(meta))

    outs = pl.pallas_call(
        kernel,
        out_shape=tuple(out_shapes),
        grid_spec=pltpu.PrefetchScalarGridSpec(
            num_scalar_prefetch=0,
            grid=(1,),
            in_specs=in_specs,
            out_specs=tuple(out_specs),
        ),
        compiler_params=pltpu.CompilerParams(
            dimension_semantics=("arbitrary",),
            vmem_limit_bytes=48 << 20,  # headroom on v7x's 64 MiB VMEM
        ),
    )(*xs_pad, *w_mats, *b_pads)
    return outs


# ------------------- parameter setup (xavier_uniform / zero bias) ------------


def xavier_uniform_conv(key, out_c, in_c, kh=3, kw=3):
    fan_in = in_c * kh * kw
    fan_out = out_c * kh * kw
    a = (6.0 / (fan_in + fan_out)) ** 0.5
    # PyTorch layout (O, C, kh, kw); matches xavier_uniform_ distribution.
    return jax.random.uniform(key, (out_c, in_c, kh, kw), jnp.float32, -a, a)


class FeatureExtractorPallas:
    # (in_channels, num_anchors) per extractor, mirroring the PyTorch module.
    CFG = [(512, 4), (1024, 6), (512, 6), (256, 6), (256, 4), (256, 4)]
    # Big maps get their own call; the three tiny tail maps are fused into one.
    GROUPS = [[0], [1], [2], [3, 4, 5]]

    def __init__(self, key):
        keys = jax.random.split(key, len(self.CFG))
        self.w_hwio = []   # (3, 3, C, O)   for the pure-JAX reference
        self.w_mat = []    # (9*C, O_pad)   for the kernel (tap-major rows)
        self.bias = []     # (O,)
        self.b_pad = []    # (1, O_pad)
        self.o_valid = []
        for (cin, na), k in zip(self.CFG, keys):
            cout = na * PRED_DIM
            w = xavier_uniform_conv(k, cout, cin)           # (O, C, 3, 3)
            w_hwio = jnp.transpose(w, (2, 3, 1, 0))         # (3, 3, C, O)
            o_pad = _round_up(cout, 128)
            w_mat = jnp.pad(w_hwio.reshape(9 * cin, cout),
                            ((0, 0), (0, o_pad - cout)))
            self.w_hwio.append(w_hwio)
            self.w_mat.append(w_mat)
            self.bias.append(jnp.zeros((cout,), jnp.float32))
            self.b_pad.append(jnp.zeros((1, o_pad), jnp.float32))
            self.o_valid.append(cout)

    def __call__(self, featmaps_nchw):
        """featmaps_nchw: list of 6 arrays in NCHW (PyTorch convention)."""
        xs = [jnp.transpose(x, (0, 2, 3, 1)).astype(jnp.float32)
              for x in featmaps_nchw]
        results = [None] * len(xs)
        for group in self.GROUPS:
            ys = conv3x3_group(
                [xs[i] for i in group],
                [self.w_mat[i] for i in group],
                [self.b_pad[i] for i in group],
                [i == 0 for i in group],
            )
            for i, y in zip(group, ys):
                results[i] = y
        outs = []
        for i, y in enumerate(results):
            N = xs[i].shape[0]
            o = self.o_valid[i]
            # Drop the padded output channels, then (N, H*W*A, 25) ordering
            # matching permute(0,2,3,1).reshape(N, -1, 25).
            outs.append(y[:, :o].reshape(N, -1, PRED_DIM))
        return jnp.concatenate(outs, axis=1)


# ---------------- reference (pure JAX) for validation ------------------------


def reference_forward(model, featmaps_nchw):
    outs = []
    for i, x in enumerate(featmaps_nchw):
        x = x.astype(jnp.float32)
        if i == 0:
            norm = jnp.sqrt(jnp.sum(x * x, axis=1, keepdims=True))
            x = x / jnp.maximum(norm, 1e-12) * 20.0
        x_nhwc = jnp.transpose(x, (0, 2, 3, 1))
        y = lax.conv_general_dilated(
            x_nhwc, model.w_hwio[i], window_strides=(1, 1), padding="SAME",
            dimension_numbers=("NHWC", "HWIO", "NHWC"))
        y = y + model.bias[i]
        N = y.shape[0]
        outs.append(y.reshape(N, -1, PRED_DIM))
    return jnp.concatenate(outs, axis=1)


if __name__ == "__main__":
    key = jax.random.PRNGKey(0)
    k_param, *k_in = jax.random.split(key, 8)

    model = FeatureExtractorPallas(k_param)

    # Small spatial sizes; channel counts are fixed by the module's convs.
    shapes = [
        (2, 512, 8, 8),
        (2, 1024, 4, 4),
        (2, 512, 4, 4),
        (2, 256, 2, 2),
        (2, 256, 2, 2),
        (2, 256, 1, 1),
    ]
    featmaps = [
        jax.random.normal(k, s, jnp.float32) for k, s in zip(k_in, shapes)
    ]

    preds = jax.block_until_ready(model(featmaps))
    ref = jax.block_until_ready(reference_forward(model, featmaps))

    assert preds.shape == ref.shape, (preds.shape, ref.shape)
    assert jnp.allclose(preds, ref, atol=2e-3, rtol=2e-3), (
        float(jnp.max(jnp.abs(preds - ref))))

    print("KERNEL_OK")
</pallas_src>

<mosaic_0001>
module attributes {stable_mosaic.version = 11 : i64} {
  func.func @_group_conv3x3_kernel(%arg0: i32, %arg1: memref<2x10x16x512xf32, #tpu.memory_space<vmem>>, %arg2: memref<4608x128xf32, #tpu.memory_space<vmem>>, %arg3: memref<1x128xf32, #tpu.memory_space<vmem>>, %arg4: memref<128x128xf32, #tpu.memory_space<vmem>>) attributes {dimension_semantics = [#tpu.dimension_semantics<arbitrary>], iteration_bounds = array<i64: 1>, scalar_prefetch = 0 : i64, scratch_operands = 0 : i64, tpu.core_type = #tpu.core_type<tc>, window_params = [{pipeline_mode = #tpu.pipeline_mode<synchronous>, transform_indices = @transform_0, window_bounds = array<i64: 2, 10, 16, 512>}, {pipeline_mode = #tpu.pipeline_mode<synchronous>, transform_indices = @transform_1, window_bounds = array<i64: 4608, 128>}, {pipeline_mode = #tpu.pipeline_mode<synchronous>, transform_indices = @transform_2, window_bounds = array<i64: 1, 128>}, {pipeline_mode = #tpu.pipeline_mode<synchronous>, transform_indices = @transform_3, window_bounds = array<i64: 128, 128>}]} {
    %c0 = arith.constant 0 : index
    %c0_0 = arith.constant 0 : index
    %c0_1 = arith.constant 0 : index
    %c0_2 = arith.constant 0 : index
    %0 = vector.load %arg1[%c0, %c0_0, %c0_1, %c0_2] : memref<2x10x16x512xf32, #tpu.memory_space<vmem>>, vector<2x10x16x512xf32>
    %1 = arith.mulf %0, %0 : vector<2x10x16x512xf32>
    %cst = arith.constant dense<0.000000e+00> : vector<2x10x16xf32>
    %2 = vector.multi_reduction <add>, %1, %cst [3] : vector<2x10x16x512xf32> to vector<2x10x16xf32>
    %3 = vector.shape_cast %2 : vector<2x10x16xf32> to vector<2x10x16x1xf32>
    %cst_3 = arith.constant 1.000000e-24 : f32
    %4 = vector.broadcast %cst_3 : f32 to vector<2x10x16x1xf32>
    %5 = arith.maximumf %3, %4 : vector<2x10x16x1xf32>
    %6 = math.rsqrt %5 : vector<2x10x16x1xf32>
    %cst_4 = arith.constant 2.000000e+01 : f32
    %7 = vector.broadcast %cst_4 : f32 to vector<2x10x16x1xf32>
    %8 = arith.mulf %6, %7 : vector<2x10x16x1xf32>
    %9 = vector.broadcast %8 : vector<2x10x16x1xf32> to vector<2x10x16x512xf32>
    %10 = arith.mulf %0, %9 : vector<2x10x16x512xf32>
    %11 = vector.extract_strided_slice %10 {offsets = [0, 0, 0, 0], sizes = [2, 8, 8, 512], strides = [1, 1, 1, 1]} : vector<2x10x16x512xf32> to vector<2x8x8x512xf32>
    %12 = vector.shape_cast %11 : vector<2x8x8x512xf32> to vector<128x512xf32>
    %13 = vector.extract_strided_slice %10 {offsets = [0, 0, 1, 0], sizes = [2, 8, 8, 512], strides = [1, 1, 1, 1]} : vector<2x10x16x512xf32> to vector<2x8x8x512xf32>
    %14 = vector.shape_cast %13 : vector<2x8x8x512xf32> to vector<128x512xf32>
    %15 = vector.extract_strided_slice %10 {offsets = [0, 0, 2, 0], sizes = [2, 8, 8, 512], strides = [1, 1, 1, 1]} : vector<2x10x16x512xf32> to vector<2x8x8x512xf32>
    %16 = vector.shape_cast %15 : vector<2x8x8x512xf32> to vector<128x512xf32>
    %17 = vector.extract_strided_slice %10 {offsets = [0, 1, 0, 0], sizes = [2, 8, 8, 512], strides = [1, 1, 1, 1]} : vector<2x10x16x512xf32> to vector<2x8x8x512xf32>
    %18 = vector.shape_cast %17 : vector<2x8x8x512xf32> to vector<128x512xf32>
    %19 = vector.extract_strided_slice %10 {offsets = [0, 1, 1, 0], sizes = [2, 8, 8, 512], strides = [1, 1, 1, 1]} : vector<2x10x16x512xf32> to vector<2x8x8x512xf32>
    %20 = vector.shape_cast %19 : vector<2x8x8x512xf32> to vector<128x512xf32>
    %21 = vector.extract_strided_slice %10 {offsets = [0, 1, 2, 0], sizes = [2, 8, 8, 512], strides = [1, 1, 1, 1]} : vector<2x10x16x512xf32> to vector<2x8x8x512xf32>
    %22 = vector.shape_cast %21 : vector<2x8x8x512xf32> to vector<128x512xf32>
    %23 = vector.extract_strided_slice %10 {offsets = [0, 2, 0, 0], sizes = [2, 8, 8, 512], strides = [1, 1, 1, 1]} : vector<2x10x16x512xf32> to vector<2x8x8x512xf32>
    %24 = vector.shape_cast %23 : vector<2x8x8x512xf32> to vector<128x512xf32>
    %25 = vector.extract_strided_slice %10 {offsets = [0, 2, 1, 0], sizes = [2, 8, 8, 512], strides = [1, 1, 1, 1]} : vector<2x10x16x512xf32> to vector<2x8x8x512xf32>
    %26 = vector.shape_cast %25 : vector<2x8x8x512xf32> to vector<128x512xf32>
    %27 = vector.extract_strided_slice %10 {offsets = [0, 2, 2, 0], sizes = [2, 8, 8, 512], strides = [1, 1, 1, 1]} : vector<2x10x16x512xf32> to vector<2x8x8x512xf32>
    %28 = vector.shape_cast %27 : vector<2x8x8x512xf32> to vector<128x512xf32>
    %29 = tpu.concatenate %12, %14, %16, %18, %20, %22, %24, %26, %28 in 1 : vector<128x512xf32>, vector<128x512xf32>, vector<128x512xf32>, vector<128x512xf32>, vector<128x512xf32>, vector<128x512xf32>, vector<128x512xf32>, vector<128x512xf32>, vector<128x512xf32> -> vector<128x4608xf32>
    %c0_5 = arith.constant 0 : index
    %c0_6 = arith.constant 0 : index
    %30 = vector.load %arg2[%c0_5, %c0_6] : memref<4608x128xf32, #tpu.memory_space<vmem>>, vector<4608x128xf32>
    %cst_7 = arith.constant dense<0.000000e+00> : vector<128x128xf32>
    %31 = tpu.matmul %29, %30, %cst_7 {dimension_numbers = #tpu.dot_dimension_numbers<[1], [0], [0], [1], [0, 0, 1, 1], [], []>} : vector<128x4608xf32>, vector<4608x128xf32>, vector<128x128xf32> -> vector<128x128xf32>
    %c0_8 = arith.constant 0 : index
    %c0_9 = arith.constant 0 : index
    %32 = vector.load %arg3[%c0_8, %c0_9] : memref<1x128xf32, #tpu.memory_space<vmem>>, vector<1x128xf32>
    %33 = vector.broadcast %32 : vector<1x128xf32> to vector<128x128xf32>
    %34 = arith.addf %31, %33 : vector<128x128xf32>
    %c0_10 = arith.constant 0 : index
    %c0_11 = arith.constant 0 : index
    %35 = vector.load %arg4[%c0_10, %c0_11] : memref<128x128xf32, #tpu.memory_space<vmem>>, vector<128x128xf32>
    tpu.vector_store %arg4[%c0_10, %c0_11], %34 {strides = array<i32>} : memref<128x128xf32, #tpu.memory_space<vmem>>, vector<128x128xf32>,
    return
  }
  func.func @transform_0(%arg0: i32) -> (i32, i32, i32, i32) {
    %c0_i32 = arith.constant 0 : i32
    %c0_i32_0 = arith.constant 0 : i32
    %c0_i32_1 = arith.constant 0 : i32
    %c0_i32_2 = arith.constant 0 : i32
    %c0_i32_3 = arith.constant 0 : i32
    return %c0_i32, %c0_i32_0, %c0_i32_1, %c0_i32_2 : i32, i32, i32, i32
  }
  func.func @transform_1(%arg0: i32) -> (i32, i32) {
    %c0_i32 = arith.constant 0 : i32
    %c0_i32_0 = arith.constant 0 : i32
    %c0_i32_1 = arith.constant 0 : i32
    return %c0_i32, %c0_i32_0 : i32, i32
  }
  func.func @transform_2(%arg0: i32) -> (i32, i32) {
    %c0_i32 = arith.constant 0 : i32
    %c0_i32_0 = arith.constant 0 : i32
    %c0_i32_1 = arith.constant 0 : i32
    return %c0_i32, %c0_i32_0 : i32, i32
  }
  func.func @transform_3(%arg0: i32) -> (i32, i32) {
    %c0_i32 = arith.constant 0 : i32
    %c0_i32_0 = arith.constant 0 : i32
    %c0_i32_1 = arith.constant 0 : i32
    return %c0_i32, %c0_i32_0 : i32, i32
  }
}

</mosaic_0001>

<bundles_post_ra>
// kernel: tpu_custom_call.1
= control target key start
LH: loop header
LB: loop body
LE: loop exit
PB: predicated region body
PF: predicated region fallthrough
CT: control target
= control target key end

     0   :  { %8 = vsyncpa [#allocation3], 0  ;;  %s9068_s0 = inlined_call_operand.hbm [shape: f32[2,10,16,512], index: 0, kind: input, shape index: {}]   ;;  %s9069_s1 = inlined_call_operand.hbm [shape: f32[4608,128], index: 1, kind: input, shape index: {}]   ;;  %s9070_s2 = inlined_call_operand.hbm [shape: f32[1,128], index: 2, kind: input, shape index: {}]   ;;  %s9071_s3 = inlined_call_operand.hbm [shape: f32[128,128], index: 3, kind: output, shape index: {}]  }
   0x1   :  { %9 = vsyncpa [#allocation6], 0 }
   0x2   :  { %10 = vsyncpa [#allocation4], 0  ;;  %s6658_s12 = smov [#allocation5]  }
   0x3   :  { %s28_s13 = sshll.u32 %s6658_s12, 4  ;;  %s29_s13 = int_to_ptr.vmem [resolvable:$true] %s28_s13 }
   0x4   :  { %s6580_s14 = scalar_lea.vmem %s29_s13, 73728  ;;  %p6585_p1 = scmp.lt.s32.totalorder %s29_s13, %s29_s13 }
   0x5   :  { %p6581_p0 = scmp.ne.s32.totalorder %s29_s13, %s6580_s14  ;;  %p6586_p2 = scmp.lt.s32.totalorder %s6580_s14, %s6580_s14 }
   0x7   :  { %p6587_p3 = por %p6586_p2, %p6585_p1 }
   0x9   :  { %p6588_p4 = pnand %p6587_p3, %p6581_p0 }
   0xb   :  { %6591 = shalt.err (!%p6588_p4)
}
   0xc   :  { %s6659_s15 = smov 128   ;;  %s6660_s16 = smov 8  }
   0xd   :  { %34 = dma.hbm_to_vmem [thread:$0]  %s9069_s1, 73728, %s29_s13, [#allocation6], %s6659_s15, %s6659_s15, %s6660_s16  }
   0xe   :  { %s6661_s19 = smov [#allocation2]  }
   0xf   :  { %s16_s20 = sshll.u32 %s6661_s19, 4  ;;  %s17_s20 = int_to_ptr.vmem [resolvable:$true] %s16_s20 }
  0x10   :  { %s6600_s21 = scalar_lea.vmem %s17_s20, 20480  ;;  %p6605_p6 = scmp.lt.s32.totalorder %s17_s20, %s17_s20 }
  0x11   :  { %p6601_p5 = scmp.ne.s32.totalorder %s17_s20, %s6600_s21  ;;  %p6606_p7 = scmp.lt.s32.totalorder %s6600_s21, %s6600_s21 }
  0x13   :  { %p6607_p8 = por %p6606_p7, %p6605_p6 }
  0x15   :  { %p6608_p9 = pnand %p6607_p8, %p6601_p5 }
  0x17   :  { %6611 = shalt.err (!%p6608_p9)
}
  0x18   :  { %s6662_s22 = smov 512   ;;  %s6663_s23 = smov 32  }
  0x19   :  { %22 = dma.hbm_to_vmem [thread:$0]  %s9068_s0, 20480, %s17_s20, [#allocation3], %s6662_s22, %s6662_s22, %s6663_s23  }
  0x1a   :  { %s6664_s26 = smov [#allocation7]  }
  0x1b   :  { %s41_s27 = sshll.u32 %s6664_s26, 4  ;;  %s42_s27 = int_to_ptr.vmem [resolvable:$true] %s41_s27 }
  0x1c   :  { %s6620_s1 = scalar_lea.vmem %s42_s27, 16  ;;  %s6624_s28 = scalar_lea.vmem %s42_s27, 32 }
  0x1d   :  { %p6621_p10 = scmp.ne.s32.totalorder %s42_s27, %s6620_s1  ;;  %p6625_p11 = scmp.lt.s32.totalorder %s42_s27, %s42_s27 }
  0x1e   :  { %p6626_p12 = scmp.lt.s32.totalorder %s6624_s28, %s6620_s1 }
  0x20   :  { %p6627_p13 = por %p6626_p12, %p6625_p11 }
  0x22   :  { %p6628_p0 = pnand %p6627_p13, %p6621_p10 }
  0x24   :  { %6631 = shalt.err (!%p6628_p0)
}
  0x25   :  { %44 = dma.hbm_to_vmem [thread:$0]  %s9070_s2, 16, %s42_s27, [#allocation6]  }
  0x26   :  { %6652 = dma.done.wait [#allocation3], 20480  }
  0x27   :  { %6653 = vsyncadd [#allocation3], 4294946816 }
  0x28   :  { %6654 = dma.done.wait [#allocation6], 73744  }
  0x29   :  { %6655 = vsyncadd [#allocation6], 4294893552  ;;  %v70_v0 = vld [vmem:[#allocation2 + $0x80] sm:$0xff]  ;;  %v71_v1 = vld [vmem:[#allocation2 + $0x88] sm:$0xff]  ;;  %vm982_vm0 = vcmask 1046528   ;;  %vm1239_vm1 = vcmask 1045504  }
  0x2a   :  { %v72_v2 = vld [vmem:[#allocation2 + $0x90] sm:$0xff]  ;;  %v73_v3 = vld [vmem:[#allocation2 + $0x98] sm:$0xff]  ;;  %v230_v4 = vmul.f32 %v70_v0, %v70_v0  ;;  %v231_v5 = vmul.f32 %v71_v1, %v71_v1  ;;  %v54_v7 = vld [vmem:[#allocation2] sm:$0xff]  ;;  %s6665_s0 = smov [#allocation8]  }
  0x2b   :  { %v232_v6 = vmul.f32 %v72_v2, %v72_v2  ;;  %v55_v8 = vld [vmem:[#allocation2 + $0x8] sm:$0xff]  ;;  %v233_v9 = vmul.f32 %v73_v3, %v73_v3  ;;  %v56_v10 = vld [vmem:[#allocation2 + $0x10] sm:$0xff]  ;;  %v57_v11 = vld [vmem:[#allocation2 + $0x18] sm:$0xff]  ;;  %v214_v12 = vmul.f32 %v54_v7, %v54_v7  ;;  %s4870_s2 = sshll.u32 %s6665_s0, 4  ;;  %s4871_s2 = int_to_ptr.vmem [resolvable:$true] %s4870_s2 }
  0x2c   :  { %v215_v13 = vmul.f32 %v55_v8, %v55_v8  ;;  %v78_v14 = vld [vmem:[#allocation2 + $0xc0] sm:$0xff]  ;;  %v394_v15 = vadd.f32 %v231_v5, %v230_v4  ;;  %v216_v16 = vmul.f32 %v56_v10, %v56_v10  ;;  %v217_v17 = vmul.f32 %v57_v11, %v57_v11  ;;  %v79_v18 = vld [vmem:[#allocation2 + $0xc8] sm:$0xff]  ;;  %v80_v19 = vld [vmem:[#allocation2 + $0xd0] sm:$0xff]  ;;  %s6632_s4 = scalar_lea.vmem %s4871_s2, 2048  ;;  %p6637_p2 = scmp.lt.s32.totalorder %s4871_s2, %s4871_s2 }
  0x2d   :  { %v81_v20 = vld [vmem:[#allocation2 + $0xd8] sm:$0xff]  ;;  %v238_v21 = vmul.f32 %v78_v14, %v78_v14  ;;  %v239_v23 = vmul.f32 %v79_v18, %v79_v18  ;;  %v240_v24 = vmul.f32 %v80_v19, %v80_v19  ;;  %v62_v26 = vld [vmem:[#allocation2 + $0x40] sm:$0xff]  ;;  %v63_v27 = vld [vmem:[#allocation2 + $0x48] sm:$0xff]  ;;  %p6633_p1 = scmp.ne.s32.totalorder %s4871_s2, %s6632_s4  ;;  %p6638_p3 = scmp.lt.s32.totalorder %s6632_s4, %s6632_s4 }
  0x2e   :  { %v374_v22 = vadd.f32 %v215_v13, %v214_v12  ;;  %v241_v25 = vmul.f32 %v81_v20, %v81_v20  ;;  %v64_v28 = vld [vmem:[#allocation2 + $0x50] sm:$0xff]  ;;  %v395_v29 = vadd.f32 %v394_v15, %v232_v6  ;;  %v65_v30 = vld [vmem:[#allocation2 + $0x58] sm:$0xff]  ;;  %v222_v31 = vmul.f32 %v62_v26, %v62_v26  ;;  %v94_v34 = vld [vmem:[#allocation2 + $0x140] sm:$0xff] }
  0x2f   :  { %v223_v32 = vmul.f32 %v63_v27, %v63_v27  ;;  %v224_v33 = vmul.f32 %v64_v28, %v64_v28  ;;  %v95_v35 = vld [vmem:[#allocation2 + $0x148] sm:$0xff]  ;;  %v404_v37 = vadd.f32 %v239_v23, %v238_v21  ;;  %v225_v38 = vmul.f32 %v65_v30, %v65_v30  ;;  %v96_v39 = vld [vmem:[#allocation2 + $0x150] sm:$0xff]  ;;  %v97_v40 = vld [vmem:[#allocation2 + $0x158] sm:$0xff]  ;;  %p6639_p4 = por %p6638_p3, %p6637_p2 }
  0x30   :  { %v375_v36 = vadd.f32 %v374_v22, %v216_v16  ;;  %v254_v41 = vmul.f32 %v94_v34, %v94_v34  ;;  %v86_v42 = vld [vmem:[#allocation2 + $0x100] sm:$0xff]  ;;  %v396_v43 = vadd.f32 %v395_v29, %v233_v9  ;;  %v255_v45 = vmul.f32 %v95_v35, %v95_v35  ;;  %v87_v47 = vld [vmem:[#allocation2 + $0x108] sm:$0xff]  ;;  %v88_v48 = vld [vmem:[#allocation2 + $0x110] sm:$0xff] }
  0x31   :  { %v384_v44 = vadd.f32 %v223_v32, %v222_v31  ;;  %v256_v46 = vmul.f32 %v96_v39, %v96_v39  ;;  %v89_v49 = vld [vmem:[#allocation2 + $0x118] sm:$0xff]  ;;  %v405_v51 = vadd.f32 %v404_v37, %v240_v24  ;;  %v257_v52 = vmul.f32 %v97_v40, %v97_v40  ;;  %v110_v54 = vld [vmem:[#allocation2 + $0x1c0] sm:$0xff]  ;;  %v111_v55 = vld [vmem:[#allocation2 + $0x1c8] sm:$0xff]  ;;  %p6640_p5 = pnand %p6639_p4, %p6633_p1 }
  0x32   :  { %v376_v50 = vadd.f32 %v375_v36, %v217_v17  ;;  %v246_v53 = vmul.f32 %v86_v42, %v86_v42  ;;  %v112_v56 = vld [vmem:[#allocation2 + $0x1d0] sm:$0xff]  ;;  %397 = vadd.xlane.f32.xlu1 %v396_v43  ;;  %v424_v58 = vadd.f32 %v255_v45, %v254_v41  ;;  %v247_v59 = vmul.f32 %v87_v47, %v87_v47  ;;  %v113_v61 = vld [vmem:[#allocation2 + $0x1d8] sm:$0xff]  ;;  %v102_v62 = vld [vmem:[#allocation2 + $0x180] sm:$0xff] }
  0x33   :  { %v385_v57 = vadd.f32 %v384_v44, %v224_v33  ;;  %v248_v60 = vmul.f32 %v88_v48, %v88_v48  ;;  %v103_v63 = vld [vmem:[#allocation2 + $0x188] sm:$0xff]  ;;  %v406_v0 = vadd.f32 %v405_v51, %v241_v25  ;;  %v249_v1 = vmul.f32 %v89_v49, %v89_v49  ;;  %v104_v4 = vld [vmem:[#allocation2 + $0x190] sm:$0xff]  ;;  %v105_v5 = vld [vmem:[#allocation2 + $0x198] sm:$0xff] }
  0x34   :  { %377 = vadd.xlane.f32.xlu0 %v376_v50  ;;  %v270_v2 = vmul.f32 %v110_v54, %v110_v54  ;;  %v271_v3 = vmul.f32 %v111_v55, %v111_v55  ;;  %v425_v7 = vadd.f32 %v424_v58, %v256_v46  ;;  %v414_v8 = vadd.f32 %v247_v59, %v246_v53  ;;  %v142_v10 = vld [vmem:[#allocation2 + $0x2c0] sm:$0xff]  ;;  %v143_v11 = vld [vmem:[#allocation2 + $0x2c8] sm:$0xff]  ;;  %v144_v16 = vld [vmem:[#allocation2 + $0x2d0] sm:$0xff] }
  0x35   :  { %v386_v6 = vadd.f32 %v385_v57, %v225_v38  ;;  %v272_v9 = vmul.f32 %v112_v56, %v112_v56  ;;  %v273_v12 = vmul.f32 %v113_v61, %v113_v61  ;;  %v262_v14 = vmul.f32 %v102_v62, %v102_v62  ;;  %v145_v17 = vld [vmem:[#allocation2 + $0x2d8] sm:$0xff]  ;;  %v134_v18 = vld [vmem:[#allocation2 + $0x280] sm:$0xff]  ;;  %v135_v23 = vld [vmem:[#allocation2 + $0x288] sm:$0xff] }
  0x36   :  { %v444_v13 = vadd.f32 %v271_v3, %v270_v2  ;;  %v263_v15 = vmul.f32 %v103_v63, %v103_v63  ;;  %407 = vadd.xlane.f32.xlu1 %v406_v0  ;;  %v426_v19 = vadd.f32 %v425_v7, %v257_v52  ;;  %v415_v20 = vadd.f32 %v414_v8, %v248_v60  ;;  %v136_v24 = vld [vmem:[#allocation2 + $0x290] sm:$0xff]  ;;  %v137_v29 = vld [vmem:[#allocation2 + $0x298] sm:$0xff]  ;;  %v158_v30 = vld [vmem:[#allocation2 + $0x340] sm:$0xff] }
  0x37   :  { %v264_v21 = vmul.f32 %v104_v4, %v104_v4  ;;  %v265_v22 = vmul.f32 %v105_v5, %v105_v5  ;;  %v302_v27 = vmul.f32 %v142_v10, %v142_v10  ;;  %v303_v28 = vmul.f32 %v143_v11, %v143_v11  ;;  %v159_v31 = vld [vmem:[#allocation2 + $0x348] sm:$0xff]  ;;  %v160_v36 = vld [vmem:[#allocation2 + $0x350] sm:$0xff]  ;;  %v150_v41 = vld [vmem:[#allocation2 + $0x300] sm:$0xff] }
  0x38   :  { %387 = vadd.xlane.f32.xlu0 %v386_v6  ;;  %v445_v25 = vadd.f32 %v444_v13, %v272_v9  ;;  %v434_v26 = vadd.f32 %v263_v15, %v262_v14  ;;  %v416_v32 = vadd.f32 %v415_v20, %v249_v1  ;;  %v304_v33 = vmul.f32 %v144_v16, %v144_v16  ;;  %v151_v42 = vld [vmem:[#allocation2 + $0x308] sm:$0xff]  ;;  %v161_v45 = vld [vmem:[#allocation2 + $0x358] sm:$0xff]  ;;  %v152_v48 = vld [vmem:[#allocation2 + $0x310] sm:$0xff] }
  0x39   :  { %v305_v34 = vmul.f32 %v145_v17, %v145_v17  ;;  %v294_v35 = vmul.f32 %v134_v18, %v134_v18  ;;  %v484_v39 = vadd.f32 %v303_v28, %v302_v27  ;;  %v295_v40 = vmul.f32 %v135_v23, %v135_v23  ;;  %v174_v53 = vld [vmem:[#allocation2 + $0x3c0] sm:$0xff]  ;;  %v175_v54 = vld [vmem:[#allocation2 + $0x3c8] sm:$0xff]  ;;  %v153_v56 = vld [vmem:[#allocation2 + $0x318] sm:$0xff] }
  0x3a   :  { %v446_v37 = vadd.f32 %v445_v25, %v273_v12  ;;  %v435_v38 = vadd.f32 %v434_v26, %v264_v21  ;;  %427 = vadd.xlane.f32.xlu1 %v426_v19  ;;  %v296_v43 = vmul.f32 %v136_v24, %v136_v24  ;;  %v297_v44 = vmul.f32 %v137_v29, %v137_v29  ;;  %v176_v59 = vld [vmem:[#allocation2 + $0x3d0] sm:$0xff]  ;;  %v166_v60 = vld [vmem:[#allocation2 + $0x380] sm:$0xff]  ;;  %v177_v1 = vld [vmem:[#allocation2 + $0x3d8] sm:$0xff] }
  0x3b   :  { %v318_v46 = vmul.f32 %v158_v30, %v158_v30  ;;  %v319_v47 = vmul.f32 %v159_v31, %v159_v31  ;;  %v485_v50 = vadd.f32 %v484_v39, %v304_v33  ;;  %v474_v51 = vadd.f32 %v295_v40, %v294_v35  ;;  %v167_v2 = vld [vmem:[#allocation2 + $0x388] sm:$0xff]  ;;  %v168_v7 = vld [vmem:[#allocation2 + $0x390] sm:$0xff]  ;;  %v190_v8 = vld [vmem:[#allocation2 + $0x440] sm:$0xff] }
  0x3c   :  { %417 = vadd.xlane.f32.xlu0 %v416_v32  ;;  %v436_v49 = vadd.f32 %v435_v38, %v265_v22  ;;  %v320_v52 = vmul.f32 %v160_v36, %v160_v36  ;;  %v310_v57 = vmul.f32 %v150_v41, %v150_v41  ;;  %v311_v58 = vmul.f32 %v151_v42, %v151_v42  ;;  %v191_v9 = vld [vmem:[#allocation2 + $0x448] sm:$0xff]  ;;  %v169_v13 = vld [vmem:[#allocation2 + $0x398] sm:$0xff]  ;;  %v192_v15 = vld [vmem:[#allocation2 + $0x450] sm:$0xff] }
  0x3d   :  { %v504_v55 = vadd.f32 %v319_v47, %v318_v46  ;;  %v486_v61 = vadd.f32 %v485_v50, %v305_v34  ;;  %v475_v62 = vadd.f32 %v474_v51, %v296_v43  ;;  %v321_v63 = vmul.f32 %v161_v45, %v161_v45  ;;  %v182_v20 = vld [vmem:[#allocation2 + $0x400] sm:$0xff]  ;;  %v183_v21 = vld [vmem:[#allocation2 + $0x408] sm:$0xff]  ;;  %v193_v24 = vld [vmem:[#allocation2 + $0x458] sm:$0xff] }
  0x3e   :  { %v312_v0 = vmul.f32 %v152_v48, %v152_v48  ;;  %447 = vadd.xlane.f32.xlu1 %v446_v37  ;;  %v494_v4 = vadd.f32 %v311_v58, %v310_v57  ;;  %v334_v5 = vmul.f32 %v174_v53, %v174_v53  ;;  %v335_v6 = vmul.f32 %v175_v54, %v175_v54  ;;  %v184_v27 = vld [vmem:[#allocation2 + $0x410] sm:$0xff]  ;;  %v66_v32 = vld [vmem:[#allocation2 + $0x60] sm:$0xff]  ;;  %v67_v33 = vld [vmem:[#allocation2 + $0x68] sm:$0xff] }
  0x3f   :  { %v505_v3 = vadd.f32 %v504_v55, %v320_v52  ;;  %v476_v10 = vadd.f32 %v475_v62, %v297_v44  ;;  %v313_v11 = vmul.f32 %v153_v56, %v153_v56  ;;  %v336_v12 = vmul.f32 %v176_v59, %v176_v59  ;;  %v185_v36 = vld [vmem:[#allocation2 + $0x418] sm:$0xff]  ;;  %v68_v39 = vld [vmem:[#allocation2 + $0x70] sm:$0xff]  ;;  %v58_v40 = vld [vmem:[#allocation2 + $0x20] sm:$0xff] }
  0x40   :  { %437 = vadd.xlane.f32.xlu0 %v436_v49  ;;  %v326_v14 = vmul.f32 %v166_v60, %v166_v60  ;;  %v495_v16 = vadd.f32 %v494_v4, %v312_v0  ;;  %v337_v17 = vmul.f32 %v177_v1, %v177_v1  ;;  %v524_v18 = vadd.f32 %v335_v6, %v334_v5  ;;  %v69_v44 = vld [vmem:[#allocation2 + $0x78] sm:$0xff]  ;;  %v59_v45 = vld [vmem:[#allocation2 + $0x28] sm:$0xff]  ;;  %v60_v50 = vld [vmem:[#allocation2 + $0x30] sm:$0xff] }
  0x41   :  { %v327_v19 = vmul.f32 %v167_v2, %v167_v2  ;;  %v506_v22 = vadd.f32 %v505_v3, %v321_v63  ;;  %v328_v23 = vmul.f32 %v168_v7, %v168_v7  ;;  %v350_v25 = vmul.f32 %v190_v8, %v190_v8  ;;  %v82_v51 = vld [vmem:[#allocation2 + $0xe0] sm:$0xff]  ;;  %v83_v52 = vld [vmem:[#allocation2 + $0xe8] sm:$0xff]  ;;  %v84_v57 = vld [vmem:[#allocation2 + $0xf0] sm:$0xff] }
  0x42   :  { %v351_v26 = vmul.f32 %v191_v9, %v191_v9  ;;  %487 = vadd.xlane.f32.xlu1 %v486_v61  ;;  %v525_v28 = vadd.f32 %v524_v18, %v336_v12  ;;  %v329_v29 = vmul.f32 %v169_v13, %v169_v13  ;;  %v352_v31 = vmul.f32 %v192_v15, %v192_v15  ;;  %v61_v61 = vld [vmem:[#allocation2 + $0x38] sm:$0xff]  ;;  %v74_v63 = vld [vmem:[#allocation2 + $0xa0] sm:$0xff]  ;;  %v75_v0 = vld [vmem:[#allocation2 + $0xa8] sm:$0xff] }
  0x43   :  { %v514_v30 = vadd.f32 %v327_v19, %v326_v14  ;;  %v496_v34 = vadd.f32 %v495_v16, %v313_v11  ;;  %v342_v37 = vmul.f32 %v182_v20, %v182_v20  ;;  %v343_v38 = vmul.f32 %v183_v21, %v183_v21  ;;  %v85_v3 = vld [vmem:[#allocation2 + $0xf8] sm:$0xff]  ;;  %v76_v6 = vld [vmem:[#allocation2 + $0xb0] sm:$0xff]  ;;  %v98_v11 = vld [vmem:[#allocation2 + $0x160] sm:$0xff] }
  0x44   :  { %477 = vadd.xlane.f32.xlu0 %v476_v10  ;;  %v544_v35 = vadd.f32 %v351_v26, %v350_v25  ;;  %v353_v42 = vmul.f32 %v193_v24, %v193_v24  ;;  %v344_v43 = vmul.f32 %v184_v27, %v184_v27  ;;  %v226_v48 = vmul.f32 %v66_v32, %v66_v32  ;;  %v99_v12 = vld [vmem:[#allocation2 + $0x168] sm:$0xff]  ;;  %v90_v18 = vld [vmem:[#allocation2 + $0x120] sm:$0xff] }
  0x45   :  { %v515_v41 = vadd.f32 %v514_v30, %v328_v23  ;;  %v534_v47 = vadd.f32 %v343_v38, %v342_v37  ;;  %v227_v49 = vmul.f32 %v67_v33, %v67_v33  ;;  %v526_v53 = vadd.f32 %v525_v28, %v337_v17  ;;  %v100_v17 = vld [vmem:[#allocation2 + $0x170] sm:$0xff]  ;;  %v91_v24 = vld [vmem:[#allocation2 + $0x128] sm:$0xff]  ;;  %v114_v30 = vld [vmem:[#allocation2 + $0x1e0] sm:$0xff] }
  0x46   :  { %v545_v46 = vadd.f32 %v544_v35, %v352_v31  ;;  %507 = vadd.xlane.f32.xlu1 %v506_v22  ;;  %v345_v54 = vmul.f32 %v185_v36, %v185_v36  ;;  %v228_v55 = vmul.f32 %v68_v39, %v68_v39  ;;  %v218_v56 = vmul.f32 %v58_v40, %v58_v40  ;;  %v77_v22 = vld [vmem:[#allocation2 + $0xb8] sm:$0xff]  ;;  %v115_v31 = vld [vmem:[#allocation2 + $0x1e8] sm:$0xff] }
  0x47   :  { %v516_v58 = vadd.f32 %v515_v41, %v329_v29  ;;  %v535_v59 = vadd.f32 %v534_v47, %v344_v43  ;;  %v389_v60 = vadd.f32 %v227_v49, %v226_v48  ;;  %v219_v62 = vmul.f32 %v59_v45, %v59_v45  ;;  %v92_v29 = vld [vmem:[#allocation2 + $0x130] sm:$0xff]  ;;  %v101_v33 = vld [vmem:[#allocation2 + $0x178] sm:$0xff]  ;;  %v106_v41 = vld [vmem:[#allocation2 + $0x1a0] sm:$0xff] }
  0x48   :  { %497 = vadd.xlane.f32.xlu0 %v496_v34  ;;  %v229_v1 = vmul.f32 %v69_v44, %v69_v44  ;;  %v220_v2 = vmul.f32 %v60_v50, %v60_v50  ;;  %v242_v4 = vmul.f32 %v82_v51, %v82_v51  ;;  %v243_v5 = vmul.f32 %v83_v52, %v83_v52  ;;  %v93_v39 = vld [vmem:[#allocation2 + $0x138] sm:$0xff]  ;;  %v116_v45 = vld [vmem:[#allocation2 + $0x1f0] sm:$0xff]  ;;  %v146_v52 = vld [vmem:[#allocation2 + $0x2e0] sm:$0xff] }
  0x49   :  { %v546_v7 = vadd.f32 %v545_v46, %v353_v42  ;;  %v390_v8 = vadd.f32 %v389_v60, %v228_v55  ;;  %v379_v9 = vadd.f32 %v219_v62, %v218_v56  ;;  %v244_v10 = vmul.f32 %v84_v57, %v84_v57  ;;  %v107_v42 = vld [vmem:[#allocation2 + $0x1a8] sm:$0xff]  ;;  %v108_v51 = vld [vmem:[#allocation2 + $0x1b0] sm:$0xff]  ;;  %v117_v56 = vld [vmem:[#allocation2 + $0x1f8] sm:$0xff] }
  0x4a   :  { %527 = vadd.xlane.f32.xlu1 %v526_v53  ;;  %v221_v13 = vmul.f32 %v61_v61, %v61_v61  ;;  %v409_v14 = vadd.f32 %v243_v5, %v242_v4  ;;  %v234_v15 = vmul.f32 %v74_v63, %v74_v63  ;;  %v235_v16 = vmul.f32 %v75_v0, %v75_v0  ;;  %v147_v53 = vld [vmem:[#allocation2 + $0x2e8] sm:$0xff]  ;;  %v138_v60 = vld [vmem:[#allocation2 + $0x2a0] sm:$0xff] }
  0x4b   :  { %v536_v19 = vadd.f32 %v535_v59, %v345_v54  ;;  %v380_v20 = vadd.f32 %v379_v9, %v220_v2  ;;  %v245_v21 = vmul.f32 %v85_v3, %v85_v3  ;;  %v236_v23 = vmul.f32 %v76_v6, %v76_v6  ;;  %v148_v59 = vld [vmem:[#allocation2 + $0x2f0] sm:$0xff]  ;;  %v139_v2 = vld [vmem:[#allocation2 + $0x2a8] sm:$0xff] }
  0x4c   :  { %517 = vadd.xlane.f32.xlu0 %v516_v58  ;;  %v410_v25 = vadd.f32 %v409_v14, %v244_v10  ;;  %v399_v26 = vadd.f32 %v235_v16, %v234_v15  ;;  %v258_v27 = vmul.f32 %v98_v11, %v98_v11  ;;  %v259_v28 = vmul.f32 %v99_v12, %v99_v12  ;;  %v140_v3 = vld [vmem:[#allocation2 + $0x2b0] sm:$0xff]  ;;  %v163_v9 = vld [vmem:[#allocation2 + $0x368] sm:$0xff]  ;;  %v1687_v10 = vld [vmem:[#allocation5 + $0xf8] sm:$0xff] }
  0x4d   :  { %v391_v32 = vadd.f32 %v390_v8, %v229_v1  ;;  %v260_v34 = vmul.f32 %v100_v17, %v100_v17  ;;  %v250_v35 = vmul.f32 %v90_v18, %v90_v18  ;;  %v237_v36 = vmul.f32 %v77_v22, %v77_v22  ;;  %v109_v1 = vld [vmem:[#allocation2 + $0x1b8] sm:$0xff]  ;;  %v162_v8 = vld [vmem:[#allocation2 + $0x360] sm:$0xff]  ;;  %4884 = vmatprep.subr.mxu0 %v1687_v10  ;;  %v155_v22 = vld [vmem:[#allocation2 + $0x328] sm:$0xff] }
  0x4e   :  { %547 = vadd.xlane.f32.xlu1 %v546_v7  ;;  %v400_v37 = vadd.f32 %v399_v26, %v236_v23  ;;  %v429_v38 = vadd.f32 %v259_v28, %v258_v27  ;;  %v251_v40 = vmul.f32 %v91_v24, %v91_v24  ;;  %v381_v43 = vadd.f32 %v380_v20, %v221_v13  ;;  %v149_v12 = vld [vmem:[#allocation2 + $0x2f8] sm:$0xff]  ;;  %v164_v26 = vld [vmem:[#allocation2 + $0x370] sm:$0xff] }
  0x4f   :  { %v252_v44 = vmul.f32 %v92_v29, %v92_v29  ;;  %v274_v46 = vmul.f32 %v114_v30, %v114_v30  ;;  %v275_v47 = vmul.f32 %v115_v31, %v115_v31  ;;  %v411_v48 = vadd.f32 %v410_v25, %v245_v21  ;;  %v141_v14 = vld [vmem:[#allocation2 + $0x2b8] sm:$0xff]  ;;  %v154_v21 = vld [vmem:[#allocation2 + $0x320] sm:$0xff]  ;;  %v156_v29 = vld [vmem:[#allocation2 + $0x330] sm:$0xff] }
  0x50   :  { %537 = vadd.xlane.f32.xlu0 %v536_v19  ;;  %v261_v49 = vmul.f32 %v101_v33, %v101_v33  ;;  %v419_v50 = vadd.f32 %v251_v40, %v250_v35  ;;  %v430_v54 = vadd.f32 %v429_v38, %v260_v34  ;;  %v253_v55 = vmul.f32 %v93_v39, %v93_v39  ;;  %v1671_v16 = vld [vmem:[#allocation5 + $0x78] sm:$0xff]  ;;  %v1686_v30 = vld [vmem:[#allocation5 + $0xf0] sm:$0xff]  ;;  %v178_v35 = vld [vmem:[#allocation2 + $0x3e0] sm:$0xff] }
  0x51   :  { %v266_v57 = vmul.f32 %v106_v41, %v106_v41  ;;  %v267_v58 = vmul.f32 %v107_v42, %v107_v42  ;;  %v401_v61 = vadd.f32 %v400_v37, %v237_v36  ;;  %v276_v63 = vmul.f32 %v116_v45, %v116_v45  ;;  %4885 = vmatpush3.msra.mxu0 %v1671_v16  ;;  %v1719_v23 = vld [vmem:[#allocation5 + $0x1f8] sm:$0xff]  ;;  %v179_v36 = vld [vmem:[#allocation2 + $0x3e8] sm:$0xff]  ;;  %v170_v41 = vld [vmem:[#allocation2 + $0x3a0] sm:$0xff] }
  0x52   :  { %392 = vadd.xlane.f32.xlu1 %v391_v32  ;;  %v420_v62 = vadd.f32 %v419_v50, %v252_v44  ;;  %v449_v0 = vadd.f32 %v275_v47, %v274_v46  ;;  %v268_v4 = vmul.f32 %v108_v51, %v108_v51  ;;  %v306_v6 = vmul.f32 %v146_v52, %v146_v52  ;;  %v171_v47 = vld [vmem:[#allocation2 + $0x3a8] sm:$0xff]  ;;  %v157_v50 = vld [vmem:[#allocation2 + $0x338] sm:$0xff] }
  0x53   :  { %v439_v5 = vadd.f32 %v267_v58, %v266_v57  ;;  %v307_v7 = vmul.f32 %v147_v53, %v147_v53  ;;  %v277_v11 = vmul.f32 %v117_v56, %v117_v56  ;;  %v308_v13 = vmul.f32 %v148_v59, %v148_v59  ;;  %4964 = vmatprep.subr.mxu1 %v1719_v23  ;;  %v180_v56 = vld [vmem:[#allocation2 + $0x3f0] sm:$0xff]  ;;  %v194_v58 = vld [vmem:[#allocation2 + $0x460] sm:$0xff]  ;;  %v195_v59 = vld [vmem:[#allocation2 + $0x468] sm:$0xff] }
  0x54   :  { %382 = vadd.xlane.f32.xlu0 %v381_v43  ;;  %v298_v15 = vmul.f32 %v138_v60, %v138_v60  ;;  %v431_v17 = vadd.f32 %v430_v54, %v261_v49  ;;  %v269_v18 = vmul.f32 %v109_v1, %v109_v1  ;;  %v299_v20 = vmul.f32 %v139_v2, %v139_v2  ;;  %v165_v43 = vld [vmem:[#allocation2 + $0x378] sm:$0xff]  ;;  %v1670_v54 = vld [vmem:[#allocation5 + $0x70] sm:$0xff]  ;;  %v187_v1 = vld [vmem:[#allocation2 + $0x428] sm:$0xff] }
  0x55   :  { %v489_v19 = vadd.f32 %v307_v7, %v306_v6  ;;  %v450_v24 = vadd.f32 %v449_v0, %v276_v63  ;;  %v300_v25 = vmul.f32 %v140_v3, %v140_v3  ;;  %v322_v27 = vmul.f32 %v162_v8, %v162_v8  ;;  %4886 = vmatprep.subr.mxu0 %v1686_v30  ;;  %v186_v0 = vld [vmem:[#allocation2 + $0x420] sm:$0xff]  ;;  %v181_v6 = vld [vmem:[#allocation2 + $0x3f8] sm:$0xff]  ;;  %v1718_v7 = vld [vmem:[#allocation5 + $0x1f0] sm:$0xff] }
  0x56   :  { %412 = vadd.xlane.f32.xlu1 %v411_v48  ;;  %v323_v28 = vmul.f32 %v163_v9, %v163_v9  ;;  %v421_v31 = vadd.f32 %v420_v62, %v253_v55  ;;  %v440_v32 = vadd.f32 %v439_v5, %v268_v4  ;;  %v309_v33 = vmul.f32 %v149_v12, %v149_v12  ;;  %v1703_v48 = vld [vmem:[#allocation5 + $0x178] sm:$0xff]  ;;  %v172_v62 = vld [vmem:[#allocation2 + $0x3b0] sm:$0xff]  ;;  %v1717_v23 = vld [vmem:[#allocation5 + $0x1e8] sm:$0xff] }
  0x57   :  { %v479_v34 = vadd.f32 %v299_v20, %v298_v15  ;;  %v490_v37 = vadd.f32 %v489_v19, %v308_v13  ;;  %v301_v38 = vmul.f32 %v141_v14, %v141_v14  ;;  %v314_v39 = vmul.f32 %v154_v21, %v154_v21  ;;  %4965 = vmatpush3.msra.mxu1 %v1703_v48  ;;  %v173_v10 = vld [vmem:[#allocation2 + $0x3b8] sm:$0xff]  ;;  %v1685_v13 = vld [vmem:[#allocation5 + $0xe8] sm:$0xff]  ;;  %v1702_v14 = vld [vmem:[#allocation5 + $0x170] sm:$0xff] }
  0x58   :  { %402 = vadd.xlane.f32.xlu0 %v401_v61  ;;  %v315_v40 = vmul.f32 %v155_v22, %v155_v22  ;;  %v324_v44 = vmul.f32 %v164_v26, %v164_v26  ;;  %v509_v45 = vadd.f32 %v323_v28, %v322_v27  ;;  %v316_v46 = vmul.f32 %v156_v29, %v156_v29  ;;  %v1669_v20 = vld [vmem:[#allocation5 + $0x68] sm:$0xff]  ;;  %v188_v22 = vld [vmem:[#allocation2 + $0x430] sm:$0xff]  ;;  %v1684_v27 = vld [vmem:[#allocation5 + $0xe0] sm:$0xff] }
  0x59   :  { %v480_v42 = vadd.f32 %v479_v34, %v300_v25  ;;  %v451_v49 = vadd.f32 %v450_v24, %v277_v11  ;;  %v338_v52 = vmul.f32 %v178_v35, %v178_v35  ;;  %v339_v53 = vmul.f32 %v179_v36, %v179_v36  ;;  %4887 = vmatpush3.msra.mxu0 %v1670_v54  ;;  %v1701_v28 = vld [vmem:[#allocation5 + $0x168] sm:$0xff]  ;;  %v197_v35 = vld [vmem:[#allocation2 + $0x478] sm:$0xff]  ;;  %v1698_v54 = vld [vmem:[#allocation5 + $0x150] sm:$0xff] }
  0x5a   :  { %432 = vadd.xlane.f32.xlu1 %v431_v17  ;;  %v499_v51 = vadd.f32 %v315_v40, %v314_v39  ;;  %v441_v55 = vadd.f32 %v440_v32, %v269_v18  ;;  %v330_v57 = vmul.f32 %v170_v41, %v170_v41  ;;  %v491_v60 = vadd.f32 %v490_v37, %v309_v33  ;;  %v196_v17 = vld [vmem:[#allocation2 + $0x470] sm:$0xff]  ;;  %v1668_v32 = vld [vmem:[#allocation5 + $0x60] sm:$0xff]  ;;  %v189_v39 = vld [vmem:[#allocation2 + $0x438] sm:$0xff] }
  0x5b   :  { %v325_v61 = vmul.f32 %v165_v43, %v165_v43  ;;  %v331_v63 = vmul.f32 %v171_v47, %v171_v47  ;;  %v481_v2 = vadd.f32 %v480_v42, %v301_v38  ;;  %v510_v3 = vadd.f32 %v509_v45, %v324_v44  ;;  %4966 = vmatprep.subr.mxu1 %v1718_v7  ;;  %v1716_v33 = vld [vmem:[#allocation5 + $0x1e0] sm:$0xff]  ;;  %v1683_v38 = vld [vmem:[#allocation5 + $0xd8] sm:$0xff]  ;;  %v1677_v7 = vld [vmem:[#allocation5 + $0xa8] sm:$0xff] }
  0x5c   :  { %422 = vadd.xlane.f32.xlu0 %v421_v31  ;;  %v317_v4 = vmul.f32 %v157_v50, %v157_v50  ;;  %v500_v5 = vadd.f32 %v499_v51, %v316_v46  ;;  %v340_v8 = vmul.f32 %v180_v56, %v180_v56  ;;  %v529_v9 = vadd.f32 %v339_v53, %v338_v52  ;;  %v1700_v40 = vld [vmem:[#allocation5 + $0x160] sm:$0xff]  ;;  %v1667_v41 = vld [vmem:[#allocation5 + $0x58] sm:$0xff]  ;;  %v1682_v46 = vld [vmem:[#allocation5 + $0xd0] sm:$0xff] }
  0x5d   :  { %v354_v11 = vmul.f32 %v194_v58, %v194_v58  ;;  %v355_v12 = vmul.f32 %v195_v59, %v195_v59  ;;  %v332_v15 = vmul.f32 %v172_v62, %v172_v62  ;;  %v519_v16 = vadd.f32 %v331_v63, %v330_v57  ;;  %4888 = vmatprep.subr.mxu0 %v1685_v13  ;;  %v1715_v42 = vld [vmem:[#allocation5 + $0x1d8] sm:$0xff]  ;;  %v1666_v51 = vld [vmem:[#allocation5 + $0x50] sm:$0xff]  ;;  %v1681_v53 = vld [vmem:[#allocation5 + $0xc8] sm:$0xff] }
  0x5e   :  { %452 = vadd.xlane.f32.xlu1 %v451_v49  ;;  %v346_v18 = vmul.f32 %v186_v0, %v186_v0  ;;  %v347_v19 = vmul.f32 %v187_v1, %v187_v1  ;;  %v341_v21 = vmul.f32 %v181_v6, %v181_v6  ;;  %v511_v24 = vadd.f32 %v510_v3, %v325_v61  ;;  %v1699_v47 = vld [vmem:[#allocation5 + $0x158] sm:$0xff]  ;;  %v1714_v52 = vld [vmem:[#allocation5 + $0x1d0] sm:$0xff]  ;;  %v1665_v56 = vld [vmem:[#allocation5 + $0x48] sm:$0xff] }
  0x5f   :  { %v501_v25 = vadd.f32 %v500_v5, %v317_v4  ;;  %v333_v26 = vmul.f32 %v173_v10, %v173_v10  ;;  %4967 = vmatpush3.msra.mxu1 %v1702_v14  ;;  %v530_v29 = vadd.f32 %v529_v9, %v340_v8  ;;  %v356_v30 = vmul.f32 %v196_v17, %v196_v17  ;;  %v1713_v57 = vld [vmem:[#allocation5 + $0x1c8] sm:$0xff]  ;;  %v1680_v59 = vld [vmem:[#allocation5 + $0xc0] sm:$0xff]  ;;  %v1679_v63 = vld [vmem:[#allocation5 + $0xb8] sm:$0xff] }
  0x60   :  { %442 = vadd.xlane.f32.xlu0 %v441_v55  ;;  %v549_v31 = vadd.f32 %v355_v12, %v354_v11  ;;  %4889 = vmatpush3.msra.mxu0 %v1669_v20  ;;  %v520_v34 = vadd.f32 %v519_v16, %v332_v15  ;;  %v348_v36 = vmul.f32 %v188_v22, %v188_v22  ;;  %v1664_v61 = vld [vmem:[#allocation5 + $0x40] sm:$0xff]  ;;  %v1663_v1 = vld [vmem:[#allocation5 + $0x38] sm:$0xff]  ;;  %v1678_v3 = vld [vmem:[#allocation5 + $0xb0] sm:$0xff] }
  0x61   :  { %v539_v37 = vadd.f32 %v347_v19, %v346_v18  ;;  %4968 = vmatprep.subr.mxu1 %v1717_v23  ;;  %4890 = vmatprep.subr.mxu0 %v1684_v27  ;;  %v531_v43 = vadd.f32 %v530_v29, %v341_v21  ;;  %v357_v44 = vmul.f32 %v197_v35, %v197_v35  ;;  %v1712_v62 = vld [vmem:[#allocation5 + $0x1c0] sm:$0xff]  ;;  %v1695_v4 = vld [vmem:[#allocation5 + $0x138] sm:$0xff]  ;;  %v1662_v5 = vld [vmem:[#allocation5 + $0x30] sm:$0xff] }
  0x62   :  { %492 = vadd.xlane.f32.xlu1 %v491_v60  ;;  %4969 = vmatpush3.msra.mxu1 %v1701_v28  ;;  %v550_v45 = vadd.f32 %v549_v31, %v356_v30  ;;  %v521_v48 = vadd.f32 %v520_v34, %v333_v26  ;;  %v349_v49 = vmul.f32 %v189_v39, %v189_v39  ;;  %v1697_v60 = vld [vmem:[#allocation5 + $0x148] sm:$0xff]  ;;  %v1696_v0 = vld [vmem:[#allocation5 + $0x140] sm:$0xff]  ;;  %v1710_v6 = vld [vmem:[#allocation5 + $0x1b0] sm:$0xff] }
  0x63   :  { %4891 = vmatpush3.msra.mxu0 %v1668_v32  ;;  %4970 = vmatprep.subr.mxu1 %v1716_v33  ;;  %v540_v50 = vadd.f32 %v539_v37, %v348_v36  ;;  %v1694_v8 = vld [vmem:[#allocation5 + $0x130] sm:$0xff]  ;;  %v1661_v9 = vld [vmem:[#allocation5 + $0x28] sm:$0xff]  ;;  %v1676_v11 = vld [vmem:[#allocation5 + $0xa0] sm:$0xff] }
  0x64   :  { %482 = vadd.xlane.f32.xlu0 %v481_v2  ;;  %4892 = vmatprep.subr.mxu0 %v1683_v38  ;;  %v551_v55 = vadd.f32 %v550_v45, %v357_v44  ;;  %v1711_v2 = vld [vmem:[#allocation5 + $0x1b8] sm:$0xff]  ;;  %v1709_v10 = vld [vmem:[#allocation5 + $0x1a8] sm:$0xff]  ;;  %v1660_v13 = vld [vmem:[#allocation5 + $0x20] sm:$0xff] }
  0x65   :  { %4971 = vmatpush3.msra.mxu1 %v1700_v40  ;;  %4893 = vmatpush3.msra.mxu0 %v1667_v41  ;;  %v541_v58 = vadd.f32 %v540_v50, %v349_v49  ;;  %v1693_v12 = vld [vmem:[#allocation5 + $0x128] sm:$0xff]  ;;  %v1708_v14 = vld [vmem:[#allocation5 + $0x1a0] sm:$0xff]  ;;  %v1675_v15 = vld [vmem:[#allocation5 + $0x98] sm:$0xff] }
  0x66   :  { %512 = vadd.xlane.f32.xlu1 %v511_v24  ;;  %4972 = vmatprep.subr.mxu1 %v1715_v42  ;;  %v1692_v16 = vld [vmem:[#allocation5 + $0x120] sm:$0xff]  ;;  %v1659_v17 = vld [vmem:[#allocation5 + $0x18] sm:$0xff]  ;;  %v1674_v19 = vld [vmem:[#allocation5 + $0x90] sm:$0xff] }
  0x67   :  { %4894 = vmatprep.subr.mxu0 %v1682_v46  ;;  %4973 = vmatpush3.msra.mxu1 %v1699_v47  ;;  %v1707_v18 = vld [vmem:[#allocation5 + $0x198] sm:$0xff]  ;;  %v1658_v21 = vld [vmem:[#allocation5 + $0x10] sm:$0xff]  ;;  %v1673_v23 = vld [vmem:[#allocation5 + $0x88] sm:$0xff] }
  0x68   :  { %502 = vadd.xlane.f32.xlu0 %v501_v25  ;;  %4895 = vmatpush3.msra.mxu0 %v1666_v51  ;;  %v1691_v20 = vld [vmem:[#allocation5 + $0x118] sm:$0xff]  ;;  %v1706_v22 = vld [vmem:[#allocation5 + $0x190] sm:$0xff]  ;;  %v1657_v25 = vld [vmem:[#allocation5 + $0x8] sm:$0xff] }
  0x69   :  { %4974 = vmatprep.subr.mxu1 %v1714_v52  ;;  %4896 = vmatprep.subr.mxu0 %v1681_v53  ;;  %v1690_v24 = vld [vmem:[#allocation5 + $0x110] sm:$0xff]  ;;  %v1705_v26 = vld [vmem:[#allocation5 + $0x188] sm:$0xff]  ;;  %v1672_v27 = vld [vmem:[#allocation5 + $0x80] sm:$0xff] }
  0x6a   :  { %532 = vadd.xlane.f32.xlu1 %v531_v43  ;;  %4975 = vmatpush3.msra.mxu1 %v1698_v54  ;;  %v1689_v28 = vld [vmem:[#allocation5 + $0x108] sm:$0xff]  ;;  %v1656_v29 = vld [vmem:[#allocation5] sm:$0xff]  ;;  %v1751_v32 = vld [vmem:[#allocation5 + $0x2f8] sm:$0xff] }
  0x6b   :  { %4897 = vmatpush3.msra.mxu0 %v1665_v56  ;;  %4976 = vmatprep.subr.mxu1 %v1713_v57  ;;  %v1704_v30 = vld [vmem:[#allocation5 + $0x180] sm:$0xff]  ;;  %v1783_v33 = vld [vmem:[#allocation5 + $0x3f8] sm:$0xff]  ;;  %v119_v35 = vld [vmem:[#allocation2 + $0x208] sm:$0xff] }
  0x6c   :  { %522 = vadd.xlane.f32.xlu0 %v521_v48  ;;  %4898 = vmatprep.subr.mxu0 %v1680_v59  ;;  %v1688_v31 = vld [vmem:[#allocation5 + $0x100] sm:$0xff]  ;;  %v279_v37 = vmul.f32 %v119_v35, %v119_v35  ;;  %v120_v38 = vld [vmem:[#allocation2 + $0x210] sm:$0xff]  ;;  %v121_v41 = vld [vmem:[#allocation2 + $0x218] sm:$0xff] }
  0x6d   :  { %4977 = vmatpush3.msra.mxu1 %v1697_v60  ;;  %4899 = vmatpush3.msra.mxu0 %v1664_v61  ;;  %v118_v34 = vld [vmem:[#allocation2 + $0x200] sm:$0xff]  ;;  %v280_v39 = vmul.f32 %v120_v38, %v120_v38  ;;  %v281_v42 = vmul.f32 %v121_v41, %v121_v41  ;;  %v123_v47 = vld [vmem:[#allocation2 + $0x228] sm:$0xff]  ;;  %v124_v48 = vld [vmem:[#allocation2 + $0x230] sm:$0xff] }
  0x6e   :  { %552 = vadd.xlane.f32.xlu1 %v551_v55  ;;  %4978 = vmatprep.subr.mxu1 %v1712_v62  ;;  %v278_v36 = vmul.f32 %v118_v34, %v118_v34  ;;  %v122_v45 = vld [vmem:[#allocation2 + $0x220] sm:$0xff]  ;;  %v125_v49 = vld [vmem:[#allocation2 + $0x238] sm:$0xff]  ;;  %v283_v50 = vmul.f32 %v123_v47, %v123_v47  ;;  %v284_v51 = vmul.f32 %v124_v48, %v124_v48  ;;  %v199_v57 = vld [vmem:[#allocation2 + $0x488] sm:$0xff] }
  0x6f   :  { %4900 = vmatprep.subr.mxu0 %v1679_v63  ;;  %4979 = vmatpush3.msra.mxu1 %v1696_v0  ;;  %v282_v46 = vmul.f32 %v122_v45, %v122_v45  ;;  %v285_v52 = vmul.f32 %v125_v49, %v125_v49  ;;  %v198_v56 = vld [vmem:[#allocation2 + $0x480] sm:$0xff]  ;;  %v201_v59 = vld [vmem:[#allocation2 + $0x498] sm:$0xff]  ;;  %v359_v61 = vmul.f32 %v199_v57, %v199_v57  ;;  %v6415_v45 = vld [vmem:[#allocation2 + $0x10] sm:$0xff] }
  0x70   :  { %542 = vadd.xlane.f32.xlu0 %v541_v58  ;;  %4901 = vmatpush3.msra.mxu0 %v1663_v1  ;;  %v454_v40 = vadd.f32 %v279_v37, %v278_v36  ;;  %v200_v58 = vld [vmem:[#allocation2 + $0x490] sm:$0xff]  ;;  %v358_v60 = vmul.f32 %v198_v56, %v198_v56  ;;  %v361_v63 = vmul.f32 %v201_v59, %v201_v59  ;;  %v202_v1 = vld [vmem:[#allocation2 + $0x4a0] sm:$0xff]  ;;  %v6412_v36 = vld [vmem:[#allocation2 + $0x8] sm:$0xff] }
  0x71   :  { %4980 = vmatprep.subr.mxu1 %v1711_v2  ;;  %4902 = vmatprep.subr.mxu0 %v1678_v3  ;;  %v459_v53 = vadd.f32 %v283_v50, %v282_v46  ;;  %v360_v62 = vmul.f32 %v200_v58, %v200_v58  ;;  %v203_v2 = vld [vmem:[#allocation2 + $0x4a8] sm:$0xff]  ;;  %v204_v3 = vld [vmem:[#allocation2 + $0x4b0] sm:$0xff]  ;;  %v6413_v38 = vld [vmem:[#allocation2 + $0x18] sm:$0xff] }
  0x72   :  { %4981 = vmatpush3.msra.mxu1 %v1695_v4  ;;  %4903 = vmatpush3.msra.mxu0 %v1662_v5  ;;  %v455_v43 = vadd.f32 %v454_v40, %v280_v39  ;;  %v554_v0 = vadd.f32 %v359_v61, %v358_v60  ;;  %v205_v5 = vld [vmem:[#allocation2 + $0x4b8] sm:$0xff]  ;;  %v6414_v40 = vld [vmem:[#allocation2] sm:$0xff] }
  0x73   :  { %4982 = vmatprep.subr.mxu1 %v1710_v6  ;;  %4904 = vmatprep.subr.mxu0 %v1677_v7  ;;  %v460_v54 = vadd.f32 %v459_v53, %v284_v51  ;;  %v362_v6 = vmul.f32 %v202_v1, %v202_v1  ;;  %v363_v7 = vmul.f32 %v203_v2, %v203_v2  ;;  %v1735_v47 = vld [vmem:[#allocation5 + $0x278] sm:$0xff]  ;;  %v1750_v51 = vld [vmem:[#allocation5 + $0x2f0] sm:$0xff]  ;;  %v6418_v58 = vld [vmem:[#allocation2 + $0x40] sm:$0xff] }
  0x74   :  { %4983 = vmatpush3.msra.mxu1 %v1694_v8  ;;  %4905 = vmatpush3.msra.mxu0 %v1661_v9  ;;  %v456_v44 = vadd.f32 %v455_v43, %v281_v42  ;;  %v555_v4 = vadd.f32 %v554_v0, %v360_v62  ;;  %v364_v8 = vmul.f32 %v204_v3, %v204_v3  ;;  %v1767_v48 = vld [vmem:[#allocation5 + $0x378] sm:$0xff]  ;;  %v6419_v62 = vld [vmem:[#allocation2 + $0x50] sm:$0xff]  ;;  %v6420_v2 = vld [vmem:[#allocation2 + $0x88] sm:$0xff] }
  0x75   :  { %4984 = vmatprep.subr.mxu1 %v1709_v10  ;;  %4906 = vmatprep.subr.mxu0 %v1676_v11  ;;  %v461_v55 = vadd.f32 %v460_v54, %v285_v52  ;;  %v365_v10 = vmul.f32 %v205_v5, %v205_v5  ;;  %v559_v11 = vadd.f32 %v363_v7, %v362_v6  ;;  %v1782_v52 = vld [vmem:[#allocation5 + $0x3f0] sm:$0xff]  ;;  %v6416_v54 = vld [vmem:[#allocation2 + $0x48] sm:$0xff]  ;;  %v6417_v56 = vld [vmem:[#allocation2 + $0x58] sm:$0xff] }
  0x76   :  { %4985 = vmatpush3.msra.mxu1 %v1693_v12  ;;  %4907 = vmatpush3.msra.mxu0 %v1660_v13  ;;  %v556_v9 = vadd.f32 %v555_v4, %v361_v63  ;;  %v1734_v0 = vld [vmem:[#allocation5 + $0x270] sm:$0xff]  ;;  %v6421_v4 = vld [vmem:[#allocation2 + $0x98] sm:$0xff] }
  0x77   :  { %4986 = vmatprep.subr.mxu1 %v1708_v14  ;;  %4908 = vmatprep.subr.mxu0 %v1675_v15  ;;  %v560_v12 = vadd.f32 %v559_v11, %v364_v8  ;;  %v1766_v1 = vld [vmem:[#allocation5 + $0x370] sm:$0xff]  ;;  %v1749_v8 = vld [vmem:[#allocation5 + $0x2e8] sm:$0xff] }
  0x78   :  { %4987 = vmatpush3.msra.mxu1 %v1692_v16  ;;  %4909 = vmatpush3.msra.mxu0 %v1659_v17  ;;  %v6423_v11 = vld [vmem:[#allocation2 + $0x90] sm:$0xff] }
  0x79   :  { %4988 = vmatprep.subr.mxu1 %v1707_v18  ;;  %4910 = vmatprep.subr.mxu0 %v1674_v19  ;;  %v561_v13 = vadd.f32 %v560_v12, %v365_v10 }
  0x7a   :  { %4989 = vmatpush3.msra.mxu1 %v1691_v20  ;;  %4911 = vmatpush3.msra.mxu0 %v1658_v21 }
  0x7b   :  { %4990 = vmatprep.subr.mxu1 %v1706_v22  ;;  %4912 = vmatprep.subr.mxu0 %v1673_v23 }
  0x7c   :  { %4991 = vmatpush3.msra.mxu1 %v1690_v24  ;;  %4913 = vmatpush3.msra.mxu0 %v1657_v25 }
  0x7d   :  { %4992 = vmatprep.subr.mxu1 %v1705_v26  ;;  %4914 = vmatprep.subr.mxu0 %v1672_v27 }
  0x7e   :  { %4993 = vmatpush3.msra.mxu1 %v1689_v28  ;;  %4915 = vmatpush3.msra.mxu0 %v1656_v29 }
  0x7f   :  { %4994 = vmatprep.subr.mxu1 %v1704_v30  ;;  %5044 = vmatprep.subr.mxu0 %v1751_v32 }
  0x80   :  { %4995 = vmatpush3.msra.mxu1 %v1688_v31  ;;  %457 = vadd.xlane.f32.xlu0 %v456_v44 }
  0x81   :  { %5124 = vmatprep.subr.mxu1 %v1783_v33  ;;  %557 = vadd.xlane.f32.xlu1 %v556_v9  ;;  %v6422_v9 = vld [vmem:[#allocation2 + $0x80] sm:$0xff] }
  0x84   :  { %462 = vadd.xlane.f32.xlu0 %v461_v55 }
  0x85   :  { %562 = vadd.xlane.f32.xlu1 %v561_v13  ;;  %v1781_v13 = vld [vmem:[#allocation5 + $0x3e8] sm:$0xff] }
  0xbb   :  { %v398_v14 = vpop.xlane.xlu1 %397 }
  0xbc   :  { %v578_v15 = vmax.f32 %v398_v14, 1e-24 }
  0xbd   :  { %v378_v16 = vpop.xlane.xlu0 %377 }
  0xbe   :  { %v574_v17 = vmax.f32 %v378_v16, 1e-24  ;;  %v1733_v16 = vld [vmem:[#allocation5 + $0x268] sm:$0xff] }
  0xbf   :  { %v408_v18 = vpop.xlane.xlu1 %407 }
  0xc0   :  { %6332 = vrsqrt.f32 %v574_v17  ;;  %v580_v19 = vmax.f32 %v408_v18, 1e-24  ;;  %v1765_v17 = vld [vmem:[#allocation5 + $0x368] sm:$0xff] }
  0xc1   :  { %6334 = vrsqrt.f32 %v578_v15  ;;  %v388_v20 = vpop.xlane.xlu0 %387  ;;  %v6424_v18 = vld [vmem:[#allocation2 + $0xc8] sm:$0xff] }
  0xc2   :  { %v576_v21 = vmax.f32 %v388_v20, 1e-24  ;;  %v6425_v20 = vld [vmem:[#allocation2 + $0xd8] sm:$0xff] }
  0xc3   :  { %v428_v22 = vpop.xlane.xlu1 %427 }
  0xc4   :  { %6336 = vrsqrt.f32 %v576_v21  ;;  %v584_v26 = vmax.f32 %v428_v22, 1e-24 }
  0xc5   :  { %6338 = vrsqrt.f32 %v580_v19  ;;  %v418_v23 = vpop.xlane.xlu0 %417 }
  0xc6   :  { %v582_v24 = vmax.f32 %v418_v23, 1e-24 }
  0xc7   :  { %v448_v25 = vpop.xlane.xlu1 %447 }
  0xc8   :  { %6340 = vrsqrt.f32 %v582_v24  ;;  %v588_v34 = vmax.f32 %v448_v25, 1e-24  ;;  %v1748_v24 = vld [vmem:[#allocation5 + $0x2e0] sm:$0xff] }
  0xc9   :  { %v438_v27 = vpop.xlane.xlu0 %437  ;;  %6342 = vrsqrt.f32 %v584_v26  ;;  %v6426_v25 = vld [vmem:[#allocation2 + $0xc0] sm:$0xff] }
  0xca   :  { %v586_v30 = vmax.f32 %v438_v27, 1e-24  ;;  %v6427_v27 = vld [vmem:[#allocation2 + $0xd0] sm:$0xff] }
  0xcb   :  { %v6698_v28 = vpop.xlane.xlu1 %487 }
  0xcc   :  { %6344 = vrsqrt.f32 %v586_v30  ;;  %v596_v14 = vmax.f32 %v6698_v28, 1e-24 }
  0xcd   :  { %v6333_v29 = vpop.eup %6332  ;;  %v6700_v31 = vpop.xlane.xlu0 %477  ;;  %6346 = vrsqrt.f32 %v588_v34  ;;  %v1764_v34 = vld [vmem:[#allocation5 + $0x360] sm:$0xff] }
  0xce   :  { %v6335_v32 = vpop.eup %6334  ;;  %v654_v33 = vmul.f32 20.0, %v6333_v29  ;;  %v594_v53 = vmax.f32 %v6700_v31, 1e-24  ;;  %v1780_v29 = vld [vmem:[#allocation5 + $0x3e0] sm:$0xff] }
  0xcf   :  { %v6702_v35 = vpop.xlane.xlu1 %507  ;;  %v658_v43 = vmul.f32 20.0, %v6335_v32 }
  0xd0   :  { %v6704_v37 = vmul.f32 %v6412_v36, %v654_v33  ;;  %v6706_v39 = vmul.f32 %v6413_v38, %v654_v33  ;;  %v6708_v41 = vmul.f32 %v6414_v40, %v654_v33  ;;  %v6712_v46 = vmul.f32 %v6415_v45, %v654_v33  ;;  %v1732_v33 = vld [vmem:[#allocation5 + $0x260] sm:$0xff]  ;;  %v6428_v36 = vld [vmem:[#allocation2 + $0x108] sm:$0xff]  ;;  %v6429_v40 = vld [vmem:[#allocation2 + $0x118] sm:$0xff] }
  0xd1   :  { %v6337_v42 = vpop.eup %6336  ;;  %v6710_v44 = vpop.xlane.xlu0 %497  ;;  %v6729_v3 = vmul.f32 %v6420_v2, %v658_v43  ;;  %v6731_v5 = vmul.f32 %v6421_v4, %v658_v43  ;;  %v6739_v10 = vmul.f32 %v6422_v9, %v658_v43  ;;  %v6741_v12 = vmul.f32 %v6423_v11, %v658_v43  ;;  %v6430_v45 = vld [vmem:[#allocation2 + $0x100] sm:$0xff]  ;;  %v1778_v11 = vld [vmem:[#allocation5 + $0x3d0] sm:$0xff] }
  0xd2   :  { %9455 = vst [vmem:[#allocation12_spill] sm:$0xff] %v6704_v37  ;;  %9456 = vst [vmem:[#allocation13_spill] sm:$0xff] %v6706_v39  ;;  %v6339_v49 = vpop.eup %6338  ;;  %v656_v50 = vmul.f32 20.0, %v6337_v42  ;;  %2303 = vmatprep.mubr.f32.mxu0 %v6704_v37  ;;  %2448 = vmatprep.mubr.f32.mxu1 %v6706_v39  ;;  %6348 = vrsqrt.f32 %v594_v53  ;;  %v598_v32 = vmax.f32 %v6710_v44, 1e-24  ;;  %v1747_v44 = vld [vmem:[#allocation5 + $0x2d8] sm:$0xff] }
  0xd3   :  { %2304 = vmatmul.mubr.f32.vlgmr.msra.gmra.mxu0 %v6708_v41  ;;  %2449 = vmatmul.mubr.f32.vlgmr.msra.gmra.mxu1 %v6712_v46  ;;  %v660_v60 = vmul.f32 20.0, %v6339_v49  ;;  %v6725_v61 = vpop.xlane.xlu1 %527  ;;  %9458 = vst [vmem:[#allocation15_spill] sm:$0xff] %v6729_v3  ;;  %9459 = vst [vmem:[#allocation16_spill] sm:$0xff] %v6731_v5  ;;  %6350 = vrsqrt.f32 %v596_v14  ;;  %v6434_v4 = vld [vmem:[#allocation2 + $0x140] sm:$0xff] }
  0xd4   :  { %5045 = vmatpush3.msra.mxu0 %v1735_v47  ;;  %5125 = vmatpush3.msra.mxu1 %v1767_v48  ;;  %v6719_v55 = vmul.f32 %v6416_v54, %v656_v50  ;;  %v6721_v57 = vmul.f32 %v6417_v56, %v656_v50  ;;  %v6723_v59 = vmul.f32 %v6418_v58, %v656_v50  ;;  %v6431_v48 = vld [vmem:[#allocation2 + $0x110] sm:$0xff]  ;;  %6352 = vrsqrt.f32 %v598_v32  ;;  %v1731_v56 = vld [vmem:[#allocation5 + $0x258] sm:$0xff] }
  0xd5   :  { %5046 = vmatprep.subr.mxu0 %v1750_v51  ;;  %v6727_v63 = vmul.f32 %v6419_v62, %v656_v50  ;;  %5126 = vmatprep.subr.mxu1 %v1782_v52  ;;  %v6341_v6 = vpop.eup %6340  ;;  %v6733_v7 = vpop.xlane.xlu0 %517  ;;  %9460 = vst [vmem:[#allocation17_spill] sm:$0xff] %v6739_v10  ;;  %9461 = vst [vmem:[#allocation18_spill] sm:$0xff] %v6741_v12  ;;  %v6746_v19 = vmul.f32 %v6424_v18, %v660_v60  ;;  %v1779_v50 = vld [vmem:[#allocation5 + $0x3d8] sm:$0xff]  ;;  %v600_v52 = vmax.f32 %v6702_v35, 1e-24  ;;  %v1746_v35 = vld [vmem:[#allocation5 + $0x2d0] sm:$0xff] }
  0xd6   :  { %9457 = vst [vmem:[#allocation14_spill] sm:$0xff] %v6719_v55  ;;  %2308 = vmatprep.mubr.f32.mxu0 %v6719_v55  ;;  %2453 = vmatprep.mubr.f32.mxu1 %v6721_v57  ;;  %v662_v15 = vmul.f32 20.0, %v6341_v6  ;;  %v6748_v21 = vmul.f32 %v6425_v20, %v660_v60  ;;  %v6343_v22 = vpop.eup %6342  ;;  %v6754_v26 = vmul.f32 %v6426_v25, %v660_v60  ;;  %v1763_v58 = vld [vmem:[#allocation5 + $0x358] sm:$0xff]  ;;  %v602_v14 = vmax.f32 %v6733_v7, 1e-24  ;;  %v1745_v7 = vld [vmem:[#allocation5 + $0x2c8] sm:$0xff] }
  0xd7   :  { %2309 = vmatmul.mubr.f32.gmra.mxu0 %v6723_v59  ;;  %2454 = vmatmul.mubr.f32.gmra.mxu1 %v6727_v63  ;;  %9462 = vst [vmem:[#allocation19_spill] sm:$0xff] %v6746_v19  ;;  %v6750_v23 = vpop.xlane.xlu1 %547  ;;  %v6756_v28 = vmul.f32 %v6427_v27, %v660_v60  ;;  %v664_v31 = vmul.f32 20.0, %v6343_v22  ;;  %v6432_v60 = vld [vmem:[#allocation2 + $0x148] sm:$0xff]  ;;  %6354 = vrsqrt.f32 %v600_v52  ;;  %v6437_v20 = vld [vmem:[#allocation2 + $0x198] sm:$0xff]  ;;  %v6438_v27 = vld [vmem:[#allocation2 + $0x180] sm:$0xff] }
  0xd8   :  { %5047 = vmatpush3.msra.mxu0 %v1734_v0  ;;  %5127 = vmatpush3.msra.mxu1 %v1766_v1  ;;  %9463 = vst [vmem:[#allocation20_spill] sm:$0xff] %v6748_v21  ;;  %9464 = vst [vmem:[#allocation21_spill] sm:$0xff] %v6754_v26  ;;  %v6763_v38 = vmul.f32 %v6428_v36, %v662_v15  ;;  %v6765_v42 = vmul.f32 %v6429_v40, %v662_v15  ;;  %v6433_v0 = vld [vmem:[#allocation2 + $0x158] sm:$0xff]  ;;  %6356 = vrsqrt.f32 %v602_v14  ;;  %v1728_v14 = vld [vmem:[#allocation5 + $0x240] sm:$0xff] }
  0xd9   :  { %2313 = vmatprep.mubr.f32.mxu0 %v6729_v3  ;;  %2458 = vmatprep.mubr.f32.mxu1 %v6731_v5  ;;  %9465 = vst [vmem:[#allocation22_spill] sm:$0xff] %v6756_v28  ;;  %v6758_v30 = vpop.xlane.xlu0 %537  ;;  %v6345_v43 = vpop.eup %6344  ;;  %v6769_v47 = vmul.f32 %v6430_v45, %v662_v15  ;;  %v6771_v49 = vmul.f32 %v6431_v48, %v662_v15  ;;  %v1730_v15 = vld [vmem:[#allocation5 + $0x250] sm:$0xff]  ;;  %v1761_v45 = vld [vmem:[#allocation5 + $0x348] sm:$0xff] }
  0xda   :  { %5048 = vmatprep.subr.mxu0 %v1749_v8  ;;  %5128 = vmatprep.subr.mxu1 %v1781_v13  ;;  %9466 = vst [vmem:[#allocation23_spill] sm:$0xff] %v6763_v38  ;;  %9467 = vst [vmem:[#allocation24_spill] sm:$0xff] %v6765_v42  ;;  %v6347_v51 = vpop.eup %6346  ;;  %v666_v53 = vmul.f32 20.0, %v6345_v43  ;;  %v6778_v62 = vmul.f32 %v6432_v60, %v664_v31  ;;  %v6780_v1 = vmul.f32 %v6433_v0, %v664_v31  ;;  %v6435_v8 = vld [vmem:[#allocation2 + $0x150] sm:$0xff]  ;;  %v6440_v48 = vld [vmem:[#allocation2 + $0x1c8] sm:$0xff] }
  0xdb   :  { %2314 = vmatmul.mubr.f32.gmra.mxu0 %v6739_v10  ;;  %2459 = vmatmul.mubr.f32.gmra.mxu1 %v6741_v12  ;;  %9468 = vst [vmem:[#allocation25_spill] sm:$0xff] %v6769_v47  ;;  %9469 = vst [vmem:[#allocation26_spill] sm:$0xff] %v6771_v49  ;;  %v6774_v54 = vpop.xlane.xlu1 %392  ;;  %v6786_v6 = vmul.f32 %v6434_v4, %v664_v31  ;;  %v6788_v9 = vmul.f32 %v6435_v8, %v664_v31  ;;  %v668_v13 = vmul.f32 20.0, %v6347_v51  ;;  %v6439_v31 = vld [vmem:[#allocation2 + $0x190] sm:$0xff]  ;;  %v6441_v51 = vld [vmem:[#allocation2 + $0x1d8] sm:$0xff] }
  0xdc   :  { %5049 = vmatpush3.msra.mxu0 %v1733_v16  ;;  %5129 = vmatpush3.msra.mxu1 %v1765_v17  ;;  %9470 = vst [vmem:[#allocation27_spill] sm:$0xff] %v6778_v62  ;;  %9471 = vst [vmem:[#allocation28_spill] sm:$0xff] %v6780_v1  ;;  %v1762_v16 = vld [vmem:[#allocation5 + $0x350] sm:$0xff]  ;;  %v6436_v17 = vld [vmem:[#allocation2 + $0x188] sm:$0xff]  ;;  %v6795_v22 = vmul.f32 %v6437_v20, %v666_v53  ;;  %v6803_v32 = vmul.f32 %v6439_v31, %v666_v53 }
  0xdd   :  { %2318 = vmatprep.mubr.f32.mxu0 %v6746_v19  ;;  %2463 = vmatprep.mubr.f32.mxu1 %v6748_v21  ;;  %v6782_v2 = vpop.xlane.xlu0 %382  ;;  %9472 = vst [vmem:[#allocation29_spill] sm:$0xff] %v6786_v6  ;;  %9473 = vst [vmem:[#allocation30_spill] sm:$0xff] %v6788_v9  ;;  %v6793_v18 = vmul.f32 %v6436_v17, %v666_v53  ;;  %v6812_v52 = vmul.f32 %v6441_v51, %v668_v13  ;;  %v6443_v0 = vld [vmem:[#allocation2 + $0x1d0] sm:$0xff]  ;;  %v1776_v4 = vld [vmem:[#allocation5 + $0x3c0] sm:$0xff] }
  0xde   :  { %5050 = vmatprep.subr.mxu0 %v1748_v24  ;;  %5130 = vmatprep.subr.mxu1 %v1780_v29  ;;  %9475 = vst [vmem:[#allocation32_spill] sm:$0xff] %v6795_v22  ;;  %v6801_v29 = vmul.f32 %v6438_v27, %v666_v53  ;;  %9477 = vst [vmem:[#allocation34_spill] sm:$0xff] %v6803_v32  ;;  %v577_v53 = vmax.f32 %v6774_v54, 1e-24  ;;  %v575_v8 = vmax.f32 %v6782_v2, 1e-24 }
  0xdf   :  { %2319 = vmatmul.mubr.f32.gmra.mxu0 %v6754_v26  ;;  %2464 = vmatmul.mubr.f32.gmra.mxu1 %v6756_v28  ;;  %9474 = vst [vmem:[#allocation31_spill] sm:$0xff] %v6793_v18  ;;  %v6349_v24 = vpop.eup %6348  ;;  %v6797_v25 = vpop.xlane.xlu1 %412  ;;  %9479 = vst [vmem:[#allocation36_spill] sm:$0xff] %v6812_v52  ;;  %v606_v54 = vmax.f32 %v6758_v30, 1e-24  ;;  %v6445_v17 = vld [vmem:[#allocation2 + $0x298] sm:$0xff]  ;;  %v6447_v31 = vld [vmem:[#allocation2 + $0x290] sm:$0xff] }
  0xe0   :  { %5051 = vmatpush3.msra.mxu0 %v1732_v33  ;;  %5131 = vmatpush3.msra.mxu1 %v1764_v34  ;;  %9476 = vst [vmem:[#allocation33_spill] sm:$0xff] %v6801_v29  ;;  %v1777_v33 = vld [vmem:[#allocation5 + $0x3c8] sm:$0xff]  ;;  %v604_v34 = vmax.f32 %v6725_v61, 1e-24  ;;  %v6351_v40 = vpop.eup %6350  ;;  %v674_v43 = vmul.f32 20.0, %v6349_v24  ;;  %v1743_v30 = vld [vmem:[#allocation5 + $0x2b8] sm:$0xff] }
  0xe1   :  { %2323 = vmatprep.mubr.f32.mxu0 %v6763_v38  ;;  %2468 = vmatprep.mubr.f32.mxu1 %v6765_v42  ;;  %v6806_v36 = vpop.xlane.xlu0 %402  ;;  %v608_v61 = vmax.f32 %v6750_v23, 1e-24  ;;  %v676_v23 = vmul.f32 20.0, %v6351_v40  ;;  %v6353_v2 = vpop.eup %6352  ;;  %v6448_v51 = vld [vmem:[#allocation2 + $0x2c8] sm:$0xff] }
  0xe2   :  { %5052 = vmatprep.subr.mxu0 %v1747_v44  ;;  %5132 = vmatprep.subr.mxu1 %v1779_v50  ;;  %v1729_v44 = vld [vmem:[#allocation5 + $0x248] sm:$0xff]  ;;  %v6810_v50 = vmul.f32 %v6440_v48, %v668_v13  ;;  %6358 = vrsqrt.f32 %v604_v34  ;;  %v6830_v20 = vmul.f32 %v6445_v17, %v674_v43  ;;  %v1775_v34 = vld [vmem:[#allocation5 + $0x3b8] sm:$0xff]  ;;  %v579_v17 = vmax.f32 %v6806_v36, 1e-24 }
  0xe3   :  { %2324 = vmatmul.mubr.f32.gmra.mxu0 %v6769_v47  ;;  %2469 = vmatmul.mubr.f32.gmra.mxu1 %v6771_v49  ;;  %6360 = vrsqrt.f32 %v608_v61  ;;  %v1759_v48 = vld [vmem:[#allocation5 + $0x338] sm:$0xff]  ;;  %v6842_v61 = vmul.f32 %v6448_v51, %v676_v23  ;;  %v1741_v36 = vld [vmem:[#allocation5 + $0x2a8] sm:$0xff] }
  0xe4   :  { %5053 = vmatpush3.msra.mxu0 %v1731_v56  ;;  %5133 = vmatpush3.msra.mxu1 %v1763_v58  ;;  %9478 = vst [vmem:[#allocation35_spill] sm:$0xff] %v6810_v50  ;;  %v1744_v56 = vld [vmem:[#allocation5 + $0x2c0] sm:$0xff]  ;;  %9483 = vst [vmem:[#allocation40_spill] sm:$0xff] %v6830_v20  ;;  %6362 = vrsqrt.f32 %v577_v53  ;;  %v6355_v40 = vpop.eup %6354  ;;  %v6449_v53 = vld [vmem:[#allocation2 + $0x2d8] sm:$0xff] }
  0xe5   :  { %2328 = vmatprep.mubr.f32.mxu0 %v6778_v62  ;;  %2473 = vmatprep.mubr.f32.mxu1 %v6780_v1  ;;  %v6442_v58 = vld [vmem:[#allocation2 + $0x1c0] sm:$0xff]  ;;  %v6832_v24 = vpop.xlane.xlu0 %422  ;;  %6364 = vrsqrt.f32 %v575_v8  ;;  %9486 = vst [vmem:[#allocation43_spill] sm:$0xff] %v6842_v61  ;;  %v6451_v8 = vld [vmem:[#allocation2 + $0x2d0] sm:$0xff]  ;;  %v6357_v51 = vpop.eup %6356 }
  0xe6   :  { %5054 = vmatprep.subr.mxu0 %v1746_v35  ;;  %5134 = vmatprep.subr.mxu1 %v1778_v11  ;;  %v6818_v60 = vmul.f32 %v6442_v58, %v668_v13  ;;  %v6820_v35 = vmul.f32 %v6443_v0, %v668_v13  ;;  %v6824_v11 = vpop.xlane.xlu1 %432  ;;  %6366 = vrsqrt.f32 %v606_v54  ;;  %v1742_v58 = vld [vmem:[#allocation5 + $0x2b0] sm:$0xff]  ;;  %v6450_v0 = vld [vmem:[#allocation2 + $0x2c0] sm:$0xff]  ;;  %v6852_v54 = vmul.f32 %v6451_v8, %v676_v23  ;;  %v1773_v8 = vld [vmem:[#allocation5 + $0x3a8] sm:$0xff] }
  0xe7   :  { %2329 = vmatmul.mubr.f32.gmra.mxu0 %v6786_v6  ;;  %2474 = vmatmul.mubr.f32.gmra.mxu1 %v6788_v9  ;;  %6368 = vrsqrt.f32 %v579_v17 }
  0xe8   :  { %5055 = vmatpush3.msra.mxu0 %v1730_v15  ;;  %5135 = vmatpush3.msra.mxu1 %v1762_v16  ;;  %9480 = vst [vmem:[#allocation37_spill] sm:$0xff] %v6818_v60  ;;  %9481 = vst [vmem:[#allocation38_spill] sm:$0xff] %v6820_v35  ;;  %v1760_v15 = vld [vmem:[#allocation5 + $0x340] sm:$0xff]  ;;  %v6444_v16 = vld [vmem:[#allocation2 + $0x288] sm:$0xff] }
  0xe9   :  { %2333 = vmatprep.mubr.f32.mxu0 %v6793_v18  ;;  %2478 = vmatprep.mubr.f32.mxu1 %v6795_v22  ;;  %v6828_v13 = vmul.f32 %v6444_v16, %v674_v43  ;;  %9489 = vst [vmem:[#allocation46_spill] sm:$0xff] %v6852_v54  ;;  %v680_v16 = vmul.f32 20.0, %v6355_v40  ;;  %v6454_v40 = vld [vmem:[#allocation2 + $0x300] sm:$0xff] }
  0xea   :  { %5056 = vmatprep.subr.mxu0 %v1745_v7  ;;  %5136 = vmatprep.subr.mxu1 %v1777_v33  ;;  %v6446_v7 = vld [vmem:[#allocation2 + $0x280] sm:$0xff]  ;;  %v6838_v33 = vmul.f32 %v6447_v31, %v674_v43 }
  0xeb   :  { %2334 = vmatmul.mubr.f32.gmra.mxu0 %v6801_v29  ;;  %2479 = vmatmul.mubr.f32.gmra.mxu1 %v6803_v32  ;;  %9482 = vst [vmem:[#allocation39_spill] sm:$0xff] %v6828_v13  ;;  %v6836_v27 = vmul.f32 %v6446_v7, %v674_v43  ;;  %v6846_v43 = vpop.xlane.xlu1 %452  ;;  %v6452_v7 = vld [vmem:[#allocation2 + $0x308] sm:$0xff] }
  0xec   :  { %5057 = vmatpush3.msra.mxu0 %v1729_v44  ;;  %5137 = vmatpush3.msra.mxu1 %v1761_v45  ;;  %9485 = vst [vmem:[#allocation42_spill] sm:$0xff] %v6838_v33  ;;  %v678_v44 = vmul.f32 20.0, %v6353_v2  ;;  %v1727_v45 = vld [vmem:[#allocation5 + $0x238] sm:$0xff]  ;;  %v1726_v2 = vld [vmem:[#allocation5 + $0x230] sm:$0xff] }
  0xed   :  { %2338 = vmatprep.mubr.f32.mxu0 %v6810_v50  ;;  %2483 = vmatprep.mubr.f32.mxu1 %v6812_v52  ;;  %9484 = vst [vmem:[#allocation41_spill] sm:$0xff] %v6836_v27 }
  0xee   :  { %5058 = vmatprep.subr.mxu0 %v1744_v56  ;;  %5138 = vmatprep.subr.mxu1 %v1776_v4  ;;  %v6844_v56 = vmul.f32 %v6449_v53, %v676_v23  ;;  %v6850_v4 = vmul.f32 %v6450_v0, %v676_v23  ;;  %v6859_v31 = vmul.f32 %v6452_v7, %v678_v44  ;;  %v6455_v53 = vld [vmem:[#allocation2 + $0x310] sm:$0xff] }
  0xef   :  { %2339 = vmatmul.mubr.f32.gmra.mxu0 %v6818_v60  ;;  %2484 = vmatmul.mubr.f32.gmra.mxu1 %v6820_v35  ;;  %v6868_v0 = vmul.f32 %v6455_v53, %v678_v44  ;;  %v6359_v7 = vpop.eup %6358  ;;  %v583_v53 = vmax.f32 %v6832_v24, 1e-24  ;;  %v589_v24 = vmax.f32 %v6846_v43, 1e-24 }
  0xf0   :  { %5059 = vmatpush3.msra.mxu0 %v1728_v14  ;;  %5139 = vmatpush3.msra.mxu1 %v1760_v15  ;;  %9487 = vst [vmem:[#allocation44_spill] sm:$0xff] %v6844_v56  ;;  %9488 = vst [vmem:[#allocation45_spill] sm:$0xff] %v6850_v4  ;;  %v1774_v14 = vld [vmem:[#allocation5 + $0x3b0] sm:$0xff]  ;;  %v6854_v15 = vpop.xlane.xlu0 %442  ;;  %v6361_v17 = vpop.eup %6360 }
  0xf1   :  { %2343 = vmatprep.mubr.f32.mxu0 %v6828_v13  ;;  %2488 = vmatprep.mubr.f32.mxu1 %v6830_v20  ;;  %9490 = vst [vmem:[#allocation47_spill] sm:$0xff] %v6859_v31  ;;  %9493 = vst [vmem:[#allocation50_spill] sm:$0xff] %v6868_v0  ;;  %v587_v43 = vmax.f32 %v6854_v15, 1e-24  ;;  %v6467_v15 = vld [vmem:[#allocation2 + $0x3d0] sm:$0xff] }
  0xf2   :  { %5060 = vmatprep.subr.mxu0 %v1743_v30  ;;  %5140 = vmatprep.subr.mxu1 %v1775_v34  ;;  %v1758_v30 = vld [vmem:[#allocation5 + $0x330] sm:$0xff]  ;;  %v6453_v34 = vld [vmem:[#allocation2 + $0x318] sm:$0xff] }
  0xf3   :  { %2344 = vmatmul.mubr.f32.gmra.mxu0 %v6836_v27  ;;  %2489 = vmatmul.mubr.f32.gmra.mxu1 %v6838_v33  ;;  %v6861_v23 = vmul.f32 %v6453_v34, %v678_v44  ;;  %v682_v34 = vmul.f32 20.0, %v6357_v51 }
  0xf4   :  { %5061 = vmatpush3.msra.mxu0 %v1727_v45  ;;  %5141 = vmatpush3.msra.mxu1 %v1759_v48  ;;  %v581_v45 = vmax.f32 %v6797_v25, 1e-24  ;;  %v6866_v48 = vmul.f32 %v6454_v40, %v678_v44  ;;  %v1725_v25 = vld [vmem:[#allocation5 + $0x228] sm:$0xff]  ;;  %v6880_v51 = vpop.xlane.xlu0 %482 }
  0xf5   :  { %2348 = vmatprep.mubr.f32.mxu0 %v6842_v61  ;;  %2493 = vmatprep.mubr.f32.mxu1 %v6844_v56  ;;  %9491 = vst [vmem:[#allocation48_spill] sm:$0xff] %v6861_v23  ;;  %v6363_v56 = vpop.eup %6362 }
  0xf6   :  { %5062 = vmatprep.subr.mxu0 %v1742_v58  ;;  %5142 = vmatprep.subr.mxu1 %v1774_v14  ;;  %9492 = vst [vmem:[#allocation49_spill] sm:$0xff] %v6866_v48  ;;  %v6870_v58 = vpop.xlane.xlu1 %492  ;;  %v1757_v14 = vld [vmem:[#allocation5 + $0x328] sm:$0xff]  ;;  %6370 = vrsqrt.f32 %v581_v45  ;;  %v6462_v45 = vld [vmem:[#allocation2 + $0x380] sm:$0xff] }
  0xf7   :  { %2349 = vmatmul.mubr.f32.gmra.mxu0 %v6850_v4  ;;  %2494 = vmatmul.mubr.f32.gmra.mxu1 %v6852_v54  ;;  %v6456_v54 = vld [vmem:[#allocation2 + $0x348] sm:$0xff]  ;;  %v6457_v4 = vld [vmem:[#allocation2 + $0x358] sm:$0xff] }
  0xf8   :  { %5063 = vmatpush3.msra.mxu0 %v1726_v2  ;;  %5143 = vmatpush3.msra.mxu1 %v1758_v30  ;;  %v6874_v40 = vmul.f32 %v6456_v54, %v680_v16  ;;  %v6876_v44 = vmul.f32 %v6457_v4, %v680_v16  ;;  %v585_v30 = vmax.f32 %v6824_v11, 1e-24  ;;  %v1740_v54 = vld [vmem:[#allocation5 + $0x2a0] sm:$0xff] }
  0xf9   :  { %2353 = vmatprep.mubr.f32.mxu0 %v6859_v31  ;;  %2498 = vmatprep.mubr.f32.mxu1 %v6861_v23  ;;  %v6458_v23 = vld [vmem:[#allocation2 + $0x340] sm:$0xff]  ;;  %v6459_v31 = vld [vmem:[#allocation2 + $0x350] sm:$0xff] }
  0xfa   :  { %9494 = vst [vmem:[#allocation51_spill] sm:$0xff] %v6874_v40  ;;  %9495 = vst [vmem:[#allocation52_spill] sm:$0xff] %v6876_v44  ;;  %5064 = vmatprep.subr.mxu0 %v1741_v36  ;;  %5144 = vmatprep.subr.mxu1 %v1773_v8  ;;  %v6885_v4 = vmul.f32 %v6458_v23, %v680_v16  ;;  %v6887_v2 = vmul.f32 %v6459_v31, %v680_v16  ;;  %v1772_v11 = vld [vmem:[#allocation5 + $0x3a0] sm:$0xff]  ;;  %v6460_v23 = vld [vmem:[#allocation2 + $0x388] sm:$0xff]  ;;  %6372 = vrsqrt.f32 %v585_v30 }
  0xfb   :  { %2354 = vmatmul.mubr.f32.gmra.mxu0 %v6866_v48  ;;  %2499 = vmatmul.mubr.f32.gmra.mxu1 %v6868_v0  ;;  %v6365_v0 = vpop.eup %6364  ;;  %v684_v48 = vmul.f32 20.0, %v6359_v7  ;;  %v1724_v16 = vld [vmem:[#allocation5 + $0x220] sm:$0xff]  ;;  %v6895_v61 = vmul.f32 %v6460_v23, %v682_v34  ;;  %v6461_v36 = vld [vmem:[#allocation2 + $0x398] sm:$0xff]  ;;  %6374 = vrsqrt.f32 %v583_v53  ;;  %v6904_v23 = vpop.xlane.xlu1 %512  ;;  %v6908_v30 = vmul.f32 %v6462_v45, %v682_v34 }
  0xfc   :  { %9496 = vst [vmem:[#allocation53_spill] sm:$0xff] %v6885_v4  ;;  %9497 = vst [vmem:[#allocation54_spill] sm:$0xff] %v6887_v2  ;;  %5065 = vmatpush3.msra.mxu0 %v1725_v25  ;;  %5145 = vmatpush3.msra.mxu1 %v1757_v14  ;;  %v1756_v31 = vld [vmem:[#allocation5 + $0x320] sm:$0xff]  ;;  %v6897_v33 = vmul.f32 %v6461_v36, %v682_v34  ;;  %v6367_v25 = vpop.eup %6366  ;;  %v1739_v36 = vld [vmem:[#allocation5 + $0x298] sm:$0xff]  ;;  %v6912_v14 = vmul.f32 20.0, %v6361_v17  ;;  %v6914_v8 = vmul.f32 20.0, %v6363_v56  ;;  %6376 = vrsqrt.f32 %v589_v24 }
  0xfd   :  { %2358 = vmatprep.mubr.f32.mxu0 %v6874_v40  ;;  %2503 = vmatprep.mubr.f32.mxu1 %v6876_v44  ;;  %9498 = vst [vmem:[#allocation55_spill] sm:$0xff] %v6895_v61  ;;  %9500 = vst [vmem:[#allocation57_spill] sm:$0xff] %v6908_v30  ;;  %v1771_v7 = vld [vmem:[#allocation5 + $0x398] sm:$0xff]  ;;  %v6916_v53 = vmul.f32 20.0, %v6365_v0  ;;  %v6919_v44 = vpop.xlane.xlu0 %502  ;;  %v6464_v17 = vld [vmem:[#allocation2 + $0x3c8] sm:$0xff]  ;;  %6378 = vrsqrt.f32 %v587_v43 }
  0xfe   :  { %9499 = vst [vmem:[#allocation56_spill] sm:$0xff] %v6897_v33  ;;  %5066 = vmatprep.subr.mxu0 %v1740_v54  ;;  %5146 = vmatprep.subr.mxu1 %v1772_v11  ;;  %v6463_v54 = vld [vmem:[#allocation2 + $0x390] sm:$0xff]  ;;  %v1755_v45 = vld [vmem:[#allocation5 + $0x318] sm:$0xff]  ;;  %v6469_v24 = vld [vmem:[#allocation2 + $0x28] sm:$0xff] }
  0xff   :  { %2359 = vmatmul.mubr.f32.gmra.mxu0 %v6885_v4  ;;  %2504 = vmatmul.mubr.f32.gmra.mxu1 %v6887_v2  ;;  %v6910_v11 = vmul.f32 %v6463_v54, %v682_v34  ;;  %v6921_v2 = vmul.f32 20.0, %v6367_v25  ;;  %v1723_v34 = vld [vmem:[#allocation5 + $0x218] sm:$0xff]  ;;  %v6925_v54 = vmul.f32 %v6464_v17, %v684_v48  ;;  %v595_v17 = vmax.f32 %v6880_v51, 1e-24  ;;  %v1722_v43 = vld [vmem:[#allocation5 + $0x210] sm:$0xff] }
 0x100   :  { %5067 = vmatpush3.msra.mxu0 %v1724_v16  ;;  %5147 = vmatpush3.msra.mxu1 %v1756_v31  ;;  %v6465_v56 = vld [vmem:[#allocation2 + $0x3d8] sm:$0xff]  ;;  %v597_v16 = vmax.f32 %v6870_v58, 1e-24  ;;  %v6466_v31 = vld [vmem:[#allocation2 + $0x3c0] sm:$0xff]  ;;  %v6938_v4 = vmul.f32 %v6467_v15, %v684_v48  ;;  %v1770_v58 = vld [vmem:[#allocation5 + $0x390] sm:$0xff]  ;;  %v6945_v51 = vmul.f32 %v6469_v24, %v6916_v53 }
 0x101   :  { %9501 = vst [vmem:[#allocation58_spill] sm:$0xff] %v6910_v11  ;;  %2363 = vmatprep.mubr.f32.mxu0 %v6895_v61  ;;  %2508 = vmatprep.mubr.f32.mxu1 %v6897_v33  ;;  %9502 = vst [vmem:[#allocation59_spill] sm:$0xff] %v6925_v54  ;;  %v6927_v0 = vmul.f32 %v6465_v56, %v684_v48  ;;  %v6931_v25 = vmul.f32 %v6466_v31, %v684_v48  ;;  %v1738_v56 = vld [vmem:[#allocation5 + $0x290] sm:$0xff]  ;;  %v6470_v61 = vld [vmem:[#allocation2 + $0x68] sm:$0xff]  ;;  %v6950_v48 = vpop.xlane.xlu1 %532 }
 0x102   :  { %5068 = vmatprep.subr.mxu0 %v1739_v36  ;;  %5148 = vmatprep.subr.mxu1 %v1771_v7  ;;  %9505 = vst [vmem:[#allocation62_spill] sm:$0xff] %v6938_v4  ;;  %v6468_v36 = vld [vmem:[#allocation2 + $0x448] sm:$0xff]  ;;  %9507 = vst [vmem:[#allocation64_spill] sm:$0xff] %v6945_v51  ;;  %v6948_v33 = vmul.f32 %v6470_v61, %v6914_v8  ;;  %v6473_v7 = vld [vmem:[#allocation2 + $0x38] sm:$0xff]  ;;  %6380 = vrsqrt.f32 %v597_v16 }
 0x103   :  { %9503 = vst [vmem:[#allocation60_spill] sm:$0xff] %v6927_v0  ;;  %9504 = vst [vmem:[#allocation61_spill] sm:$0xff] %v6931_v25  ;;  %2364 = vmatmul.mubr.f32.gmra.mxu0 %v6908_v30  ;;  %2509 = vmatmul.mubr.f32.gmra.mxu1 %v6910_v11  ;;  %v6942_v31 = vmul.f32 %v6468_v36, %v6912_v14  ;;  %v6472_v36 = vld [vmem:[#allocation2 + $0x418] sm:$0xff]  ;;  %v6961_v61 = vmul.f32 %v6473_v7, %v6916_v53  ;;  %v6369_v30 = vpop.eup %6368  ;;  %6382 = vrsqrt.f32 %v595_v17  ;;  %v6476_v16 = vld [vmem:[#allocation2 + $0x400] sm:$0xff] }
 0x104   :  { %5069 = vmatpush3.msra.mxu0 %v1723_v34  ;;  %5149 = vmatpush3.msra.mxu1 %v1755_v45  ;;  %9508 = vst [vmem:[#allocation65_spill] sm:$0xff] %v6948_v33  ;;  %v1754_v34 = vld [vmem:[#allocation5 + $0x310] sm:$0xff]  ;;  %v6471_v45 = vld [vmem:[#allocation2 + $0x408] sm:$0xff]  ;;  %v6958_v24 = vmul.f32 %v6472_v36, %v6921_v2  ;;  %v6475_v36 = vld [vmem:[#allocation2 + $0x440] sm:$0xff]  ;;  %v599_v7 = vmax.f32 %v6919_v44, 1e-24  ;;  %v6371_v20 = vpop.eup %6370 }
 0x105   :  { %9506 = vst [vmem:[#allocation63_spill] sm:$0xff] %v6942_v31  ;;  %2368 = vmatprep.mubr.f32.mxu0 %v6925_v54  ;;  %2513 = vmatprep.mubr.f32.mxu1 %v6927_v0  ;;  %v6955_v15 = vmul.f32 %v6471_v45, %v6921_v2  ;;  %9511 = vst [vmem:[#allocation68_spill] sm:$0xff] %v6961_v61  ;;  %v601_v0 = vmax.f32 %v6904_v23, 1e-24  ;;  %v6965_v54 = vpop.xlane.xlu0 %522  ;;  %v6474_v45 = vld [vmem:[#allocation2 + $0x458] sm:$0xff]  ;;  %v6971_v27 = vmul.f32 %v6475_v36, %v6912_v14  ;;  %v1737_v23 = vld [vmem:[#allocation5 + $0x288] sm:$0xff] }
 0x106   :  { %9510 = vst [vmem:[#allocation67_spill] sm:$0xff] %v6958_v24  ;;  %5070 = vmatprep.subr.mxu0 %v1738_v56  ;;  %5150 = vmatprep.subr.mxu1 %v1770_v58  ;;  %v6968_v40 = vmul.f32 %v6474_v45, %v6912_v14  ;;  %v6977_v56 = vmul.f32 %v6476_v16, %v6921_v2  ;;  %v6477_v58 = vld [vmem:[#allocation2 + $0x410] sm:$0xff]  ;;  %v1769_v11 = vld [vmem:[#allocation5 + $0x388] sm:$0xff]  ;;  %v987_v17 = vrot.slane %v6945_v51, 1  ;;  %v6478_v44 = vld [vmem:[#allocation2 + $0x20] sm:$0xff]  ;;  %v999_v16 = vrot.slane %v6948_v33, 1 }
 0x107   :  { %9509 = vst [vmem:[#allocation66_spill] sm:$0xff] %v6955_v15  ;;  %9513 = vst [vmem:[#allocation70_spill] sm:$0xff] %v6971_v27  ;;  %2369 = vmatmul.mubr.f32.gmra.mxu0 %v6931_v25  ;;  %2514 = vmatmul.mubr.f32.gmra.mxu1 %v6938_v4  ;;  %v6980_v45 = vmul.f32 %v6477_v58, %v6921_v2  ;;  %v6984_v36 = vmul.f32 %v6478_v44, %v6916_v53  ;;  %v6479_v4 = vld [vmem:[#allocation2 + $0x30] sm:$0xff]  ;;  %v659_v13 = vmul.f32 20.0, %v6369_v30  ;;  %v1721_v2 = vld [vmem:[#allocation5 + $0x208] sm:$0xff]  ;;  %v6373_v33 = vpop.eup %6372 }
 0x108   :  { %9512 = vst [vmem:[#allocation69_spill] sm:$0xff] %v6968_v40  ;;  %9514 = vst [vmem:[#allocation71_spill] sm:$0xff] %v6977_v56  ;;  %5071 = vmatpush3.msra.mxu0 %v1722_v43  ;;  %5151 = vmatpush3.msra.mxu1 %v1754_v34  ;;  %v6987_v25 = vmul.f32 %v6479_v4, %v6916_v53  ;;  %v1753_v43 = vld [vmem:[#allocation5 + $0x308] sm:$0xff]  ;;  %v6480_v34 = vld [vmem:[#allocation2 + $0x450] sm:$0xff]  ;;  %v993_v44 = vrot.slane %v6961_v61, 1  ;;  %6384 = vrsqrt.f32 %v601_v0  ;;  %v9519_v61 = vrot.slane %v6719_v55, 1 }
 0x109   :  { %9515 = vst [vmem:[#allocation72_spill] sm:$0xff] %v6980_v45  ;;  %2373 = vmatprep.mubr.f32.mxu0 %v6955_v15  ;;  %2518 = vmatprep.mubr.f32.mxu1 %v6958_v24  ;;  %v6993_v58 = vmul.f32 %v6480_v34, %v6912_v14  ;;  %v6481_v51 = vld [vmem:[#allocation2 + $0x78] sm:$0xff]  ;;  %v605_v4 = vmax.f32 %v6950_v48, 1e-24  ;;  %v7002_v24 = vmul.f32 20.0, %v6371_v20  ;;  %6386 = vrsqrt.f32 %v599_v7  ;;  %v553_v34 = vpop.xlane.xlu1 %552  ;;  %v1736_v0 = vld [vmem:[#allocation5 + $0x280] sm:$0xff]  ;;  %v543_v30 = vpop.xlane.xlu0 %542 }
 0x10a   :  { %v6997_v35 = vmul.f32 %v6481_v51, %v6914_v8  ;;  %5072 = vmatprep.subr.mxu0 %v1737_v23  ;;  %5152 = vmatprep.subr.mxu1 %v1769_v11  ;;  %v603_v14 = vmax.f32 %v6965_v54, 1e-24  ;;  %v1768_v51 = vld [vmem:[#allocation5 + $0x380] sm:$0xff]  ;;  %v6375_v23 = vpop.eup %6374  ;;  %v9518_v20 = vrot.slane %v6704_v37, 1  ;;  %v984_v54 = vrot.slane %v6984_v36, 1 }
 0x10b   :  { %9516 = vst [vmem:[#allocation73_spill] sm:$0xff] %v6993_v58  ;;  %2374 = vmatmul.mubr.f32.gmra.mxu0 %v6977_v56  ;;  %2519 = vmatmul.mubr.f32.gmra.mxu1 %v6980_v45  ;;  %v6482_v48 = vld [vmem:[#allocation2 + $0x60] sm:$0xff]  ;;  %v990_v53 = vrot.slane %v6987_v25, 1  ;;  %v7018_v45 = vsel %vm982_vm0, %v9519_v61, %v999_v16  ;;  %v6484_v56 = vld [vmem:[#allocation2 + $0xa8] sm:$0xff]  ;;  %6388 = vrsqrt.f32 %v605_v4  ;;  %v609_v61 = vmax.f32 %v553_v34, 1e-24 }
 0x10c   :  { %9517 = vst [vmem:[#allocation74_spill] sm:$0xff] %v6997_v35  ;;  %v7008_v11 = vmul.f32 %v6482_v48, %v6914_v8  ;;  %5073 = vmatpush3.msra.mxu0 %v1721_v2  ;;  %5153 = vmatpush3.msra.mxu1 %v1753_v43  ;;  %v988_v7 = vsel %vm982_vm0, %v9518_v20, %v987_v17  ;;  %9520 = vst [vmem:[#allocation75_spill] sm:$0xff] %v7018_v45  ;;  %v1720_v48 = vld [vmem:[#allocation5 + $0x200] sm:$0xff]  ;;  %v9521_v2 = vrot.slane %v6706_v39, 1  ;;  %v6483_v20 = vld [vmem:[#allocation2 + $0x70] sm:$0xff] }
 0x10d   :  { %2378 = vmatprep.mubr.f32.mxu0 %v6942_v31  ;;  %2523 = vmatprep.mubr.f32.mxu1 %v6968_v40  ;;  %v1005_v17 = vrot.slane %v6997_v35, 1  ;;  %v7027_v37 = vmul.f32 %v6483_v20, %v6914_v8  ;;  %v7029_v55 = vmul.f32 %v6484_v56, %v659_v13  ;;  %v1752_v16 = vld [vmem:[#allocation5 + $0x300] sm:$0xff]  ;;  %v6485_v40 = vld [vmem:[#allocation2 + $0xb8] sm:$0xff]  ;;  %6390 = vrsqrt.f32 %v603_v14  ;;  %v6487_v34 = vld [vmem:[#allocation2 + $0xb0] sm:$0xff] }
 0x10e   :  { %v994_v43 = vsel %vm982_vm0, %v9521_v2, %v993_v44  ;;  %5074 = vmatprep.subr.mxu0 %v1736_v0  ;;  %5154 = vmatprep.subr.mxu1 %v1768_v51  ;;  %v7031_v31 = vmul.f32 %v6485_v40, %v659_v13  ;;  %v6486_v39 = vld [vmem:[#allocation2 + $0xa0] sm:$0xff]  ;;  %v607_v44 = vmax.f32 %v543_v30, 1e-24  ;;  %v1815_v8 = vld [vmem:[#allocation5 + $0x4f8] sm:$0xff]  ;;  %v996_v4 = vrot.slane %v7008_v11, 1  ;;  %v6377_v51 = vpop.eup %6376 }
 0x10f   :  { %9522 = vst [vmem:[#allocation76_spill] sm:$0xff] %v7027_v37  ;;  %9523 = vst [vmem:[#allocation77_spill] sm:$0xff] %v7029_v55  ;;  %v7033_v15 = vmul.f32 %v6486_v39, %v659_v13  ;;  %2379 = vmatmul.mubr.f32.gmra.mxu0 %v6971_v27  ;;  %2524 = vmatmul.mubr.f32.gmra.mxu1 %v6993_v58  ;;  %v1847_v56 = vld [vmem:[#allocation5 + $0x5f8] sm:$0xff]  ;;  %v7038_v0 = vmul.f32 %v6487_v34, %v659_v13  ;;  %v7040_v2 = vmul.f32 20.0, %v6373_v33  ;;  %v6379_v35 = vpop.eup %6378 }
 0x110   :  { %9524 = vst [vmem:[#allocation78_spill] sm:$0xff] %v7031_v31  ;;  %v7042_v40 = vmul.f32 20.0, %v6375_v23  ;;  %5075 = vmatpush3.msra.mxu0 %v1720_v48  ;;  %2593 = vmatprep.mubr.f32.mxu0 %v988_v7  ;;  %v9526_v39 = vrot.slane %v6708_v41, 1  ;;  %v9527_v14 = vrot.slane %v6712_v46, 1  ;;  %v1799_v13 = vld [vmem:[#allocation5 + $0x478] sm:$0xff]  ;;  %v9528_v34 = vrot.slane %v6721_v57, 1 }
 0x111   :  { %9525 = vst [vmem:[#allocation79_spill] sm:$0xff] %v7033_v15  ;;  %2738 = vmatprep.mubr.f32.mxu1 %v994_v43  ;;  %5155 = vmatpush3.msra.mxu1 %v1752_v16  ;;  %v1002_v23 = vrot.slane %v7027_v37, 1  ;;  %v1011_v7 = vrot.slane %v7029_v55, 1  ;;  %v6488_v48 = vld [vmem:[#allocation2 + $0xe8] sm:$0xff]  ;;  %6392 = vrsqrt.f32 %v609_v61  ;;  %v1017_v43 = vrot.slane %v7031_v31, 1  ;;  %v6490_v31 = vld [vmem:[#allocation2 + $0xe0] sm:$0xff] }
 0x112   :  { %v985_v30 = vsel %vm982_vm0, %v9526_v39, %v984_v54  ;;  %v991_v20 = vsel %vm982_vm0, %v9527_v14, %v990_v53  ;;  %v7053_v33 = vsel %vm982_vm0, %v9528_v34, %v1005_v17  ;;  %v7058_v54 = vmul.f32 %v6488_v48, %v7002_v24  ;;  %5204 = vmatprep.subr.mxu0 %v1815_v8  ;;  %v1831_v53 = vld [vmem:[#allocation5 + $0x578] sm:$0xff]  ;;  %v6381_v14 = vpop.eup %6380  ;;  %v1814_v34 = vld [vmem:[#allocation5 + $0x4f0] sm:$0xff] }
 0x113   :  { %9529 = vst [vmem:[#allocation80_spill] sm:$0xff] %v7053_v33  ;;  %5284 = vmatprep.subr.mxu1 %v1847_v56  ;;  %v1008_v16 = vrot.slane %v7033_v15, 1  ;;  %v6489_v39 = vld [vmem:[#allocation2 + $0xf8] sm:$0xff]  ;;  %6394 = vrsqrt.f32 %v607_v44  ;;  %2594 = vmatmul.mubr.f32.vlgmr.msra.gmra.mxu0 %v985_v30  ;;  %v9532_v48 = vrot.slane %v6723_v59, 1  ;;  %v1846_v8 = vld [vmem:[#allocation5 + $0x5f0] sm:$0xff]  ;;  %v1014_v56 = vrot.slane %v7038_v0, 1  ;;  %v6383_v55 = vpop.eup %6382 }
 0x114   :  { %9530 = vst [vmem:[#allocation81_spill] sm:$0xff] %v7058_v54  ;;  %v7063_v17 = vmul.f32 %v6489_v39, %v7002_v24  ;;  %2739 = vmatmul.mubr.f32.vlgmr.msra.gmra.mxu1 %v991_v20  ;;  %v7072_v15 = vmul.f32 %v6490_v31, %v7002_v24  ;;  %v7074_v39 = vmul.f32 20.0, %v6377_v51  ;;  %v7076_v37 = vmul.f32 20.0, %v6379_v35  ;;  %5205 = vmatpush3.msra.mxu0 %v1799_v13  ;;  %v6491_v44 = vld [vmem:[#allocation2 + $0xf0] sm:$0xff] }
 0x115   :  { %v7068_v61 = vsel %vm982_vm0, %v9532_v48, %v996_v4  ;;  %2598 = vmatprep.mubr.f32.mxu0 %v7018_v45  ;;  %v7080_v30 = vmul.f32 %v6491_v44, %v7002_v24  ;;  %v6492_v4 = vld [vmem:[#allocation2 + $0x128] sm:$0xff]  ;;  %2743 = vmatprep.mubr.f32.mxu1 %v7053_v33  ;;  %v9537_v31 = vrot.slane %v6727_v63, 1  ;;  %v1798_v35 = vld [vmem:[#allocation5 + $0x470] sm:$0xff]  ;;  %v9539_v13 = vrot.slane %v6729_v3, 1  ;;  %v6493_v44 = vld [vmem:[#allocation2 + $0x138] sm:$0xff] }
 0x116   :  { %9531 = vst [vmem:[#allocation82_spill] sm:$0xff] %v7063_v17  ;;  %9533 = vst [vmem:[#allocation83_spill] sm:$0xff] %v7068_v61  ;;  %v7083_v20 = vmul.f32 %v6492_v4, %v7042_v40  ;;  %5285 = vmatpush3.msra.mxu1 %v1831_v53  ;;  %v1023_v24 = vrot.slane %v7058_v54, 1  ;;  %v7098_v4 = vmul.f32 %v6493_v44, %v7042_v40  ;;  %v7100_v45 = vmul.f32 20.0, %v6381_v14  ;;  %v6385_v54 = vpop.eup %6384  ;;  %v1813_v14 = vld [vmem:[#allocation5 + $0x4e8] sm:$0xff] }
 0x117   :  { %9534 = vst [vmem:[#allocation84_spill] sm:$0xff] %v7072_v15  ;;  %9535 = vst [vmem:[#allocation85_spill] sm:$0xff] %v7080_v30  ;;  %v7089_v51 = vsel %vm982_vm0, %v9537_v31, %v1002_v23  ;;  %v7094_v48 = vsel %vm982_vm0, %v9539_v13, %v1011_v7  ;;  %5206 = vmatprep.subr.mxu0 %v1814_v34  ;;  %v9542_v53 = vrot.slane %v6731_v5, 1  ;;  %5286 = vmatprep.subr.mxu1 %v1846_v8  ;;  %v1830_v31 = vld [vmem:[#allocation5 + $0x570] sm:$0xff]  ;;  %v1845_v8 = vld [vmem:[#allocation5 + $0x5e8] sm:$0xff] }
 0x118   :  { %9536 = vst [vmem:[#allocation86_spill] sm:$0xff] %v7083_v20  ;;  %9538 = vst [vmem:[#allocation87_spill] sm:$0xff] %v7089_v51  ;;  %v9544_v33 = vrot.slane %v6739_v10, 1  ;;  %v1029_v13 = vrot.slane %v7063_v17, 1  ;;  %v7113_v44 = vmul.f32 20.0, %v6383_v55  ;;  %2599 = vmatmul.mubr.f32.gmra.mxu0 %v7068_v61  ;;  %2744 = vmatmul.mubr.f32.gmra.mxu1 %v7089_v51  ;;  %v6387_v17 = vpop.eup %6386  ;;  %v1019_v55 = vrot.slane %v6754_v26, 1 }
 0x119   :  { %9540 = vst [vmem:[#allocation88_spill] sm:$0xff] %v7094_v48  ;;  %9541 = vst [vmem:[#allocation89_spill] sm:$0xff] %v7098_v4  ;;  %v7105_v23 = vsel %vm982_vm0, %v9542_v53, %v1017_v43  ;;  %v9546_v43 = vrot.slane %v6741_v12, 1  ;;  %v1020_v53 = vrot.slane %v7072_v15, 1  ;;  %5207 = vmatpush3.msra.mxu0 %v1798_v35  ;;  %2603 = vmatprep.mubr.f32.mxu0 %v7094_v48  ;;  %v1026_v51 = vrot.slane %v7080_v30, 1  ;;  %v6495_v12 = vld [vmem:[#allocation2 + $0x130] sm:$0xff] }
 0x11a   :  { %9543 = vst [vmem:[#allocation90_spill] sm:$0xff] %v7105_v23  ;;  %v7110_v7 = vsel %vm982_vm0, %v9544_v33, %v1008_v16  ;;  %v6494_v33 = vld [vmem:[#allocation2 + $0x120] sm:$0xff]  ;;  %v1035_v61 = vrot.slane %v7083_v20, 1  ;;  %2748 = vmatprep.mubr.f32.mxu1 %v7105_v23  ;;  %5287 = vmatpush3.msra.mxu1 %v1830_v31  ;;  %v1025_v48 = vrot.slane %v6756_v28, 1  ;;  %v1041_v26 = vrot.slane %v7098_v4, 1  ;;  %v6496_v30 = vld [vmem:[#allocation2 + $0x168] sm:$0xff]  ;;  %v6389_v4 = vpop.eup %6388 }
 0x11b   :  { %9545 = vst [vmem:[#allocation91_spill] sm:$0xff] %v7110_v7  ;;  %v7120_v34 = vsel %vm982_vm0, %v9546_v43, %v1014_v56  ;;  %v7124_v16 = vmul.f32 %v6494_v33, %v7042_v40  ;;  %v7131_v56 = vmul.f32 %v6495_v12, %v7042_v40  ;;  %v1797_v43 = vld [vmem:[#allocation5 + $0x468] sm:$0xff]  ;;  %v9549_v33 = vrot.slane %v6746_v19, 1  ;;  %5208 = vmatprep.subr.mxu0 %v1813_v14  ;;  %v1844_v14 = vld [vmem:[#allocation5 + $0x5e0] sm:$0xff] }
 0x11c   :  { %9547 = vst [vmem:[#allocation92_spill] sm:$0xff] %v7120_v34  ;;  %v7142_v20 = vmul.f32 %v6496_v30, %v7040_v2  ;;  %v7144_v15 = vmul.f32 20.0, %v6385_v54  ;;  %v9552_v12 = vrot.slane %v6748_v21, 1  ;;  %5288 = vmatprep.subr.mxu1 %v1845_v8  ;;  %v1829_v31 = vld [vmem:[#allocation5 + $0x568] sm:$0xff]  ;;  %v7155_v28 = vmul.f32 20.0, %v6387_v17  ;;  %2604 = vmatmul.mubr.f32.gmra.mxu0 %v7110_v7  ;;  %v1812_v54 = vld [vmem:[#allocation5 + $0x4e0] sm:$0xff] }
 0x11d   :  { %9548 = vst [vmem:[#allocation93_spill] sm:$0xff] %v7131_v56  ;;  %v7137_v35 = vsel %vm982_vm0, %v9549_v33, %v1023_v24  ;;  %v1034_v24 = vrot.slane %v6763_v38, 1  ;;  %v6497_v33 = vld [vmem:[#allocation2 + $0x178] sm:$0xff]  ;;  %2749 = vmatmul.mubr.f32.gmra.mxu1 %v7120_v34  ;;  %v7160_v30 = vsel %vm982_vm0, %v1019_v55, %v1020_v53  ;;  %v1032_v8 = vrot.slane %v7124_v16, 1  ;;  %5209 = vmatpush3.msra.mxu0 %v1797_v43  ;;  %v6498_v7 = vld [vmem:[#allocation2 + $0x160] sm:$0xff] }
 0x11e   :  { %9550 = vst [vmem:[#allocation94_spill] sm:$0xff] %v7137_v35  ;;  %9551 = vst [vmem:[#allocation95_spill] sm:$0xff] %v7142_v20  ;;  %v7149_v40 = vsel %vm982_vm0, %v9552_v12, %v1029_v13  ;;  %v7153_v23 = vmul.f32 %v6497_v33, %v7040_v2  ;;  %v1040_v13 = vrot.slane %v6765_v42, 1  ;;  %v6391_v12 = vpop.eup %6390  ;;  %2608 = vmatprep.mubr.f32.mxu0 %v7137_v35  ;;  %v1038_v34 = vrot.slane %v7131_v56, 1  ;;  %v1796_v55 = vld [vmem:[#allocation5 + $0x460] sm:$0xff]  ;;  %v6500_v56 = vld [vmem:[#allocation2 + $0x1a8] sm:$0xff] }
 0x11f   :  { %9553 = vst [vmem:[#allocation96_spill] sm:$0xff] %v7149_v40  ;;  %9554 = vst [vmem:[#allocation97_spill] sm:$0xff] %v7160_v30  ;;  %v7166_v17 = vsel %vm982_vm0, %v1025_v48, %v1026_v51  ;;  %v7169_v33 = vsel %vm982_vm0, %v1034_v24, %v1035_v61  ;;  %v7173_v53 = vmul.f32 %v6498_v7, %v7040_v2  ;;  %2753 = vmatprep.mubr.f32.mxu1 %v7149_v40  ;;  %v6499_v48 = vld [vmem:[#allocation2 + $0x170] sm:$0xff]  ;;  %v1828_v24 = vld [vmem:[#allocation5 + $0x560] sm:$0xff] }
 0x120   :  { %9555 = vst [vmem:[#allocation98_spill] sm:$0xff] %v7166_v17  ;;  %9556 = vst [vmem:[#allocation99_spill] sm:$0xff] %v7169_v33  ;;  %5289 = vmatpush3.msra.mxu1 %v1829_v31  ;;  %v7177_v43 = vsel %vm982_vm0, %v1040_v13, %v1041_v26  ;;  %v1031_v35 = vrot.slane %v6769_v47, 1  ;;  %v1047_v51 = vrot.slane %v7142_v20, 1  ;;  %v7182_v61 = vmul.f32 %v6499_v48, %v7040_v2  ;;  %v6393_v13 = vpop.eup %6392  ;;  %v1811_v2 = vld [vmem:[#allocation5 + $0x4d8] sm:$0xff] }
 0x121   :  { %9557 = vst [vmem:[#allocation100_spill] sm:$0xff] %v7177_v43  ;;  %5210 = vmatprep.subr.mxu0 %v1812_v54  ;;  %5290 = vmatprep.subr.mxu1 %v1844_v14  ;;  %v1037_v7 = vrot.slane %v6771_v49, 1  ;;  %v1046_v40 = vrot.slane %v6778_v62, 1  ;;  %v1053_v31 = vrot.slane %v7153_v23, 1  ;;  %v7188_v26 = vmul.f32 %v6500_v56, %v7076_v37  ;;  %v1843_v48 = vld [vmem:[#allocation5 + $0x5d8] sm:$0xff]  ;;  %v6395_v62 = vpop.eup %6394 }
 0x122   :  { %v7190_v47 = vmul.f32 20.0, %v6389_v4  ;;  %v7192_v20 = vmul.f32 20.0, %v6391_v12  ;;  %2609 = vmatmul.mubr.f32.gmra.mxu0 %v7160_v30  ;;  %2754 = vmatmul.mubr.f32.gmra.mxu1 %v7166_v17  ;;  %v7197_v54 = vsel %vm982_vm0, %v1031_v35, %v1032_v8  ;;  %v1052_v14 = vrot.slane %v6780_v1, 1  ;;  %v6501_v30 = vld [vmem:[#allocation2 + $0x1b8] sm:$0xff] }
 0x123   :  { %9558 = vst [vmem:[#allocation101_spill] sm:$0xff] %v7188_v26  ;;  %9559 = vst [vmem:[#allocation102_spill] sm:$0xff] %v7197_v54  ;;  %5211 = vmatpush3.msra.mxu0 %v1796_v55  ;;  %2613 = vmatprep.mubr.f32.mxu0 %v7169_v33  ;;  %v7202_v4 = vsel %vm982_vm0, %v1037_v7, %v1038_v34  ;;  %v1043_v56 = vrot.slane %v6786_v6, 1  ;;  %v1044_v12 = vrot.slane %v7173_v53, 1  ;;  %v1795_v35 = vld [vmem:[#allocation5 + $0x458] sm:$0xff]  ;;  %v1049_v55 = vrot.slane %v6788_v9, 1 }
 0x124   :  { %9560 = vst [vmem:[#allocation103_spill] sm:$0xff] %v7202_v4  ;;  %v7207_v17 = vmul.f32 %v6501_v30, %v7076_v37  ;;  %2758 = vmatprep.mubr.f32.mxu1 %v7177_v43  ;;  %5291 = vmatpush3.msra.mxu1 %v1828_v24  ;;  %v7211_v8 = vsel %vm982_vm0, %v1046_v40, %v1047_v51  ;;  %v1050_v34 = vrot.slane %v7182_v61, 1  ;;  %v6502_v7 = vld [vmem:[#allocation2 + $0x1a0] sm:$0xff]  ;;  %v7218_v6 = vmul.f32 20.0, %v6393_v13  ;;  %v1827_v24 = vld [vmem:[#allocation5 + $0x558] sm:$0xff]  ;;  %v6503_v40 = vld [vmem:[#allocation2 + $0x1b0] sm:$0xff] }
 0x125   :  { %9561 = vst [vmem:[#allocation104_spill] sm:$0xff] %v7211_v8  ;;  %v7216_v33 = vmul.f32 %v6502_v7, %v7076_v37  ;;  %5212 = vmatprep.subr.mxu0 %v1811_v2  ;;  %v7221_v30 = vsel %vm982_vm0, %v1052_v14, %v1053_v31  ;;  %5292 = vmatprep.subr.mxu1 %v1843_v48  ;;  %v1059_v43 = vrot.slane %v7188_v26, 1  ;;  %v7227_v9 = vmul.f32 20.0, %v6395_v62  ;;  %v1810_v13 = vld [vmem:[#allocation5 + $0x4d0] sm:$0xff]  ;;  %v6504_v31 = vld [vmem:[#allocation2 + $0x1e8] sm:$0xff]  ;;  %v6505_v48 = vld [vmem:[#allocation2 + $0x1f8] sm:$0xff] }
 0x126   :  { %9562 = vst [vmem:[#allocation105_spill] sm:$0xff] %v7221_v30  ;;  %v7225_v51 = vmul.f32 %v6503_v40, %v7076_v37  ;;  %2614 = vmatmul.mubr.f32.gmra.mxu0 %v7197_v54  ;;  %2759 = vmatmul.mubr.f32.gmra.mxu1 %v7202_v4  ;;  %v1058_v2 = vrot.slane %v6793_v18, 1  ;;  %v1842_v7 = vld [vmem:[#allocation5 + $0x5d0] sm:$0xff]  ;;  %v7233_v14 = vmul.f32 %v6504_v31, %v7074_v39  ;;  %v1064_v62 = vrot.slane %v6795_v22, 1  ;;  %v6506_v4 = vld [vmem:[#allocation2 + $0x1e0] sm:$0xff] }
 0x127   :  { %v7236_v26 = vmul.f32 %v6505_v48, %v7074_v39  ;;  %5213 = vmatpush3.msra.mxu0 %v1795_v35  ;;  %2618 = vmatprep.mubr.f32.mxu0 %v7211_v8  ;;  %v7240_v37 = vsel %vm982_vm0, %v1043_v56, %v1044_v12  ;;  %v1065_v40 = vrot.slane %v7207_v17, 1  ;;  %v7245_v54 = vmul.f32 %v6506_v4, %v7074_v39  ;;  %v1794_v35 = vld [vmem:[#allocation5 + $0x450] sm:$0xff] }
 0x128   :  { %9563 = vst [vmem:[#allocation106_spill] sm:$0xff] %v7233_v14  ;;  %9565 = vst [vmem:[#allocation108_spill] sm:$0xff] %v7240_v37  ;;  %2763 = vmatprep.mubr.f32.mxu1 %v7221_v30  ;;  %5293 = vmatpush3.msra.mxu1 %v1827_v24  ;;  %v7249_v31 = vsel %vm982_vm0, %v1049_v55, %v1050_v34  ;;  %v1055_v48 = vrot.slane %v6801_v29, 1  ;;  %v1056_v56 = vrot.slane %v7216_v33, 1  ;;  %v6507_v12 = vld [vmem:[#allocation2 + $0x1f0] sm:$0xff]  ;;  %v1061_v24 = vrot.slane %v6803_v32, 1 }
 0x129   :  { %9564 = vst [vmem:[#allocation107_spill] sm:$0xff] %v7236_v26  ;;  %9566 = vst [vmem:[#allocation109_spill] sm:$0xff] %v7245_v54  ;;  %v7254_v8 = vmul.f32 %v6507_v12, %v7074_v39  ;;  %5214 = vmatprep.subr.mxu0 %v1810_v13  ;;  %v7257_v22 = vsel %vm982_vm0, %v1058_v2, %v1059_v43  ;;  %5294 = vmatprep.subr.mxu1 %v1842_v7  ;;  %v1826_v4 = vld [vmem:[#allocation5 + $0x550] sm:$0xff]  ;;  %v1062_v55 = vrot.slane %v7225_v51, 1  ;;  %v6508_v34 = vld [vmem:[#allocation2 + $0x2a8] sm:$0xff] }
 0x12a   :  { %9567 = vst [vmem:[#allocation110_spill] sm:$0xff] %v7249_v31  ;;  %9569 = vst [vmem:[#allocation112_spill] sm:$0xff] %v7257_v22  ;;  %v7262_v30 = vmul.f32 %v6508_v34, %v7113_v44  ;;  %2619 = vmatmul.mubr.f32.gmra.mxu0 %v7240_v37  ;;  %2764 = vmatmul.mubr.f32.gmra.mxu1 %v7249_v31  ;;  %v1809_v39 = vld [vmem:[#allocation5 + $0x4c8] sm:$0xff]  ;;  %v1070_v13 = vrot.slane %v6810_v50, 1  ;;  %v1071_v43 = vrot.slane %v7233_v14, 1  ;;  %v1077_v2 = vrot.slane %v7236_v26, 1 }
 0x12b   :  { %9568 = vst [vmem:[#allocation111_spill] sm:$0xff] %v7254_v8  ;;  %v1841_v7 = vld [vmem:[#allocation5 + $0x5c8] sm:$0xff]  ;;  %v6509_v12 = vld [vmem:[#allocation2 + $0x2b8] sm:$0xff]  ;;  %5215 = vmatpush3.msra.mxu0 %v1794_v35  ;;  %2623 = vmatprep.mubr.f32.mxu0 %v7257_v22  ;;  %v7274_v34 = vsel %vm982_vm0, %v1064_v62, %v1065_v40  ;;  %v1076_v31 = vrot.slane %v6812_v52, 1  ;;  %v1068_v37 = vrot.slane %v7245_v54, 1  ;;  %v6510_v50 = vld [vmem:[#allocation2 + $0x2a0] sm:$0xff] }
 0x12c   :  { %v7270_v32 = vmul.f32 %v6509_v12, %v7113_v44  ;;  %9571 = vst [vmem:[#allocation114_spill] sm:$0xff] %v7274_v34  ;;  %v7279_v14 = vmul.f32 %v6510_v50, %v7113_v44  ;;  %2768 = vmatprep.mubr.f32.mxu1 %v7274_v34  ;;  %5295 = vmatpush3.msra.mxu1 %v1826_v4  ;;  %v1793_v35 = vld [vmem:[#allocation5 + $0x448] sm:$0xff]  ;;  %v1074_v22 = vrot.slane %v7254_v8, 1  ;;  %v6511_v26 = vld [vmem:[#allocation2 + $0x2b0] sm:$0xff]  ;;  %v1083_v8 = vrot.slane %v7262_v30, 1 }
 0x12d   :  { %v7283_v12 = vsel %vm982_vm0, %v1055_v48, %v1056_v56  ;;  %v7287_v62 = vmul.f32 %v6511_v26, %v7113_v44  ;;  %v6512_v40 = vld [vmem:[#allocation2 + $0x2e8] sm:$0xff]  ;;  %5216 = vmatprep.subr.mxu0 %v1809_v39  ;;  %v7293_v50 = vsel %vm982_vm0, %v1061_v24, %v1062_v55  ;;  %5296 = vmatprep.subr.mxu1 %v1841_v7  ;;  %v1067_v48 = vrot.slane %v6818_v60, 1  ;;  %v9577_v56 = vld [vmem:[#allocation38_spill] sm:$0xff]  ;;  %v1808_v24 = vld [vmem:[#allocation5 + $0x4c0] sm:$0xff] }
 0x12e   :  { %9570 = vst [vmem:[#allocation113_spill] sm:$0xff] %v7270_v32  ;;  %9572 = vst [vmem:[#allocation115_spill] sm:$0xff] %v7279_v14  ;;  %v7290_v54 = vmul.f32 %v6512_v40, %v7100_v45  ;;  %v1825_v4 = vld [vmem:[#allocation5 + $0x548] sm:$0xff]  ;;  %v1073_v34 = vrot.slane %v9577_v56, 1  ;;  %2624 = vmatmul.mubr.f32.gmra.mxu0 %v7283_v12  ;;  %2769 = vmatmul.mubr.f32.gmra.mxu1 %v7293_v50  ;;  %v7301_v44 = vsel %vm982_vm0, %v1070_v13, %v1071_v43  ;;  %v9580_v55 = vld [vmem:[#allocation39_spill] sm:$0xff] }
 0x12f   :  { %9573 = vst [vmem:[#allocation116_spill] sm:$0xff] %v7283_v12  ;;  %9574 = vst [vmem:[#allocation117_spill] sm:$0xff] %v7287_v62  ;;  %v7304_v26 = vsel %vm982_vm0, %v1076_v31, %v1077_v2  ;;  %v1082_v39 = vrot.slane %v9580_v55, 1  ;;  %v1089_v7 = vrot.slane %v7270_v32, 1  ;;  %v1840_v40 = vld [vmem:[#allocation5 + $0x5c0] sm:$0xff]  ;;  %5217 = vmatpush3.msra.mxu0 %v1793_v35  ;;  %2628 = vmatprep.mubr.f32.mxu0 %v7301_v44  ;;  %v1080_v13 = vrot.slane %v7279_v14, 1 }
 0x130   :  { %9575 = vst [vmem:[#allocation118_spill] sm:$0xff] %v7290_v54  ;;  %9576 = vst [vmem:[#allocation119_spill] sm:$0xff] %v7293_v50  ;;  %v7310_v56 = vsel %vm982_vm0, %v1067_v48, %v1068_v37  ;;  %v9582_v12 = vld [vmem:[#allocation40_spill] sm:$0xff]  ;;  %v6513_v43 = vld [vmem:[#allocation2 + $0x2f8] sm:$0xff]  ;;  %2773 = vmatprep.mubr.f32.mxu1 %v7304_v26  ;;  %5297 = vmatpush3.msra.mxu1 %v1825_v4  ;;  %v7319_v2 = vsel %vm982_vm0, %v1073_v34, %v1074_v22  ;;  %v1086_v37 = vrot.slane %v7287_v62, 1 }
 0x131   :  { %9578 = vst [vmem:[#allocation120_spill] sm:$0xff] %v7301_v44  ;;  %9579 = vst [vmem:[#allocation121_spill] sm:$0xff] %v7304_v26  ;;  %v1088_v50 = vrot.slane %v9582_v12, 1  ;;  %v7315_v31 = vmul.f32 %v6513_v43, %v7100_v45  ;;  %v1792_v35 = vld [vmem:[#allocation5 + $0x440] sm:$0xff]  ;;  %v9584_v55 = vld [vmem:[#allocation41_spill] sm:$0xff]  ;;  %v1095_v48 = vrot.slane %v7290_v54, 1  ;;  %5218 = vmatprep.subr.mxu0 %v1808_v24  ;;  %v1084_v12 = vsel %vm982_vm0, %v1082_v39, %v1083_v8 }
 0x132   :  { %9581 = vst [vmem:[#allocation122_spill] sm:$0xff] %v7310_v56  ;;  %9583 = vst [vmem:[#allocation123_spill] sm:$0xff] %v7319_v2  ;;  %v1079_v44 = vrot.slane %v9584_v55, 1  ;;  %5298 = vmatprep.subr.mxu1 %v1840_v40  ;;  %v1824_v14 = vld [vmem:[#allocation5 + $0x540] sm:$0xff]  ;;  %v9585_v43 = vld [vmem:[#allocation42_spill] sm:$0xff]  ;;  %2629 = vmatmul.mubr.f32.gmra.mxu0 %v7310_v56 }
 0x133   :  { %v1085_v32 = vrot.slane %v9585_v43, 1  ;;  %v6514_v60 = vld [vmem:[#allocation2 + $0x2e0] sm:$0xff]  ;;  %v6515_v22 = vld [vmem:[#allocation2 + $0x2f0] sm:$0xff]  ;;  %2774 = vmatmul.mubr.f32.gmra.mxu1 %v7319_v2  ;;  %v1090_v24 = vsel %vm982_vm0, %v1088_v50, %v1089_v7  ;;  %v1807_v26 = vld [vmem:[#allocation5 + $0x4b8] sm:$0xff]  ;;  %5219 = vmatpush3.msra.mxu0 %v1792_v35 }
 0x134   :  { %v7327_v4 = vmul.f32 %v6514_v60, %v7100_v45  ;;  %v7330_v34 = vmul.f32 %v6515_v22, %v7100_v45  ;;  %v9587_v8 = vld [vmem:[#allocation43_spill] sm:$0xff]  ;;  %v9588_v40 = vld [vmem:[#allocation44_spill] sm:$0xff]  ;;  %2633 = vmatprep.mubr.f32.mxu0 %v1084_v12  ;;  %v1081_v45 = vsel %vm982_vm0, %v1079_v44, %v1080_v13  ;;  %v1101_v22 = vrot.slane %v7315_v31, 1  ;;  %v9590_v56 = vld [vmem:[#allocation45_spill] sm:$0xff]  ;;  %2778 = vmatprep.mubr.f32.mxu1 %v1090_v24 }
 0x135   :  { %v1094_v39 = vrot.slane %v9587_v8, 1  ;;  %v1100_v54 = vrot.slane %v9588_v40, 1  ;;  %v1839_v43 = vld [vmem:[#allocation5 + $0x5b8] sm:$0xff]  ;;  %v6516_v55 = vld [vmem:[#allocation2 + $0x328] sm:$0xff]  ;;  %v1091_v2 = vrot.slane %v9590_v56, 1  ;;  %5299 = vmatpush3.msra.mxu1 %v1824_v14  ;;  %v1087_v7 = vsel %vm982_vm0, %v1085_v32, %v1086_v37  ;;  %v6518_v8 = vld [vmem:[#allocation2 + $0x320] sm:$0xff]  ;;  %5220 = vmatprep.subr.mxu0 %v1807_v26 }
 0x136   :  { %9586 = vst [vmem:[#allocation124_spill] sm:$0xff] %v7330_v34  ;;  %v7338_v60 = vmul.f32 %v6516_v55, %v7155_v28  ;;  %v6517_v62 = vld [vmem:[#allocation2 + $0x338] sm:$0xff]  ;;  %v7352_v44 = vmul.f32 %v6518_v8, %v7155_v28  ;;  %5300 = vmatprep.subr.mxu1 %v1839_v43  ;;  %v1098_v24 = vrot.slane %v7330_v34, 1  ;;  %v6519_v32 = vld [vmem:[#allocation2 + $0x330] sm:$0xff]  ;;  %2634 = vmatmul.mubr.f32.gmra.mxu0 %v1081_v45  ;;  %v1241_v43 = vrot.slane %v6984_v36, 2  ;;  %v9595_v45 = vld [vmem:[#allocation48_spill] sm:$0xff] }
 0x137   :  { %v7344_v50 = vmul.f32 %v6517_v62, %v7155_v28  ;;  %v1791_v40 = vld [vmem:[#allocation5 + $0x438] sm:$0xff]  ;;  %v7348_v55 = vsel %vm982_vm0, %v1094_v39, %v1095_v48  ;;  %v1092_v62 = vrot.slane %v7327_v4, 1  ;;  %v7358_v37 = vmul.f32 %v6519_v32, %v7155_v28  ;;  %2779 = vmatmul.mubr.f32.gmra.mxu1 %v1087_v7  ;;  %v1806_v48 = vld [vmem:[#allocation5 + $0x4b0] sm:$0xff] }
 0x138   :  { %9589 = vst [vmem:[#allocation125_spill] sm:$0xff] %v7338_v60  ;;  %9591 = vst [vmem:[#allocation126_spill] sm:$0xff] %v7348_v55  ;;  %v9592_v35 = vld [vmem:[#allocation46_spill] sm:$0xff]  ;;  %v9593_v14 = vld [vmem:[#allocation47_spill] sm:$0xff]  ;;  %v1107_v39 = vrot.slane %v7338_v60, 1  ;;  %v1247_v34 = vrot.slane %v6987_v25, 2  ;;  %5221 = vmatpush3.msra.mxu0 %v1791_v40  ;;  %2638 = vmatprep.mubr.f32.mxu0 %v7348_v55  ;;  %v7368_v28 = vsel %vm982_vm0, %v1100_v54, %v1101_v22 }
 0x139   :  { %v1097_v12 = vrot.slane %v9592_v35, 1  ;;  %v1823_v13 = vld [vmem:[#allocation5 + $0x538] sm:$0xff]  ;;  %v1106_v56 = vrot.slane %v9593_v14, 1  ;;  %v1838_v8 = vld [vmem:[#allocation5 + $0x5b0] sm:$0xff]  ;;  %v6520_v35 = vld [vmem:[#allocation2 + $0x368] sm:$0xff]  ;;  %9594 = vst [vmem:[#allocation127_spill] sm:$0xff] %v7368_v28  ;;  %2783 = vmatprep.mubr.f32.mxu1 %v7368_v28  ;;  %5222 = vmatprep.subr.mxu0 %v1806_v48 }
 0x13a   :  { %v7362_v26 = vmul.f32 %v6520_v35, %v7144_v15  ;;  %v1112_v7 = vrot.slane %v9595_v45, 1  ;;  %v1113_v32 = vrot.slane %v7344_v50, 1  ;;  %v6521_v14 = vld [vmem:[#allocation2 + $0x378] sm:$0xff]  ;;  %5301 = vmatpush3.msra.mxu1 %v1823_v13  ;;  %v1790_v36 = vld [vmem:[#allocation5 + $0x430] sm:$0xff]  ;;  %v1104_v25 = vrot.slane %v7352_v44, 1  ;;  %v6522_v40 = vld [vmem:[#allocation2 + $0x360] sm:$0xff] }
 0x13b   :  { %v7373_v60 = vmul.f32 %v6521_v14, %v7144_v15  ;;  %v7378_v35 = vmul.f32 %v6522_v40, %v7144_v15  ;;  %v9598_v54 = vrot.slane %v6708_v41, 2  ;;  %v9599_v55 = vrot.slane %v6712_v46, 2  ;;  %5302 = vmatprep.subr.mxu1 %v1838_v8  ;;  %v1822_v40 = vld [vmem:[#allocation5 + $0x530] sm:$0xff]  ;;  %5223 = vmatpush3.msra.mxu0 %v1790_v36  ;;  %v1789_v36 = vld [vmem:[#allocation5 + $0x428] sm:$0xff] }
 0x13c   :  { %v7391_v13 = vsel %vm982_vm0, %v1091_v2, %v1092_v62  ;;  %v7394_v28 = vsel %vm982_vm0, %v1097_v12, %v1098_v24  ;;  %v1110_v45 = vrot.slane %v7358_v37, 1  ;;  %v6523_v41 = vld [vmem:[#allocation2 + $0x370] sm:$0xff]  ;;  %v7403_v46 = vsel %vm982_vm0, %v1106_v56, %v1107_v39  ;;  %v1805_v2 = vld [vmem:[#allocation5 + $0x4a8] sm:$0xff]  ;;  %v6525_v39 = vld [vmem:[#allocation2 + $0x3b8] sm:$0xff]  ;;  %5303 = vmatpush3.msra.mxu1 %v1822_v40 }
 0x13d   :  { %9596 = vst [vmem:[#allocation128_spill] sm:$0xff] %v7373_v60  ;;  %9597 = vst [vmem:[#allocation129_spill] sm:$0xff] %v7378_v35  ;;  %v7383_v22 = vsel %vm1239_vm1, %v9598_v54, %v1241_v43  ;;  %v7388_v14 = vsel %vm1239_vm1, %v9599_v55, %v1247_v34  ;;  %v7398_v43 = vmul.f32 %v6523_v41, %v7144_v15  ;;  %2639 = vmatmul.mubr.f32.gmra.mxu0 %v7391_v13  ;;  %v9604_v34 = vld [vmem:[#allocation49_spill] sm:$0xff]  ;;  %v9607_v8 = vld [vmem:[#allocation50_spill] sm:$0xff] }
 0x13e   :  { %9600 = vst [vmem:[#allocation130_spill] sm:$0xff] %v7391_v13  ;;  %9601 = vst [vmem:[#allocation131_spill] sm:$0xff] %v7394_v28  ;;  %2784 = vmatmul.mubr.f32.gmra.mxu1 %v7394_v28  ;;  %v1103_v55 = vrot.slane %v9604_v34, 1  ;;  %v1119_v12 = vrot.slane %v7362_v26, 1  ;;  %v1837_v62 = vld [vmem:[#allocation5 + $0x5a8] sm:$0xff]  ;;  %2643 = vmatprep.mubr.f32.mxu0 %v7403_v46  ;;  %v7412_v15 = vsel %vm982_vm0, %v1112_v7, %v1113_v32  ;;  %v1109_v54 = vrot.slane %v9607_v8, 1 }
 0x13f   :  { %9602 = vst [vmem:[#allocation132_spill] sm:$0xff] %v7398_v43  ;;  %9603 = vst [vmem:[#allocation133_spill] sm:$0xff] %v7403_v46  ;;  %v6524_v24 = vld [vmem:[#allocation2 + $0x3a8] sm:$0xff]  ;;  %v1125_v56 = vrot.slane %v7373_v60, 1  ;;  %v7417_v41 = vmul.f32 %v6525_v39, %v7192_v20  ;;  %2788 = vmatprep.mubr.f32.mxu1 %v7412_v15  ;;  %v9610_v28 = vld [vmem:[#allocation51_spill] sm:$0xff]  ;;  %v1116_v32 = vrot.slane %v7378_v35, 1  ;;  %5224 = vmatprep.subr.mxu0 %v1805_v2 }
 0x140   :  { %v7408_v48 = vmul.f32 %v6524_v24, %v7192_v20  ;;  %9606 = vst [vmem:[#allocation135_spill] sm:$0xff] %v7412_v15  ;;  %v7421_v24 = vsel %vm982_vm0, %v1103_v55, %v1104_v25  ;;  %v1118_v46 = vrot.slane %v9610_v28, 1  ;;  %v9611_v13 = vld [vmem:[#allocation52_spill] sm:$0xff]  ;;  %v7427_v60 = vsel %vm982_vm0, %v1109_v54, %v1110_v45  ;;  %5304 = vmatprep.subr.mxu1 %v1837_v62  ;;  %v6527_v25 = vld [vmem:[#allocation2 + $0x3b0] sm:$0xff] }
 0x141   :  { %9608 = vst [vmem:[#allocation136_spill] sm:$0xff] %v7417_v41  ;;  %9609 = vst [vmem:[#allocation137_spill] sm:$0xff] %v7421_v24  ;;  %v1124_v7 = vrot.slane %v9611_v13, 1  ;;  %v1821_v39 = vld [vmem:[#allocation5 + $0x528] sm:$0xff]  ;;  %v1122_v8 = vrot.slane %v7398_v43, 1  ;;  %v6526_v15 = vld [vmem:[#allocation2 + $0x3a0] sm:$0xff]  ;;  %v7434_v55 = vmul.f32 %v6527_v25, %v7192_v20  ;;  %2644 = vmatmul.mubr.f32.gmra.mxu0 %v7421_v24 }
 0x142   :  { %9605 = vst [vmem:[#allocation134_spill] sm:$0xff] %v7408_v48  ;;  %9612 = vst [vmem:[#allocation138_spill] sm:$0xff] %v7427_v60  ;;  %v7431_v40 = vmul.f32 %v6526_v15, %v7192_v20  ;;  %2789 = vmatmul.mubr.f32.gmra.mxu1 %v7427_v60  ;;  %v7439_v2 = vsel %vm982_vm0, %v1118_v46, %v1119_v12  ;;  %v1804_v45 = vld [vmem:[#allocation5 + $0x4a0] sm:$0xff]  ;;  %v9616_v62 = vld [vmem:[#allocation53_spill] sm:$0xff]  ;;  %v1131_v43 = vrot.slane %v7408_v48, 1  ;;  %5225 = vmatpush3.msra.mxu0 %v1789_v36 }
 0x143   :  { %9614 = vst [vmem:[#allocation140_spill] sm:$0xff] %v7434_v55  ;;  %9615 = vst [vmem:[#allocation141_spill] sm:$0xff] %v7439_v2  ;;  %v1115_v54 = vrot.slane %v9616_v62, 1  ;;  %v1836_v35 = vld [vmem:[#allocation5 + $0x5a0] sm:$0xff]  ;;  %v6528_v13 = vld [vmem:[#allocation2 + $0x3e8] sm:$0xff]  ;;  %2648 = vmatprep.mubr.f32.mxu0 %v7439_v2  ;;  %v7448_v20 = vsel %vm982_vm0, %v1124_v7, %v1125_v56  ;;  %v1137_v46 = vrot.slane %v7417_v41, 1  ;;  %5305 = vmatpush3.msra.mxu1 %v1821_v39 }
 0x144   :  { %9613 = vst [vmem:[#allocation139_spill] sm:$0xff] %v7431_v40  ;;  %v7444_v15 = vmul.f32 %v6528_v13, %v7190_v47  ;;  %9618 = vst [vmem:[#allocation143_spill] sm:$0xff] %v7448_v20  ;;  %v9619_v25 = vld [vmem:[#allocation54_spill] sm:$0xff]  ;;  %2793 = vmatprep.mubr.f32.mxu1 %v7448_v20  ;;  %v1788_v36 = vld [vmem:[#allocation5 + $0x420] sm:$0xff]  ;;  %5226 = vmatprep.subr.mxu0 %v1804_v45  ;;  %v1128_v39 = vrot.slane %v7431_v40, 1 }
 0x145   :  { %v1121_v60 = vrot.slane %v9619_v25, 1  ;;  %v6529_v12 = vld [vmem:[#allocation2 + $0x3f8] sm:$0xff]  ;;  %v7457_v13 = vsel %vm982_vm0, %v1115_v54, %v1116_v32  ;;  %v9623_v48 = vld [vmem:[#allocation56_spill] sm:$0xff]  ;;  %5306 = vmatprep.subr.mxu1 %v1836_v35  ;;  %v1134_v32 = vrot.slane %v7434_v55, 1  ;;  %v6531_v54 = vld [vmem:[#allocation2 + $0x3f0] sm:$0xff]  ;;  %5227 = vmatpush3.msra.mxu0 %v1788_v36 }
 0x146   :  { %9617 = vst [vmem:[#allocation142_spill] sm:$0xff] %v7444_v15  ;;  %v7453_v24 = vmul.f32 %v6529_v12, %v7190_v47  ;;  %9621 = vst [vmem:[#allocation145_spill] sm:$0xff] %v7457_v13  ;;  %v9622_v62 = vld [vmem:[#allocation55_spill] sm:$0xff]  ;;  %v1136_v56 = vrot.slane %v9623_v48, 1  ;;  %v7470_v20 = vmul.f32 %v6531_v54, %v7190_v47  ;;  %2649 = vmatmul.mubr.f32.gmra.mxu0 %v7457_v13  ;;  %v1143_v35 = vrot.slane %v7444_v15, 1  ;;  %v6532_v40 = vld [vmem:[#allocation2 + $0x428] sm:$0xff] }
 0x147   :  { %v1130_v2 = vrot.slane %v9622_v62, 1  ;;  %v6530_v7 = vld [vmem:[#allocation2 + $0x3e0] sm:$0xff]  ;;  %v7465_v41 = vsel %vm982_vm0, %v1121_v60, %v1122_v8  ;;  %v1803_v45 = vld [vmem:[#allocation5 + $0x498] sm:$0xff]  ;;  %v9627_v60 = vld [vmem:[#allocation57_spill] sm:$0xff]  ;;  %v7480_v55 = vmul.f32 %v6532_v40, %v7227_v9 }
 0x148   :  { %9620 = vst [vmem:[#allocation144_spill] sm:$0xff] %v7453_v24  ;;  %v7462_v25 = vmul.f32 %v6530_v7, %v7190_v47  ;;  %9624 = vst [vmem:[#allocation146_spill] sm:$0xff] %v7465_v41  ;;  %v1820_v12 = vld [vmem:[#allocation5 + $0x520] sm:$0xff]  ;;  %2794 = vmatmul.mubr.f32.gmra.mxu1 %v7465_v41  ;;  %v1127_v8 = vrot.slane %v9627_v60, 1  ;;  %v1835_v48 = vld [vmem:[#allocation5 + $0x598] sm:$0xff]  ;;  %v7484_v47 = vsel %vm982_vm0, %v1136_v56, %v1137_v46  ;;  %5228 = vmatprep.subr.mxu0 %v1803_v45 }
 0x149   :  { %9625 = vst [vmem:[#allocation147_spill] sm:$0xff] %v7470_v20  ;;  %v7475_v7 = vsel %vm982_vm0, %v1130_v2, %v1131_v43  ;;  %9628 = vst [vmem:[#allocation149_spill] sm:$0xff] %v7480_v55  ;;  %v9630_v54 = vld [vmem:[#allocation58_spill] sm:$0xff]  ;;  %v1149_v43 = vrot.slane %v7453_v24, 1  ;;  %2798 = vmatprep.mubr.f32.mxu1 %v7484_v47  ;;  %5307 = vmatpush3.msra.mxu1 %v1820_v12  ;;  %v9632_v40 = vld [vmem:[#allocation59_spill] sm:$0xff] }
 0x14a   :  { %9626 = vst [vmem:[#allocation148_spill] sm:$0xff] %v7475_v7  ;;  %2653 = vmatprep.mubr.f32.mxu0 %v7475_v7  ;;  %9629 = vst [vmem:[#allocation150_spill] sm:$0xff] %v7484_v47  ;;  %v1133_v41 = vrot.slane %v9630_v54, 1  ;;  %v6533_v2 = vld [vmem:[#allocation2 + $0x438] sm:$0xff]  ;;  %v1142_v60 = vrot.slane %v9632_v40, 1  ;;  %v9633_v36 = vld [vmem:[#allocation60_spill] sm:$0xff]  ;;  %v7499_v24 = vsel %vm982_vm0, %v1127_v8, %v1128_v39  ;;  %5308 = vmatprep.subr.mxu1 %v1835_v48 }
 0x14b   :  { %v7489_v13 = vmul.f32 %v6533_v2, %v7227_v9  ;;  %v1787_v15 = vld [vmem:[#allocation5 + $0x418] sm:$0xff]  ;;  %v1148_v62 = vrot.slane %v9633_v36, 1  ;;  %v1140_v7 = vrot.slane %v7462_v25, 1  ;;  %v6534_v46 = vld [vmem:[#allocation2 + $0x420] sm:$0xff]  ;;  %9635 = vst [vmem:[#allocation153_spill] sm:$0xff] %v7499_v24  ;;  %v1146_v47 = vrot.slane %v7470_v20, 1  ;;  %2654 = vmatmul.mubr.f32.gmra.mxu0 %v7499_v24 }
 0x14c   :  { %v7496_v56 = vmul.f32 %v6534_v46, %v7227_v9  ;;  %v7502_v2 = vsel %vm982_vm0, %v1133_v41, %v1134_v32  ;;  %v1819_v12 = vld [vmem:[#allocation5 + $0x518] sm:$0xff]  ;;  %v6535_v40 = vld [vmem:[#allocation2 + $0x430] sm:$0xff]  ;;  %v7511_v45 = vsel %vm982_vm0, %v1142_v60, %v1143_v35  ;;  %v1155_v41 = vrot.slane %v7480_v55, 1  ;;  %v6536_v32 = vld [vmem:[#allocation2 + $0x468] sm:$0xff]  ;;  %5229 = vmatpush3.msra.mxu0 %v1787_v15 }
 0x14d   :  { %9631 = vst [vmem:[#allocation151_spill] sm:$0xff] %v7489_v13  ;;  %9636 = vst [vmem:[#allocation154_spill] sm:$0xff] %v7502_v2  ;;  %v7506_v36 = vmul.f32 %v6535_v40, %v7227_v9  ;;  %2799 = vmatmul.mubr.f32.gmra.mxu1 %v7502_v2  ;;  %v1802_v39 = vld [vmem:[#allocation5 + $0x490] sm:$0xff]  ;;  %v7516_v20 = vmul.f32 %v6536_v32, %v7218_v6  ;;  %2658 = vmatprep.mubr.f32.mxu0 %v7511_v45  ;;  %v1161_v60 = vrot.slane %v7489_v13, 1  ;;  %v6537_v35 = vld [vmem:[#allocation2 + $0x478] sm:$0xff] }
 0x14e   :  { %9634 = vst [vmem:[#allocation152_spill] sm:$0xff] %v7496_v56  ;;  %9638 = vst [vmem:[#allocation156_spill] sm:$0xff] %v7511_v45  ;;  %v9639_v8 = vld [vmem:[#allocation61_spill] sm:$0xff]  ;;  %v7520_v9 = vsel %vm982_vm0, %v1148_v62, %v1149_v43  ;;  %v9642_v40 = vld [vmem:[#allocation62_spill] sm:$0xff]  ;;  %v7525_v24 = vmul.f32 %v6537_v35, %v7218_v6  ;;  %5309 = vmatpush3.msra.mxu1 %v1819_v12  ;;  %v1152_v43 = vrot.slane %v7496_v56, 1  ;;  %5230 = vmatprep.subr.mxu0 %v1802_v39 }
 0x14f   :  { %9637 = vst [vmem:[#allocation155_spill] sm:$0xff] %v7506_v36  ;;  %v1139_v46 = vrot.slane %v9639_v8, 1  ;;  %v1834_v48 = vld [vmem:[#allocation5 + $0x590] sm:$0xff]  ;;  %9640 = vst [vmem:[#allocation157_spill] sm:$0xff] %v7516_v20  ;;  %v1145_v2 = vrot.slane %v9642_v40, 1  ;;  %2803 = vmatprep.mubr.f32.mxu1 %v7520_v9  ;;  %v9646_v55 = vld [vmem:[#allocation67_spill] sm:$0xff] }
 0x150   :  { %9641 = vst [vmem:[#allocation158_spill] sm:$0xff] %v7520_v9  ;;  %9643 = vst [vmem:[#allocation159_spill] sm:$0xff] %v7525_v24  ;;  %v1786_v15 = vld [vmem:[#allocation5 + $0x410] sm:$0xff]  ;;  %v1160_v62 = vrot.slane %v9646_v55, 1  ;;  %5310 = vmatprep.subr.mxu1 %v1834_v48  ;;  %v1158_v40 = vrot.slane %v7506_v36, 1  ;;  %v6538_v9 = vld [vmem:[#allocation2 + $0x460] sm:$0xff] }
 0x151   :  { %v7529_v32 = vsel %vm982_vm0, %v1139_v46, %v1140_v7  ;;  %v9645_v8 = vld [vmem:[#allocation66_spill] sm:$0xff]  ;;  %v7535_v13 = vsel %vm982_vm0, %v1145_v2, %v1146_v47  ;;  %v7539_v12 = vmul.f32 %v6538_v9, %v7218_v6  ;;  %v1801_v47 = vld [vmem:[#allocation5 + $0x488] sm:$0xff]  ;;  %v9650_v2 = vld [vmem:[#allocation71_spill] sm:$0xff]  ;;  %v1167_v56 = vrot.slane %v7516_v20, 1  ;;  %5231 = vmatpush3.msra.mxu0 %v1786_v15 }
 0x152   :  { %9644 = vst [vmem:[#allocation160_spill] sm:$0xff] %v7529_v32  ;;  %v1154_v45 = vrot.slane %v9645_v8, 1  ;;  %9647 = vst [vmem:[#allocation161_spill] sm:$0xff] %v7535_v13  ;;  %v1818_v35 = vld [vmem:[#allocation5 + $0x510] sm:$0xff]  ;;  %2659 = vmatmul.mubr.f32.gmra.mxu0 %v7529_v32  ;;  %2804 = vmatmul.mubr.f32.gmra.mxu1 %v7535_v13  ;;  %v1151_v48 = vrot.slane %v9650_v2, 1  ;;  %v9651_v55 = vld [vmem:[#allocation63_spill] sm:$0xff] }
 0x153   :  { %v6539_v7 = vld [vmem:[#allocation2 + $0x470] sm:$0xff]  ;;  %v1166_v36 = vrot.slane %v9651_v55, 1  ;;  %v1833_v9 = vld [vmem:[#allocation5 + $0x588] sm:$0xff]  ;;  %5311 = vmatpush3.msra.mxu1 %v1818_v35  ;;  %v1163_v15 = vrot.slane %v6971_v27, 1  ;;  %5232 = vmatprep.subr.mxu0 %v1801_v47  ;;  %v1800_v35 = vld [vmem:[#allocation5 + $0x480] sm:$0xff] }
 0x154   :  { %v7542_v46 = vmul.f32 %v6539_v7, %v7218_v6  ;;  %v7547_v39 = vsel %vm982_vm0, %v1154_v45, %v1155_v41  ;;  %v7554_v6 = vsel %vm982_vm0, %v1160_v62, %v1161_v60  ;;  %v9653_v7 = vld [vmem:[#allocation72_spill] sm:$0xff]  ;;  %v9654_v13 = vld [vmem:[#allocation69_spill] sm:$0xff]  ;;  %v1173_v45 = vrot.slane %v7525_v24, 1  ;;  %5312 = vmatprep.subr.mxu1 %v1833_v9 }
 0x155   :  { %9649 = vst [vmem:[#allocation163_spill] sm:$0xff] %v7547_v39  ;;  %2663 = vmatprep.mubr.f32.mxu0 %v7547_v39  ;;  %9652 = vst [vmem:[#allocation164_spill] sm:$0xff] %v7554_v6  ;;  %v1157_v32 = vrot.slane %v9653_v7, 1  ;;  %v1172_v8 = vrot.slane %v9654_v13, 1  ;;  %2808 = vmatprep.mubr.f32.mxu1 %v7554_v6  ;;  %v7561_v41 = vsel %vm982_vm0, %v1151_v48, %v1152_v43  ;;  %v1785_v20 = vld [vmem:[#allocation5 + $0x408] sm:$0xff]  ;;  %v1164_v62 = vrot.slane %v7539_v12, 1 }
 0x156   :  { %9648 = vst [vmem:[#allocation162_spill] sm:$0xff] %v7542_v46  ;;  %9655 = vst [vmem:[#allocation165_spill] sm:$0xff] %v7561_v41  ;;  %v1817_v60 = vld [vmem:[#allocation5 + $0x508] sm:$0xff]  ;;  %v1169_v13 = vrot.slane %v6993_v58, 1  ;;  %v1170_v24 = vrot.slane %v7542_v46, 1  ;;  %2664 = vmatmul.mubr.f32.gmra.mxu0 %v7561_v41  ;;  %v7573_v43 = vsel %vm982_vm0, %v1166_v36, %v1167_v56  ;;  %v1784_v41 = vld [vmem:[#allocation5 + $0x400] sm:$0xff] }
 0x157   :  { %v7565_v39 = vsel %vm982_vm0, %v1157_v32, %v1158_v40  ;;  %9657 = vst [vmem:[#allocation167_spill] sm:$0xff] %v7573_v43  ;;  %v9658_v47 = vld [vmem:[#allocation64_spill] sm:$0xff]  ;;  %5233 = vmatpush3.msra.mxu0 %v1785_v20  ;;  %2668 = vmatprep.mubr.f32.mxu0 %v7573_v43  ;;  %v7578_v32 = vsel %vm982_vm0, %v1172_v8, %v1173_v45  ;;  %v9664_v20 = vld [vmem:[#allocation13_spill] sm:$0xff] }
 0x158   :  { %9656 = vst [vmem:[#allocation166_spill] sm:$0xff] %v7565_v39  ;;  %2809 = vmatmul.mubr.f32.gmra.mxu1 %v7565_v39  ;;  %v1244_v48 = vrot.slane %v9658_v47, 2  ;;  %v1832_v40 = vld [vmem:[#allocation5 + $0x580] sm:$0xff]  ;;  %9659 = vst [vmem:[#allocation64_spill] sm:$0xff] %v7578_v32  ;;  %5234 = vmatprep.subr.mxu0 %v1800_v35  ;;  %v7584_v36 = vsel %vm982_vm0, %v1163_v15, %v1164_v62  ;;  %v7587_v56 = vsel %vm982_vm0, %v1169_v13, %v1170_v24  ;;  %v1911_v35 = vld [vmem:[#allocation5 + $0x7f8] sm:$0xff] }
 0x159   :  { %v9660_v9 = vld [vmem:[#allocation68_spill] sm:$0xff]  ;;  %2813 = vmatprep.mubr.f32.mxu1 %v7578_v32  ;;  %5313 = vmatpush3.msra.mxu1 %v1817_v60  ;;  %v1249_v47 = vrot.slane %v9664_v20, 2  ;;  %v1879_v60 = vld [vmem:[#allocation5 + $0x6f8] sm:$0xff] }
 0x15a   :  { %v1250_v6 = vrot.slane %v9660_v9, 2  ;;  %v9661_v39 = vld [vmem:[#allocation12_spill] sm:$0xff]  ;;  %9662 = vst [vmem:[#allocation68_spill] sm:$0xff] %v7584_v36  ;;  %5314 = vmatprep.subr.mxu1 %v1832_v40  ;;  %2669 = vmatmul.mubr.f32.gmra.mxu0 %v7584_v36  ;;  %v9665_v9 = vld [vmem:[#allocation65_spill] sm:$0xff]  ;;  %v9666_v24 = vld [vmem:[#allocation74_spill] sm:$0xff] }
 0x15b   :  { %v1243_v46 = vrot.slane %v9661_v39, 2  ;;  %9663 = vst [vmem:[#allocation12_spill] sm:$0xff] %v7587_v56  ;;  %v1816_v8 = vld [vmem:[#allocation5 + $0x500] sm:$0xff]  ;;  %v1256_v39 = vrot.slane %v9665_v9, 2  ;;  %5235 = vmatpush3.msra.mxu0 %v1784_v41  ;;  %v1262_v13 = vrot.slane %v9666_v24, 2  ;;  %v1863_v62 = vld [vmem:[#allocation5 + $0x678] sm:$0xff] }
 0x15c   :  { %2814 = vmatmul.mubr.f32.gmra.mxu1 %v7587_v56  ;;  %v1251_v15 = vsel %vm1239_vm1, %v1249_v47, %v1250_v6  ;;  %v9667_v40 = vld [vmem:[#allocation14_spill] sm:$0xff]  ;;  %5364 = vmatprep.subr.mxu0 %v1879_v60  ;;  %v1261_v56 = vrot.slane %v6721_v57, 2  ;;  %v9668_v9 = vld [vmem:[#allocation76_spill] sm:$0xff]  ;;  %v9670_v47 = vld [vmem:[#allocation77_spill] sm:$0xff] }
 0x15d   :  { %v1245_v45 = vsel %vm1239_vm1, %v1243_v46, %v1244_v48  ;;  %3028 = vmatprep.mubr.f32.mxu1 %v1251_v15  ;;  %5315 = vmatpush3.msra.mxu1 %v1816_v8  ;;  %v1255_v20 = vrot.slane %v9667_v40, 2  ;;  %v1895_v46 = vld [vmem:[#allocation5 + $0x778] sm:$0xff]  ;;  %v1253_v48 = vrot.slane %v7008_v11, 2  ;;  %v1259_v36 = vrot.slane %v9668_v9, 2  ;;  %v1878_v41 = vld [vmem:[#allocation5 + $0x6f0] sm:$0xff] }
 0x15e   :  { %2883 = vmatprep.mubr.f32.mxu0 %v1245_v45  ;;  %5444 = vmatprep.subr.mxu1 %v1911_v35  ;;  %v1268_v8 = vrot.slane %v9670_v47, 2  ;;  %v1910_v45 = vld [vmem:[#allocation5 + $0x7f0] sm:$0xff]  ;;  %v7608_v60 = vsel %vm1239_vm1, %v1261_v56, %v1262_v13  ;;  %v1252_v11 = vrot.slane %v6723_v59, 2  ;;  %v1258_v35 = vrot.slane %v6727_v63, 2  ;;  %v9673_v24 = vld [vmem:[#allocation79_spill] sm:$0xff] }
 0x15f   :  { %2884 = vmatmul.mubr.f32.vlgmr.msra.gmra.mxu0 %v7383_v22  ;;  %v7603_v6 = vsel %vm1239_vm1, %v1255_v20, %v1256_v39  ;;  %9671 = vst [vmem:[#allocation65_spill] sm:$0xff] %v7608_v60  ;;  %v9672_v22 = vld [vmem:[#allocation78_spill] sm:$0xff]  ;;  %v1267_v39 = vrot.slane %v6729_v3, 2  ;;  %v1265_v20 = vrot.slane %v9673_v24, 2  ;;  %v1273_v13 = vrot.slane %v6731_v5, 2 }
 0x160   :  { %3029 = vmatmul.mubr.f32.vlgmr.msra.gmra.mxu1 %v7388_v14  ;;  %9669 = vst [vmem:[#allocation13_spill] sm:$0xff] %v7603_v6  ;;  %5365 = vmatpush3.msra.mxu0 %v1863_v62  ;;  %v1274_v15 = vrot.slane %v9672_v22, 2  ;;  %v1862_v14 = vld [vmem:[#allocation5 + $0x670] sm:$0xff]  ;;  %v7617_v62 = vsel %vm1239_vm1, %v1252_v11, %v1253_v48  ;;  %v7620_v56 = vsel %vm1239_vm1, %v1258_v35, %v1259_v36  ;;  %v1271_v47 = vrot.slane %v7038_v0, 2  ;;  %v1909_v36 = vld [vmem:[#allocation5 + $0x7e8] sm:$0xff] }
 0x161   :  { %2888 = vmatprep.mubr.f32.mxu0 %v7603_v6  ;;  %3033 = vmatprep.mubr.f32.mxu1 %v7608_v60  ;;  %9674 = vst [vmem:[#allocation74_spill] sm:$0xff] %v7617_v62  ;;  %9675 = vst [vmem:[#allocation14_spill] sm:$0xff] %v7620_v56  ;;  %v1894_v9 = vld [vmem:[#allocation5 + $0x770] sm:$0xff]  ;;  %v1264_v48 = vrot.slane %v6739_v10, 2 }
 0x162   :  { %5445 = vmatpush3.msra.mxu1 %v1895_v46  ;;  %5366 = vmatprep.subr.mxu0 %v1878_v41  ;;  %v7627_v46 = vsel %vm1239_vm1, %v1267_v39, %v1268_v8  ;;  %v1877_v41 = vld [vmem:[#allocation5 + $0x6e8] sm:$0xff]  ;;  %v9679_v0 = vld [vmem:[#allocation18_spill] sm:$0xff] }
 0x163   :  { %5446 = vmatprep.subr.mxu1 %v1910_v45  ;;  %2889 = vmatmul.mubr.f32.gmra.mxu0 %v7617_v62  ;;  %9676 = vst [vmem:[#allocation76_spill] sm:$0xff] %v7627_v46  ;;  %v9677_v11 = vld [vmem:[#allocation81_spill] sm:$0xff]  ;;  %v7633_v45 = vsel %vm1239_vm1, %v1273_v13, %v1274_v15  ;;  %v1270_v35 = vrot.slane %v9679_v0, 2  ;;  %v9680_v24 = vld [vmem:[#allocation82_spill] sm:$0xff]  ;;  %v7639_v8 = vsel %vm1239_vm1, %v1264_v48, %v1265_v20  ;;  %v1285_v15 = vrot.slane %v6748_v21, 2 }
 0x164   :  { %3034 = vmatmul.mubr.f32.gmra.mxu1 %v7620_v56  ;;  %v1280_v22 = vrot.slane %v9677_v11, 2  ;;  %5367 = vmatpush3.msra.mxu0 %v1862_v14  ;;  %9678 = vst [vmem:[#allocation77_spill] sm:$0xff] %v7633_v45  ;;  %v1286_v62 = vrot.slane %v9680_v24, 2  ;;  %9681 = vst [vmem:[#allocation78_spill] sm:$0xff] %v7639_v8  ;;  %v1861_v39 = vld [vmem:[#allocation5 + $0x668] sm:$0xff]  ;;  %v1279_v11 = vrot.slane %v6746_v19, 2 }
 0x165   :  { %2893 = vmatprep.mubr.f32.mxu0 %v7627_v46  ;;  %3038 = vmatprep.mubr.f32.mxu1 %v7633_v45  ;;  %v7643_v14 = vsel %vm1239_vm1, %v1270_v35, %v1271_v47  ;;  %v1893_v13 = vld [vmem:[#allocation5 + $0x768] sm:$0xff]  ;;  %v1908_v47 = vld [vmem:[#allocation5 + $0x7e0] sm:$0xff] }
 0x166   :  { %5447 = vmatpush3.msra.mxu1 %v1894_v9  ;;  %5368 = vmatprep.subr.mxu0 %v1877_v41  ;;  %9682 = vst [vmem:[#allocation79_spill] sm:$0xff] %v7643_v14  ;;  %v9683_v46 = vld [vmem:[#allocation84_spill] sm:$0xff]  ;;  %v9684_v24 = vld [vmem:[#allocation85_spill] sm:$0xff]  ;;  %v7651_v20 = vsel %vm1239_vm1, %v1279_v11, %v1280_v22  ;;  %v9686_v41 = vld [vmem:[#allocation86_spill] sm:$0xff]  ;;  %v1291_v11 = vrot.slane %v6763_v38, 2 }
 0x167   :  { %5448 = vmatprep.subr.mxu1 %v1909_v36  ;;  %v1277_v56 = vrot.slane %v9683_v46, 2  ;;  %v1283_v60 = vrot.slane %v9684_v24, 2  ;;  %2894 = vmatmul.mubr.f32.gmra.mxu0 %v7639_v8  ;;  %9685 = vst [vmem:[#allocation81_spill] sm:$0xff] %v7651_v20  ;;  %v1876_v9 = vld [vmem:[#allocation5 + $0x6e0] sm:$0xff]  ;;  %v1292_v48 = vrot.slane %v9686_v41, 2  ;;  %v7656_v36 = vsel %vm1239_vm1, %v1285_v15, %v1286_v62  ;;  %v9688_v46 = vld [vmem:[#allocation21_spill] sm:$0xff] }
 0x168   :  { %3039 = vmatmul.mubr.f32.gmra.mxu1 %v7643_v14  ;;  %5369 = vmatpush3.msra.mxu0 %v1861_v39  ;;  %9687 = vst [vmem:[#allocation82_spill] sm:$0xff] %v7656_v36  ;;  %v1276_v35 = vrot.slane %v9688_v46, 2  ;;  %v9689_v24 = vld [vmem:[#allocation22_spill] sm:$0xff]  ;;  %v9690_v8 = vld [vmem:[#allocation89_spill] sm:$0xff]  ;;  %v1860_v22 = vld [vmem:[#allocation5 + $0x660] sm:$0xff]  ;;  %v1289_v41 = vrot.slane %v7124_v16, 2 }
 0x169   :  { %2898 = vmatprep.mubr.f32.mxu0 %v7651_v20  ;;  %v1282_v45 = vrot.slane %v9689_v24, 2  ;;  %v1298_v6 = vrot.slane %v9690_v8, 2  ;;  %3043 = vmatprep.mubr.f32.mxu1 %v7656_v36  ;;  %v1297_v15 = vrot.slane %v6765_v42, 2  ;;  %v1892_v20 = vld [vmem:[#allocation5 + $0x760] sm:$0xff]  ;;  %v9693_v8 = vld [vmem:[#allocation93_spill] sm:$0xff]  ;;  %v1875_v16 = vld [vmem:[#allocation5 + $0x6d8] sm:$0xff] }
 0x16a   :  { %5449 = vmatpush3.msra.mxu1 %v1893_v13  ;;  %5370 = vmatprep.subr.mxu0 %v1876_v9  ;;  %v7665_v39 = vsel %vm1239_vm1, %v1276_v35, %v1277_v56  ;;  %v1295_v14 = vrot.slane %v9693_v8, 2  ;;  %v7675_v13 = vsel %vm1239_vm1, %v1291_v11, %v1292_v48  ;;  %v9695_v9 = vld [vmem:[#allocation25_spill] sm:$0xff]  ;;  %v9696_v35 = vld [vmem:[#allocation95_spill] sm:$0xff]  ;;  %v1310_v8 = vrot.slane %v7153_v23, 2 }
 0x16b   :  { %9691 = vst [vmem:[#allocation84_spill] sm:$0xff] %v7665_v39  ;;  %v7668_v62 = vsel %vm1239_vm1, %v1282_v45, %v1283_v60  ;;  %5450 = vmatprep.subr.mxu1 %v1908_v47  ;;  %2899 = vmatmul.mubr.f32.gmra.mxu0 %v7665_v39  ;;  %9694 = vst [vmem:[#allocation86_spill] sm:$0xff] %v7675_v13  ;;  %v1288_v56 = vrot.slane %v9695_v9, 2  ;;  %v1304_v36 = vrot.slane %v9696_v35, 2  ;;  %v1907_v60 = vld [vmem:[#allocation5 + $0x7d8] sm:$0xff]  ;;  %v1294_v47 = vrot.slane %v6771_v49, 2 }
 0x16c   :  { %9692 = vst [vmem:[#allocation85_spill] sm:$0xff] %v7668_v62  ;;  %3044 = vmatmul.mubr.f32.gmra.mxu1 %v7668_v62  ;;  %5371 = vmatpush3.msra.mxu0 %v1860_v22  ;;  %v7681_v45 = vsel %vm1239_vm1, %v1297_v15, %v1298_v6  ;;  %v1859_v11 = vld [vmem:[#allocation5 + $0x658] sm:$0xff]  ;;  %v1309_v6 = vrot.slane %v6780_v1, 2  ;;  %v1307_v23 = vrot.slane %v7182_v61, 2 }
 0x16d   :  { %2903 = vmatprep.mubr.f32.mxu0 %v7675_v13  ;;  %9697 = vst [vmem:[#allocation89_spill] sm:$0xff] %v7681_v45  ;;  %3048 = vmatprep.mubr.f32.mxu1 %v7681_v45  ;;  %v7687_v48 = vsel %vm1239_vm1, %v1288_v56, %v1289_v41  ;;  %v9699_v62 = vld [vmem:[#allocation27_spill] sm:$0xff]  ;;  %v7691_v22 = vsel %vm1239_vm1, %v1294_v47, %v1295_v14  ;;  %v1301_v13 = vrot.slane %v7173_v53, 2  ;;  %v1874_v41 = vld [vmem:[#allocation5 + $0x6d0] sm:$0xff] }
 0x16e   :  { %5451 = vmatpush3.msra.mxu1 %v1892_v20  ;;  %9698 = vst [vmem:[#allocation93_spill] sm:$0xff] %v7687_v48  ;;  %v1303_v35 = vrot.slane %v9699_v62, 2  ;;  %5372 = vmatprep.subr.mxu0 %v1875_v16  ;;  %9700 = vst [vmem:[#allocation95_spill] sm:$0xff] %v7691_v22  ;;  %v1891_v15 = vld [vmem:[#allocation5 + $0x758] sm:$0xff]  ;;  %v9702_v16 = vld [vmem:[#allocation101_spill] sm:$0xff] }
 0x16f   :  { %5452 = vmatprep.subr.mxu1 %v1907_v60  ;;  %2904 = vmatmul.mubr.f32.gmra.mxu0 %v7687_v48  ;;  %v1316_v56 = vrot.slane %v9702_v16, 2  ;;  %v1906_v14 = vld [vmem:[#allocation5 + $0x7d0] sm:$0xff]  ;;  %v7704_v60 = vsel %vm1239_vm1, %v1309_v6, %v1310_v8  ;;  %v1322_v48 = vrot.slane %v7207_v17, 2  ;;  %v1313_v16 = vrot.slane %v7216_v33, 2  ;;  %v9708_v6 = vld [vmem:[#allocation32_spill] sm:$0xff] }
 0x170   :  { %3049 = vmatmul.mubr.f32.gmra.mxu1 %v7691_v22  ;;  %v7699_v20 = vsel %vm1239_vm1, %v1303_v35, %v1304_v36  ;;  %5373 = vmatpush3.msra.mxu0 %v1859_v11  ;;  %9703 = vst [vmem:[#allocation101_spill] sm:$0xff] %v7704_v60  ;;  %v9704_v53 = vld [vmem:[#allocation29_spill] sm:$0xff]  ;;  %v9705_v61 = vld [vmem:[#allocation30_spill] sm:$0xff]  ;;  %v1315_v35 = vrot.slane %v6793_v18, 2  ;;  %v1319_v17 = vrot.slane %v7225_v51, 2 }
 0x171   :  { %9701 = vst [vmem:[#allocation168_spill] sm:$0xff] %v7699_v20  ;;  %2908 = vmatprep.mubr.f32.mxu0 %v7699_v20  ;;  %v1300_v47 = vrot.slane %v9704_v53, 2  ;;  %v1306_v45 = vrot.slane %v9705_v61, 2  ;;  %3053 = vmatprep.mubr.f32.mxu1 %v7704_v60  ;;  %v1858_v36 = vld [vmem:[#allocation5 + $0x650] sm:$0xff]  ;;  %v1321_v20 = vrot.slane %v9708_v6, 2  ;;  %v1873_v33 = vld [vmem:[#allocation5 + $0x6c8] sm:$0xff] }
 0x172   :  { %5453 = vmatpush3.msra.mxu1 %v1891_v15  ;;  %5374 = vmatprep.subr.mxu0 %v1874_v41  ;;  %v1890_v22 = vld [vmem:[#allocation5 + $0x750] sm:$0xff]  ;;  %v7723_v15 = vsel %vm1239_vm1, %v1315_v35, %v1316_v56  ;;  %v1857_v35 = vld [vmem:[#allocation5 + $0x648] sm:$0xff] }
 0x173   :  { %v7713_v11 = vsel %vm1239_vm1, %v1300_v47, %v1301_v13  ;;  %v7716_v8 = vsel %vm1239_vm1, %v1306_v45, %v1307_v23  ;;  %5454 = vmatprep.subr.mxu1 %v1906_v14  ;;  %9709 = vst [vmem:[#allocation171_spill] sm:$0xff] %v7723_v15  ;;  %v1312_v13 = vrot.slane %v6801_v29, 2  ;;  %v9710_v41 = vld [vmem:[#allocation106_spill] sm:$0xff]  ;;  %v1905_v45 = vld [vmem:[#allocation5 + $0x7c8] sm:$0xff]  ;;  %5375 = vmatpush3.msra.mxu0 %v1858_v36 }
 0x174   :  { %9706 = vst [vmem:[#allocation169_spill] sm:$0xff] %v7713_v11  ;;  %9707 = vst [vmem:[#allocation170_spill] sm:$0xff] %v7716_v8  ;;  %2909 = vmatmul.mubr.f32.gmra.mxu0 %v7713_v11  ;;  %3054 = vmatmul.mubr.f32.gmra.mxu1 %v7716_v8  ;;  %v1328_v47 = vrot.slane %v9710_v41, 2  ;;  %v7729_v23 = vsel %vm1239_vm1, %v1321_v20, %v1322_v48  ;;  %v9712_v51 = vld [vmem:[#allocation34_spill] sm:$0xff]  ;;  %v9713_v11 = vld [vmem:[#allocation107_spill] sm:$0xff]  ;;  %v1333_v48 = vrot.slane %v6812_v52, 2 }
 0x175   :  { %2913 = vmatprep.mubr.f32.mxu0 %v7723_v15  ;;  %9711 = vst [vmem:[#allocation106_spill] sm:$0xff] %v7729_v23  ;;  %v1318_v14 = vrot.slane %v9712_v51, 2  ;;  %v1334_v60 = vrot.slane %v9713_v11, 2  ;;  %3058 = vmatprep.mubr.f32.mxu1 %v7729_v23  ;;  %v7735_v56 = vsel %vm1239_vm1, %v1312_v13, %v1313_v16  ;;  %v9715_v8 = vld [vmem:[#allocation35_spill] sm:$0xff]  ;;  %v1889_v20 = vld [vmem:[#allocation5 + $0x748] sm:$0xff] }
 0x176   :  { %5455 = vmatpush3.msra.mxu1 %v1890_v22  ;;  %9714 = vst [vmem:[#allocation107_spill] sm:$0xff] %v7735_v56  ;;  %v1327_v41 = vrot.slane %v9715_v8, 2  ;;  %5376 = vmatprep.subr.mxu0 %v1873_v33  ;;  %v9717_v15 = vld [vmem:[#allocation109_spill] sm:$0xff]  ;;  %v9718_v11 = vld [vmem:[#allocation111_spill] sm:$0xff]  ;;  %v1340_v33 = vrot.slane %v7262_v30, 2 }
 0x177   :  { %v7739_v36 = vsel %vm1239_vm1, %v1318_v14, %v1319_v17  ;;  %5456 = vmatprep.subr.mxu1 %v1905_v45  ;;  %v1325_v39 = vrot.slane %v9717_v15, 2  ;;  %v1331_v32 = vrot.slane %v9718_v11, 2  ;;  %v1872_v16 = vld [vmem:[#allocation5 + $0x6c0] sm:$0xff]  ;;  %5377 = vmatpush3.msra.mxu0 %v1857_v35  ;;  %v7752_v13 = vsel %vm1239_vm1, %v1333_v48, %v1334_v60  ;;  %v9721_v15 = vld [vmem:[#allocation37_spill] sm:$0xff]  ;;  %v9722_v14 = vld [vmem:[#allocation38_spill] sm:$0xff] }
 0x178   :  { %9716 = vst [vmem:[#allocation172_spill] sm:$0xff] %v7739_v36  ;;  %2914 = vmatmul.mubr.f32.gmra.mxu0 %v7735_v56  ;;  %3059 = vmatmul.mubr.f32.gmra.mxu1 %v7739_v36  ;;  %v7747_v22 = vsel %vm1239_vm1, %v1327_v41, %v1328_v47  ;;  %v1904_v17 = vld [vmem:[#allocation5 + $0x7c0] sm:$0xff]  ;;  %9720 = vst [vmem:[#allocation111_spill] sm:$0xff] %v7752_v13  ;;  %v1324_v45 = vrot.slane %v9721_v15, 2  ;;  %v1330_v11 = vrot.slane %v9722_v14, 2  ;;  %v9723_v56 = vld [vmem:[#allocation113_spill] sm:$0xff] }
 0x179   :  { %9719 = vst [vmem:[#allocation109_spill] sm:$0xff] %v7747_v22  ;;  %2918 = vmatprep.mubr.f32.mxu0 %v7747_v22  ;;  %v1346_v23 = vrot.slane %v9723_v56, 2  ;;  %3063 = vmatprep.mubr.f32.mxu1 %v7752_v13  ;;  %v1856_v47 = vld [vmem:[#allocation5 + $0x640] sm:$0xff]  ;;  %v9729_v56 = vld [vmem:[#allocation117_spill] sm:$0xff]  ;;  %v1903_v13 = vld [vmem:[#allocation5 + $0x7b8] sm:$0xff] }
 0x17a   :  { %5457 = vmatpush3.msra.mxu1 %v1889_v20  ;;  %v9724_v41 = vld [vmem:[#allocation39_spill] sm:$0xff]  ;;  %5378 = vmatprep.subr.mxu0 %v1872_v16  ;;  %v7761_v35 = vsel %vm1239_vm1, %v1324_v45, %v1325_v39  ;;  %v7764_v60 = vsel %vm1239_vm1, %v1330_v11, %v1331_v32  ;;  %v9728_v48 = vld [vmem:[#allocation40_spill] sm:$0xff]  ;;  %v1343_v15 = vrot.slane %v9729_v56, 2  ;;  %v9730_v16 = vld [vmem:[#allocation41_spill] sm:$0xff] }
 0x17b   :  { %v1339_v36 = vrot.slane %v9724_v41, 2  ;;  %v9725_v30 = vld [vmem:[#allocation115_spill] sm:$0xff]  ;;  %9726 = vst [vmem:[#allocation113_spill] sm:$0xff] %v7761_v35  ;;  %9727 = vst [vmem:[#allocation39_spill] sm:$0xff] %v7764_v60  ;;  %v1345_v22 = vrot.slane %v9728_v48, 2  ;;  %5458 = vmatprep.subr.mxu1 %v1904_v17  ;;  %v9731_v39 = vld [vmem:[#allocation118_spill] sm:$0xff]  ;;  %5379 = vmatpush3.msra.mxu0 %v1856_v47 }
 0x17c   :  { %v1337_v43 = vrot.slane %v9725_v30, 2  ;;  %v1888_v14 = vld [vmem:[#allocation5 + $0x740] sm:$0xff]  ;;  %2919 = vmatmul.mubr.f32.gmra.mxu0 %v7761_v35  ;;  %3064 = vmatmul.mubr.f32.gmra.mxu1 %v7764_v60  ;;  %v1871_v41 = vld [vmem:[#allocation5 + $0x6b8] sm:$0xff]  ;;  %v1336_v30 = vrot.slane %v9730_v16, 2  ;;  %v1352_v45 = vrot.slane %v9731_v39, 2  ;;  %v1358_v48 = vrot.slane %v7315_v31, 2 }
 0x17d   :  { %v1341_v20 = vsel %vm1239_vm1, %v1339_v36, %v1340_v33  ;;  %v1347_v32 = vsel %vm1239_vm1, %v1345_v22, %v1346_v23  ;;  %v9732_v17 = vld [vmem:[#allocation42_spill] sm:$0xff]  ;;  %5459 = vmatpush3.msra.mxu1 %v1888_v14  ;;  %v9733_v36 = vld [vmem:[#allocation43_spill] sm:$0xff]  ;;  %5380 = vmatprep.subr.mxu0 %v1871_v41  ;;  %v9734_v39 = vld [vmem:[#allocation44_spill] sm:$0xff]  ;;  %v1349_v23 = vrot.slane %v7327_v4, 2 }
 0x17e   :  { %2923 = vmatprep.mubr.f32.mxu0 %v1341_v20  ;;  %v1342_v11 = vrot.slane %v9732_v17, 2  ;;  %3068 = vmatprep.mubr.f32.mxu1 %v1347_v32  ;;  %v1338_v56 = vsel %vm1239_vm1, %v1336_v30, %v1337_v43  ;;  %v1855_v60 = vld [vmem:[#allocation5 + $0x638] sm:$0xff]  ;;  %v1351_v33 = vrot.slane %v9733_v36, 2  ;;  %v1357_v35 = vrot.slane %v9734_v39, 2  ;;  %v9735_v22 = vld [vmem:[#allocation124_spill] sm:$0xff]  ;;  %v1870_v43 = vld [vmem:[#allocation5 + $0x6b0] sm:$0xff] }
 0x17f   :  { %5460 = vmatprep.subr.mxu1 %v1903_v13  ;;  %v1887_v47 = vld [vmem:[#allocation5 + $0x738] sm:$0xff]  ;;  %v1355_v20 = vrot.slane %v9735_v22, 2  ;;  %v9737_v14 = vld [vmem:[#allocation125_spill] sm:$0xff]  ;;  %5381 = vmatpush3.msra.mxu0 %v1855_v60 }
 0x180   :  { %v1344_v16 = vsel %vm1239_vm1, %v1342_v11, %v1343_v15  ;;  %2924 = vmatmul.mubr.f32.gmra.mxu0 %v1338_v56  ;;  %v7783_v31 = vsel %vm1239_vm1, %v1351_v33, %v1352_v45  ;;  %v1364_v30 = vrot.slane %v9737_v14, 2  ;;  %v1902_v32 = vld [vmem:[#allocation5 + $0x7b0] sm:$0xff]  ;;  %v7788_v15 = vsel %vm1239_vm1, %v1357_v35, %v1358_v48  ;;  %5461 = vmatpush3.msra.mxu1 %v1887_v47  ;;  %v9741_v56 = vld [vmem:[#allocation47_spill] sm:$0xff]  ;;  %v9744_v48 = vld [vmem:[#allocation48_spill] sm:$0xff] }
 0x181   :  { %3069 = vmatmul.mubr.f32.gmra.mxu1 %v1344_v16  ;;  %9736 = vst [vmem:[#allocation115_spill] sm:$0xff] %v7783_v31  ;;  %2928 = vmatprep.mubr.f32.mxu0 %v7783_v31  ;;  %9738 = vst [vmem:[#allocation40_spill] sm:$0xff] %v7788_v15  ;;  %v9739_v13 = vld [vmem:[#allocation45_spill] sm:$0xff]  ;;  %v9740_v4 = vld [vmem:[#allocation46_spill] sm:$0xff]  ;;  %v1370_v11 = vrot.slane %v7344_v50, 2  ;;  %v1363_v33 = vrot.slane %v9741_v56, 2 }
 0x182   :  { %v1348_v41 = vrot.slane %v9739_v13, 2  ;;  %v1354_v17 = vrot.slane %v9740_v4, 2  ;;  %3073 = vmatprep.mubr.f32.mxu1 %v7788_v15  ;;  %v1854_v45 = vld [vmem:[#allocation5 + $0x630] sm:$0xff]  ;;  %v1361_v16 = vrot.slane %v7352_v44, 2  ;;  %5382 = vmatprep.subr.mxu0 %v1870_v43  ;;  %v1369_v22 = vrot.slane %v9744_v48, 2  ;;  %v1869_v44 = vld [vmem:[#allocation5 + $0x6a8] sm:$0xff] }
 0x183   :  { %5462 = vmatprep.subr.mxu1 %v1902_v32  ;;  %v1886_v14 = vld [vmem:[#allocation5 + $0x730] sm:$0xff]  ;;  %v1367_v50 = vrot.slane %v7358_v37, 2  ;;  %v7807_v47 = vsel %vm1239_vm1, %v1363_v33, %v1364_v30  ;;  %v1376_v43 = vrot.slane %v7362_v26, 2  ;;  %5383 = vmatpush3.msra.mxu0 %v1854_v45  ;;  %v1853_v33 = vld [vmem:[#allocation5 + $0x628] sm:$0xff]  ;;  %v1375_v26 = vrot.slane %v9610_v28, 2 }
 0x184   :  { %v7797_v60 = vsel %vm1239_vm1, %v1348_v41, %v1349_v23  ;;  %v7800_v35 = vsel %vm1239_vm1, %v1354_v17, %v1355_v20  ;;  %9745 = vst [vmem:[#allocation118_spill] sm:$0xff] %v7807_v47  ;;  %v1360_v23 = vrot.slane %v9604_v34, 2  ;;  %v1901_v20 = vld [vmem:[#allocation5 + $0x7a8] sm:$0xff]  ;;  %v7813_v32 = vsel %vm1239_vm1, %v1369_v22, %v1370_v11  ;;  %v9747_v37 = vld [vmem:[#allocation50_spill] sm:$0xff]  ;;  %5463 = vmatpush3.msra.mxu1 %v1886_v14  ;;  %v1868_v14 = vld [vmem:[#allocation5 + $0x6a0] sm:$0xff] }
 0x185   :  { %9742 = vst [vmem:[#allocation117_spill] sm:$0xff] %v7797_v60  ;;  %9743 = vst [vmem:[#allocation41_spill] sm:$0xff] %v7800_v35  ;;  %2929 = vmatmul.mubr.f32.gmra.mxu0 %v7797_v60  ;;  %3074 = vmatmul.mubr.f32.gmra.mxu1 %v7800_v35  ;;  %v1366_v41 = vrot.slane %v9747_v37, 2  ;;  %v9748_v17 = vld [vmem:[#allocation128_spill] sm:$0xff]  ;;  %v9752_v35 = vld [vmem:[#allocation129_spill] sm:$0xff] }
 0x186   :  { %2933 = vmatprep.mubr.f32.mxu0 %v7807_v47  ;;  %9746 = vst [vmem:[#allocation42_spill] sm:$0xff] %v7813_v32  ;;  %v1382_v60 = vrot.slane %v9748_v17, 2  ;;  %3078 = vmatprep.mubr.f32.mxu1 %v7813_v32  ;;  %v7819_v30 = vsel %vm1239_vm1, %v1360_v23, %v1361_v16  ;;  %v9751_v47 = vld [vmem:[#allocation52_spill] sm:$0xff]  ;;  %v1373_v15 = vrot.slane %v9752_v35, 2  ;;  %v7831_v16 = vsel %vm1239_vm1, %v1375_v26, %v1376_v43  ;;  %v9757_v35 = vld [vmem:[#allocation53_spill] sm:$0xff]  ;;  %v9760_v26 = vld [vmem:[#allocation55_spill] sm:$0xff] }
 0x187   :  { %9749 = vst [vmem:[#allocation43_spill] sm:$0xff] %v7819_v30  ;;  %5384 = vmatprep.subr.mxu0 %v1869_v44  ;;  %v7823_v45 = vsel %vm1239_vm1, %v1366_v41, %v1367_v50  ;;  %v1381_v11 = vrot.slane %v9751_v47, 2  ;;  %5464 = vmatprep.subr.mxu1 %v1901_v20  ;;  %v1885_v22 = vld [vmem:[#allocation5 + $0x728] sm:$0xff]  ;;  %9754 = vst [vmem:[#allocation124_spill] sm:$0xff] %v7831_v16  ;;  %v9755_v44 = vld [vmem:[#allocation134_spill] sm:$0xff]  ;;  %v1372_v41 = vrot.slane %v9757_v35, 2 }
 0x188   :  { %9750 = vst [vmem:[#allocation44_spill] sm:$0xff] %v7823_v45  ;;  %v9753_v17 = vld [vmem:[#allocation132_spill] sm:$0xff]  ;;  %v1388_v23 = vrot.slane %v9755_v44, 2  ;;  %5385 = vmatpush3.msra.mxu0 %v1853_v33  ;;  %5465 = vmatpush3.msra.mxu1 %v1885_v22  ;;  %v9761_v44 = vld [vmem:[#allocation139_spill] sm:$0xff] }
 0x189   :  { %v1379_v31 = vrot.slane %v9753_v17, 2  ;;  %2934 = vmatmul.mubr.f32.gmra.mxu0 %v7819_v30  ;;  %3079 = vmatmul.mubr.f32.gmra.mxu1 %v7823_v45  ;;  %v1900_v50 = vld [vmem:[#allocation5 + $0x7a0] sm:$0xff]  ;;  %v7836_v20 = vsel %vm1239_vm1, %v1381_v11, %v1382_v60  ;;  %v9758_v17 = vld [vmem:[#allocation54_spill] sm:$0xff]  ;;  %v1387_v45 = vrot.slane %v9760_v26, 2  ;;  %v1385_v28 = vrot.slane %v9761_v44, 2  ;;  %v9767_v44 = vld [vmem:[#allocation57_spill] sm:$0xff] }
 0x18a   :  { %2938 = vmatprep.mubr.f32.mxu0 %v7831_v16  ;;  %9756 = vst [vmem:[#allocation125_spill] sm:$0xff] %v7836_v20  ;;  %v1378_v32 = vrot.slane %v9758_v17, 2  ;;  %v9759_v30 = vld [vmem:[#allocation136_spill] sm:$0xff]  ;;  %3083 = vmatprep.mubr.f32.mxu1 %v7836_v20  ;;  %v7845_v33 = vsel %vm1239_vm1, %v1372_v41, %v1373_v15  ;;  %v1384_v15 = vrot.slane %v9767_v44, 2  ;;  %v9768_v41 = vld [vmem:[#allocation142_spill] sm:$0xff] }
 0x18b   :  { %v1394_v47 = vrot.slane %v9759_v30, 2  ;;  %v1852_v43 = vld [vmem:[#allocation5 + $0x620] sm:$0xff]  ;;  %5386 = vmatprep.subr.mxu0 %v1868_v14  ;;  %9762 = vst [vmem:[#allocation45_spill] sm:$0xff] %v7845_v33  ;;  %5466 = vmatprep.subr.mxu1 %v1900_v50  ;;  %v7855_v22 = vsel %vm1239_vm1, %v1387_v45, %v1388_v23  ;;  %v1867_v14 = vld [vmem:[#allocation5 + $0x698] sm:$0xff]  ;;  %v1400_v20 = vrot.slane %v9768_v41, 2  ;;  %v1390_v50 = vrot.slane %v9630_v54, 2 }
 0x18c   :  { %v7848_v60 = vsel %vm1239_vm1, %v1378_v32, %v1379_v31  ;;  %v9764_v11 = vld [vmem:[#allocation56_spill] sm:$0xff]  ;;  %9766 = vst [vmem:[#allocation128_spill] sm:$0xff] %v7855_v22  ;;  %v1899_v31 = vld [vmem:[#allocation5 + $0x798] sm:$0xff]  ;;  %5387 = vmatpush3.msra.mxu0 %v1852_v43  ;;  %v7867_v45 = vsel %vm1239_vm1, %v1384_v15, %v1385_v28  ;;  %v1397_v54 = vrot.slane %v7462_v25, 2  ;;  %v9779_v25 = vld [vmem:[#allocation61_spill] sm:$0xff] }
 0x18d   :  { %9763 = vst [vmem:[#allocation46_spill] sm:$0xff] %v7848_v60  ;;  %v1393_v16 = vrot.slane %v9764_v11, 2  ;;  %v1884_v17 = vld [vmem:[#allocation5 + $0x720] sm:$0xff]  ;;  %2939 = vmatmul.mubr.f32.gmra.mxu0 %v7845_v33  ;;  %3084 = vmatmul.mubr.f32.gmra.mxu1 %v7848_v60  ;;  %9771 = vst [vmem:[#allocation132_spill] sm:$0xff] %v7867_v45  ;;  %v1851_v23 = vld [vmem:[#allocation5 + $0x618] sm:$0xff] }
 0x18e   :  { %v9765_v30 = vld [vmem:[#allocation140_spill] sm:$0xff]  ;;  %2943 = vmatprep.mubr.f32.mxu0 %v7855_v22  ;;  %5467 = vmatpush3.msra.mxu1 %v1884_v17  ;;  %v9772_v60 = vld [vmem:[#allocation59_spill] sm:$0xff]  ;;  %v1866_v17 = vld [vmem:[#allocation5 + $0x690] sm:$0xff] }
 0x18f   :  { %v1391_v35 = vrot.slane %v9765_v30, 2  ;;  %v7861_v32 = vsel %vm1239_vm1, %v1393_v16, %v1394_v47  ;;  %v9770_v30 = vld [vmem:[#allocation144_spill] sm:$0xff]  ;;  %v1399_v41 = vrot.slane %v9772_v60, 2  ;;  %5388 = vmatprep.subr.mxu0 %v1867_v14  ;;  %5468 = vmatprep.subr.mxu1 %v1899_v31  ;;  %v1883_v16 = vld [vmem:[#allocation5 + $0x718] sm:$0xff]  ;;  %v9777_v14 = vld [vmem:[#allocation149_spill] sm:$0xff] }
 0x190   :  { %9769 = vst [vmem:[#allocation129_spill] sm:$0xff] %v7861_v32  ;;  %v1406_v33 = vrot.slane %v9770_v30, 2  ;;  %3088 = vmatprep.mubr.f32.mxu1 %v7861_v32  ;;  %v9774_v22 = vld [vmem:[#allocation60_spill] sm:$0xff]  ;;  %v9775_v30 = vld [vmem:[#allocation147_spill] sm:$0xff]  ;;  %v1412_v15 = vrot.slane %v9777_v14, 2  ;;  %5389 = vmatpush3.msra.mxu0 %v1851_v23 }
 0x191   :  { %v7871_v43 = vsel %vm1239_vm1, %v1390_v50, %v1391_v35  ;;  %v1405_v47 = vrot.slane %v9774_v22, 2  ;;  %v1403_v44 = vrot.slane %v9775_v30, 2  ;;  %2944 = vmatmul.mubr.f32.gmra.mxu0 %v7867_v45  ;;  %v7879_v28 = vsel %vm1239_vm1, %v1399_v41, %v1400_v20  ;;  %v1898_v35 = vld [vmem:[#allocation5 + $0x790] sm:$0xff]  ;;  %v9781_v45 = vld [vmem:[#allocation151_spill] sm:$0xff]  ;;  %5469 = vmatpush3.msra.mxu1 %v1883_v16  ;;  %v9783_v14 = vld [vmem:[#allocation152_spill] sm:$0xff] }
 0x192   :  { %9773 = vst [vmem:[#allocation134_spill] sm:$0xff] %v7871_v43  ;;  %3089 = vmatmul.mubr.f32.gmra.mxu1 %v7871_v43  ;;  %9776 = vst [vmem:[#allocation136_spill] sm:$0xff] %v7879_v28  ;;  %2948 = vmatprep.mubr.f32.mxu0 %v7879_v28  ;;  %v1396_v50 = vrot.slane %v9779_v25, 2  ;;  %v9780_v30 = vld [vmem:[#allocation62_spill] sm:$0xff]  ;;  %v1418_v22 = vrot.slane %v9781_v45, 2  ;;  %v1409_v60 = vrot.slane %v9783_v14, 2 }
 0x193   :  { %v7884_v31 = vsel %vm1239_vm1, %v1405_v47, %v1406_v33  ;;  %v1402_v32 = vrot.slane %v9780_v30, 2  ;;  %v1850_v20 = vld [vmem:[#allocation5 + $0x610] sm:$0xff]  ;;  %5390 = vmatprep.subr.mxu0 %v1866_v17  ;;  %v9786_v47 = vld [vmem:[#allocation67_spill] sm:$0xff]  ;;  %5470 = vmatprep.subr.mxu1 %v1898_v35  ;;  %v1865_v17 = vld [vmem:[#allocation5 + $0x688] sm:$0xff] }
 0x194   :  { %9778 = vst [vmem:[#allocation139_spill] sm:$0xff] %v7884_v31  ;;  %3093 = vmatprep.mubr.f32.mxu1 %v7884_v31  ;;  %v9782_v41 = vld [vmem:[#allocation66_spill] sm:$0xff]  ;;  %v7893_v23 = vsel %vm1239_vm1, %v1396_v50, %v1397_v54  ;;  %v1417_v28 = vrot.slane %v9786_v47, 2  ;;  %v9787_v45 = vld [vmem:[#allocation155_spill] sm:$0xff]  ;;  %v1408_v54 = vrot.slane %v9650_v2, 2  ;;  %v1423_v50 = vrot.slane %v9651_v55, 2  ;;  %5391 = vmatpush3.msra.mxu0 %v1850_v20 }
 0x195   :  { %v1411_v43 = vrot.slane %v9782_v41, 2  ;;  %9784 = vst [vmem:[#allocation140_spill] sm:$0xff] %v7893_v23  ;;  %v7896_v33 = vsel %vm1239_vm1, %v1402_v32, %v1403_v44  ;;  %v1882_v30 = vld [vmem:[#allocation5 + $0x710] sm:$0xff]  ;;  %v1415_v25 = vrot.slane %v9787_v45, 2  ;;  %2949 = vmatmul.mubr.f32.gmra.mxu0 %v7893_v23  ;;  %v1897_v14 = vld [vmem:[#allocation5 + $0x788] sm:$0xff]  ;;  %v1414_v45 = vrot.slane %v9653_v7, 2  ;;  %5392 = vmatprep.subr.mxu0 %v1865_v17 }
 0x196   :  { %9785 = vst [vmem:[#allocation142_spill] sm:$0xff] %v7896_v33  ;;  %3094 = vmatmul.mubr.f32.gmra.mxu1 %v7896_v33  ;;  %v9789_v44 = vld [vmem:[#allocation157_spill] sm:$0xff]  ;;  %v7910_v35 = vsel %vm1239_vm1, %v1417_v28, %v1418_v22  ;;  %v7917_v31 = vsel %vm1239_vm1, %v1408_v54, %v1409_v60  ;;  %v1420_v20 = vrot.slane %v6971_v27, 2  ;;  %v1421_v28 = vrot.slane %v7539_v12, 2  ;;  %v1896_v17 = vld [vmem:[#allocation5 + $0x780] sm:$0xff] }
 0x197   :  { %v7903_v16 = vsel %vm1239_vm1, %v1411_v43, %v1412_v15  ;;  %v1424_v32 = vrot.slane %v9789_v44, 2  ;;  %9790 = vst [vmem:[#allocation147_spill] sm:$0xff] %v7910_v35  ;;  %v9791_v33 = vld [vmem:[#allocation69_spill] sm:$0xff]  ;;  %v9792_v43 = vld [vmem:[#allocation159_spill] sm:$0xff]  ;;  %3098 = vmatprep.mubr.f32.mxu1 %v7910_v35  ;;  %5471 = vmatpush3.msra.mxu1 %v1882_v30  ;;  %9793 = vst [vmem:[#allocation149_spill] sm:$0xff] %v7917_v31 }
 0x198   :  { %9788 = vst [vmem:[#allocation144_spill] sm:$0xff] %v7903_v16  ;;  %2953 = vmatprep.mubr.f32.mxu0 %v7903_v16  ;;  %v1429_v23 = vrot.slane %v9791_v33, 2  ;;  %v1430_v15 = vrot.slane %v9792_v43, 2  ;;  %v1849_v44 = vld [vmem:[#allocation5 + $0x608] sm:$0xff]  ;;  %v7921_v16 = vsel %vm1239_vm1, %v1414_v45, %v1415_v25  ;;  %5472 = vmatprep.subr.mxu1 %v1897_v14  ;;  %v1426_v33 = vrot.slane %v6993_v58, 2  ;;  %v9795_v43 = vld [vmem:[#allocation162_spill] sm:$0xff]  ;;  %v458_v45 = vpop.xlane.xlu0 %457 }
 0x199   :  { %9794 = vst [vmem:[#allocation151_spill] sm:$0xff] %v7921_v16  ;;  %v1881_v22 = vld [vmem:[#allocation5 + $0x708] sm:$0xff]  ;;  %v1427_v55 = vrot.slane %v9795_v43, 2  ;;  %2954 = vmatmul.mubr.f32.gmra.mxu0 %v7917_v31  ;;  %v7929_v60 = vsel %vm1239_vm1, %v1423_v50, %v1424_v32  ;;  %v1864_v30 = vld [vmem:[#allocation5 + $0x680] sm:$0xff]  ;;  %v7937_v54 = vsel %vm1239_vm1, %v1420_v20, %v1421_v28  ;;  %v1943_v32 = vld [vmem:[#allocation5 + $0x8f8] sm:$0xff]  ;;  %v4996_v20 = vpop.f32.mrf.mxu1 }
 0x19a   :  { %3099 = vmatmul.mubr.f32.gmra.mxu1 %v7921_v16  ;;  %9796 = vst [vmem:[#allocation152_spill] sm:$0xff] %v7929_v60  ;;  %5393 = vmatpush3.msra.mxu0 %v1849_v44  ;;  %v7933_v25 = vsel %vm1239_vm1, %v1429_v23, %v1430_v15  ;;  %v1848_v12 = vld [vmem:[#allocation5 + $0x600] sm:$0xff]  ;;  %9798 = vst [vmem:[#allocation157_spill] sm:$0xff] %v7937_v54  ;;  %v1975_v23 = vld [vmem:[#allocation5 + $0x9f8] sm:$0xff]  ;;  %v590_v44 = vmax.f32 %v458_v45, 1e-24 }
 0x19b   :  { %2958 = vmatprep.mubr.f32.mxu0 %v7929_v60  ;;  %9797 = vst [vmem:[#allocation155_spill] sm:$0xff] %v7933_v25  ;;  %3103 = vmatprep.mubr.f32.mxu1 %v7933_v25  ;;  %v7940_v14 = vsel %vm1239_vm1, %v1426_v33, %v1427_v55  ;;  %v1880_v50 = vld [vmem:[#allocation5 + $0x700] sm:$0xff]  ;;  %v1927_v15 = vld [vmem:[#allocation5 + $0x878] sm:$0xff]  ;;  %v4916_v33 = vpop.f32.mrf.mxu0  ;;  %v1974_v28 = vld [vmem:[#allocation5 + $0x9f0] sm:$0xff]  ;;  %v4997_v43 = vpop.f32.mrf.mxu1 }
 0x19c   :  { %5473 = vmatpush3.msra.mxu1 %v1881_v22  ;;  %5394 = vmatprep.subr.mxu0 %v1864_v30  ;;  %9799 = vst [vmem:[#allocation159_spill] sm:$0xff] %v7940_v14  ;;  %v1959_v55 = vld [vmem:[#allocation5 + $0x978] sm:$0xff]  ;;  %v1942_v22 = vld [vmem:[#allocation5 + $0x8f0] sm:$0xff]  ;;  %6396 = vrsqrt.f32 %v590_v44 }
 0x19d   :  { %5474 = vmatprep.subr.mxu1 %v1896_v17  ;;  %2959 = vmatmul.mubr.f32.gmra.mxu0 %v7937_v54  ;;  %v1926_v30 = vld [vmem:[#allocation5 + $0x870] sm:$0xff] }
 0x19e   :  { %3104 = vmatmul.mubr.f32.gmra.mxu1 %v7940_v14  ;;  %5395 = vmatpush3.msra.mxu0 %v1848_v12  ;;  %v4998_v12 = vadd.f32 %v4997_v43, %v4996_v20 }
 0x19f   :  { %3173 = vmatprep.mubr.f32.mxu0 %v9667_v40  ;;  %3318 = vmatprep.mubr.f32.mxu1 %v6721_v57  ;;  %v7950_v57 = vld [vmem:[#allocation7] ss:$0 sm:$0xff]  ;;  %v4917_v40 = vpop.f32.mrf.mxu0 }
 0x1a0   :  { %5475 = vmatpush3.msra.mxu1 %v1880_v50  ;;  %5524 = vmatprep.subr.mxu0 %v1943_v32  ;;  %v4918_v17 = vadd.f32 %v4917_v40, %v4916_v33  ;;  %v4999_v50 = vpop.f32.mrf.mxu1  ;;  %v1941_v32 = vld [vmem:[#allocation5 + $0x8e8] sm:$0xff] }
 0x1a1   :  { %5604 = vmatprep.subr.mxu1 %v1975_v23  ;;  %3174 = vmatmul.mubr.f32.vlgmr.msra.gmra.mxu0 %v6723_v59  ;;  %v1958_v59 = vld [vmem:[#allocation5 + $0x970] sm:$0xff]  ;;  %v1973_v23 = vld [vmem:[#allocation5 + $0x9e8] sm:$0xff] }
 0x1a2   :  { %3319 = vmatmul.mubr.f32.vlgmr.msra.gmra.mxu1 %v6727_v63  ;;  %5525 = vmatpush3.msra.mxu0 %v1927_v15  ;;  %v4919_v63 = vpop.f32.mrf.mxu0  ;;  %v2306_v45 = vadd.f32 %v4918_v17, %v7950_v57  ;;  %v5000_v44 = vpop.f32.mrf.mxu1  ;;  %v1972_v17 = vld [vmem:[#allocation5 + $0x9e0] sm:$0xff] }
 0x1a3   :  { %3178 = vmatprep.mubr.f32.mxu0 %v6729_v3  ;;  %3323 = vmatprep.mubr.f32.mxu1 %v6731_v5 }
 0x1a4   :  { %5605 = vmatpush3.msra.mxu1 %v1959_v55  ;;  %5526 = vmatprep.subr.mxu0 %v1942_v22  ;;  %v4920_v15 = vpop.f32.mrf.mxu0  ;;  %v1925_v55 = vld [vmem:[#allocation5 + $0x868] sm:$0xff]  ;;  %v7957_v33 = vadd.f32 %v4998_v12, %v2306_v45  ;;  %v5001_v22 = vadd.f32 %v5000_v44, %v4999_v50  ;;  %v5002_v43 = vpop.f32.mrf.mxu1  ;;  %v1956_v45 = vld [vmem:[#allocation5 + $0x960] sm:$0xff] }
 0x1a5   :  { %5606 = vmatprep.subr.mxu1 %v1974_v28  ;;  %3179 = vmatmul.mubr.f32.gmra.mxu0 %v6739_v10  ;;  %v4921_v20 = vadd.f32 %v4920_v15, %v4919_v63  ;;  %v1957_v28 = vld [vmem:[#allocation5 + $0x968] sm:$0xff]  ;;  %v1924_v63 = vld [vmem:[#allocation5 + $0x860] sm:$0xff] }
 0x1a6   :  { %3324 = vmatmul.mubr.f32.gmra.mxu1 %v9679_v0  ;;  %5527 = vmatpush3.msra.mxu0 %v1926_v30  ;;  %v4922_v40 = vpop.f32.mrf.mxu0  ;;  %v1940_v30 = vld [vmem:[#allocation5 + $0x8e0] sm:$0xff] }
 0x1a7   :  { %3183 = vmatprep.mubr.f32.mxu0 %v6746_v19  ;;  %3328 = vmatprep.mubr.f32.mxu1 %v6748_v21  ;;  %v2311_v21 = vadd.f32 %v4921_v20, %v7950_v57  ;;  %v1971_v20 = vld [vmem:[#allocation5 + $0x9d8] sm:$0xff]  ;;  %v6550_v0 = vld [vmem:[#allocation2 + $0x220] sm:$0xff] }
 0x1a8   :  { %5607 = vmatpush3.msra.mxu1 %v1958_v59  ;;  %5528 = vmatprep.subr.mxu0 %v1941_v32  ;;  %v4923_v12 = vpop.f32.mrf.mxu0  ;;  %v5003_v59 = vpop.f32.mrf.mxu1  ;;  %v9833_v19 = vld [vmem:[#allocation110_spill] sm:$0xff] }
 0x1a9   :  { %5608 = vmatprep.subr.mxu1 %v1973_v23  ;;  %3184 = vmatmul.mubr.f32.gmra.mxu0 %v9688_v46  ;;  %v7964_v50 = vadd.f32 %v5001_v22, %v2311_v21  ;;  %v4924_v32 = vadd.f32 %v4923_v12, %v4922_v40  ;;  %v5004_v23 = vadd.f32 %v5003_v59, %v5002_v43  ;;  %v6397_v40 = vpop.eup %6396  ;;  %v1955_v12 = vld [vmem:[#allocation5 + $0x958] sm:$0xff] }
 0x1aa   :  { %3329 = vmatmul.mubr.f32.gmra.mxu1 %v9689_v24  ;;  %5529 = vmatpush3.msra.mxu0 %v1925_v55  ;;  %v4925_v15 = vpop.f32.mrf.mxu0  ;;  %v5005_v44 = vpop.f32.mrf.mxu1  ;;  %v1939_v55 = vld [vmem:[#allocation5 + $0x8d8] sm:$0xff] }
 0x1ab   :  { %3188 = vmatprep.mubr.f32.mxu0 %v6763_v38  ;;  %3333 = vmatprep.mubr.f32.mxu1 %v6765_v42  ;;  %v2316_v42 = vadd.f32 %v4924_v32, %v7950_v57  ;;  %v1970_v32 = vld [vmem:[#allocation5 + $0x9d0] sm:$0xff]  ;;  %v9829_v38 = vld [vmem:[#allocation103_spill] sm:$0xff] }
 0x1ac   :  { %5609 = vmatpush3.msra.mxu1 %v1957_v28  ;;  %5530 = vmatprep.subr.mxu0 %v1940_v30  ;;  %v4926_v21 = vpop.f32.mrf.mxu0  ;;  %v5006_v22 = vpop.f32.mrf.mxu1  ;;  %v1923_v28 = vld [vmem:[#allocation5 + $0x858] sm:$0xff] }
 0x1ad   :  { %5610 = vmatprep.subr.mxu1 %v1972_v17  ;;  %3189 = vmatmul.mubr.f32.gmra.mxu0 %v9695_v9  ;;  %v7971_v43 = vadd.f32 %v5004_v23, %v2316_v42  ;;  %v4927_v30 = vadd.f32 %v4926_v21, %v4925_v15  ;;  %v5007_v17 = vadd.f32 %v5006_v22, %v5005_v44  ;;  %v670_v42 = vmul.f32 20.0, %v6397_v40  ;;  %v1922_v15 = vld [vmem:[#allocation5 + $0x850] sm:$0xff]  ;;  %v1969_v40 = vld [vmem:[#allocation5 + $0x9c8] sm:$0xff] }
 0x1ae   :  { %3334 = vmatmul.mubr.f32.gmra.mxu1 %v6771_v49  ;;  %5531 = vmatpush3.msra.mxu0 %v1924_v63  ;;  %v4928_v59 = vpop.f32.mrf.mxu0  ;;  %v5008_v49 = vpop.f32.mrf.mxu1  ;;  %v1938_v63 = vld [vmem:[#allocation5 + $0x8d0] sm:$0xff] }
 0x1af   :  { %3193 = vmatprep.mubr.f32.mxu0 %v9699_v62  ;;  %3338 = vmatprep.mubr.f32.mxu1 %v6780_v1  ;;  %v2321_v1 = vadd.f32 %v4927_v30, %v7950_v57  ;;  %v1954_v21 = vld [vmem:[#allocation5 + $0x950] sm:$0xff] }
 0x1b0   :  { %5611 = vmatpush3.msra.mxu1 %v1956_v45  ;;  %5532 = vmatprep.subr.mxu0 %v1939_v55  ;;  %v4929_v23 = vpop.f32.mrf.mxu0  ;;  %v5009_v45 = vpop.f32.mrf.mxu1 }
 0x1b1   :  { %5612 = vmatprep.subr.mxu1 %v1971_v20  ;;  %3194 = vmatmul.mubr.f32.gmra.mxu0 %v9704_v53  ;;  %v7978_v44 = vadd.f32 %v5007_v17, %v2321_v1  ;;  %v4930_v55 = vadd.f32 %v4929_v23, %v4928_v59  ;;  %v5010_v20 = vadd.f32 %v5009_v45, %v5008_v49  ;;  %v1921_v17 = vld [vmem:[#allocation5 + $0x848] sm:$0xff] }
 0x1b2   :  { %3339 = vmatmul.mubr.f32.gmra.mxu1 %v9705_v61  ;;  %5533 = vmatpush3.msra.mxu0 %v1923_v28  ;;  %v4931_v22 = vpop.f32.mrf.mxu0  ;;  %v5011_v61 = vpop.f32.mrf.mxu1  ;;  %v1937_v28 = vld [vmem:[#allocation5 + $0x8c8] sm:$0xff] }
 0x1b3   :  { %3198 = vmatprep.mubr.f32.mxu0 %v6793_v18  ;;  %3343 = vmatprep.mubr.f32.mxu1 %v9708_v6  ;;  %v2326_v30 = vadd.f32 %v4930_v55, %v7950_v57  ;;  %v6540_v59 = vld [vmem:[#allocation2 + $0x208] sm:$0xff]  ;;  %v6542_v6 = vld [vmem:[#allocation2 + $0x200] sm:$0xff] }
 0x1b4   :  { %5613 = vmatpush3.msra.mxu1 %v1955_v12  ;;  %5534 = vmatprep.subr.mxu0 %v1938_v63  ;;  %v4932_v1 = vpop.f32.mrf.mxu0  ;;  %v5012_v49 = vpop.f32.mrf.mxu1  ;;  %v1953_v12 = vld [vmem:[#allocation5 + $0x948] sm:$0xff]  ;;  %v7985_v63 = vmul.f32 %v6540_v59, %v670_v42  ;;  %v7993_v18 = vmul.f32 %v6542_v6, %v670_v42  ;;  %v6543_v59 = vld [vmem:[#allocation2 + $0x210] sm:$0xff] }
 0x1b5   :  { %5614 = vmatprep.subr.mxu1 %v1970_v32  ;;  %3199 = vmatmul.mubr.f32.gmra.mxu0 %v6801_v29  ;;  %v6541_v32 = vld [vmem:[#allocation2 + $0x218] sm:$0xff]  ;;  %v7989_v45 = vadd.f32 %v5010_v20, %v2326_v30  ;;  %v5013_v55 = vadd.f32 %v5012_v49, %v5011_v61  ;;  %v7995_v53 = vmul.f32 %v6543_v59, %v670_v42 }
 0x1b6   :  { %3344 = vmatmul.mubr.f32.gmra.mxu1 %v9712_v51  ;;  %5535 = vmatpush3.msra.mxu0 %v1922_v15  ;;  %v7987_v23 = vmul.f32 %v6541_v32, %v670_v42  ;;  %v4933_v51 = vadd.f32 %v4932_v1, %v4931_v22  ;;  %v4934_v15 = vpop.f32.mrf.mxu0  ;;  %v9801_v29 = vld [vmem:[#allocation38_spill] sm:$0xff]  ;;  %v1968_v32 = vld [vmem:[#allocation5 + $0x9c0] sm:$0xff]  ;;  %v1512_v5 = vrot.slane %v7993_v18, 1 }
 0x1b7   :  { %3203 = vmatprep.mubr.f32.mxu0 %v9715_v8  ;;  %3348 = vmatprep.mubr.f32.mxu1 %v6812_v52  ;;  %v5014_v8 = vpop.f32.mrf.mxu1  ;;  %v9800_v52 = vld [vmem:[#allocation37_spill] sm:$0xff]  ;;  %v1952_v42 = vld [vmem:[#allocation5 + $0x940] sm:$0xff] }
 0x1b8   :  { %5615 = vmatpush3.msra.mxu1 %v1954_v21  ;;  %5536 = vmatprep.subr.mxu0 %v1937_v28  ;;  %v1936_v21 = vld [vmem:[#allocation5 + $0x8c0] sm:$0xff]  ;;  %v2331_v20 = vadd.f32 %v4933_v51, %v7950_v57  ;;  %v4935_v61 = vpop.f32.mrf.mxu0  ;;  %v1935_v51 = vld [vmem:[#allocation5 + $0x8b8] sm:$0xff] }
 0x1b9   :  { %5616 = vmatprep.subr.mxu1 %v1969_v40  ;;  %3204 = vmatmul.mubr.f32.gmra.mxu0 %v9800_v52  ;;  %v5015_v22 = vpop.f32.mrf.mxu1  ;;  %v1920_v28 = vld [vmem:[#allocation5 + $0x840] sm:$0xff]  ;;  %v4936_v30 = vadd.f32 %v4935_v61, %v4934_v15  ;;  %v1963_v52 = vld [vmem:[#allocation5 + $0x998] sm:$0xff] }
 0x1ba   :  { %3349 = vmatmul.mubr.f32.gmra.mxu1 %v9801_v29  ;;  %5537 = vmatpush3.msra.mxu0 %v1921_v17  ;;  %v8000_v40 = vadd.f32 %v5013_v55, %v2331_v20  ;;  %v5016_v6 = vadd.f32 %v5015_v22, %v5014_v8  ;;  %v4937_v1 = vpop.f32.mrf.mxu0  ;;  %v1967_v17 = vld [vmem:[#allocation5 + $0x9b8] sm:$0xff]  ;;  %v558_v55 = vpop.xlane.xlu1 %557 }
 0x1bb   :  { %5617 = vmatpush3.msra.mxu1 %v1953_v12  ;;  %3208 = vmatprep.mubr.f32.mxu0 %v7985_v63  ;;  %v5017_v49 = vpop.f32.mrf.mxu1  ;;  %v2336_v12 = vadd.f32 %v4936_v30, %v7950_v57  ;;  %v610_v59 = vmax.f32 %v558_v55, 1e-24  ;;  %v1951_v22 = vld [vmem:[#allocation5 + $0x938] sm:$0xff] }
 0x1bc   :  { %3353 = vmatprep.mubr.f32.mxu1 %v7987_v23  ;;  %5538 = vmatprep.subr.mxu0 %v1936_v21  ;;  %v4938_v8 = vpop.f32.mrf.mxu0  ;;  %v1919_v21 = vld [vmem:[#allocation5 + $0x838] sm:$0xff] }
 0x1bd   :  { %5618 = vmatprep.subr.mxu1 %v1968_v32  ;;  %3209 = vmatmul.mubr.f32.gmra.mxu0 %v7993_v18  ;;  %v5018_v15 = vpop.f32.mrf.mxu1  ;;  %v8007_v32 = vadd.f32 %v5016_v6, %v2336_v12  ;;  %v4939_v20 = vadd.f32 %v4938_v8, %v4937_v1  ;;  %6398 = vrsqrt.f32 %v610_v59  ;;  %v1918_v1 = vld [vmem:[#allocation5 + $0x830] sm:$0xff]  ;;  %v127_v12 = vld [vmem:[#allocation2 + $0x248] sm:$0xff] }
 0x1be   :  { %3354 = vmatmul.mubr.f32.gmra.mxu1 %v7995_v53  ;;  %5539 = vmatpush3.msra.mxu0 %v1920_v28  ;;  %v5019_v61 = vadd.f32 %v5018_v15, %v5017_v49  ;;  %v4940_v29 = vpop.f32.mrf.mxu0  ;;  %v1933_v15 = vld [vmem:[#allocation5 + $0x8a8] sm:$0xff] }
 0x1bf   :  { %3213 = vmatprep.mubr.f32.mxu0 %v9733_v36  ;;  %3358 = vmatprep.mubr.f32.mxu1 %v9734_v39  ;;  %v5020_v30 = vpop.f32.mrf.mxu1  ;;  %v1934_v36 = vld [vmem:[#allocation5 + $0x8b0] sm:$0xff]  ;;  %v2341_v28 = vadd.f32 %v4939_v20, %v7950_v57  ;;  %v9802_v20 = vld [vmem:[#allocation51_spill] sm:$0xff] }
 0x1c0   :  { %5619 = vmatpush3.msra.mxu1 %v1952_v42  ;;  %5540 = vmatprep.subr.mxu0 %v1935_v51  ;;  %v1966_v39 = vld [vmem:[#allocation5 + $0x9b0] sm:$0xff]  ;;  %v4941_v6 = vpop.f32.mrf.mxu0 }
 0x1c1   :  { %5620 = vmatprep.subr.mxu1 %v1967_v17  ;;  %3214 = vmatmul.mubr.f32.gmra.mxu0 %v9739_v13  ;;  %v5021_v42 = vpop.f32.mrf.mxu1  ;;  %v8014_v49 = vadd.f32 %v5019_v61, %v2341_v28  ;;  %v4942_v51 = vadd.f32 %v4941_v6, %v4940_v29  ;;  %v126_v17 = vld [vmem:[#allocation2 + $0x240] sm:$0xff] }
 0x1c2   :  { %3359 = vmatmul.mubr.f32.gmra.mxu1 %v9740_v4  ;;  %5541 = vmatpush3.msra.mxu0 %v1919_v21  ;;  %v5022_v13 = vadd.f32 %v5021_v42, %v5020_v30  ;;  %v1950_v4 = vld [vmem:[#allocation5 + $0x930] sm:$0xff]  ;;  %v4943_v55 = vpop.f32.mrf.mxu0  ;;  %v1965_v21 = vld [vmem:[#allocation5 + $0x9a8] sm:$0xff] }
 0x1c3   :  { %3218 = vmatprep.mubr.f32.mxu0 %v9741_v56  ;;  %3363 = vmatprep.mubr.f32.mxu1 %v9744_v48  ;;  %v5023_v8 = vpop.f32.mrf.mxu1  ;;  %v2346_v59 = vadd.f32 %v4942_v51, %v7950_v57  ;;  %v9803_v29 = vld [vmem:[#allocation52_spill] sm:$0xff]  ;;  %v9804_v48 = vld [vmem:[#allocation53_spill] sm:$0xff] }
 0x1c4   :  { %5621 = vmatpush3.msra.mxu1 %v1951_v22  ;;  %5542 = vmatprep.subr.mxu0 %v1934_v36  ;;  %v4944_v61 = vpop.f32.mrf.mxu0  ;;  %v1917_v30 = vld [vmem:[#allocation5 + $0x828] sm:$0xff]  ;;  %v286_v36 = vmul.f32 %v126_v17, %v126_v17  ;;  %v1964_v56 = vld [vmem:[#allocation5 + $0x9a0] sm:$0xff] }
 0x1c5   :  { %5622 = vmatprep.subr.mxu1 %v1966_v39  ;;  %3219 = vmatmul.mubr.f32.gmra.mxu0 %v9604_v34  ;;  %v5024_v22 = vpop.f32.mrf.mxu1  ;;  %v287_v39 = vmul.f32 %v127_v12, %v127_v12  ;;  %v8021_v28 = vadd.f32 %v5022_v13, %v2346_v59  ;;  %v4945_v6 = vadd.f32 %v4944_v61, %v4943_v55  ;;  %v128_v34 = vld [vmem:[#allocation2 + $0x250] sm:$0xff]  ;;  %v1916_v12 = vld [vmem:[#allocation5 + $0x820] sm:$0xff] }
 0x1c6   :  { %3364 = vmatmul.mubr.f32.gmra.mxu1 %v9747_v37  ;;  %5543 = vmatpush3.msra.mxu0 %v1918_v1  ;;  %v5025_v42 = vadd.f32 %v5024_v22, %v5023_v8  ;;  %v1949_v37 = vld [vmem:[#allocation5 + $0x928] sm:$0xff]  ;;  %v4946_v51 = vpop.f32.mrf.mxu0  ;;  %v288_v55 = vmul.f32 %v128_v34, %v128_v34 }
 0x1c7   :  { %3223 = vmatprep.mubr.f32.mxu0 %v9802_v20  ;;  %3368 = vmatprep.mubr.f32.mxu1 %v9803_v29  ;;  %v5026_v1 = vpop.f32.mrf.mxu1  ;;  %v9805_v20 = vld [vmem:[#allocation54_spill] sm:$0xff]  ;;  %v1932_v29 = vld [vmem:[#allocation5 + $0x8a0] sm:$0xff]  ;;  %v464_v8 = vadd.f32 %v287_v39, %v286_v36 }
 0x1c8   :  { %5623 = vmatpush3.msra.mxu1 %v1950_v4  ;;  %5544 = vmatprep.subr.mxu0 %v1933_v15  ;;  %v2351_v4 = vadd.f32 %v4945_v6, %v7950_v57  ;;  %v4947_v13 = vpop.f32.mrf.mxu0  ;;  %v130_v15 = vld [vmem:[#allocation2 + $0x260] sm:$0xff] }
 0x1c9   :  { %5624 = vmatprep.subr.mxu1 %v1965_v21  ;;  %3224 = vmatmul.mubr.f32.gmra.mxu0 %v9804_v48  ;;  %v5027_v17 = vpop.f32.mrf.mxu1  ;;  %v131_v21 = vld [vmem:[#allocation2 + $0x268] sm:$0xff]  ;;  %v4948_v61 = vadd.f32 %v4947_v13, %v4946_v51  ;;  %v1948_v6 = vld [vmem:[#allocation5 + $0x920] sm:$0xff]  ;;  %v290_v39 = vmul.f32 %v130_v15, %v130_v15  ;;  %v465_v13 = vadd.f32 %v464_v8, %v288_v55 }
 0x1ca   :  { %3369 = vmatmul.mubr.f32.gmra.mxu1 %v9805_v20  ;;  %5545 = vmatpush3.msra.mxu0 %v1917_v30  ;;  %v8028_v59 = vadd.f32 %v5025_v42, %v2351_v4  ;;  %v5028_v22 = vadd.f32 %v5027_v17, %v5026_v1  ;;  %v129_v30 = vld [vmem:[#allocation2 + $0x258] sm:$0xff]  ;;  %v4949_v20 = vpop.f32.mrf.mxu0  ;;  %v9806_v48 = vld [vmem:[#allocation57_spill] sm:$0xff]  ;;  %v291_v42 = vmul.f32 %v131_v21, %v131_v21  ;;  %v9809_v51 = vld [vmem:[#allocation60_spill] sm:$0xff] }
 0x1cb   :  { %3228 = vmatprep.mubr.f32.mxu0 %v9760_v26  ;;  %3373 = vmatprep.mubr.f32.mxu1 %v9764_v11  ;;  %v5029_v26 = vpop.f32.mrf.mxu1  ;;  %v9807_v11 = vld [vmem:[#allocation58_spill] sm:$0xff]  ;;  %v2356_v34 = vadd.f32 %v4948_v61, %v7950_v57  ;;  %v9808_v36 = vld [vmem:[#allocation59_spill] sm:$0xff]  ;;  %v289_v4 = vmul.f32 %v129_v30, %v129_v30  ;;  %v9810_v21 = vld [vmem:[#allocation61_spill] sm:$0xff] }
 0x1cc   :  { %5625 = vmatpush3.msra.mxu1 %v1949_v37  ;;  %5546 = vmatprep.subr.mxu0 %v1932_v29  ;;  %v1931_v37 = vld [vmem:[#allocation5 + $0x898] sm:$0xff]  ;;  %v132_v17 = vld [vmem:[#allocation2 + $0x270] sm:$0xff]  ;;  %v469_v8 = vadd.f32 %v291_v42, %v290_v39  ;;  %v463_v39 = vpop.xlane.xlu0 %462 }
 0x1cd   :  { %5626 = vmatprep.subr.mxu1 %v1964_v56  ;;  %3229 = vmatmul.mubr.f32.gmra.mxu0 %v9806_v48  ;;  %v4950_v56 = vpop.f32.mrf.mxu0  ;;  %v5030_v29 = vpop.f32.mrf.mxu1  ;;  %v1915_v1 = vld [vmem:[#allocation5 + $0x818] sm:$0xff]  ;;  %v292_v55 = vmul.f32 %v132_v17, %v132_v17  ;;  %v9813_v17 = vld [vmem:[#allocation69_spill] sm:$0xff] }
 0x1ce   :  { %3374 = vmatmul.mubr.f32.gmra.mxu1 %v9807_v11  ;;  %5547 = vmatpush3.msra.mxu0 %v1916_v12  ;;  %v6399_v48 = vpop.eup %6398  ;;  %v8035_v11 = vadd.f32 %v5028_v22, %v2356_v34  ;;  %v4951_v62 = vadd.f32 %v4950_v56, %v4949_v20  ;;  %v5031_v9 = vadd.f32 %v5030_v29, %v5029_v26  ;;  %v1947_v12 = vld [vmem:[#allocation5 + $0x918] sm:$0xff]  ;;  %v1914_v22 = vld [vmem:[#allocation5 + $0x810] sm:$0xff] }
 0x1cf   :  { %3233 = vmatprep.mubr.f32.mxu0 %v9808_v36  ;;  %3378 = vmatprep.mubr.f32.mxu1 %v9809_v51  ;;  %v4952_v61 = vpop.f32.mrf.mxu0  ;;  %v5032_v15 = vpop.f32.mrf.mxu1  ;;  %v9811_v51 = vld [vmem:[#allocation62_spill] sm:$0xff]  ;;  %v690_v20 = vmul.f32 20.0, %v6399_v48  ;;  %v1929_v48 = vld [vmem:[#allocation5 + $0x888] sm:$0xff] }
 0x1d0   :  { %5627 = vmatpush3.msra.mxu1 %v1948_v6  ;;  %5548 = vmatprep.subr.mxu0 %v1931_v37  ;;  %v1930_v36 = vld [vmem:[#allocation5 + $0x890] sm:$0xff]  ;;  %v2361_v30 = vadd.f32 %v4951_v62, %v7950_v57  ;;  %v466_v37 = vadd.f32 %v465_v13, %v289_v4  ;;  %v133_v34 = vld [vmem:[#allocation2 + $0x278] sm:$0xff]  ;;  %v470_v13 = vadd.f32 %v469_v8, %v292_v55  ;;  %v1945_v55 = vld [vmem:[#allocation5 + $0x908] sm:$0xff] }
 0x1d1   :  { %5628 = vmatprep.subr.mxu1 %v1963_v52  ;;  %3234 = vmatmul.mubr.f32.gmra.mxu0 %v9810_v21  ;;  %v1962_v6 = vld [vmem:[#allocation5 + $0x990] sm:$0xff]  ;;  %v4953_v52 = vpop.f32.mrf.mxu0  ;;  %v5033_v26 = vpop.f32.mrf.mxu1  ;;  %v9812_v4 = vld [vmem:[#allocation63_spill] sm:$0xff] }
 0x1d2   :  { %3379 = vmatmul.mubr.f32.gmra.mxu1 %v9811_v51  ;;  %5549 = vmatpush3.msra.mxu0 %v1915_v1  ;;  %v8042_v56 = vadd.f32 %v5031_v9, %v2361_v30  ;;  %v4954_v29 = vadd.f32 %v4953_v52, %v4952_v61  ;;  %v5034_v51 = vadd.f32 %v5033_v26, %v5032_v15  ;;  %v1946_v62 = vld [vmem:[#allocation5 + $0x910] sm:$0xff]  ;;  %v1913_v61 = vld [vmem:[#allocation5 + $0x808] sm:$0xff]  ;;  %v6545_v52 = vld [vmem:[#allocation2 + $0x498] sm:$0xff] }
 0x1d3   :  { %3238 = vmatprep.mubr.f32.mxu0 %v9782_v41  ;;  %3383 = vmatprep.mubr.f32.mxu1 %v9786_v47  ;;  %v4955_v1 = vpop.f32.mrf.mxu0  ;;  %v5035_v41 = vpop.f32.mrf.mxu1  ;;  %v293_v9 = vmul.f32 %v133_v34, %v133_v34  ;;  %v1961_v15 = vld [vmem:[#allocation5 + $0x988] sm:$0xff]  ;;  %v8051_v26 = vmul.f32 %v6545_v52, %v690_v20  ;;  %v2003_v47 = vld [vmem:[#allocation5 + $0xad8] sm:$0xff] }
 0x1d4   :  { %5629 = vmatpush3.msra.mxu1 %v1947_v12  ;;  %5550 = vmatprep.subr.mxu0 %v1930_v36  ;;  %v2366_v42 = vadd.f32 %v4954_v29, %v7950_v57 }
 0x1d5   :  { %5630 = vmatprep.subr.mxu1 %v1962_v6  ;;  %3239 = vmatmul.mubr.f32.gmra.mxu0 %v9650_v2  ;;  %v4956_v36 = vpop.f32.mrf.mxu0  ;;  %v5036_v12 = vpop.f32.mrf.mxu1  ;;  %v6544_v6 = vld [vmem:[#allocation2 + $0x488] sm:$0xff] }
 0x1d6   :  { %3384 = vmatmul.mubr.f32.gmra.mxu1 %v9653_v7  ;;  %5551 = vmatpush3.msra.mxu0 %v1914_v22  ;;  %v8049_v30 = vmul.f32 %v6544_v6, %v690_v20  ;;  %v8053_v7 = vadd.f32 %v5034_v51, %v2366_v42  ;;  %v4957_v22 = vadd.f32 %v4956_v36, %v4955_v1  ;;  %v591_v51 = vmax.f32 %v463_v39, 1e-24  ;;  %v1912_v42 = vld [vmem:[#allocation5 + $0x800] sm:$0xff] }
 0x1d7   :  { %3243 = vmatprep.mubr.f32.mxu0 %v9812_v4  ;;  %3388 = vmatprep.mubr.f32.mxu1 %v9813_v17  ;;  %v5037_v29 = vadd.f32 %v5036_v12, %v5035_v41  ;;  %v4958_v8 = vpop.f32.mrf.mxu0  ;;  %v5038_v34 = vpop.f32.mrf.mxu1  ;;  %v6546_v17 = vld [vmem:[#allocation2 + $0x480] sm:$0xff]  ;;  %v6547_v4 = vld [vmem:[#allocation2 + $0x490] sm:$0xff]  ;;  %v471_v41 = vadd.f32 %v470_v13, %v293_v9 }
 0x1d8   :  { %5631 = vmatpush3.msra.mxu1 %v1946_v62  ;;  %5552 = vmatprep.subr.mxu0 %v1929_v48  ;;  %v1928_v62 = vld [vmem:[#allocation5 + $0x880] sm:$0xff]  ;;  %v8057_v6 = vmul.f32 %v6546_v17, %v690_v20  ;;  %v8059_v52 = vmul.f32 %v6547_v4, %v690_v20  ;;  %v2371_v1 = vadd.f32 %v4957_v22, %v7950_v57  ;;  %6400 = vrsqrt.f32 %v591_v51 }
 0x1d9   :  { %467 = vadd.xlane.f32.xlu0 %v466_v37  ;;  %3244 = vmatmul.mubr.f32.gmra.mxu0 %v6971_v27  ;;  %v4959_v37 = vpop.f32.mrf.mxu0  ;;  %v5039_v48 = vpop.f32.mrf.mxu1  ;;  %v1960_v20 = vld [vmem:[#allocation5 + $0x980] sm:$0xff]  ;;  %v2021_v27 = vld [vmem:[#allocation5 + $0xb68] sm:$0xff] }
 0x1da   :  { %3389 = vmatmul.mubr.f32.gmra.mxu1 %v6993_v58  ;;  %5553 = vmatpush3.msra.mxu0 %v1913_v61  ;;  %v8063_v36 = vadd.f32 %v5037_v29, %v2371_v1  ;;  %v4960_v12 = vadd.f32 %v4959_v37, %v4958_v8  ;;  %v5040_v17 = vadd.f32 %v5039_v48, %v5038_v34  ;;  %v1944_v9 = vld [vmem:[#allocation5 + $0x900] sm:$0xff]  ;;  %v2007_v61 = vld [vmem:[#allocation5 + $0xaf8] sm:$0xff] }
 0x1db   :  { %5632 = vmatprep.subr.mxu1 %v1961_v15  ;;  %3248 = vmatprep.mubr.f32.mxu0 %v8049_v30  ;;  %v4961_v39 = vpop.f32.mrf.mxu0  ;;  %v5041_v4 = vpop.f32.mrf.mxu1  ;;  %v9814_v15 = vld [vmem:[#allocation75_spill] sm:$0xff]  ;;  %v9815_v34 = vld [vmem:[#allocation80_spill] sm:$0xff]  ;;  %v9822_v58 = vld [vmem:[#allocation94_spill] sm:$0xff] }
 0x1dc   :  { %5633 = vmatpush3.msra.mxu1 %v1945_v55  ;;  %3393 = vmatprep.mubr.f32.mxu1 %v8051_v26  ;;  %v2376_v13 = vadd.f32 %v4960_v12, %v7950_v57  ;;  %v1991_v55 = vld [vmem:[#allocation5 + $0xa78] sm:$0xff] }
 0x1dd   :  { %5554 = vmatprep.subr.mxu0 %v1928_v62  ;;  %3249 = vmatmul.mubr.f32.gmra.mxu0 %v8057_v6  ;;  %v4962_v22 = vpop.f32.mrf.mxu0  ;;  %v5042_v29 = vpop.f32.mrf.mxu1  ;;  %v9816_v48 = vld [vmem:[#allocation83_spill] sm:$0xff] }
 0x1de   :  { %3394 = vmatmul.mubr.f32.gmra.mxu1 %v8059_v52  ;;  %5555 = vmatpush3.msra.mxu0 %v1912_v42  ;;  %v8070_v8 = vadd.f32 %v5040_v17, %v2376_v13  ;;  %v4963_v62 = vadd.f32 %v4962_v22, %v4961_v39  ;;  %v5043_v1 = vadd.f32 %v5042_v29, %v5041_v4  ;;  %v2006_v42 = vld [vmem:[#allocation5 + $0xaf0] sm:$0xff]  ;;  %v9818_v17 = vld [vmem:[#allocation88_spill] sm:$0xff] }
 0x1df   :  { %472 = vadd.xlane.f32.xlu0 %v471_v41  ;;  %3463 = vmatprep.mubr.f32.mxu0 %v9814_v15  ;;  %v5076_v51 = vpop.f32.mrf.mxu0  ;;  %v5156_v37 = vpop.f32.mrf.mxu1  ;;  %v2039_v41 = vld [vmem:[#allocation5 + $0xbf8] sm:$0xff] }
 0x1e0   :  { %5634 = vmatprep.subr.mxu1 %v1960_v20  ;;  %3608 = vmatprep.mubr.f32.mxu1 %v9815_v34  ;;  %v2381_v12 = vadd.f32 %v4963_v62, %v7950_v57  ;;  %v9817_v20 = vld [vmem:[#allocation87_spill] sm:$0xff]  ;;  %v9819_v13 = vld [vmem:[#allocation90_spill] sm:$0xff] }
 0x1e1   :  { %5635 = vmatpush3.msra.mxu1 %v1944_v9  ;;  %5684 = vmatprep.subr.mxu0 %v2007_v61  ;;  %v2023_v15 = vld [vmem:[#allocation5 + $0xb78] sm:$0xff]  ;;  %v5077_v39 = vpop.f32.mrf.mxu0  ;;  %v5157_v4 = vpop.f32.mrf.mxu1  ;;  %v1990_v9 = vld [vmem:[#allocation5 + $0xa70] sm:$0xff] }
 0x1e2   :  { %3464 = vmatmul.mubr.f32.vlgmr.msra.gmra.mxu0 %v9816_v48  ;;  %3609 = vmatmul.mubr.f32.vlgmr.msra.gmra.mxu1 %v9817_v20  ;;  %v8078_v61 = vadd.f32 %v5043_v1, %v2381_v12  ;;  %v5078_v22 = vadd.f32 %v5077_v39, %v5076_v51  ;;  %v5158_v29 = vadd.f32 %v5157_v4, %v5156_v37  ;;  %v9820_v62 = vld [vmem:[#allocation91_spill] sm:$0xff]  ;;  %v2005_v48 = vld [vmem:[#allocation5 + $0xae8] sm:$0xff] }
 0x1e3   :  { %5685 = vmatpush3.msra.mxu0 %v1991_v55  ;;  %3468 = vmatprep.mubr.f32.mxu0 %v9818_v17  ;;  %v5079_v34 = vpop.f32.mrf.mxu0  ;;  %v5159_v57 = vpop.f32.mrf.mxu1  ;;  %v2038_v55 = vld [vmem:[#allocation5 + $0xbf0] sm:$0xff]  ;;  %v9821_v17 = vld [vmem:[#allocation92_spill] sm:$0xff] }
 0x1e4   :  { %3613 = vmatprep.mubr.f32.mxu1 %v9819_v13  ;;  %5764 = vmatprep.subr.mxu1 %v2039_v41  ;;  %v2596_v20 = vadd.f32 %v5078_v22, %v7957_v33  ;;  %v2022_v13 = vld [vmem:[#allocation5 + $0xb70] sm:$0xff]  ;;  %v9823_v1 = vld [vmem:[#allocation96_spill] sm:$0xff] }
 0x1e5   :  { %5686 = vmatprep.subr.mxu0 %v2006_v42  ;;  %5765 = vmatpush3.msra.mxu1 %v2023_v15  ;;  %v5080_v51 = vpop.f32.mrf.mxu0  ;;  %v5160_v37 = vpop.f32.mrf.mxu1  ;;  %v1989_v41 = vld [vmem:[#allocation5 + $0xa68] sm:$0xff]  ;;  %v206_v42 = vld [vmem:[#allocation2 + $0x4c0] sm:$0xff] }
 0x1e6   :  { %3469 = vmatmul.mubr.f32.gmra.mxu0 %v9820_v62  ;;  %3614 = vmatmul.mubr.f32.gmra.mxu1 %v9821_v17  ;;  %v207_v12 = vld [vmem:[#allocation2 + $0x4c8] sm:$0xff]  ;;  %v8085_v15 = vadd.f32 %v5158_v29, %v2596_v20  ;;  %v5081_v39 = vadd.f32 %v5080_v51, %v5079_v34  ;;  %v5161_v4 = vadd.f32 %v5160_v37, %v5159_v57  ;;  %v9825_v62 = vld [vmem:[#allocation98_spill] sm:$0xff]  ;;  %v6401_v20 = vpop.eup %6400 }
 0x1e7   :  { %5687 = vmatpush3.msra.mxu0 %v1990_v9  ;;  %3473 = vmatprep.mubr.f32.mxu0 %v9822_v58  ;;  %v5082_v33 = vpop.f32.mrf.mxu0  ;;  %v5162_v22 = vpop.f32.mrf.mxu1  ;;  %v9824_v9 = vld [vmem:[#allocation97_spill] sm:$0xff]  ;;  %v2004_v58 = vld [vmem:[#allocation5 + $0xae0] sm:$0xff]  ;;  %v366_v2 = vmul.f32 %v206_v42, %v206_v42  ;;  %v367_v29 = vmul.f32 %v207_v12, %v207_v12 }
 0x1e8   :  { %3618 = vmatprep.mubr.f32.mxu1 %v9823_v1  ;;  %5766 = vmatprep.subr.mxu1 %v2038_v55  ;;  %v2037_v17 = vld [vmem:[#allocation5 + $0xbe8] sm:$0xff]  ;;  %v2601_v1 = vadd.f32 %v5081_v39, %v7964_v50  ;;  %v9826_v55 = vld [vmem:[#allocation99_spill] sm:$0xff]  ;;  %v208_v51 = vld [vmem:[#allocation2 + $0x4d0] sm:$0xff] }
 0x1e9   :  { %5688 = vmatprep.subr.mxu0 %v2005_v48  ;;  %5767 = vmatpush3.msra.mxu1 %v2022_v13  ;;  %v9827_v34 = vld [vmem:[#allocation100_spill] sm:$0xff]  ;;  %v5083_v13 = vpop.f32.mrf.mxu0  ;;  %v5163_v57 = vpop.f32.mrf.mxu1 }
 0x1ea   :  { %3474 = vmatmul.mubr.f32.gmra.mxu0 %v9824_v9  ;;  %3619 = vmatmul.mubr.f32.gmra.mxu1 %v9825_v62  ;;  %v1988_v48 = vld [vmem:[#allocation5 + $0xa60] sm:$0xff]  ;;  %v8092_v37 = vadd.f32 %v5161_v4, %v2601_v1  ;;  %v5084_v9 = vadd.f32 %v5083_v13, %v5082_v33  ;;  %v5164_v50 = vadd.f32 %v5163_v57, %v5162_v22  ;;  %v9828_v62 = vld [vmem:[#allocation102_spill] sm:$0xff]  ;;  %v9831_v22 = vld [vmem:[#allocation105_spill] sm:$0xff] }
 0x1eb   :  { %5689 = vmatpush3.msra.mxu0 %v1989_v41  ;;  %3478 = vmatprep.mubr.f32.mxu0 %v9826_v55  ;;  %v210_v39 = vld [vmem:[#allocation2 + $0x4e0] sm:$0xff]  ;;  %v211_v41 = vld [vmem:[#allocation2 + $0x4e8] sm:$0xff]  ;;  %v5085_v42 = vpop.f32.mrf.mxu0  ;;  %v5165_v12 = vpop.f32.mrf.mxu1  ;;  %v368_v4 = vmul.f32 %v208_v51, %v208_v51  ;;  %v564_v33 = vadd.f32 %v367_v29, %v366_v2  ;;  %v1987_v57 = vld [vmem:[#allocation5 + $0xa58] sm:$0xff] }
 0x1ec   :  { %3623 = vmatprep.mubr.f32.mxu1 %v9827_v34  ;;  %5768 = vmatprep.subr.mxu1 %v2037_v17  ;;  %v2036_v55 = vld [vmem:[#allocation5 + $0xbe0] sm:$0xff]  ;;  %v671_v34 = vmul.f32 20.0, %v6401_v20  ;;  %v2606_v21 = vadd.f32 %v5084_v9, %v7971_v43  ;;  %v209_v17 = vld [vmem:[#allocation2 + $0x4d8] sm:$0xff]  ;;  %v371_v24 = vmul.f32 %v211_v41, %v211_v41  ;;  %v212_v20 = vld [vmem:[#allocation2 + $0x4f0] sm:$0xff] }
 0x1ed   :  { %5690 = vmatprep.subr.mxu0 %v2004_v58  ;;  %5769 = vmatpush3.msra.mxu1 %v2021_v27  ;;  %v2020_v1 = vld [vmem:[#allocation5 + $0xb60] sm:$0xff]  ;;  %v5086_v27 = vpop.f32.mrf.mxu0  ;;  %v5166_v13 = vpop.f32.mrf.mxu1  ;;  %v2035_v29 = vld [vmem:[#allocation5 + $0xbd8] sm:$0xff] }
 0x1ee   :  { %3479 = vmatmul.mubr.f32.gmra.mxu0 %v9828_v62  ;;  %3624 = vmatmul.mubr.f32.gmra.mxu1 %v9829_v38  ;;  %v9830_v58 = vld [vmem:[#allocation104_spill] sm:$0xff]  ;;  %v370_v62 = vmul.f32 %v210_v39, %v210_v39  ;;  %v8099_v46 = vadd.f32 %v5164_v50, %v2606_v21  ;;  %v5087_v43 = vadd.f32 %v5086_v27, %v5085_v42  ;;  %v2019_v21 = vld [vmem:[#allocation5 + $0xb58] sm:$0xff] }
 0x1ef   :  { %5691 = vmatpush3.msra.mxu0 %v1988_v48  ;;  %3483 = vmatprep.mubr.f32.mxu0 %v9830_v58  ;;  %v5167_v9 = vadd.f32 %v5166_v13, %v5165_v12  ;;  %v5088_v48 = vpop.f32.mrf.mxu0  ;;  %v5168_v51 = vpop.f32.mrf.mxu1  ;;  %v9832_v2 = vld [vmem:[#allocation108_spill] sm:$0xff]  ;;  %v2002_v58 = vld [vmem:[#allocation5 + $0xad0] sm:$0xff]  ;;  %v565_v50 = vadd.f32 %v564_v33, %v368_v4  ;;  %v6549_v27 = vld [vmem:[#allocation2 + $0x238] sm:$0xff]  ;;  %v8113_v10 = vmul.f32 %v6550_v0, %v671_v34 }
 0x1f0   :  { %3628 = vmatprep.mubr.f32.mxu1 %v9831_v22  ;;  %5770 = vmatprep.subr.mxu1 %v2036_v55  ;;  %v369_v22 = vmul.f32 %v209_v17, %v209_v17  ;;  %v2611_v38 = vadd.f32 %v5087_v43, %v7978_v44  ;;  %v6548_v55 = vld [vmem:[#allocation2 + $0x228] sm:$0xff]  ;;  %v9835_v41 = vld [vmem:[#allocation114_spill] sm:$0xff]  ;;  %v8108_v13 = vmul.f32 %v6549_v27, %v671_v34 }
 0x1f1   :  { %5692 = vmatprep.subr.mxu0 %v2003_v47  ;;  %5771 = vmatpush3.msra.mxu1 %v2020_v1  ;;  %v8104_v39 = vmul.f32 %v6548_v55, %v671_v34  ;;  %v9834_v47 = vld [vmem:[#allocation112_spill] sm:$0xff]  ;;  %v5089_v42 = vpop.f32.mrf.mxu0  ;;  %v5169_v12 = vpop.f32.mrf.mxu1  ;;  %v1986_v1 = vld [vmem:[#allocation5 + $0xa50] sm:$0xff]  ;;  %v372_v17 = vmul.f32 %v212_v20, %v212_v20  ;;  %v569_v44 = vadd.f32 %v371_v24, %v370_v62  ;;  %v213_v33 = vld [vmem:[#allocation2 + $0x4f8] sm:$0xff]  ;;  %v1513_v3 = vrot.slane %v8113_v10, 1 }
 0x1f2   :  { %3484 = vmatmul.mubr.f32.gmra.mxu0 %v9832_v2  ;;  %3629 = vmatmul.mubr.f32.gmra.mxu1 %v9833_v19  ;;  %v8110_v43 = vadd.f32 %v5167_v9, %v2611_v38  ;;  %v5170_v4 = vadd.f32 %v5169_v12, %v5168_v51  ;;  %v9836_v19 = vld [vmem:[#allocation116_spill] sm:$0xff]  ;;  %v6551_v27 = vld [vmem:[#allocation2 + $0x230] sm:$0xff]  ;;  %v9837_v24 = vld [vmem:[#allocation119_spill] sm:$0xff]  ;;  %v1515_v9 = vrot.slane %v7985_v63, 1  ;;  %v373_v12 = vmul.f32 %v213_v33, %v213_v33 }
 0x1f3   :  { %5693 = vmatpush3.msra.mxu0 %v1987_v57  ;;  %3488 = vmatprep.mubr.f32.mxu0 %v9834_v47  ;;  %v5090_v57 = vadd.f32 %v5089_v42, %v5088_v48  ;;  %v5091_v55 = vpop.f32.mrf.mxu0  ;;  %v5171_v47 = vpop.f32.mrf.mxu1  ;;  %v2001_v2 = vld [vmem:[#allocation5 + $0xac8] sm:$0xff]  ;;  %v8115_v20 = vmul.f32 %v6551_v27, %v671_v34  ;;  %v2018_v62 = vld [vmem:[#allocation5 + $0xb50] sm:$0xff]  ;;  %v1516_v48 = vrot.slane %v8104_v39, 1  ;;  %v1521_v34 = vrot.slane %v7987_v23, 1 }
 0x1f4   :  { %3633 = vmatprep.mubr.f32.mxu1 %v9835_v41  ;;  %5772 = vmatprep.subr.mxu1 %v2035_v29  ;;  %v2034_v41 = vld [vmem:[#allocation5 + $0xbd0] sm:$0xff]  ;;  %v9838_v51 = vld [vmem:[#allocation120_spill] sm:$0xff]  ;;  %v1518_v33 = vrot.slane %v7995_v53, 1 }
 0x1f5   :  { %5694 = vmatprep.subr.mxu0 %v2002_v58  ;;  %5773 = vmatpush3.msra.mxu1 %v2019_v21  ;;  %v2616_v38 = vadd.f32 %v5090_v57, %v7989_v45  ;;  %v566_v58 = vadd.f32 %v565_v50, %v369_v22  ;;  %v9839_v29 = vld [vmem:[#allocation121_spill] sm:$0xff]  ;;  %v5092_v0 = vpop.f32.mrf.mxu0  ;;  %v5172_v21 = vpop.f32.mrf.mxu1  ;;  %v1522_v45 = vrot.slane %v8108_v13, 1  ;;  %v570_v57 = vadd.f32 %v569_v44, %v372_v17 }
 0x1f6   :  { %3489 = vmatmul.mubr.f32.gmra.mxu0 %v9836_v19  ;;  %3634 = vmatmul.mubr.f32.gmra.mxu1 %v9837_v24  ;;  %v1985_v42 = vld [vmem:[#allocation5 + $0xa48] sm:$0xff]  ;;  %v5093_v22 = vadd.f32 %v5092_v0, %v5091_v55  ;;  %v5173_v50 = vadd.f32 %v5172_v21, %v5171_v47  ;;  %v1519_v17 = vrot.slane %v8115_v20, 1 }
 0x1f7   :  { %5695 = vmatpush3.msra.mxu0 %v1986_v1  ;;  %3493 = vmatprep.mubr.f32.mxu0 %v9838_v51  ;;  %v563_v1 = vpop.xlane.xlu1 %562  ;;  %v8125_v27 = vadd.f32 %v5170_v4, %v2616_v38  ;;  %v5094_v51 = vpop.f32.mrf.mxu0  ;;  %v2033_v19 = vld [vmem:[#allocation5 + $0xbc8] sm:$0xff]  ;;  %v2000_v4 = vld [vmem:[#allocation5 + $0xac0] sm:$0xff]  ;;  %v8139_v38 = vsel %vm982_vm0, %v1521_v34, %v1522_v45  ;;  %v571_v21 = vadd.f32 %v570_v57, %v373_v12 }
 0x1f8   :  { %3638 = vmatprep.mubr.f32.mxu1 %v9839_v29  ;;  %5774 = vmatprep.subr.mxu1 %v2034_v41  ;;  %v5174_v24 = vpop.f32.mrf.mxu1  ;;  %v9840_v29 = vld [vmem:[#allocation122_spill] sm:$0xff]  ;;  %v2621_v44 = vadd.f32 %v5093_v22, %v8000_v40  ;;  %v9841_v41 = vld [vmem:[#allocation123_spill] sm:$0xff]  ;;  %v2017_v47 = vld [vmem:[#allocation5 + $0xb48] sm:$0xff]  ;;  %v611_v55 = vmax.f32 %v563_v1, 1e-24  ;;  %9843 = vst [vmem:[#allocation75_spill] sm:$0xff] %v8139_v38  ;;  %v8145_v1 = vsel %vm982_vm0, %v1512_v5, %v1513_v3 }
 0x1f9   :  { %5696 = vmatprep.subr.mxu0 %v2001_v2  ;;  %5775 = vmatpush3.msra.mxu1 %v2018_v62  ;;  %v8135_v2 = vsel %vm982_vm0, %v1515_v9, %v1516_v48  ;;  %v5095_v62 = vpop.f32.mrf.mxu0  ;;  %v1984_v48 = vld [vmem:[#allocation5 + $0xa40] sm:$0xff]  ;;  %9844 = vst [vmem:[#allocation80_spill] sm:$0xff] %v8145_v1  ;;  %v8148_v34 = vsel %vm982_vm0, %v1518_v33, %v1519_v17  ;;  %v9846_v3 = vld [vmem:[#allocation126_spill] sm:$0xff] }
 0x1fa   :  { %3494 = vmatmul.mubr.f32.gmra.mxu0 %v9840_v29  ;;  %3639 = vmatmul.mubr.f32.gmra.mxu1 %v9841_v41  ;;  %9842 = vst [vmem:[#allocation162_spill] sm:$0xff] %v8135_v2  ;;  %v5175_v0 = vpop.f32.mrf.mxu1  ;;  %v8141_v29 = vadd.f32 %v5173_v50, %v2621_v44  ;;  %v5096_v40 = vadd.f32 %v5095_v62, %v5094_v51  ;;  %9845 = vst [vmem:[#allocation83_spill] sm:$0xff] %v8148_v34  ;;  %v1999_v51 = vld [vmem:[#allocation5 + $0xab8] sm:$0xff]  ;;  %6402 = vrsqrt.f32 %v611_v55  ;;  %v2016_v57 = vld [vmem:[#allocation5 + $0xb40] sm:$0xff] }
 0x1fb   :  { %5697 = vmatpush3.msra.mxu0 %v1985_v42  ;;  %567 = vadd.xlane.f32.xlu1 %v566_v58  ;;  %v5176_v9 = vadd.f32 %v5175_v0, %v5174_v24  ;;  %v5097_v42 = vpop.f32.mrf.mxu0  ;;  %v9847_v5 = vld [vmem:[#allocation127_spill] sm:$0xff]  ;;  %v1998_v62 = vld [vmem:[#allocation5 + $0xab0] sm:$0xff] }
 0x1fc   :  { %3498 = vmatprep.mubr.f32.mxu0 %v8135_v2  ;;  %3643 = vmatprep.mubr.f32.mxu1 %v8139_v38  ;;  %v5177_v58 = vpop.f32.mrf.mxu1  ;;  %v2626_v45 = vadd.f32 %v5096_v40, %v8007_v32  ;;  %v1983_v33 = vld [vmem:[#allocation5 + $0xa38] sm:$0xff]  ;;  %v1976_v2 = vld [vmem:[#allocation5 + $0xa00] sm:$0xff] }
 0x1fd   :  { %5776 = vmatprep.subr.mxu1 %v2033_v19  ;;  %5698 = vmatprep.subr.mxu0 %v2000_v4  ;;  %v2032_v19 = vld [vmem:[#allocation5 + $0xbc0] sm:$0xff]  ;;  %v5098_v24 = vpop.f32.mrf.mxu0  ;;  %v9848_v4 = vld [vmem:[#allocation130_spill] sm:$0xff] }
 0x1fe   :  { %5777 = vmatpush3.msra.mxu1 %v2017_v47  ;;  %3499 = vmatmul.mubr.f32.gmra.mxu0 %v8145_v1  ;;  %v5178_v12 = vpop.f32.mrf.mxu1  ;;  %v8153_v22 = vadd.f32 %v5176_v9, %v2626_v45  ;;  %v5099_v50 = vadd.f32 %v5098_v24, %v5097_v42  ;;  %v2031_v55 = vld [vmem:[#allocation5 + $0xbb8] sm:$0xff]  ;;  %v9850_v42 = vld [vmem:[#allocation133_spill] sm:$0xff] }
 0x1ff   :  { %3644 = vmatmul.mubr.f32.gmra.mxu1 %v8148_v34  ;;  %5699 = vmatpush3.msra.mxu0 %v1984_v48  ;;  %v5179_v32 = vadd.f32 %v5178_v12, %v5177_v58  ;;  %v5100_v17 = vpop.f32.mrf.mxu0  ;;  %v9849_v0 = vld [vmem:[#allocation131_spill] sm:$0xff]  ;;  %v1524_v34 = vrot.slane %v8057_v6, 1 }
 0x200   :  { %572 = vadd.xlane.f32.xlu1 %v571_v21  ;;  %3503 = vmatprep.mubr.f32.mxu0 %v9846_v3  ;;  %v5180_v44 = vpop.f32.mrf.mxu1  ;;  %v2631_v47 = vadd.f32 %v5099_v50, %v8014_v49  ;;  %v2015_v9 = vld [vmem:[#allocation5 + $0xb38] sm:$0xff]  ;;  %v1982_v49 = vld [vmem:[#allocation5 + $0xa30] sm:$0xff] }
 0x201   :  { %3648 = vmatprep.mubr.f32.mxu1 %v9847_v5  ;;  %5778 = vmatprep.subr.mxu1 %v2032_v19  ;;  %v5101_v21 = vpop.f32.mrf.mxu0  ;;  %v9851_v58 = vld [vmem:[#allocation135_spill] sm:$0xff]  ;;  %v2030_v3 = vld [vmem:[#allocation5 + $0xbb0] sm:$0xff]  ;;  %v1997_v5 = vld [vmem:[#allocation5 + $0xaa8] sm:$0xff] }
 0x202   :  { %5700 = vmatprep.subr.mxu0 %v1999_v51  ;;  %5779 = vmatpush3.msra.mxu1 %v2016_v57  ;;  %v5181_v40 = vpop.f32.mrf.mxu1  ;;  %v8160_v48 = vadd.f32 %v5179_v32, %v2631_v47  ;;  %v5102_v45 = vadd.f32 %v5101_v21, %v5100_v17  ;;  %v9852_v57 = vld [vmem:[#allocation137_spill] sm:$0xff]  ;;  %v9853_v50 = vld [vmem:[#allocation138_spill] sm:$0xff] }
 0x203   :  { %3504 = vmatmul.mubr.f32.gmra.mxu0 %v9848_v4  ;;  %3649 = vmatmul.mubr.f32.gmra.mxu1 %v9849_v0  ;;  %v5182_v19 = vadd.f32 %v5181_v40, %v5180_v44  ;;  %v5103_v51 = vpop.f32.mrf.mxu0  ;;  %v2014_v47 = vld [vmem:[#allocation5 + $0xb30] sm:$0xff]  ;;  %v9855_v4 = vld [vmem:[#allocation143_spill] sm:$0xff] }
 0x204   :  { %5701 = vmatpush3.msra.mxu0 %v1983_v33  ;;  %3508 = vmatprep.mubr.f32.mxu0 %v9850_v42  ;;  %v5183_v24 = vpop.f32.mrf.mxu1  ;;  %v2636_v12 = vadd.f32 %v5102_v45, %v8021_v28  ;;  %v9854_v44 = vld [vmem:[#allocation141_spill] sm:$0xff] }
 0x205   :  { %3653 = vmatprep.mubr.f32.mxu1 %v9851_v58  ;;  %5780 = vmatprep.subr.mxu1 %v2031_v55  ;;  %v5104_v32 = vpop.f32.mrf.mxu0  ;;  %v1981_v28 = vld [vmem:[#allocation5 + $0xa28] sm:$0xff] }
 0x206   :  { %5702 = vmatprep.subr.mxu0 %v1998_v62  ;;  %5781 = vmatpush3.msra.mxu1 %v2015_v9  ;;  %v5184_v33 = vpop.f32.mrf.mxu1  ;;  %v8167_v17 = vadd.f32 %v5182_v19, %v2636_v12  ;;  %v5105_v55 = vadd.f32 %v5104_v32, %v5103_v51  ;;  %v9856_v9 = vld [vmem:[#allocation145_spill] sm:$0xff]  ;;  %v9857_v19 = vld [vmem:[#allocation146_spill] sm:$0xff] }
 0x207   :  { %3509 = vmatmul.mubr.f32.gmra.mxu0 %v9852_v57  ;;  %3654 = vmatmul.mubr.f32.gmra.mxu1 %v9853_v50  ;;  %v5185_v62 = vadd.f32 %v5184_v33, %v5183_v24  ;;  %v5106_v0 = vpop.f32.mrf.mxu0  ;;  %v2029_v45 = vld [vmem:[#allocation5 + $0xba8] sm:$0xff]  ;;  %v6403_v51 = vpop.eup %6402  ;;  %v1980_v33 = vld [vmem:[#allocation5 + $0xa20] sm:$0xff]  ;;  %v1995_v50 = vld [vmem:[#allocation5 + $0xa98] sm:$0xff] }
 0x208   :  { %5703 = vmatpush3.msra.mxu0 %v1982_v49  ;;  %3513 = vmatprep.mubr.f32.mxu0 %v9854_v44  ;;  %v5186_v21 = vpop.f32.mrf.mxu1  ;;  %v2641_v40 = vadd.f32 %v5105_v55, %v8028_v59  ;;  %v1996_v49 = vld [vmem:[#allocation5 + $0xaa0] sm:$0xff] }
 0x209   :  { %3658 = vmatprep.mubr.f32.mxu1 %v9855_v4  ;;  %5782 = vmatprep.subr.mxu1 %v2030_v3  ;;  %v5107_v12 = vpop.f32.mrf.mxu0  ;;  %v2013_v4 = vld [vmem:[#allocation5 + $0xb28] sm:$0xff]  ;;  %v6554_v57 = vld [vmem:[#allocation2 + $0x4a0] sm:$0xff] }
 0x20a   :  { %5704 = vmatprep.subr.mxu0 %v1997_v5  ;;  %5783 = vmatpush3.msra.mxu1 %v2014_v47  ;;  %v5187_v44 = vpop.f32.mrf.mxu1  ;;  %v8174_v24 = vadd.f32 %v5185_v62, %v2641_v40  ;;  %v9858_v3 = vld [vmem:[#allocation148_spill] sm:$0xff]  ;;  %v9859_v5 = vld [vmem:[#allocation150_spill] sm:$0xff]  ;;  %v5108_v32 = vadd.f32 %v5107_v12, %v5106_v0  ;;  %v691_v62 = vmul.f32 20.0, %v6403_v51 }
 0x20b   :  { %3514 = vmatmul.mubr.f32.gmra.mxu0 %v9856_v9  ;;  %3659 = vmatmul.mubr.f32.gmra.mxu1 %v9857_v19  ;;  %v5188_v59 = vadd.f32 %v5187_v44, %v5186_v21  ;;  %v5109_v47 = vpop.f32.mrf.mxu0  ;;  %v2028_v9 = vld [vmem:[#allocation5 + $0xba0] sm:$0xff]  ;;  %v9861_v40 = vld [vmem:[#allocation154_spill] sm:$0xff] }
 0x20c   :  { %5705 = vmatpush3.msra.mxu0 %v1981_v28  ;;  %3518 = vmatprep.mubr.f32.mxu0 %v9858_v3  ;;  %v5189_v55 = vpop.f32.mrf.mxu1  ;;  %v2646_v19 = vadd.f32 %v5108_v32, %v8035_v11  ;;  %v9860_v28 = vld [vmem:[#allocation153_spill] sm:$0xff]  ;;  %v2012_v0 = vld [vmem:[#allocation5 + $0xb20] sm:$0xff]  ;;  %v8196_v58 = vmul.f32 %v6554_v57, %v691_v62 }
 0x20d   :  { %3663 = vmatprep.mubr.f32.mxu1 %v9859_v5  ;;  %5784 = vmatprep.subr.mxu1 %v2029_v45  ;;  %v5110_v3 = vpop.f32.mrf.mxu0  ;;  %v9862_v21 = vld [vmem:[#allocation156_spill] sm:$0xff]  ;;  %v9863_v45 = vld [vmem:[#allocation158_spill] sm:$0xff] }
 0x20e   :  { %5706 = vmatprep.subr.mxu0 %v1996_v49  ;;  %5785 = vmatpush3.msra.mxu1 %v2013_v4  ;;  %v5190_v5 = vpop.f32.mrf.mxu1  ;;  %v8181_v44 = vadd.f32 %v5188_v59, %v2646_v19  ;;  %v5111_v49 = vadd.f32 %v5110_v3, %v5109_v47  ;;  %v1979_v4 = vld [vmem:[#allocation5 + $0xa18] sm:$0xff]  ;;  %v9865_v19 = vld [vmem:[#allocation161_spill] sm:$0xff]  ;;  %v1525_v1 = vrot.slane %v8196_v58, 1 }
 0x20f   :  { %3519 = vmatmul.mubr.f32.gmra.mxu0 %v9860_v28  ;;  %3664 = vmatmul.mubr.f32.gmra.mxu1 %v9861_v40  ;;  %v5191_v11 = vadd.f32 %v5190_v5, %v5189_v55  ;;  %v5112_v12 = vpop.f32.mrf.mxu0  ;;  %v2027_v40 = vld [vmem:[#allocation5 + $0xb98] sm:$0xff]  ;;  %v1994_v28 = vld [vmem:[#allocation5 + $0xa90] sm:$0xff]  ;;  %v6552_v3 = vld [vmem:[#allocation2 + $0x4a8] sm:$0xff] }
 0x210   :  { %5707 = vmatpush3.msra.mxu0 %v1980_v33  ;;  %3523 = vmatprep.mubr.f32.mxu0 %v9862_v21  ;;  %v5192_v32 = vpop.f32.mrf.mxu1  ;;  %v2651_v51 = vadd.f32 %v5111_v49, %v8042_v56  ;;  %v9864_v33 = vld [vmem:[#allocation160_spill] sm:$0xff]  ;;  %v8188_v5 = vmul.f32 %v6552_v3, %v691_v62  ;;  %v9866_v56 = vld [vmem:[#allocation163_spill] sm:$0xff] }
 0x211   :  { %3668 = vmatprep.mubr.f32.mxu1 %v9863_v45  ;;  %5786 = vmatprep.subr.mxu1 %v2028_v9  ;;  %v5113_v59 = vpop.f32.mrf.mxu0  ;;  %v2011_v45 = vld [vmem:[#allocation5 + $0xb18] sm:$0xff]  ;;  %v9867_v55 = vld [vmem:[#allocation164_spill] sm:$0xff] }
 0x212   :  { %5708 = vmatprep.subr.mxu0 %v1995_v50  ;;  %5787 = vmatpush3.msra.mxu1 %v2012_v0  ;;  %v5193_v21 = vpop.f32.mrf.mxu1  ;;  %v6553_v9 = vld [vmem:[#allocation2 + $0x4b8] sm:$0xff]  ;;  %v8192_v47 = vadd.f32 %v5191_v11, %v2651_v51  ;;  %v5114_v0 = vadd.f32 %v5113_v59, %v5112_v12  ;;  %v2026_v11 = vld [vmem:[#allocation5 + $0xb90] sm:$0xff]  ;;  %v1993_v51 = vld [vmem:[#allocation5 + $0xa88] sm:$0xff]  ;;  %v1528_v57 = vrot.slane %v8188_v5, 1 }
 0x213   :  { %3524 = vmatmul.mubr.f32.gmra.mxu0 %v9864_v33  ;;  %3669 = vmatmul.mubr.f32.gmra.mxu1 %v9865_v19  ;;  %v8190_v50 = vmul.f32 %v6553_v9, %v691_v62  ;;  %v5194_v49 = vadd.f32 %v5193_v21, %v5192_v32  ;;  %v1978_v33 = vld [vmem:[#allocation5 + $0xa10] sm:$0xff]  ;;  %v1527_v32 = vrot.slane %v8049_v30, 1 }
 0x214   :  { %5709 = vmatpush3.msra.mxu0 %v1979_v4  ;;  %3528 = vmatprep.mubr.f32.mxu0 %v9866_v56  ;;  %v5115_v4 = vpop.f32.mrf.mxu0  ;;  %v5195_v19 = vpop.f32.mrf.mxu1  ;;  %v2656_v3 = vadd.f32 %v5114_v0, %v8053_v7  ;;  %v9868_v9 = vld [vmem:[#allocation165_spill] sm:$0xff]  ;;  %v9869_v12 = vld [vmem:[#allocation166_spill] sm:$0xff]  ;;  %v1533_v7 = vrot.slane %v8051_v26, 1  ;;  %v9870_v0 = vld [vmem:[#allocation167_spill] sm:$0xff] }
 0x215   :  { %3673 = vmatprep.mubr.f32.mxu1 %v9867_v55  ;;  %5788 = vmatprep.subr.mxu1 %v2027_v40  ;;  %v6555_v56 = vld [vmem:[#allocation2 + $0x4b0] sm:$0xff] }
 0x216   :  { %5710 = vmatprep.subr.mxu0 %v1994_v28  ;;  %5789 = vmatpush3.msra.mxu1 %v2011_v45  ;;  %v8200_v42 = vmul.f32 %v6555_v56, %v691_v62  ;;  %v5116_v40 = vpop.f32.mrf.mxu0  ;;  %v5196_v28 = vpop.f32.mrf.mxu1  ;;  %v2010_v21 = vld [vmem:[#allocation5 + $0xb10] sm:$0xff]  ;;  %v1534_v45 = vrot.slane %v8190_v50, 1  ;;  %v8207_v59 = vadd.f32 %v5194_v49, %v2656_v3  ;;  %v9871_v62 = vld [vmem:[#allocation64_spill] sm:$0xff] }
 0x217   :  { %3529 = vmatmul.mubr.f32.gmra.mxu0 %v9868_v9  ;;  %3674 = vmatmul.mubr.f32.gmra.mxu1 %v9869_v12  ;;  %v5117_v56 = vadd.f32 %v5116_v40, %v5115_v4  ;;  %v5197_v12 = vadd.f32 %v5196_v28, %v5195_v19  ;;  %v9872_v49 = vld [vmem:[#allocation68_spill] sm:$0xff] }
 0x218   :  { %5711 = vmatpush3.msra.mxu0 %v1978_v33  ;;  %3533 = vmatprep.mubr.f32.mxu0 %v9870_v0  ;;  %v1977_v33 = vld [vmem:[#allocation5 + $0xa08] sm:$0xff]  ;;  %v5118_v9 = vpop.f32.mrf.mxu0  ;;  %v5198_v55 = vpop.f32.mrf.mxu1  ;;  %v1992_v0 = vld [vmem:[#allocation5 + $0xa80] sm:$0xff]  ;;  %v1531_v19 = vrot.slane %v8200_v42, 1 }
 0x219   :  { %3678 = vmatprep.mubr.f32.mxu1 %v9871_v62  ;;  %5790 = vmatprep.subr.mxu1 %v2026_v11  ;;  %v2661_v38 = vadd.f32 %v5117_v56, %v8063_v36  ;;  %v2025_v3 = vld [vmem:[#allocation5 + $0xb88] sm:$0xff]  ;;  %v1530_v62 = vrot.slane %v8059_v52, 1  ;;  %v8219_v11 = vsel %vm982_vm0, %v1527_v32, %v1528_v57  ;;  %v8229_v57 = vsel %vm982_vm0, %v1524_v34, %v1525_v1 }
 0x21a   :  { %5712 = vmatprep.subr.mxu0 %v1993_v51  ;;  %5791 = vmatpush3.msra.mxu1 %v2010_v21  ;;  %v9873_v4 = vld [vmem:[#allocation12_spill] sm:$0xff]  ;;  %v8222_v51 = vsel %vm982_vm0, %v1533_v7, %v1534_v45  ;;  %v5119_v40 = vpop.f32.mrf.mxu0  ;;  %v5199_v36 = vpop.f32.mrf.mxu1  ;;  %9875 = vst [vmem:[#allocation123_spill] sm:$0xff] %v8229_v57  ;;  %v9877_v1 = vld [vmem:[#allocation13_spill] sm:$0xff] }
 0x21b   :  { %3534 = vmatmul.mubr.f32.gmra.mxu0 %v9872_v49  ;;  %3679 = vmatmul.mubr.f32.gmra.mxu1 %v9873_v4  ;;  %9874 = vst [vmem:[#allocation87_spill] sm:$0xff] %v8222_v51  ;;  %v2009_v28 = vld [vmem:[#allocation5 + $0xb08] sm:$0xff]  ;;  %v8224_v21 = vadd.f32 %v5197_v12, %v2661_v38  ;;  %v5120_v56 = vadd.f32 %v5119_v40, %v5118_v9  ;;  %v2024_v7 = vld [vmem:[#allocation5 + $0xb80] sm:$0xff]  ;;  %v2055_v40 = vld [vmem:[#allocation5 + $0xc78] sm:$0xff] }
 0x21c   :  { %5713 = vmatpush3.msra.mxu0 %v1977_v33  ;;  %3538 = vmatprep.mubr.f32.mxu0 %v8219_v11  ;;  %v5200_v49 = vadd.f32 %v5199_v36, %v5198_v55  ;;  %v5121_v33 = vpop.f32.mrf.mxu0  ;;  %v5201_v32 = vpop.f32.mrf.mxu1  ;;  %v8234_v38 = vsel %vm982_vm0, %v1530_v62, %v1531_v19  ;;  %v2008_v12 = vld [vmem:[#allocation5 + $0xb00] sm:$0xff]  ;;  %v9878_v36 = vld [vmem:[#allocation65_spill] sm:$0xff] }
 0x21d   :  { %3683 = vmatprep.mubr.f32.mxu1 %v8222_v51  ;;  %5792 = vmatprep.subr.mxu1 %v2025_v3  ;;  %v2666_v45 = vadd.f32 %v5120_v56, %v8070_v8  ;;  %9876 = vst [vmem:[#allocation126_spill] sm:$0xff] %v8234_v38  ;;  %v2103_v56 = vld [vmem:[#allocation5 + $0xdf8] sm:$0xff] }
 0x21e   :  { %5714 = vmatprep.subr.mxu0 %v1992_v0  ;;  %5793 = vmatpush3.msra.mxu1 %v2009_v28  ;;  %v5122_v55 = vpop.f32.mrf.mxu0  ;;  %v5202_v9 = vpop.f32.mrf.mxu1  ;;  %v2071_v0 = vld [vmem:[#allocation5 + $0xcf8] sm:$0xff] }
 0x21f   :  { %3539 = vmatmul.mubr.f32.gmra.mxu0 %v8229_v57  ;;  %3684 = vmatmul.mubr.f32.gmra.mxu1 %v8234_v38  ;;  %v8237_v3 = vadd.f32 %v5200_v49, %v2666_v45  ;;  %v5123_v34 = vadd.f32 %v5122_v55, %v5121_v33  ;;  %v5203_v8 = vadd.f32 %v5202_v9, %v5201_v32  ;;  %v2070_v38 = vld [vmem:[#allocation5 + $0xcf0] sm:$0xff]  ;;  %v2087_v33 = vld [vmem:[#allocation5 + $0xd78] sm:$0xff]  ;;  %v9881_v55 = vld [vmem:[#allocation76_spill] sm:$0xff]  ;;  %v1544_v57 = vrot.slane %v7993_v18, 2 }
 0x220   :  { %5715 = vmatpush3.msra.mxu0 %v1976_v2  ;;  %3753 = vmatprep.mubr.f32.mxu0 %v9877_v1  ;;  %v5236_v62 = vpop.f32.mrf.mxu0  ;;  %v5316_v19 = vpop.f32.mrf.mxu1  ;;  %v9879_v2 = vld [vmem:[#allocation74_spill] sm:$0xff] }
 0x221   :  { %5794 = vmatprep.subr.mxu1 %v2024_v7  ;;  %3898 = vmatprep.mubr.f32.mxu1 %v9878_v36  ;;  %v2671_v28 = vadd.f32 %v5123_v34, %v8078_v61  ;;  %v9880_v49 = vld [vmem:[#allocation14_spill] sm:$0xff] }
 0x222   :  { %5795 = vmatpush3.msra.mxu1 %v2008_v12  ;;  %5844 = vmatprep.subr.mxu0 %v2071_v0  ;;  %v5237_v45 = vpop.f32.mrf.mxu0  ;;  %v5317_v7 = vpop.f32.mrf.mxu1  ;;  %v9882_v12 = vld [vmem:[#allocation77_spill] sm:$0xff] }
 0x223   :  { %3754 = vmatmul.mubr.f32.vlgmr.msra.gmra.mxu0 %v9879_v2  ;;  %3899 = vmatmul.mubr.f32.vlgmr.msra.gmra.mxu1 %v9880_v49  ;;  %v8244_v32 = vadd.f32 %v5203_v8, %v2671_v28  ;;  %v5238_v9 = vadd.f32 %v5237_v45, %v5236_v62  ;;  %v5318_v1 = vadd.f32 %v5317_v7, %v5316_v19  ;;  %v2054_v61 = vld [vmem:[#allocation5 + $0xc70] sm:$0xff]  ;;  %v2069_v49 = vld [vmem:[#allocation5 + $0xce8] sm:$0xff]  ;;  %v9884_v8 = vld [vmem:[#allocation79_spill] sm:$0xff] }
 0x224   :  { %5845 = vmatpush3.msra.mxu0 %v2055_v40  ;;  %3758 = vmatprep.mubr.f32.mxu0 %v9881_v55  ;;  %v5239_v0 = vpop.f32.mrf.mxu0  ;;  %v5319_v34 = vpop.f32.mrf.mxu1  ;;  %v9883_v40 = vld [vmem:[#allocation78_spill] sm:$0xff]  ;;  %v9885_v19 = vld [vmem:[#allocation81_spill] sm:$0xff] }
 0x225   :  { %3903 = vmatprep.mubr.f32.mxu1 %v9882_v12  ;;  %5924 = vmatprep.subr.mxu1 %v2103_v56  ;;  %v2886_v36 = vadd.f32 %v5238_v9, %v8085_v15  ;;  %v2102_v2 = vld [vmem:[#allocation5 + $0xdf0] sm:$0xff]  ;;  %v2053_v15 = vld [vmem:[#allocation5 + $0xc68] sm:$0xff] }
 0x226   :  { %5846 = vmatprep.subr.mxu0 %v2070_v38  ;;  %5925 = vmatpush3.msra.mxu1 %v2087_v33  ;;  %v5240_v28 = vpop.f32.mrf.mxu0  ;;  %v5320_v55 = vpop.f32.mrf.mxu1  ;;  %v2086_v12 = vld [vmem:[#allocation5 + $0xd70] sm:$0xff] }
 0x227   :  { %3759 = vmatmul.mubr.f32.gmra.mxu0 %v9883_v40  ;;  %3904 = vmatmul.mubr.f32.gmra.mxu1 %v9884_v8  ;;  %v8251_v62 = vadd.f32 %v5318_v1, %v2886_v36  ;;  %v9886_v38 = vld [vmem:[#allocation82_spill] sm:$0xff]  ;;  %v5241_v56 = vadd.f32 %v5240_v28, %v5239_v0  ;;  %v5321_v45 = vadd.f32 %v5320_v55, %v5319_v34  ;;  %v2101_v8 = vld [vmem:[#allocation5 + $0xde8] sm:$0xff]  ;;  %v2068_v40 = vld [vmem:[#allocation5 + $0xce0] sm:$0xff] }
 0x228   :  { %5847 = vmatpush3.msra.mxu0 %v2054_v61  ;;  %3763 = vmatprep.mubr.f32.mxu0 %v9885_v19  ;;  %v5242_v7 = vpop.f32.mrf.mxu0  ;;  %v5322_v33 = vpop.f32.mrf.mxu1  ;;  %v9887_v61 = vld [vmem:[#allocation84_spill] sm:$0xff]  ;;  %v9888_v1 = vld [vmem:[#allocation85_spill] sm:$0xff]  ;;  %v9889_v55 = vld [vmem:[#allocation86_spill] sm:$0xff] }
 0x229   :  { %3908 = vmatprep.mubr.f32.mxu1 %v9886_v38  ;;  %5926 = vmatprep.subr.mxu1 %v2102_v2  ;;  %v2891_v9 = vadd.f32 %v5241_v56, %v8092_v37  ;;  %v2085_v38 = vld [vmem:[#allocation5 + $0xd68] sm:$0xff]  ;;  %v2052_v37 = vld [vmem:[#allocation5 + $0xc60] sm:$0xff] }
 0x22a   :  { %5848 = vmatprep.subr.mxu0 %v2069_v49  ;;  %5927 = vmatpush3.msra.mxu1 %v2086_v12  ;;  %v5243_v36 = vpop.f32.mrf.mxu0  ;;  %v5323_v19 = vpop.f32.mrf.mxu1  ;;  %v9890_v34 = vld [vmem:[#allocation89_spill] sm:$0xff] }
 0x22b   :  { %3764 = vmatmul.mubr.f32.gmra.mxu0 %v9887_v61  ;;  %3909 = vmatmul.mubr.f32.gmra.mxu1 %v9888_v1  ;;  %v8258_v0 = vadd.f32 %v5321_v45, %v2891_v9  ;;  %v5244_v2 = vadd.f32 %v5243_v36, %v5242_v7  ;;  %v5324_v49 = vadd.f32 %v5323_v19, %v5322_v33  ;;  %v2100_v1 = vld [vmem:[#allocation5 + $0xde0] sm:$0xff]  ;;  %v2067_v61 = vld [vmem:[#allocation5 + $0xcd8] sm:$0xff] }
 0x22c   :  { %5849 = vmatpush3.msra.mxu0 %v2053_v15  ;;  %3768 = vmatprep.mubr.f32.mxu0 %v9889_v55  ;;  %v5245_v12 = vpop.f32.mrf.mxu0  ;;  %v5325_v28 = vpop.f32.mrf.mxu1  ;;  %v9891_v15 = vld [vmem:[#allocation93_spill] sm:$0xff]  ;;  %v9892_v45 = vld [vmem:[#allocation95_spill] sm:$0xff]  ;;  %v9893_v19 = vld [vmem:[#allocation168_spill] sm:$0xff] }
 0x22d   :  { %3913 = vmatprep.mubr.f32.mxu1 %v9890_v34  ;;  %5928 = vmatprep.subr.mxu1 %v2101_v8  ;;  %v2896_v56 = vadd.f32 %v5244_v2, %v8099_v46  ;;  %v2084_v34 = vld [vmem:[#allocation5 + $0xd60] sm:$0xff]  ;;  %v2051_v46 = vld [vmem:[#allocation5 + $0xc58] sm:$0xff] }
 0x22e   :  { %5850 = vmatprep.subr.mxu0 %v2068_v40  ;;  %5929 = vmatpush3.msra.mxu1 %v2085_v38  ;;  %v5246_v9 = vpop.f32.mrf.mxu0  ;;  %v5326_v55 = vpop.f32.mrf.mxu1  ;;  %v9894_v40 = vld [vmem:[#allocation101_spill] sm:$0xff] }
 0x22f   :  { %3769 = vmatmul.mubr.f32.gmra.mxu0 %v9891_v15  ;;  %3914 = vmatmul.mubr.f32.gmra.mxu1 %v9892_v45  ;;  %v8265_v7 = vadd.f32 %v5324_v49, %v2896_v56  ;;  %v5247_v8 = vadd.f32 %v5246_v9, %v5245_v12  ;;  %v5327_v33 = vadd.f32 %v5326_v55, %v5325_v28  ;;  %v2099_v45 = vld [vmem:[#allocation5 + $0xdd8] sm:$0xff]  ;;  %v2066_v15 = vld [vmem:[#allocation5 + $0xcd0] sm:$0xff] }
 0x230   :  { %5851 = vmatpush3.msra.mxu0 %v2052_v37  ;;  %3773 = vmatprep.mubr.f32.mxu0 %v9893_v19  ;;  %v5248_v38 = vpop.f32.mrf.mxu0  ;;  %v5328_v36 = vpop.f32.mrf.mxu1  ;;  %v9895_v37 = vld [vmem:[#allocation169_spill] sm:$0xff]  ;;  %v9896_v49 = vld [vmem:[#allocation170_spill] sm:$0xff]  ;;  %v9897_v55 = vld [vmem:[#allocation171_spill] sm:$0xff] }
 0x231   :  { %3918 = vmatprep.mubr.f32.mxu1 %v9894_v40  ;;  %5930 = vmatprep.subr.mxu1 %v2100_v1  ;;  %v2901_v2 = vadd.f32 %v5247_v8, %v8110_v43  ;;  %v2083_v40 = vld [vmem:[#allocation5 + $0xd58] sm:$0xff]  ;;  %v2050_v43 = vld [vmem:[#allocation5 + $0xc50] sm:$0xff] }
 0x232   :  { %5852 = vmatprep.subr.mxu0 %v2067_v61  ;;  %5931 = vmatpush3.msra.mxu1 %v2084_v34  ;;  %v5249_v56 = vpop.f32.mrf.mxu0  ;;  %v5329_v19 = vpop.f32.mrf.mxu1  ;;  %v9898_v61 = vld [vmem:[#allocation106_spill] sm:$0xff] }
 0x233   :  { %3774 = vmatmul.mubr.f32.gmra.mxu0 %v9895_v37  ;;  %3919 = vmatmul.mubr.f32.gmra.mxu1 %v9896_v49  ;;  %v8272_v12 = vadd.f32 %v5327_v33, %v2901_v2  ;;  %v5250_v1 = vadd.f32 %v5249_v56, %v5248_v38  ;;  %v5330_v28 = vadd.f32 %v5329_v19, %v5328_v36  ;;  %v2098_v49 = vld [vmem:[#allocation5 + $0xdd0] sm:$0xff]  ;;  %v2065_v37 = vld [vmem:[#allocation5 + $0xcc8] sm:$0xff]  ;;  %v1547_v19 = vrot.slane %v7985_v63, 2  ;;  %v9902_v36 = vld [vmem:[#allocation111_spill] sm:$0xff] }
 0x234   :  { %5853 = vmatpush3.msra.mxu0 %v2051_v46  ;;  %3778 = vmatprep.mubr.f32.mxu0 %v9897_v55  ;;  %v5251_v34 = vpop.f32.mrf.mxu0  ;;  %v5331_v9 = vpop.f32.mrf.mxu1  ;;  %v9899_v46 = vld [vmem:[#allocation107_spill] sm:$0xff]  ;;  %v9900_v33 = vld [vmem:[#allocation172_spill] sm:$0xff]  ;;  %v1554_v38 = vrot.slane %v8108_v13, 2  ;;  %v9903_v13 = vld [vmem:[#allocation113_spill] sm:$0xff] }
 0x235   :  { %3923 = vmatprep.mubr.f32.mxu1 %v9898_v61  ;;  %5932 = vmatprep.subr.mxu1 %v2099_v45  ;;  %v2906_v8 = vadd.f32 %v5250_v1, %v8125_v27  ;;  %v2082_v61 = vld [vmem:[#allocation5 + $0xd50] sm:$0xff]  ;;  %v1548_v45 = vrot.slane %v8104_v39, 2  ;;  %v1545_v39 = vrot.slane %v8113_v10, 2 }
 0x236   :  { %5854 = vmatprep.subr.mxu0 %v2066_v15  ;;  %5933 = vmatpush3.msra.mxu1 %v2083_v40  ;;  %v5252_v2 = vpop.f32.mrf.mxu0  ;;  %v5332_v55 = vpop.f32.mrf.mxu1  ;;  %v1553_v15 = vrot.slane %v7987_v23, 2  ;;  %v9901_v40 = vld [vmem:[#allocation109_spill] sm:$0xff] }
 0x237   :  { %3779 = vmatmul.mubr.f32.gmra.mxu0 %v9899_v46  ;;  %3924 = vmatmul.mubr.f32.gmra.mxu1 %v9900_v33  ;;  %v8283_v27 = vadd.f32 %v5330_v28, %v2906_v8  ;;  %v5253_v56 = vadd.f32 %v5252_v2, %v5251_v34  ;;  %v5333_v1 = vadd.f32 %v5332_v55, %v5331_v9  ;;  %v2097_v28 = vld [vmem:[#allocation5 + $0xdc8] sm:$0xff]  ;;  %v2064_v8 = vld [vmem:[#allocation5 + $0xcc0] sm:$0xff]  ;;  %v1551_v55 = vrot.slane %v8115_v20, 2 }
 0x238   :  { %5855 = vmatpush3.msra.mxu0 %v2050_v43  ;;  %3783 = vmatprep.mubr.f32.mxu0 %v9901_v40  ;;  %v2049_v43 = vld [vmem:[#allocation5 + $0xc48] sm:$0xff]  ;;  %v5254_v33 = vpop.f32.mrf.mxu0  ;;  %v5334_v46 = vpop.f32.mrf.mxu1  ;;  %v9904_v34 = vld [vmem:[#allocation39_spill] sm:$0xff] }
 0x239   :  { %3928 = vmatprep.mubr.f32.mxu1 %v9902_v36  ;;  %5934 = vmatprep.subr.mxu1 %v2098_v49  ;;  %v2911_v51 = vadd.f32 %v5253_v56, %v8141_v29  ;;  %v1550_v36 = vrot.slane %v7995_v53, 2  ;;  %v8298_v49 = vsel %vm1239_vm1, %v1553_v15, %v1554_v38  ;;  %v2048_v56 = vld [vmem:[#allocation5 + $0xc40] sm:$0xff] }
 0x23a   :  { %5856 = vmatprep.subr.mxu0 %v2065_v37  ;;  %5935 = vmatpush3.msra.mxu1 %v2082_v61  ;;  %v8295_v37 = vsel %vm1239_vm1, %v1547_v19, %v1548_v45  ;;  %v5255_v10 = vpop.f32.mrf.mxu0  ;;  %v5335_v29 = vpop.f32.mrf.mxu1  ;;  %v2081_v61 = vld [vmem:[#allocation5 + $0xd48] sm:$0xff]  ;;  %v8305_v45 = vsel %vm1239_vm1, %v1544_v57, %v1545_v39  ;;  %v2096_v38 = vld [vmem:[#allocation5 + $0xdc0] sm:$0xff] }
 0x23b   :  { %3784 = vmatmul.mubr.f32.gmra.mxu0 %v9903_v13  ;;  %3929 = vmatmul.mubr.f32.gmra.mxu1 %v9904_v34  ;;  %v8300_v9 = vadd.f32 %v5333_v1, %v2911_v51  ;;  %v5256_v2 = vadd.f32 %v5255_v10, %v5254_v33  ;;  %v5336_v20 = vadd.f32 %v5335_v29, %v5334_v46  ;;  %v2063_v1 = vld [vmem:[#allocation5 + $0xcb8] sm:$0xff]  ;;  %v9908_v39 = vld [vmem:[#allocation40_spill] sm:$0xff] }
 0x23c   :  { %5857 = vmatpush3.msra.mxu0 %v2049_v43  ;;  %3788 = vmatprep.mubr.f32.mxu0 %v8295_v37  ;;  %v5257_v43 = vpop.f32.mrf.mxu0  ;;  %v5337_v19 = vpop.f32.mrf.mxu1  ;;  %9905 = vst [vmem:[#allocation127_spill] sm:$0xff] %v8305_v45  ;;  %v8310_v51 = vsel %vm1239_vm1, %v1550_v36, %v1551_v55  ;;  %v9907_v57 = vld [vmem:[#allocation115_spill] sm:$0xff] }
 0x23d   :  { %3933 = vmatprep.mubr.f32.mxu1 %v8298_v49  ;;  %5936 = vmatprep.subr.mxu1 %v2097_v28  ;;  %v2916_v15 = vadd.f32 %v5256_v2, %v8153_v22  ;;  %9906 = vst [vmem:[#allocation130_spill] sm:$0xff] %v8310_v51  ;;  %v2080_v28 = vld [vmem:[#allocation5 + $0xd40] sm:$0xff]  ;;  %v2047_v29 = vld [vmem:[#allocation5 + $0xc38] sm:$0xff]  ;;  %v9909_v2 = vld [vmem:[#allocation117_spill] sm:$0xff] }
 0x23e   :  { %5858 = vmatprep.subr.mxu0 %v2064_v8  ;;  %5937 = vmatpush3.msra.mxu1 %v2081_v61  ;;  %v5258_v46 = vpop.f32.mrf.mxu0  ;;  %v5338_v33 = vpop.f32.mrf.mxu1 }
 0x23f   :  { %3789 = vmatmul.mubr.f32.gmra.mxu0 %v8305_v45  ;;  %3934 = vmatmul.mubr.f32.gmra.mxu1 %v8310_v51  ;;  %v8313_v8 = vadd.f32 %v5336_v20, %v2916_v15  ;;  %v5259_v22 = vadd.f32 %v5258_v46, %v5257_v43  ;;  %v5339_v10 = vadd.f32 %v5338_v33, %v5337_v19  ;;  %v2062_v51 = vld [vmem:[#allocation5 + $0xcb0] sm:$0xff] }
 0x240   :  { %5859 = vmatpush3.msra.mxu0 %v2048_v56  ;;  %3793 = vmatprep.mubr.f32.mxu0 %v9907_v57  ;;  %v5260_v36 = vpop.f32.mrf.mxu0  ;;  %v2095_v56 = vld [vmem:[#allocation5 + $0xdb8] sm:$0xff]  ;;  %v9910_v20 = vld [vmem:[#allocation41_spill] sm:$0xff] }
 0x241   :  { %3938 = vmatprep.mubr.f32.mxu1 %v9908_v39  ;;  %5938 = vmatprep.subr.mxu1 %v2096_v38  ;;  %v5340_v55 = vpop.f32.mrf.mxu1  ;;  %v2921_v61 = vadd.f32 %v5259_v22, %v8160_v48  ;;  %v2079_v39 = vld [vmem:[#allocation5 + $0xd38] sm:$0xff]  ;;  %v2046_v48 = vld [vmem:[#allocation5 + $0xc30] sm:$0xff] }
 0x242   :  { %5860 = vmatprep.subr.mxu0 %v2063_v1  ;;  %5939 = vmatpush3.msra.mxu1 %v2080_v28  ;;  %v5261_v15 = vpop.f32.mrf.mxu0  ;;  %v9911_v19 = vld [vmem:[#allocation118_spill] sm:$0xff] }
 0x243   :  { %3794 = vmatmul.mubr.f32.gmra.mxu0 %v9909_v2  ;;  %3939 = vmatmul.mubr.f32.gmra.mxu1 %v9910_v20  ;;  %v5341_v57 = vpop.f32.mrf.mxu1  ;;  %v8320_v43 = vadd.f32 %v5339_v10, %v2921_v61  ;;  %v9912_v38 = vld [vmem:[#allocation42_spill] sm:$0xff]  ;;  %v5262_v1 = vadd.f32 %v5261_v15, %v5260_v36  ;;  %v2061_v20 = vld [vmem:[#allocation5 + $0xca8] sm:$0xff] }
 0x244   :  { %5861 = vmatpush3.msra.mxu0 %v2047_v29  ;;  %3798 = vmatprep.mubr.f32.mxu0 %v9911_v19  ;;  %v5342_v46 = vadd.f32 %v5341_v57, %v5340_v55  ;;  %v9913_v29 = vld [vmem:[#allocation43_spill] sm:$0xff]  ;;  %v2094_v2 = vld [vmem:[#allocation5 + $0xdb0] sm:$0xff]  ;;  %v9914_v10 = vld [vmem:[#allocation44_spill] sm:$0xff] }
 0x245   :  { %3943 = vmatprep.mubr.f32.mxu1 %v9912_v38  ;;  %5940 = vmatprep.subr.mxu1 %v2095_v56  ;;  %v5263_v33 = vpop.f32.mrf.mxu0  ;;  %v5343_v28 = vpop.f32.mrf.mxu1  ;;  %v2926_v22 = vadd.f32 %v5262_v1, %v8167_v17  ;;  %v2078_v38 = vld [vmem:[#allocation5 + $0xd30] sm:$0xff]  ;;  %v9915_v55 = vld [vmem:[#allocation124_spill] sm:$0xff] }
 0x246   :  { %5862 = vmatprep.subr.mxu0 %v2062_v51  ;;  %5941 = vmatpush3.msra.mxu1 %v2079_v39  ;;  %v9916_v51 = vld [vmem:[#allocation125_spill] sm:$0xff] }
 0x247   :  { %3799 = vmatmul.mubr.f32.gmra.mxu0 %v9913_v29  ;;  %3944 = vmatmul.mubr.f32.gmra.mxu1 %v9914_v10  ;;  %v5264_v61 = vpop.f32.mrf.mxu0  ;;  %v5344_v19 = vpop.f32.mrf.mxu1  ;;  %v8327_v36 = vadd.f32 %v5342_v46, %v2926_v22  ;;  %v2045_v17 = vld [vmem:[#allocation5 + $0xc28] sm:$0xff]  ;;  %v2060_v29 = vld [vmem:[#allocation5 + $0xca0] sm:$0xff]  ;;  %v9918_v46 = vld [vmem:[#allocation46_spill] sm:$0xff] }
 0x248   :  { %5863 = vmatpush3.msra.mxu0 %v2046_v48  ;;  %3803 = vmatprep.mubr.f32.mxu0 %v9915_v55  ;;  %v5265_v56 = vadd.f32 %v5264_v61, %v5263_v33  ;;  %v5345_v15 = vadd.f32 %v5344_v19, %v5343_v28  ;;  %v9917_v48 = vld [vmem:[#allocation45_spill] sm:$0xff]  ;;  %v9919_v19 = vld [vmem:[#allocation128_spill] sm:$0xff] }
 0x249   :  { %3948 = vmatprep.mubr.f32.mxu1 %v9916_v51  ;;  %5942 = vmatprep.subr.mxu1 %v2094_v2  ;;  %v5266_v57 = vpop.f32.mrf.mxu0  ;;  %v5346_v39 = vpop.f32.mrf.mxu1  ;;  %v2093_v10 = vld [vmem:[#allocation5 + $0xda8] sm:$0xff] }
 0x24a   :  { %5864 = vmatprep.subr.mxu0 %v2061_v20  ;;  %v2931_v1 = vadd.f32 %v5265_v56, %v8174_v24  ;;  %5943 = vmatpush3.msra.mxu1 %v2078_v38  ;;  %v2077_v51 = vld [vmem:[#allocation5 + $0xd28] sm:$0xff]  ;;  %v2044_v24 = vld [vmem:[#allocation5 + $0xc20] sm:$0xff] }
 0x24b   :  { %3804 = vmatmul.mubr.f32.gmra.mxu0 %v9917_v48  ;;  %3949 = vmatmul.mubr.f32.gmra.mxu1 %v9918_v46  ;;  %v5267_v22 = vpop.f32.mrf.mxu0  ;;  %v5347_v55 = vpop.f32.mrf.mxu1  ;;  %v9920_v28 = vld [vmem:[#allocation129_spill] sm:$0xff]  ;;  %v2092_v46 = vld [vmem:[#allocation5 + $0xda0] sm:$0xff]  ;;  %v2059_v48 = vld [vmem:[#allocation5 + $0xc98] sm:$0xff] }
 0x24c   :  { %5865 = vmatpush3.msra.mxu0 %v2045_v17  ;;  %v8334_v33 = vadd.f32 %v5345_v15, %v2931_v1  ;;  %3808 = vmatprep.mubr.f32.mxu0 %v9919_v19  ;;  %v5268_v2 = vadd.f32 %v5267_v22, %v5266_v57  ;;  %v5348_v20 = vadd.f32 %v5347_v55, %v5346_v39  ;;  %v9921_v17 = vld [vmem:[#allocation132_spill] sm:$0xff]  ;;  %v9922_v15 = vld [vmem:[#allocation134_spill] sm:$0xff] }
 0x24d   :  { %3953 = vmatprep.mubr.f32.mxu1 %v9920_v28  ;;  %5944 = vmatprep.subr.mxu1 %v2093_v10  ;;  %v5269_v38 = vpop.f32.mrf.mxu0  ;;  %v5349_v61 = vpop.f32.mrf.mxu1  ;;  %v2076_v28 = vld [vmem:[#allocation5 + $0xd20] sm:$0xff] }
 0x24e   :  { %5866 = vmatprep.subr.mxu0 %v2060_v29  ;;  %v2936_v56 = vadd.f32 %v5268_v2, %v8181_v44  ;;  %5945 = vmatpush3.msra.mxu1 %v2077_v51  ;;  %v9923_v55 = vld [vmem:[#allocation136_spill] sm:$0xff]  ;;  %v9924_v29 = vld [vmem:[#allocation139_spill] sm:$0xff] }
 0x24f   :  { %3809 = vmatmul.mubr.f32.gmra.mxu0 %v9921_v17  ;;  %3954 = vmatmul.mubr.f32.gmra.mxu1 %v9922_v15  ;;  %v5270_v1 = vpop.f32.mrf.mxu0  ;;  %v5350_v19 = vpop.f32.mrf.mxu1  ;;  %v2043_v44 = vld [vmem:[#allocation5 + $0xc18] sm:$0xff]  ;;  %v2058_v17 = vld [vmem:[#allocation5 + $0xc90] sm:$0xff] }
 0x250   :  { %5867 = vmatpush3.msra.mxu0 %v2044_v24  ;;  %v8341_v57 = vadd.f32 %v5348_v20, %v2936_v56  ;;  %3813 = vmatprep.mubr.f32.mxu0 %v9923_v55  ;;  %v5271_v10 = vadd.f32 %v5270_v1, %v5269_v38  ;;  %v5351_v39 = vadd.f32 %v5350_v19, %v5349_v61  ;;  %v9925_v24 = vld [vmem:[#allocation140_spill] sm:$0xff]  ;;  %v2091_v15 = vld [vmem:[#allocation5 + $0xd98] sm:$0xff] }
 0x251   :  { %3958 = vmatprep.mubr.f32.mxu1 %v9924_v29  ;;  %5946 = vmatprep.subr.mxu1 %v2092_v46  ;;  %v5272_v51 = vpop.f32.mrf.mxu0  ;;  %v9926_v20 = vld [vmem:[#allocation142_spill] sm:$0xff]  ;;  %v9927_v19 = vld [vmem:[#allocation144_spill] sm:$0xff] }
 0x252   :  { %5868 = vmatprep.subr.mxu0 %v2059_v48  ;;  %v5352_v22 = vpop.f32.mrf.mxu1  ;;  %v2941_v2 = vadd.f32 %v5271_v10, %v8192_v47  ;;  %5947 = vmatpush3.msra.mxu1 %v2076_v28  ;;  %v2075_v29 = vld [vmem:[#allocation5 + $0xd18] sm:$0xff]  ;;  %v2042_v47 = vld [vmem:[#allocation5 + $0xc10] sm:$0xff] }
 0x253   :  { %3814 = vmatmul.mubr.f32.gmra.mxu0 %v9925_v24  ;;  %3959 = vmatmul.mubr.f32.gmra.mxu1 %v9926_v20  ;;  %v5273_v56 = vpop.f32.mrf.mxu0  ;;  %v2090_v10 = vld [vmem:[#allocation5 + $0xd90] sm:$0xff] }
 0x254   :  { %5869 = vmatpush3.msra.mxu0 %v2043_v44  ;;  %v5353_v55 = vpop.f32.mrf.mxu1  ;;  %v8348_v38 = vadd.f32 %v5351_v39, %v2941_v2  ;;  %3818 = vmatprep.mubr.f32.mxu0 %v9927_v19  ;;  %v5274_v48 = vadd.f32 %v5273_v56, %v5272_v51  ;;  %v2057_v44 = vld [vmem:[#allocation5 + $0xc88] sm:$0xff]  ;;  %v1566_v51 = vrot.slane %v8190_v50, 2 }
 0x255   :  { %3963 = vmatprep.mubr.f32.mxu1 %v7910_v35  ;;  %v5354_v46 = vadd.f32 %v5353_v55, %v5352_v22  ;;  %5948 = vmatprep.subr.mxu1 %v2091_v15  ;;  %v5275_v28 = vpop.f32.mrf.mxu0  ;;  %v2074_v35 = vld [vmem:[#allocation5 + $0xd10] sm:$0xff]  ;;  %v1559_v55 = vrot.slane %v8049_v30, 2  ;;  %v1560_v15 = vrot.slane %v8188_v5, 2  ;;  %v2041_v56 = vld [vmem:[#allocation5 + $0xc08] sm:$0xff]  ;;  %v1557_v5 = vrot.slane %v8196_v58, 2 }
 0x256   :  { %5870 = vmatprep.subr.mxu0 %v2058_v17  ;;  %v5355_v61 = vpop.f32.mrf.mxu1  ;;  %v2946_v1 = vadd.f32 %v5274_v48, %v8207_v59  ;;  %5949 = vmatpush3.msra.mxu1 %v2075_v29  ;;  %v1565_v17 = vrot.slane %v8051_v26, 2  ;;  %v2089_v50 = vld [vmem:[#allocation5 + $0xd88] sm:$0xff] }
 0x257   :  { %3819 = vmatmul.mubr.f32.gmra.mxu0 %v7917_v31  ;;  %3964 = vmatmul.mubr.f32.gmra.mxu1 %v7921_v16  ;;  %v5276_v39 = vpop.f32.mrf.mxu0  ;;  %v1556_v16 = vrot.slane %v8057_v6, 2 }
 0x258   :  { %5871 = vmatpush3.msra.mxu0 %v2042_v47  ;;  %v5356_v2 = vpop.f32.mrf.mxu1  ;;  %v8359_v59 = vadd.f32 %v5354_v46, %v2946_v1  ;;  %3823 = vmatprep.mubr.f32.mxu0 %v7929_v60  ;;  %v5277_v29 = vadd.f32 %v5276_v39, %v5275_v28  ;;  %v2056_v46 = vld [vmem:[#allocation5 + $0xc80] sm:$0xff]  ;;  %v1562_v1 = vrot.slane %v8059_v52, 2  ;;  %v1563_v28 = vrot.slane %v8200_v42, 2 }
 0x259   :  { %3968 = vmatprep.mubr.f32.mxu1 %v7933_v25  ;;  %v5357_v22 = vadd.f32 %v5356_v2, %v5355_v61  ;;  %5950 = vmatprep.subr.mxu1 %v2090_v10  ;;  %v5278_v48 = vpop.f32.mrf.mxu0  ;;  %v8371_v61 = vsel %vm1239_vm1, %v1559_v55, %v1560_v15  ;;  %v8374_v10 = vsel %vm1239_vm1, %v1565_v17, %v1566_v51  ;;  %v2040_v2 = vld [vmem:[#allocation5 + $0xc00] sm:$0xff] }
 0x25a   :  { %5872 = vmatprep.subr.mxu0 %v2057_v44  ;;  %v5358_v47 = vpop.f32.mrf.mxu1  ;;  %v2951_v31 = vadd.f32 %v5277_v29, %v8224_v21  ;;  %5951 = vmatpush3.msra.mxu1 %v2074_v35  ;;  %9928 = vst [vmem:[#allocation131_spill] sm:$0xff] %v8371_v61  ;;  %9929 = vst [vmem:[#allocation12_spill] sm:$0xff] %v8374_v10  ;;  %v2073_v35 = vld [vmem:[#allocation5 + $0xd08] sm:$0xff]  ;;  %v8381_v15 = vsel %vm1239_vm1, %v1556_v16, %v1557_v5  ;;  %v2088_v17 = vld [vmem:[#allocation5 + $0xd80] sm:$0xff] }
 0x25b   :  { %3824 = vmatmul.mubr.f32.gmra.mxu0 %v7937_v54  ;;  %3969 = vmatmul.mubr.f32.gmra.mxu1 %v7940_v14  ;;  %v5279_v58 = vpop.f32.mrf.mxu0  ;;  %9930 = vst [vmem:[#allocation13_spill] sm:$0xff] %v8381_v15  ;;  %v9932_v16 = vld [vmem:[#allocation15_spill] sm:$0xff] }
 0x25c   :  { %5873 = vmatpush3.msra.mxu0 %v2041_v56  ;;  %v5359_v21 = vpop.f32.mrf.mxu1  ;;  %v8376_v44 = vadd.f32 %v5357_v22, %v2951_v31  ;;  %3828 = vmatprep.mubr.f32.mxu0 %v8371_v61  ;;  %v5280_v39 = vadd.f32 %v5279_v58, %v5278_v48  ;;  %v8386_v31 = vsel %vm1239_vm1, %v1562_v1, %v1563_v28  ;;  %v2072_v22 = vld [vmem:[#allocation5 + $0xd00] sm:$0xff]  ;;  %v2111_v54 = vld [vmem:[#allocation5 + $0xe38] sm:$0xff] }
 0x25d   :  { %3973 = vmatprep.mubr.f32.mxu1 %v8374_v10  ;;  %v5360_v42 = vadd.f32 %v5359_v21, %v5358_v47  ;;  %5952 = vmatprep.subr.mxu1 %v2089_v50  ;;  %v5281_v29 = vpop.f32.mrf.mxu0  ;;  %9931 = vst [vmem:[#allocation65_spill] sm:$0xff] %v8386_v31  ;;  %v2135_v47 = vld [vmem:[#allocation5 + $0xef8] sm:$0xff]  ;;  %v9933_v58 = vld [vmem:[#allocation16_spill] sm:$0xff] }
 0x25e   :  { %5874 = vmatprep.subr.mxu0 %v2056_v46  ;;  %v5361_v55 = vpop.f32.mrf.mxu1  ;;  %v2956_v51 = vadd.f32 %v5280_v39, %v8237_v3  ;;  %5953 = vmatpush3.msra.mxu1 %v2073_v35  ;;  %v2119_v46 = vld [vmem:[#allocation5 + $0xe78] sm:$0xff]  ;;  %v9934_v35 = vld [vmem:[#allocation17_spill] sm:$0xff] }
 0x25f   :  { %3829 = vmatmul.mubr.f32.gmra.mxu0 %v8381_v15  ;;  %3974 = vmatmul.mubr.f32.gmra.mxu1 %v8386_v31  ;;  %v5282_v56 = vpop.f32.mrf.mxu0  ;;  %v2167_v39 = vld [vmem:[#allocation5 + $0xff8] sm:$0xff] }
 0x260   :  { %5875 = vmatpush3.msra.mxu0 %v2040_v2  ;;  %v5362_v48 = vpop.f32.mrf.mxu1  ;;  %v8389_v50 = vadd.f32 %v5360_v42, %v2956_v51  ;;  %4043 = vmatprep.mubr.f32.mxu0 %v9932_v16  ;;  %v5283_v5 = vadd.f32 %v5282_v56, %v5281_v29  ;;  %v2134_v42 = vld [vmem:[#allocation5 + $0xef0] sm:$0xff]  ;;  %v9937_v16 = vld [vmem:[#allocation20_spill] sm:$0xff] }
 0x261   :  { %5954 = vmatprep.subr.mxu1 %v2088_v17  ;;  %v5363_v3 = vadd.f32 %v5362_v48, %v5361_v55  ;;  %4188 = vmatprep.mubr.f32.mxu1 %v9933_v58  ;;  %v5396_v1 = vpop.f32.mrf.mxu0  ;;  %v9935_v51 = vld [vmem:[#allocation18_spill] sm:$0xff] }
 0x262   :  { %5955 = vmatpush3.msra.mxu1 %v2072_v22  ;;  %v5476_v28 = vpop.f32.mrf.mxu1  ;;  %v2961_v21 = vadd.f32 %v5283_v5, %v8244_v32  ;;  %6004 = vmatprep.subr.mxu0 %v2135_v47  ;;  %v468_v2 = vpop.xlane.xlu0 %467  ;;  %v2151_v55 = vld [vmem:[#allocation5 + $0xf78] sm:$0xff]  ;;  %v2118_v5 = vld [vmem:[#allocation5 + $0xe70] sm:$0xff] }
 0x263   :  { %4044 = vmatmul.mubr.f32.vlgmr.msra.gmra.mxu0 %v9934_v35  ;;  %4189 = vmatmul.mubr.f32.vlgmr.msra.gmra.mxu1 %v9935_v51  ;;  %v5397_v17 = vpop.f32.mrf.mxu0  ;;  %v592_v56 = vmax.f32 %v468_v2, 1e-24  ;;  %v9936_v22 = vld [vmem:[#allocation19_spill] sm:$0xff]  ;;  %v9938_v51 = vld [vmem:[#allocation21_spill] sm:$0xff]  ;;  %v9951_v31 = vld [vmem:[#allocation34_spill] sm:$0xff] }
 0x264   :  { %6005 = vmatpush3.msra.mxu0 %v2119_v46  ;;  %v5477_v29 = vpop.f32.mrf.mxu1  ;;  %v8396_v48 = vadd.f32 %v5363_v3, %v2961_v21  ;;  %4048 = vmatprep.mubr.f32.mxu0 %v9936_v22  ;;  %v5398_v32 = vadd.f32 %v5397_v17, %v5396_v1  ;;  %v2166_v2 = vld [vmem:[#allocation5 + $0xff0] sm:$0xff]  ;;  %v2133_v3 = vld [vmem:[#allocation5 + $0xee8] sm:$0xff] }
 0x265   :  { %4193 = vmatprep.mubr.f32.mxu1 %v9937_v16  ;;  %v5478_v47 = vadd.f32 %v5477_v29, %v5476_v28  ;;  %6084 = vmatprep.subr.mxu1 %v2167_v39  ;;  %6404 = vrsqrt.f32 %v592_v56  ;;  %v5399_v58 = vpop.f32.mrf.mxu0  ;;  %v9939_v21 = vld [vmem:[#allocation22_spill] sm:$0xff]  ;;  %v9940_v39 = vld [vmem:[#allocation23_spill] sm:$0xff] }
 0x266   :  { %6006 = vmatprep.subr.mxu0 %v2134_v42  ;;  %v5479_v35 = vpop.f32.mrf.mxu1  ;;  %v3176_v46 = vadd.f32 %v5398_v32, %v8251_v62  ;;  %6085 = vmatpush3.msra.mxu1 %v2151_v55  ;;  %v2150_v1 = vld [vmem:[#allocation5 + $0xf70] sm:$0xff]  ;;  %v9941_v42 = vld [vmem:[#allocation24_spill] sm:$0xff] }
 0x267   :  { %4049 = vmatmul.mubr.f32.gmra.mxu0 %v9938_v51  ;;  %4194 = vmatmul.mubr.f32.gmra.mxu1 %v9939_v21  ;;  %v5400_v22 = vpop.f32.mrf.mxu0  ;;  %v2117_v55 = vld [vmem:[#allocation5 + $0xe68] sm:$0xff] }
 0x268   :  { %6007 = vmatpush3.msra.mxu0 %v2118_v5  ;;  %v5480_v16 = vpop.f32.mrf.mxu1  ;;  %v8403_v28 = vadd.f32 %v5478_v47, %v3176_v46  ;;  %4053 = vmatprep.mubr.f32.mxu0 %v9940_v39  ;;  %v5401_v17 = vadd.f32 %v5400_v22, %v5399_v58  ;;  %v473_v62 = vpop.xlane.xlu0 %472  ;;  %v9942_v21 = vld [vmem:[#allocation25_spill] sm:$0xff]  ;;  %v2132_v46 = vld [vmem:[#allocation5 + $0xee0] sm:$0xff]  ;;  %v9943_v39 = vld [vmem:[#allocation26_spill] sm:$0xff] }
 0x269   :  { %4198 = vmatprep.mubr.f32.mxu1 %v9941_v42  ;;  %v5481_v29 = vadd.f32 %v5480_v16, %v5479_v35  ;;  %6086 = vmatprep.subr.mxu1 %v2166_v2  ;;  %v593_v56 = vmax.f32 %v473_v62, 1e-24  ;;  %v5402_v32 = vpop.f32.mrf.mxu0  ;;  %v2165_v47 = vld [vmem:[#allocation5 + $0xfe8] sm:$0xff]  ;;  %v9944_v2 = vld [vmem:[#allocation27_spill] sm:$0xff] }
 0x26a   :  { %6008 = vmatprep.subr.mxu0 %v2133_v3  ;;  %v5482_v51 = vpop.f32.mrf.mxu1  ;;  %v3181_v5 = vadd.f32 %v5401_v17, %v8258_v0  ;;  %6087 = vmatpush3.msra.mxu1 %v2150_v1  ;;  %v2149_v22 = vld [vmem:[#allocation5 + $0xf68] sm:$0xff]  ;;  %v2116_v1 = vld [vmem:[#allocation5 + $0xe60] sm:$0xff] }
 0x26b   :  { %4054 = vmatmul.mubr.f32.gmra.mxu0 %v9942_v21  ;;  %6406 = vrsqrt.f32 %v593_v56  ;;  %4199 = vmatmul.mubr.f32.gmra.mxu1 %v9943_v39  ;;  %v5403_v58 = vpop.f32.mrf.mxu0  ;;  %v9945_v3 = vld [vmem:[#allocation28_spill] sm:$0xff]  ;;  %v2131_v39 = vld [vmem:[#allocation5 + $0xed8] sm:$0xff] }
 0x26c   :  { %6009 = vmatpush3.msra.mxu0 %v2117_v55  ;;  %v5483_v35 = vpop.f32.mrf.mxu1  ;;  %v8410_v16 = vadd.f32 %v5481_v29, %v3181_v5  ;;  %4058 = vmatprep.mubr.f32.mxu0 %v9944_v2  ;;  %v5404_v42 = vadd.f32 %v5403_v58, %v5402_v32  ;;  %v9946_v55 = vld [vmem:[#allocation29_spill] sm:$0xff]  ;;  %v2164_v21 = vld [vmem:[#allocation5 + $0xfe0] sm:$0xff]  ;;  %v9947_v29 = vld [vmem:[#allocation30_spill] sm:$0xff] }
 0x26d   :  { %4203 = vmatprep.mubr.f32.mxu1 %v9945_v3  ;;  %v5484_v0 = vadd.f32 %v5483_v35, %v5482_v51  ;;  %6088 = vmatprep.subr.mxu1 %v2165_v47  ;;  %v5405_v17 = vpop.f32.mrf.mxu0  ;;  %v2148_v3 = vld [vmem:[#allocation5 + $0xf60] sm:$0xff] }
 0x26e   :  { %6010 = vmatprep.subr.mxu0 %v2132_v46  ;;  %v5485_v62 = vpop.f32.mrf.mxu1  ;;  %v3186_v56 = vadd.f32 %v5404_v42, %v8265_v7  ;;  %6089 = vmatpush3.msra.mxu1 %v2149_v22  ;;  %v9948_v51 = vld [vmem:[#allocation31_spill] sm:$0xff]  ;;  %v9949_v47 = vld [vmem:[#allocation32_spill] sm:$0xff] }
 0x26f   :  { %4059 = vmatmul.mubr.f32.gmra.mxu0 %v9946_v55  ;;  %4204 = vmatmul.mubr.f32.gmra.mxu1 %v9947_v29  ;;  %v5406_v5 = vpop.f32.mrf.mxu0  ;;  %v2115_v7 = vld [vmem:[#allocation5 + $0xe58] sm:$0xff] }
 0x270   :  { %6011 = vmatpush3.msra.mxu0 %v2116_v1  ;;  %v5486_v2 = vpop.f32.mrf.mxu1  ;;  %v8417_v32 = vadd.f32 %v5484_v0, %v3186_v56  ;;  %4063 = vmatprep.mubr.f32.mxu0 %v9948_v51  ;;  %v5407_v46 = vadd.f32 %v5406_v5, %v5405_v17  ;;  %v9950_v1 = vld [vmem:[#allocation33_spill] sm:$0xff]  ;;  %v2163_v29 = vld [vmem:[#allocation5 + $0xfd8] sm:$0xff] }
 0x271   :  { %4208 = vmatprep.mubr.f32.mxu1 %v9949_v47  ;;  %v5487_v58 = vadd.f32 %v5486_v2, %v5485_v62  ;;  %6090 = vmatprep.subr.mxu1 %v2164_v21  ;;  %v5408_v35 = vpop.f32.mrf.mxu0  ;;  %v2130_v0 = vld [vmem:[#allocation5 + $0xed0] sm:$0xff]  ;;  %v2147_v62 = vld [vmem:[#allocation5 + $0xf58] sm:$0xff] }
 0x272   :  { %6012 = vmatprep.subr.mxu0 %v2131_v39  ;;  %v5488_v22 = vpop.f32.mrf.mxu1  ;;  %v6405_v42 = vpop.eup %6404  ;;  %v3191_v55 = vadd.f32 %v5407_v46, %v8272_v12  ;;  %6091 = vmatpush3.msra.mxu1 %v2148_v3  ;;  %v9952_v21 = vld [vmem:[#allocation35_spill] sm:$0xff]  ;;  %v9953_v39 = vld [vmem:[#allocation36_spill] sm:$0xff]  ;;  %v2114_v3 = vld [vmem:[#allocation5 + $0xe50] sm:$0xff] }
 0x273   :  { %4064 = vmatmul.mubr.f32.gmra.mxu0 %v9950_v1  ;;  %v672_v56 = vmul.f32 20.0, %v6405_v42  ;;  %4209 = vmatmul.mubr.f32.gmra.mxu1 %v9951_v31  ;;  %v5409_v51 = vpop.f32.mrf.mxu0  ;;  %v9954_v31 = vld [vmem:[#allocation37_spill] sm:$0xff] }
 0x274   :  { %6013 = vmatpush3.msra.mxu0 %v2115_v7  ;;  %v5489_v17 = vpop.f32.mrf.mxu1  ;;  %v8424_v5 = vadd.f32 %v5487_v58, %v3191_v55  ;;  %4068 = vmatprep.mubr.f32.mxu0 %v9952_v21  ;;  %v5410_v2 = vadd.f32 %v5409_v51, %v5408_v35  ;;  %v2162_v7 = vld [vmem:[#allocation5 + $0xfd0] sm:$0xff]  ;;  %v2129_v1 = vld [vmem:[#allocation5 + $0xec8] sm:$0xff] }
 0x275   :  { %4213 = vmatprep.mubr.f32.mxu1 %v9953_v39  ;;  %v5490_v12 = vadd.f32 %v5489_v17, %v5488_v22  ;;  %6092 = vmatprep.subr.mxu1 %v2163_v29  ;;  %v5411_v47 = vpop.f32.mrf.mxu0  ;;  %v9955_v58 = vld [vmem:[#allocation38_spill] sm:$0xff]  ;;  %v6556_v35 = vld [vmem:[#allocation2 + $0x248] sm:$0xff] }
 0x276   :  { %6014 = vmatprep.subr.mxu0 %v2130_v0  ;;  %v5491_v46 = vpop.f32.mrf.mxu1  ;;  %v3196_v42 = vadd.f32 %v5410_v2, %v8283_v27  ;;  %6093 = vmatpush3.msra.mxu1 %v2147_v62  ;;  %v2146_v39 = vld [vmem:[#allocation5 + $0xf50] sm:$0xff]  ;;  %v8431_v22 = vmul.f32 %v6556_v35, %v672_v56  ;;  %v2113_v17 = vld [vmem:[#allocation5 + $0xe48] sm:$0xff]  ;;  %v6558_v35 = vld [vmem:[#allocation2 + $0x240] sm:$0xff] }
 0x277   :  { %4069 = vmatmul.mubr.f32.gmra.mxu0 %v9954_v31  ;;  %4214 = vmatmul.mubr.f32.gmra.mxu1 %v9955_v58  ;;  %v5412_v55 = vpop.f32.mrf.mxu0  ;;  %v2161_v31 = vld [vmem:[#allocation5 + $0xfc8] sm:$0xff]  ;;  %v6557_v58 = vld [vmem:[#allocation2 + $0x258] sm:$0xff]  ;;  %v8439_v10 = vmul.f32 %v6558_v35, %v672_v56 }
 0x278   :  { %6015 = vmatpush3.msra.mxu0 %v2114_v3  ;;  %v5492_v21 = vpop.f32.mrf.mxu1  ;;  %v6407_v29 = vpop.eup %6406  ;;  %v8433_v0 = vadd.f32 %v5490_v12, %v3196_v42  ;;  %4073 = vmatprep.mubr.f32.mxu0 %v7985_v63  ;;  %v5413_v27 = vadd.f32 %v5412_v55, %v5411_v47  ;;  %v8437_v15 = vmul.f32 %v6557_v58, %v672_v56  ;;  %v6559_v12 = vld [vmem:[#allocation2 + $0x250] sm:$0xff] }
 0x279   :  { %4218 = vmatprep.mubr.f32.mxu1 %v7987_v23  ;;  %v5493_v51 = vadd.f32 %v5492_v21, %v5491_v46  ;;  %v673_v62 = vmul.f32 20.0, %v6407_v29  ;;  %6094 = vmatprep.subr.mxu1 %v2162_v7  ;;  %v5414_v2 = vpop.f32.mrf.mxu0  ;;  %v8441_v42 = vmul.f32 %v6559_v12, %v672_v56  ;;  %v2145_v23 = vld [vmem:[#allocation5 + $0xf48] sm:$0xff]  ;;  %v2128_v7 = vld [vmem:[#allocation5 + $0xec0] sm:$0xff]  ;;  %v6561_v21 = vld [vmem:[#allocation2 + $0x278] sm:$0xff] }
 0x27a   :  { %6016 = vmatprep.subr.mxu0 %v2129_v1  ;;  %v5494_v3 = vpop.f32.mrf.mxu1  ;;  %v3201_v63 = vadd.f32 %v5413_v27, %v8300_v9  ;;  %6095 = vmatpush3.msra.mxu1 %v2146_v39  ;;  %v6560_v1 = vld [vmem:[#allocation2 + $0x268] sm:$0xff]  ;;  %v6562_v56 = vld [vmem:[#allocation2 + $0x260] sm:$0xff]  ;;  %v1627_v27 = vrot.slane %v8431_v22, 2  ;;  %v6563_v12 = vld [vmem:[#allocation2 + $0x270] sm:$0xff] }
 0x27b   :  { %4074 = vmatmul.mubr.f32.gmra.mxu0 %v7993_v18  ;;  %4219 = vmatmul.mubr.f32.gmra.mxu1 %v7995_v53  ;;  %v5415_v47 = vpop.f32.mrf.mxu0  ;;  %v8446_v55 = vmul.f32 %v6560_v1, %v673_v62  ;;  %v8448_v29 = vmul.f32 %v6561_v21, %v673_v62  ;;  %v8450_v58 = vmul.f32 %v6562_v56, %v673_v62  ;;  %v2112_v53 = vld [vmem:[#allocation5 + $0xe40] sm:$0xff]  ;;  %v1633_v21 = vrot.slane %v8437_v15, 2 }
 0x27c   :  { %6017 = vmatpush3.msra.mxu0 %v2113_v17  ;;  %v5495_v46 = vpop.f32.mrf.mxu1  ;;  %v8452_v9 = vadd.f32 %v5493_v51, %v3201_v63  ;;  %6096 = vmatprep.subr.mxu1 %v2161_v31  ;;  %v5416_v18 = vadd.f32 %v5415_v47, %v5414_v2  ;;  %v8457_v1 = vmul.f32 %v6563_v12, %v673_v62  ;;  %v1624_v51 = vrot.slane %v8439_v10, 2  ;;  %v2160_v31 = vld [vmem:[#allocation5 + $0xfc0] sm:$0xff]  ;;  %v2127_v63 = vld [vmem:[#allocation5 + $0xeb8] sm:$0xff] }
 0x27d   :  { %v5496_v39 = vadd.f32 %v5495_v46, %v5494_v3  ;;  %4078 = vmatprep.mubr.f32.mxu0 %v8431_v22  ;;  %6097 = vmatpush3.msra.mxu1 %v2145_v23  ;;  %v5417_v17 = vpop.f32.mrf.mxu0  ;;  %v1630_v2 = vrot.slane %v8441_v42, 2  ;;  %v1628_v23 = vrot.slane %v8446_v55, 2  ;;  %v1634_v47 = vrot.slane %v8448_v29, 2  ;;  %v2144_v12 = vld [vmem:[#allocation5 + $0xf40] sm:$0xff] }
 0x27e   :  { %4223 = vmatprep.mubr.f32.mxu1 %v8437_v15  ;;  %v5497_v35 = vpop.f32.mrf.mxu1  ;;  %v3206_v3 = vadd.f32 %v5416_v18, %v8313_v8  ;;  %6018 = vmatprep.subr.mxu0 %v2128_v7  ;;  %v1625_v62 = vrot.slane %v8450_v58, 2  ;;  %v9956_v8 = vld [vmem:[#allocation47_spill] sm:$0xff]  ;;  %v9957_v7 = vld [vmem:[#allocation48_spill] sm:$0xff]  ;;  %v1631_v25 = vrot.slane %v8457_v1, 2 }
 0x27f   :  { %4079 = vmatmul.mubr.f32.gmra.mxu0 %v8439_v10  ;;  %4224 = vmatmul.mubr.f32.gmra.mxu1 %v8441_v42  ;;  %v5418_v46 = vpop.f32.mrf.mxu0  ;;  %v8477_v20 = vsel %vm1239_vm1, %v1633_v21, %v1634_v47  ;;  %v2143_v21 = vld [vmem:[#allocation5 + $0xf38] sm:$0xff] }
 0x280   :  { %6019 = vmatpush3.msra.mxu0 %v2112_v53  ;;  %v5498_v56 = vpop.f32.mrf.mxu1  ;;  %v8468_v61 = vadd.f32 %v5496_v39, %v3206_v3  ;;  %4083 = vmatprep.mubr.f32.mxu0 %v9956_v8  ;;  %v5419_v18 = vadd.f32 %v5418_v46, %v5417_v17  ;;  %v8474_v53 = vsel %vm1239_vm1, %v1627_v27, %v1628_v23  ;;  %v9960_v3 = vld [vmem:[#allocation49_spill] sm:$0xff]  ;;  %v2159_v17 = vld [vmem:[#allocation5 + $0xfb8] sm:$0xff] }
 0x281   :  { %4228 = vmatprep.mubr.f32.mxu1 %v9957_v7  ;;  %v5499_v14 = vadd.f32 %v5498_v56, %v5497_v35  ;;  %6098 = vmatprep.subr.mxu1 %v2160_v31  ;;  %v5420_v60 = vpop.f32.mrf.mxu0  ;;  %9958 = vst [vmem:[#allocation74_spill] sm:$0xff] %v8474_v53  ;;  %9959 = vst [vmem:[#allocation14_spill] sm:$0xff] %v8477_v20  ;;  %v2126_v35 = vld [vmem:[#allocation5 + $0xeb0] sm:$0xff]  ;;  %v8482_v46 = vsel %vm1239_vm1, %v1624_v51, %v1625_v62  ;;  %v9965_v56 = vld [vmem:[#allocation52_spill] sm:$0xff] }
 0x282   :  { %6020 = vmatprep.subr.mxu0 %v2127_v63  ;;  %v5500_v19 = vpop.f32.mrf.mxu1  ;;  %v3211_v39 = vadd.f32 %v5419_v18, %v8320_v43  ;;  %6099 = vmatpush3.msra.mxu1 %v2144_v12  ;;  %9961 = vst [vmem:[#allocation109_spill] sm:$0xff] %v8482_v46  ;;  %v8485_v31 = vsel %vm1239_vm1, %v1630_v2, %v1631_v25  ;;  %v9963_v63 = vld [vmem:[#allocation50_spill] sm:$0xff]  ;;  %v9964_v43 = vld [vmem:[#allocation51_spill] sm:$0xff]  ;;  %v9966_v18 = vld [vmem:[#allocation53_spill] sm:$0xff] }
 0x283   :  { %4084 = vmatmul.mubr.f32.gmra.mxu0 %v9960_v3  ;;  %9962 = vst [vmem:[#allocation113_spill] sm:$0xff] %v8485_v31  ;;  %4229 = vmatmul.mubr.f32.gmra.mxu1 %v9963_v63  ;;  %v5421_v27 = vpop.f32.mrf.mxu0  ;;  %v2110_v51 = vld [vmem:[#allocation5 + $0xe30] sm:$0xff]  ;;  %v9984_v31 = vld [vmem:[#allocation88_spill] sm:$0xff] }
 0x284   :  { %6021 = vmatpush3.msra.mxu0 %v2111_v54  ;;  %v5501_v23 = vpop.f32.mrf.mxu1  ;;  %v8488_v47 = vadd.f32 %v5499_v14, %v3211_v39  ;;  %4088 = vmatprep.mubr.f32.mxu0 %v9964_v43  ;;  %v568_v12 = vpop.xlane.xlu1 %567  ;;  %v5422_v8 = vadd.f32 %v5421_v27, %v5420_v60  ;;  %v2158_v14 = vld [vmem:[#allocation5 + $0xfb0] sm:$0xff]  ;;  %v2125_v39 = vld [vmem:[#allocation5 + $0xea8] sm:$0xff] }
 0x285   :  { %4233 = vmatprep.mubr.f32.mxu1 %v9965_v56  ;;  %v5502_v7 = vadd.f32 %v5501_v23, %v5500_v19  ;;  %6100 = vmatprep.subr.mxu1 %v2159_v17  ;;  %v612_v62 = vmax.f32 %v568_v12, 1e-24  ;;  %v5423_v25 = vpop.f32.mrf.mxu0  ;;  %v9967_v3 = vld [vmem:[#allocation54_spill] sm:$0xff]  ;;  %v9968_v17 = vld [vmem:[#allocation55_spill] sm:$0xff]  ;;  %v2109_v43 = vld [vmem:[#allocation5 + $0xe28] sm:$0xff] }
 0x286   :  { %6022 = vmatprep.subr.mxu0 %v2126_v35  ;;  %v5503_v2 = vpop.f32.mrf.mxu1  ;;  %v3216_v54 = vadd.f32 %v5422_v8, %v8327_v36  ;;  %6101 = vmatpush3.msra.mxu1 %v2143_v21  ;;  %v2142_v19 = vld [vmem:[#allocation5 + $0xf30] sm:$0xff]  ;;  %v9969_v35 = vld [vmem:[#allocation56_spill] sm:$0xff] }
 0x287   :  { %4089 = vmatmul.mubr.f32.gmra.mxu0 %v9966_v18  ;;  %6408 = vrsqrt.f32 %v612_v62  ;;  %4234 = vmatmul.mubr.f32.gmra.mxu1 %v9967_v3  ;;  %v5424_v63 = vpop.f32.mrf.mxu0  ;;  %v9970_v62 = vld [vmem:[#allocation57_spill] sm:$0xff]  ;;  %v9971_v18 = vld [vmem:[#allocation58_spill] sm:$0xff] }
 0x288   :  { %6023 = vmatpush3.msra.mxu0 %v2110_v51  ;;  %v5504_v60 = vpop.f32.mrf.mxu1  ;;  %v8495_v27 = vadd.f32 %v5502_v7, %v3216_v54  ;;  %4093 = vmatprep.mubr.f32.mxu0 %v9968_v17  ;;  %v5425_v36 = vadd.f32 %v5424_v63, %v5423_v25  ;;  %v2157_v7 = vld [vmem:[#allocation5 + $0xfa8] sm:$0xff]  ;;  %v2124_v54 = vld [vmem:[#allocation5 + $0xea0] sm:$0xff]  ;;  %v9985_v20 = vld [vmem:[#allocation90_spill] sm:$0xff] }
 0x289   :  { %4238 = vmatprep.mubr.f32.mxu1 %v9969_v35  ;;  %v573_v23 = vpop.xlane.xlu1 %572  ;;  %v5505_v21 = vadd.f32 %v5504_v60, %v5503_v2  ;;  %6102 = vmatprep.subr.mxu1 %v2158_v14  ;;  %v5426_v12 = vpop.f32.mrf.mxu0  ;;  %v2141_v2 = vld [vmem:[#allocation5 + $0xf28] sm:$0xff]  ;;  %v9972_v14 = vld [vmem:[#allocation59_spill] sm:$0xff] }
 0x28a   :  { %v613_v56 = vmax.f32 %v573_v23, 1e-24  ;;  %6024 = vmatprep.subr.mxu0 %v2125_v39  ;;  %v5506_v8 = vpop.f32.mrf.mxu1  ;;  %v3221_v51 = vadd.f32 %v5425_v36, %v8334_v33  ;;  %6103 = vmatpush3.msra.mxu1 %v2142_v19  ;;  %v9973_v39 = vld [vmem:[#allocation60_spill] sm:$0xff]  ;;  %v9974_v36 = vld [vmem:[#allocation61_spill] sm:$0xff] }
 0x28b   :  { %4094 = vmatmul.mubr.f32.gmra.mxu0 %v9970_v62  ;;  %4239 = vmatmul.mubr.f32.gmra.mxu1 %v9971_v18  ;;  %v5427_v3 = vpop.f32.mrf.mxu0  ;;  %v2108_v19 = vld [vmem:[#allocation5 + $0xe20] sm:$0xff] }
 0x28c   :  { %6410 = vrsqrt.f32 %v613_v56  ;;  %6025 = vmatpush3.msra.mxu0 %v2109_v43  ;;  %v5507_v25 = vpop.f32.mrf.mxu1  ;;  %v8502_v63 = vadd.f32 %v5505_v21, %v3221_v51  ;;  %4098 = vmatprep.mubr.f32.mxu0 %v9972_v14  ;;  %v5428_v60 = vadd.f32 %v5427_v3, %v5426_v12  ;;  %v2156_v43 = vld [vmem:[#allocation5 + $0xfa0] sm:$0xff]  ;;  %v2123_v56 = vld [vmem:[#allocation5 + $0xe98] sm:$0xff] }
 0x28d   :  { %4243 = vmatprep.mubr.f32.mxu1 %v9973_v39  ;;  %v5508_v33 = vadd.f32 %v5507_v25, %v5506_v8  ;;  %6104 = vmatprep.subr.mxu1 %v2157_v7  ;;  %v5429_v17 = vpop.f32.mrf.mxu0  ;;  %v9975_v21 = vld [vmem:[#allocation62_spill] sm:$0xff]  ;;  %v2140_v18 = vld [vmem:[#allocation5 + $0xf20] sm:$0xff] }
 0x28e   :  { %6026 = vmatprep.subr.mxu0 %v2124_v54  ;;  %v5509_v35 = vpop.f32.mrf.mxu1  ;;  %v3226_v23 = vadd.f32 %v5428_v60, %v8341_v57  ;;  %6105 = vmatpush3.msra.mxu1 %v2141_v2  ;;  %v9976_v8 = vld [vmem:[#allocation66_spill] sm:$0xff]  ;;  %v9977_v7 = vld [vmem:[#allocation67_spill] sm:$0xff] }
 0x28f   :  { %4099 = vmatmul.mubr.f32.gmra.mxu0 %v9974_v36  ;;  %4244 = vmatmul.mubr.f32.gmra.mxu1 %v9975_v21  ;;  %v5430_v51 = vpop.f32.mrf.mxu0  ;;  %v2107_v57 = vld [vmem:[#allocation5 + $0xe18] sm:$0xff] }
 0x290   :  { %6027 = vmatpush3.msra.mxu0 %v2108_v19  ;;  %v5510_v62 = vpop.f32.mrf.mxu1  ;;  %v8509_v12 = vadd.f32 %v5508_v33, %v3226_v23  ;;  %4103 = vmatprep.mubr.f32.mxu0 %v9976_v8  ;;  %v5431_v54 = vadd.f32 %v5430_v51, %v5429_v17  ;;  %v9978_v39 = vld [vmem:[#allocation71_spill] sm:$0xff]  ;;  %v2122_v19 = vld [vmem:[#allocation5 + $0xe90] sm:$0xff]  ;;  %v9979_v33 = vld [vmem:[#allocation72_spill] sm:$0xff] }
 0x291   :  { %4248 = vmatprep.mubr.f32.mxu1 %v9977_v7  ;;  %v5511_v3 = vadd.f32 %v5510_v62, %v5509_v35  ;;  %6106 = vmatprep.subr.mxu1 %v2156_v43  ;;  %v5432_v25 = vpop.f32.mrf.mxu0  ;;  %v2155_v60 = vld [vmem:[#allocation5 + $0xf98] sm:$0xff]  ;;  %v2106_v62 = vld [vmem:[#allocation5 + $0xe10] sm:$0xff] }
 0x292   :  { %6028 = vmatprep.subr.mxu0 %v2123_v56  ;;  %v5512_v2 = vpop.f32.mrf.mxu1  ;;  %v3231_v14 = vadd.f32 %v5431_v54, %v8348_v38  ;;  %6107 = vmatpush3.msra.mxu1 %v2140_v18  ;;  %v2139_v21 = vld [vmem:[#allocation5 + $0xf18] sm:$0xff]  ;;  %v9981_v56 = vld [vmem:[#allocation69_spill] sm:$0xff] }
 0x293   :  { %4104 = vmatmul.mubr.f32.gmra.mxu0 %v9978_v39  ;;  %4249 = vmatmul.mubr.f32.gmra.mxu1 %v9979_v33  ;;  %v5433_v23 = vpop.f32.mrf.mxu0  ;;  %v9980_v43 = vld [vmem:[#allocation63_spill] sm:$0xff]  ;;  %v2154_v39 = vld [vmem:[#allocation5 + $0xf90] sm:$0xff] }
 0x294   :  { %6029 = vmatpush3.msra.mxu0 %v2107_v57  ;;  %v5513_v36 = vpop.f32.mrf.mxu1  ;;  %v6409_v17 = vpop.eup %6408  ;;  %v8516_v35 = vadd.f32 %v5511_v3, %v3231_v14  ;;  %4108 = vmatprep.mubr.f32.mxu0 %v9980_v43  ;;  %v5434_v51 = vadd.f32 %v5433_v23, %v5432_v25  ;;  %v9982_v57 = vld [vmem:[#allocation70_spill] sm:$0xff]  ;;  %v2121_v3 = vld [vmem:[#allocation5 + $0xe88] sm:$0xff] }
 0x295   :  { %4253 = vmatprep.mubr.f32.mxu1 %v9981_v56  ;;  %v5514_v38 = vadd.f32 %v5513_v36, %v5512_v2  ;;  %v692_v18 = vmul.f32 20.0, %v6409_v17  ;;  %6108 = vmatprep.subr.mxu1 %v2155_v60  ;;  %v5435_v8 = vpop.f32.mrf.mxu0  ;;  %v9983_v14 = vld [vmem:[#allocation73_spill] sm:$0xff] }
 0x296   :  { %6030 = vmatprep.subr.mxu0 %v2122_v19  ;;  %v5515_v7 = vpop.f32.mrf.mxu1  ;;  %v3236_v54 = vadd.f32 %v5434_v51, %v8359_v59  ;;  %6109 = vmatpush3.msra.mxu1 %v2139_v21  ;;  %v2138_v25 = vld [vmem:[#allocation5 + $0xf10] sm:$0xff]  ;;  %v6564_v2 = vld [vmem:[#allocation2 + $0x4c8] sm:$0xff] }
 0x297   :  { %4109 = vmatmul.mubr.f32.gmra.mxu0 %v9982_v57  ;;  %4254 = vmatmul.mubr.f32.gmra.mxu1 %v9983_v14  ;;  %v5436_v33 = vpop.f32.mrf.mxu0  ;;  %v8523_v23 = vmul.f32 %v6564_v2, %v692_v18  ;;  %v2105_v21 = vld [vmem:[#allocation5 + $0xe08] sm:$0xff]  ;;  %v6565_v57 = vld [vmem:[#allocation2 + $0x4d8] sm:$0xff]  ;;  %v6566_v2 = vld [vmem:[#allocation2 + $0x4c0] sm:$0xff] }
 0x298   :  { %6031 = vmatpush3.msra.mxu0 %v2106_v62  ;;  %v5516_v43 = vpop.f32.mrf.mxu1  ;;  %v8525_v19 = vadd.f32 %v5514_v38, %v3236_v54  ;;  %4113 = vmatprep.mubr.f32.mxu0 %v8049_v30  ;;  %v5437_v59 = vadd.f32 %v5436_v33, %v5435_v8  ;;  %v2153_v62 = vld [vmem:[#allocation5 + $0xf88] sm:$0xff]  ;;  %v8529_v14 = vmul.f32 %v6565_v57, %v692_v18 }
 0x299   :  { %v6411_v60 = vpop.eup %6410  ;;  %4258 = vmatprep.mubr.f32.mxu1 %v8051_v26  ;;  %v5517_v36 = vadd.f32 %v5516_v43, %v5515_v7  ;;  %6110 = vmatprep.subr.mxu1 %v2154_v39  ;;  %v5438_v56 = vpop.f32.mrf.mxu0  ;;  %v8531_v24 = vmul.f32 %v6566_v2, %v692_v18  ;;  %v2137_v30 = vld [vmem:[#allocation5 + $0xf08] sm:$0xff]  ;;  %v6567_v26 = vld [vmem:[#allocation2 + $0x4d0] sm:$0xff]  ;;  %v2120_v39 = vld [vmem:[#allocation5 + $0xe80] sm:$0xff] }
 0x29a   :  { %v693_v17 = vmul.f32 20.0, %v6411_v60  ;;  %6032 = vmatprep.subr.mxu0 %v2121_v3  ;;  %v5518_v51 = vpop.f32.mrf.mxu1  ;;  %v3241_v38 = vadd.f32 %v5437_v59, %v8376_v44  ;;  %6111 = vmatpush3.msra.mxu1 %v2138_v25  ;;  %v8535_v8 = vmul.f32 %v6567_v26, %v692_v18  ;;  %v6568_v3 = vld [vmem:[#allocation2 + $0x4e8] sm:$0xff]  ;;  %v6569_v43 = vld [vmem:[#allocation2 + $0x4f8] sm:$0xff]  ;;  %v6570_v44 = vld [vmem:[#allocation2 + $0x4e0] sm:$0xff] }
 0x29b   :  { %4114 = vmatmul.mubr.f32.gmra.mxu0 %v8057_v6  ;;  %4259 = vmatmul.mubr.f32.gmra.mxu1 %v8059_v52  ;;  %v5439_v7 = vpop.f32.mrf.mxu0  ;;  %v2104_v52 = vld [vmem:[#allocation5 + $0xe00] sm:$0xff]  ;;  %v6571_v26 = vld [vmem:[#allocation2 + $0x4f0] sm:$0xff] }
 0x29c   :  { %6033 = vmatpush3.msra.mxu0 %v2105_v21  ;;  %v5519_v54 = vpop.f32.mrf.mxu1  ;;  %v8538_v33 = vmul.f32 %v6568_v3, %v693_v17  ;;  %v8540_v60 = vmul.f32 %v6569_v43, %v693_v17  ;;  %v8542_v25 = vmul.f32 %v6570_v44, %v693_v17  ;;  %v8544_v6 = vadd.f32 %v5517_v36, %v3241_v38  ;;  %v2152_v2 = vld [vmem:[#allocation5 + $0xf80] sm:$0xff]  ;;  %v2199_v44 = vld [vmem:[#allocation5 + $0x10f8] sm:$0xff] }
 0x29d   :  { %6112 = vmatprep.subr.mxu1 %v2153_v62  ;;  %v5440_v18 = vadd.f32 %v5439_v7, %v5438_v56  ;;  %v5520_v59 = vadd.f32 %v5519_v54, %v5518_v51  ;;  %4118 = vmatprep.mubr.f32.mxu0 %v8523_v23  ;;  %v5441_v21 = vpop.f32.mrf.mxu0  ;;  %v8548_v3 = vmul.f32 %v6571_v26, %v693_v17  ;;  %v1639_v43 = vrot.slane %v8523_v23, 2  ;;  %v2136_v51 = vld [vmem:[#allocation5 + $0xf00] sm:$0xff] }
 0x29e   :  { %6113 = vmatpush3.msra.mxu1 %v2137_v30  ;;  %4263 = vmatprep.mubr.f32.mxu1 %v8529_v14  ;;  %v5521_v57 = vpop.f32.mrf.mxu1  ;;  %v1645_v36 = vrot.slane %v8529_v14, 2  ;;  %v1636_v62 = vrot.slane %v8531_v24, 2  ;;  %v1640_v38 = vrot.slane %v8538_v33, 2  ;;  %v1646_v30 = vrot.slane %v8540_v60, 2 }
 0x29f   :  { %v3246_v56 = vadd.f32 %v5440_v18, %v8389_v50  ;;  %6034 = vmatprep.subr.mxu0 %v2120_v39  ;;  %4119 = vmatmul.mubr.f32.gmra.mxu0 %v8531_v24  ;;  %v1637_v7 = vrot.slane %v8542_v25, 2  ;;  %v5442_v17 = vpop.f32.mrf.mxu0  ;;  %v2183_v18 = vld [vmem:[#allocation5 + $0x1078] sm:$0xff]  ;;  %v1642_v46 = vrot.slane %v8535_v8, 2 }
 0x2a0   :  { %4264 = vmatmul.mubr.f32.gmra.mxu1 %v8535_v8  ;;  %6035 = vmatpush3.msra.mxu0 %v2104_v52  ;;  %v5522_v54 = vpop.f32.mrf.mxu1  ;;  %v5443_v50 = vadd.f32 %v5442_v17, %v5441_v21  ;;  %v8565_v45 = vsel %vm1239_vm1, %v1639_v43, %v1640_v38  ;;  %v8568_v52 = vsel %vm1239_vm1, %v1645_v36, %v1646_v30  ;;  %v2215_v38 = vld [vmem:[#allocation5 + $0x1178] sm:$0xff]  ;;  %v9989_v17 = vld [vmem:[#allocation96_spill] sm:$0xff] }
 0x2a1   :  { %v8559_v26 = vadd.f32 %v5520_v59, %v3246_v56  ;;  %4333 = vmatprep.mubr.f32.mxu0 %v9984_v31  ;;  %6114 = vmatprep.subr.mxu1 %v2152_v2  ;;  %v5523_v39 = vadd.f32 %v5522_v54, %v5521_v57  ;;  %v1643_v59 = vrot.slane %v8548_v3, 2  ;;  %v9986_v57 = vld [vmem:[#allocation91_spill] sm:$0xff]  ;;  %v2198_v56 = vld [vmem:[#allocation5 + $0x10f0] sm:$0xff] }
 0x2a2   :  { %4478 = vmatprep.mubr.f32.mxu1 %v9985_v20  ;;  %6115 = vmatpush3.msra.mxu1 %v2136_v51  ;;  %v5556_v53 = vpop.f32.mrf.mxu0  ;;  %v3251_v31 = vadd.f32 %v5443_v50, %v8396_v48  ;;  %v5636_v21 = vpop.f32.mrf.mxu1  ;;  %v2231_v2 = vld [vmem:[#allocation5 + $0x11f8] sm:$0xff]  ;;  %v8574_v20 = vsel %vm1239_vm1, %v1636_v62, %v1637_v7  ;;  %v9987_v51 = vld [vmem:[#allocation92_spill] sm:$0xff]  ;;  %v2182_v50 = vld [vmem:[#allocation5 + $0x1070] sm:$0xff] }
 0x2a3   :  { %6164 = vmatprep.subr.mxu0 %v2199_v44  ;;  %4334 = vmatmul.mubr.f32.vlgmr.msra.gmra.mxu0 %v9986_v57  ;;  %v8578_v36 = vsel %vm1239_vm1, %v1642_v46, %v1643_v59  ;;  %v9988_v48 = vld [vmem:[#allocation94_spill] sm:$0xff] }
 0x2a4   :  { %4479 = vmatmul.mubr.f32.vlgmr.msra.gmra.mxu1 %v9987_v51  ;;  %6165 = vmatpush3.msra.mxu0 %v2183_v18  ;;  %v5557_v43 = vpop.f32.mrf.mxu0  ;;  %v8580_v30 = vadd.f32 %v5523_v39, %v3251_v31  ;;  %v5637_v44 = vpop.f32.mrf.mxu1  ;;  %v9990_v51 = vld [vmem:[#allocation97_spill] sm:$0xff]  ;;  %v9991_v59 = vld [vmem:[#allocation98_spill] sm:$0xff] }
 0x2a5   :  { %4338 = vmatprep.mubr.f32.mxu0 %v9988_v48  ;;  %4483 = vmatprep.mubr.f32.mxu1 %v9989_v17  ;;  %v5558_v54 = vadd.f32 %v5557_v43, %v5556_v53  ;;  %v5638_v62 = vadd.f32 %v5637_v44, %v5636_v21  ;;  %v2230_v46 = vld [vmem:[#allocation5 + $0x11f0] sm:$0xff]  ;;  %v2197_v39 = vld [vmem:[#allocation5 + $0x10e8] sm:$0xff]  ;;  %v9992_v43 = vld [vmem:[#allocation99_spill] sm:$0xff] }
 0x2a6   :  { %6244 = vmatprep.subr.mxu1 %v2231_v2  ;;  %6166 = vmatprep.subr.mxu0 %v2198_v56  ;;  %v5559_v7 = vpop.f32.mrf.mxu0  ;;  %v5639_v57 = vpop.f32.mrf.mxu1  ;;  %v2214_v48 = vld [vmem:[#allocation5 + $0x1170] sm:$0xff]  ;;  %v9993_v21 = vld [vmem:[#allocation100_spill] sm:$0xff] }
 0x2a7   :  { %v3466_v18 = vadd.f32 %v5558_v54, %v8403_v28  ;;  %6245 = vmatpush3.msra.mxu1 %v2215_v38  ;;  %4339 = vmatmul.mubr.f32.gmra.mxu0 %v9990_v51  ;;  %v2181_v28 = vld [vmem:[#allocation5 + $0x1068] sm:$0xff] }
 0x2a8   :  { %4484 = vmatmul.mubr.f32.gmra.mxu1 %v9991_v59  ;;  %6167 = vmatpush3.msra.mxu0 %v2182_v50  ;;  %v5560_v31 = vpop.f32.mrf.mxu0  ;;  %v5640_v56 = vpop.f32.mrf.mxu1  ;;  %v9994_v50 = vld [vmem:[#allocation102_spill] sm:$0xff]  ;;  %v2229_v51 = vld [vmem:[#allocation5 + $0x11e8] sm:$0xff] }
 0x2a9   :  { %v8587_v53 = vadd.f32 %v5638_v62, %v3466_v18  ;;  %4343 = vmatprep.mubr.f32.mxu0 %v9992_v43  ;;  %4488 = vmatprep.mubr.f32.mxu1 %v9993_v21  ;;  %v5561_v2 = vadd.f32 %v5560_v31, %v5559_v7  ;;  %v5641_v38 = vadd.f32 %v5640_v56, %v5639_v57  ;;  %v2196_v62 = vld [vmem:[#allocation5 + $0x10e0] sm:$0xff]  ;;  %v2213_v43 = vld [vmem:[#allocation5 + $0x1168] sm:$0xff] }
 0x2aa   :  { %6246 = vmatprep.subr.mxu1 %v2230_v46  ;;  %6168 = vmatprep.subr.mxu0 %v2197_v39  ;;  %v5562_v17 = vpop.f32.mrf.mxu0  ;;  %v5642_v44 = vpop.f32.mrf.mxu1  ;;  %v9995_v18 = vld [vmem:[#allocation103_spill] sm:$0xff]  ;;  %v9996_v31 = vld [vmem:[#allocation104_spill] sm:$0xff]  ;;  %v9997_v57 = vld [vmem:[#allocation105_spill] sm:$0xff] }
 0x2ab   :  { %v3471_v54 = vadd.f32 %v5561_v2, %v8410_v16  ;;  %6247 = vmatpush3.msra.mxu1 %v2214_v48  ;;  %4344 = vmatmul.mubr.f32.gmra.mxu0 %v9994_v50  ;;  %v2180_v16 = vld [vmem:[#allocation5 + $0x1060] sm:$0xff] }
 0x2ac   :  { %4489 = vmatmul.mubr.f32.gmra.mxu1 %v9995_v18  ;;  %6169 = vmatpush3.msra.mxu0 %v2181_v28  ;;  %v5563_v59 = vpop.f32.mrf.mxu0  ;;  %v5643_v39 = vpop.f32.mrf.mxu1  ;;  %v9998_v28 = vld [vmem:[#allocation108_spill] sm:$0xff] }
 0x2ad   :  { %v8594_v7 = vadd.f32 %v5641_v38, %v3471_v54  ;;  %4348 = vmatprep.mubr.f32.mxu0 %v9996_v31  ;;  %4493 = vmatprep.mubr.f32.mxu1 %v9997_v57  ;;  %v5564_v46 = vadd.f32 %v5563_v59, %v5562_v17  ;;  %v5644_v48 = vadd.f32 %v5643_v39, %v5642_v44  ;;  %v2228_v50 = vld [vmem:[#allocation5 + $0x11e0] sm:$0xff]  ;;  %v2195_v38 = vld [vmem:[#allocation5 + $0x10d8] sm:$0xff] }
 0x2ae   :  { %6248 = vmatprep.subr.mxu1 %v2229_v51  ;;  %6170 = vmatprep.subr.mxu0 %v2196_v62  ;;  %v5565_v21 = vpop.f32.mrf.mxu0  ;;  %v5645_v56 = vpop.f32.mrf.mxu1  ;;  %v9999_v54 = vld [vmem:[#allocation110_spill] sm:$0xff]  ;;  %v2212_v31 = vld [vmem:[#allocation5 + $0x1160] sm:$0xff] }
 0x2af   :  { %v3476_v2 = vadd.f32 %v5564_v46, %v8417_v32  ;;  %6249 = vmatpush3.msra.mxu1 %v2213_v43  ;;  %4349 = vmatmul.mubr.f32.gmra.mxu0 %v9998_v28  ;;  %v10000_v59 = vld [vmem:[#allocation112_spill] sm:$0xff]  ;;  %v10001_v44 = vld [vmem:[#allocation114_spill] sm:$0xff] }
 0x2b0   :  { %4494 = vmatmul.mubr.f32.gmra.mxu1 %v9999_v54  ;;  %6171 = vmatpush3.msra.mxu0 %v2180_v16  ;;  %v5566_v18 = vpop.f32.mrf.mxu0  ;;  %v5646_v62 = vpop.f32.mrf.mxu1  ;;  %v2179_v32 = vld [vmem:[#allocation5 + $0x1058] sm:$0xff]  ;;  %v10002_v16 = vld [vmem:[#allocation116_spill] sm:$0xff] }
 0x2b1   :  { %v8601_v17 = vadd.f32 %v5644_v48, %v3476_v2  ;;  %4353 = vmatprep.mubr.f32.mxu0 %v10000_v59  ;;  %4498 = vmatprep.mubr.f32.mxu1 %v10001_v44  ;;  %v5567_v51 = vadd.f32 %v5566_v18, %v5565_v21  ;;  %v5647_v43 = vadd.f32 %v5646_v62, %v5645_v56  ;;  %v2227_v28 = vld [vmem:[#allocation5 + $0x11d8] sm:$0xff]  ;;  %v2194_v48 = vld [vmem:[#allocation5 + $0x10d0] sm:$0xff]  ;;  %v10004_v18 = vld [vmem:[#allocation120_spill] sm:$0xff] }
 0x2b2   :  { %6250 = vmatprep.subr.mxu1 %v2228_v50  ;;  %6172 = vmatprep.subr.mxu0 %v2195_v38  ;;  %v5568_v57 = vpop.f32.mrf.mxu0  ;;  %v5648_v39 = vpop.f32.mrf.mxu1  ;;  %v10003_v2 = vld [vmem:[#allocation119_spill] sm:$0xff]  ;;  %v10005_v56 = vld [vmem:[#allocation121_spill] sm:$0xff] }
 0x2b3   :  { %v3481_v46 = vadd.f32 %v5567_v51, %v8424_v5  ;;  %6251 = vmatpush3.msra.mxu1 %v2212_v31  ;;  %4354 = vmatmul.mubr.f32.gmra.mxu0 %v10002_v16  ;;  %v2211_v59 = vld [vmem:[#allocation5 + $0x1158] sm:$0xff]  ;;  %v2178_v5 = vld [vmem:[#allocation5 + $0x1050] sm:$0xff] }
 0x2b4   :  { %4499 = vmatmul.mubr.f32.gmra.mxu1 %v10003_v2  ;;  %6173 = vmatpush3.msra.mxu0 %v2179_v32  ;;  %v5569_v54 = vpop.f32.mrf.mxu0  ;;  %v5649_v38 = vpop.f32.mrf.mxu1  ;;  %v10006_v32 = vld [vmem:[#allocation122_spill] sm:$0xff] }
 0x2b5   :  { %v8608_v21 = vadd.f32 %v5647_v43, %v3481_v46  ;;  %4358 = vmatprep.mubr.f32.mxu0 %v10004_v18  ;;  %4503 = vmatprep.mubr.f32.mxu1 %v10005_v56  ;;  %v5570_v50 = vadd.f32 %v5569_v54, %v5568_v57  ;;  %v5650_v31 = vadd.f32 %v5649_v38, %v5648_v39  ;;  %v2226_v16 = vld [vmem:[#allocation5 + $0x11d0] sm:$0xff]  ;;  %v2193_v43 = vld [vmem:[#allocation5 + $0x10c8] sm:$0xff]  ;;  %v1595_v57 = vrot.slane %v8431_v22, 1 }
 0x2b6   :  { %6252 = vmatprep.subr.mxu1 %v2227_v28  ;;  %6174 = vmatprep.subr.mxu0 %v2194_v48  ;;  %v5571_v44 = vpop.f32.mrf.mxu0  ;;  %v5651_v62 = vpop.f32.mrf.mxu1  ;;  %v2210_v2 = vld [vmem:[#allocation5 + $0x1150] sm:$0xff]  ;;  %v1596_v28 = vrot.slane %v8446_v55, 1  ;;  %v1601_v39 = vrot.slane %v8437_v15, 1  ;;  %v1602_v48 = vrot.slane %v8448_v29, 1  ;;  %v1592_v22 = vrot.slane %v8439_v10, 1 }
 0x2b7   :  { %v3486_v51 = vadd.f32 %v5570_v50, %v8433_v0  ;;  %6253 = vmatpush3.msra.mxu1 %v2211_v59  ;;  %4359 = vmatmul.mubr.f32.gmra.mxu0 %v10006_v32  ;;  %v10007_v54 = vld [vmem:[#allocation162_spill] sm:$0xff]  ;;  %v10008_v59 = vld [vmem:[#allocation75_spill] sm:$0xff]  ;;  %v1593_v55 = vrot.slane %v8450_v58, 1  ;;  %v1599_v32 = vrot.slane %v8457_v1, 1 }
 0x2b8   :  { %4504 = vmatmul.mubr.f32.gmra.mxu1 %v9841_v41  ;;  %6175 = vmatpush3.msra.mxu0 %v2178_v5  ;;  %v5572_v46 = vpop.f32.mrf.mxu0  ;;  %v5652_v56 = vpop.f32.mrf.mxu1  ;;  %v2177_v41 = vld [vmem:[#allocation5 + $0x1048] sm:$0xff]  ;;  %v1603_v10 = vsel %vm982_vm0, %v1601_v39, %v1602_v48  ;;  %v2224_v48 = vld [vmem:[#allocation5 + $0x11c0] sm:$0xff] }
 0x2b9   :  { %v8619_v0 = vadd.f32 %v5650_v31, %v3486_v51  ;;  %4363 = vmatprep.mubr.f32.mxu0 %v10007_v54  ;;  %4508 = vmatprep.mubr.f32.mxu1 %v10008_v59  ;;  %v5573_v18 = vadd.f32 %v5572_v46, %v5571_v44  ;;  %v5653_v50 = vadd.f32 %v5652_v56, %v5651_v62  ;;  %v10009_v5 = vld [vmem:[#allocation80_spill] sm:$0xff]  ;;  %v1598_v44 = vrot.slane %v8441_v42, 1 }
 0x2ba   :  { %6254 = vmatprep.subr.mxu1 %v2226_v16  ;;  %6176 = vmatprep.subr.mxu0 %v2193_v43  ;;  %v5574_v38 = vpop.f32.mrf.mxu0  ;;  %v5654_v29 = vpop.f32.mrf.mxu1  ;;  %v2225_v31 = vld [vmem:[#allocation5 + $0x11c8] sm:$0xff]  ;;  %v2192_v51 = vld [vmem:[#allocation5 + $0x10c0] sm:$0xff]  ;;  %v1597_v62 = vsel %vm982_vm0, %v1595_v57, %v1596_v28  ;;  %v1594_v1 = vsel %vm982_vm0, %v1592_v22, %v1593_v55 }
 0x2bb   :  { %v3491_v15 = vadd.f32 %v5573_v18, %v8452_v9  ;;  %6255 = vmatpush3.msra.mxu1 %v2210_v2  ;;  %4364 = vmatmul.mubr.f32.gmra.mxu0 %v10009_v5  ;;  %v10010_v16 = vld [vmem:[#allocation83_spill] sm:$0xff]  ;;  %v2209_v43 = vld [vmem:[#allocation5 + $0x1148] sm:$0xff]  ;;  %v1600_v39 = vsel %vm982_vm0, %v1598_v44, %v1599_v32  ;;  %v2190_v44 = vld [vmem:[#allocation5 + $0x10b0] sm:$0xff] }
 0x2bc   :  { %4509 = vmatmul.mubr.f32.gmra.mxu1 %v10010_v16  ;;  %6177 = vmatpush3.msra.mxu0 %v2177_v41  ;;  %v5575_v58 = vpop.f32.mrf.mxu0  ;;  %v5655_v2 = vpop.f32.mrf.mxu1  ;;  %v2176_v54 = vld [vmem:[#allocation5 + $0x1040] sm:$0xff]  ;;  %v2191_v18 = vld [vmem:[#allocation5 + $0x10b8] sm:$0xff] }
 0x2bd   :  { %v8632_v9 = vadd.f32 %v5653_v50, %v3491_v15  ;;  %4368 = vmatprep.mubr.f32.mxu0 %v1597_v62  ;;  %4513 = vmatprep.mubr.f32.mxu1 %v1603_v10  ;;  %v5576_v46 = vadd.f32 %v5575_v58, %v5574_v38  ;;  %v5656_v42 = vadd.f32 %v5655_v2, %v5654_v29  ;;  %v2208_v56 = vld [vmem:[#allocation5 + $0x1140] sm:$0xff]  ;;  %v10011_v50 = vld [vmem:[#allocation133_spill] sm:$0xff]  ;;  %v10014_v62 = vld [vmem:[#allocation138_spill] sm:$0xff] }
 0x2be   :  { %6256 = vmatprep.subr.mxu1 %v2225_v31  ;;  %6178 = vmatprep.subr.mxu0 %v2192_v51  ;;  %v5577_v57 = vpop.f32.mrf.mxu0  ;;  %v10012_v38 = vld [vmem:[#allocation135_spill] sm:$0xff]  ;;  %v10013_v31 = vld [vmem:[#allocation137_spill] sm:$0xff] }
 0x2bf   :  { %v3496_v59 = vadd.f32 %v5576_v46, %v8468_v61  ;;  %6257 = vmatpush3.msra.mxu1 %v2209_v43  ;;  %v5657_v28 = vpop.f32.mrf.mxu1  ;;  %4369 = vmatmul.mubr.f32.gmra.mxu0 %v1594_v1  ;;  %v2175_v61 = vld [vmem:[#allocation5 + $0x1038] sm:$0xff]  ;;  %v10015_v58 = vld [vmem:[#allocation141_spill] sm:$0xff] }
 0x2c0   :  { %4514 = vmatmul.mubr.f32.gmra.mxu1 %v1600_v39  ;;  %6179 = vmatpush3.msra.mxu0 %v2176_v54  ;;  %v5578_v22 = vpop.f32.mrf.mxu0  ;;  %v2223_v51 = vld [vmem:[#allocation5 + $0x11b8] sm:$0xff]  ;;  %v2174_v2 = vld [vmem:[#allocation5 + $0x1030] sm:$0xff]  ;;  %v2189_v39 = vld [vmem:[#allocation5 + $0x10a8] sm:$0xff] }
 0x2c1   :  { %v8637_v41 = vadd.f32 %v5656_v42, %v3496_v59  ;;  %4373 = vmatprep.mubr.f32.mxu0 %v10011_v50  ;;  %4518 = vmatprep.mubr.f32.mxu1 %v10012_v38  ;;  %v5658_v55 = vpop.f32.mrf.mxu1  ;;  %v5579_v15 = vadd.f32 %v5578_v22, %v5577_v57  ;;  %v2207_v10 = vld [vmem:[#allocation5 + $0x1138] sm:$0xff]  ;;  %v10017_v57 = vld [vmem:[#allocation145_spill] sm:$0xff]  ;;  %v10019_v38 = vld [vmem:[#allocation148_spill] sm:$0xff] }
 0x2c2   :  { %6258 = vmatprep.subr.mxu1 %v2224_v48  ;;  %v5659_v29 = vadd.f32 %v5658_v55, %v5657_v28  ;;  %6180 = vmatprep.subr.mxu0 %v2191_v18  ;;  %v10016_v43 = vld [vmem:[#allocation143_spill] sm:$0xff]  ;;  %v2222_v28 = vld [vmem:[#allocation5 + $0x11b0] sm:$0xff] }
 0x2c3   :  { %6259 = vmatpush3.msra.mxu1 %v2208_v56  ;;  %v5580_v5 = vpop.f32.mrf.mxu0  ;;  %4374 = vmatmul.mubr.f32.gmra.mxu0 %v10013_v31  ;;  %v3501_v32 = vadd.f32 %v5579_v15, %v8488_v47  ;;  %v5660_v16 = vpop.f32.mrf.mxu1  ;;  %v10018_v56 = vld [vmem:[#allocation146_spill] sm:$0xff] }
 0x2c4   :  { %4519 = vmatmul.mubr.f32.gmra.mxu1 %v10014_v62  ;;  %6181 = vmatpush3.msra.mxu0 %v2175_v61  ;;  %v2206_v50 = vld [vmem:[#allocation5 + $0x1130] sm:$0xff]  ;;  %v2173_v61 = vld [vmem:[#allocation5 + $0x1028] sm:$0xff] }
 0x2c5   :  { %4378 = vmatprep.mubr.f32.mxu0 %v10015_v58  ;;  %4523 = vmatprep.mubr.f32.mxu1 %v10016_v43  ;;  %v5581_v46 = vpop.f32.mrf.mxu0  ;;  %v8646_v54 = vadd.f32 %v5659_v29, %v3501_v32  ;;  %v5661_v1 = vpop.f32.mrf.mxu1  ;;  %v10020_v22 = vld [vmem:[#allocation150_spill] sm:$0xff]  ;;  %v2188_v32 = vld [vmem:[#allocation5 + $0x10a0] sm:$0xff]  ;;  %v2205_v58 = vld [vmem:[#allocation5 + $0x1128] sm:$0xff] }
 0x2c6   :  { %6260 = vmatprep.subr.mxu1 %v2223_v51  ;;  %v5582_v42 = vadd.f32 %v5581_v46, %v5580_v5  ;;  %6182 = vmatprep.subr.mxu0 %v2190_v44  ;;  %v5662_v59 = vadd.f32 %v5661_v1, %v5660_v16  ;;  %v10021_v51 = vld [vmem:[#allocation153_spill] sm:$0xff]  ;;  %v10023_v43 = vld [vmem:[#allocation156_spill] sm:$0xff]  ;;  %v10024_v46 = vld [vmem:[#allocation158_spill] sm:$0xff] }
 0x2c7   :  { %6261 = vmatpush3.msra.mxu1 %v2207_v10  ;;  %v5583_v47 = vpop.f32.mrf.mxu0  ;;  %4379 = vmatmul.mubr.f32.gmra.mxu0 %v10017_v57  ;;  %v5663_v18 = vpop.f32.mrf.mxu1  ;;  %v2221_v44 = vld [vmem:[#allocation5 + $0x11a8] sm:$0xff]  ;;  %v10022_v10 = vld [vmem:[#allocation154_spill] sm:$0xff] }
 0x2c8   :  { %v3506_v48 = vadd.f32 %v5582_v42, %v8495_v27  ;;  %4524 = vmatmul.mubr.f32.gmra.mxu1 %v10018_v56  ;;  %6183 = vmatpush3.msra.mxu0 %v2174_v2  ;;  %v2172_v42 = vld [vmem:[#allocation5 + $0x1020] sm:$0xff] }
 0x2c9   :  { %4383 = vmatprep.mubr.f32.mxu0 %v10019_v38  ;;  %4528 = vmatprep.mubr.f32.mxu1 %v10020_v22  ;;  %v5584_v55 = vpop.f32.mrf.mxu0  ;;  %v5664_v5 = vpop.f32.mrf.mxu1  ;;  %v2204_v38 = vld [vmem:[#allocation5 + $0x1120] sm:$0xff] }
 0x2ca   :  { %v8653_v15 = vadd.f32 %v5662_v59, %v3506_v48  ;;  %6262 = vmatprep.subr.mxu1 %v2222_v28  ;;  %v5585_v29 = vadd.f32 %v5584_v55, %v5583_v47  ;;  %6184 = vmatprep.subr.mxu0 %v2189_v39  ;;  %v5665_v31 = vadd.f32 %v5664_v5, %v5663_v18  ;;  %v10025_v28 = vld [vmem:[#allocation160_spill] sm:$0xff]  ;;  %v2187_v48 = vld [vmem:[#allocation5 + $0x1098] sm:$0xff] }
 0x2cb   :  { %6263 = vmatpush3.msra.mxu1 %v2206_v50  ;;  %v5586_v27 = vpop.f32.mrf.mxu0  ;;  %4384 = vmatmul.mubr.f32.gmra.mxu0 %v10021_v51  ;;  %v5666_v62 = vpop.f32.mrf.mxu1  ;;  %v2220_v39 = vld [vmem:[#allocation5 + $0x11a0] sm:$0xff]  ;;  %v10026_v50 = vld [vmem:[#allocation161_spill] sm:$0xff] }
 0x2cc   :  { %v3511_v16 = vadd.f32 %v5585_v29, %v8502_v63  ;;  %4529 = vmatmul.mubr.f32.gmra.mxu1 %v10022_v10  ;;  %6185 = vmatpush3.msra.mxu0 %v2173_v61  ;;  %v10027_v22 = vld [vmem:[#allocation163_spill] sm:$0xff]  ;;  %v10028_v55 = vld [vmem:[#allocation164_spill] sm:$0xff] }
 0x2cd   :  { %4388 = vmatprep.mubr.f32.mxu0 %v10023_v43  ;;  %4533 = vmatprep.mubr.f32.mxu1 %v10024_v46  ;;  %v5587_v2 = vpop.f32.mrf.mxu0  ;;  %v5667_v47 = vpop.f32.mrf.mxu1  ;;  %v2171_v29 = vld [vmem:[#allocation5 + $0x1018] sm:$0xff] }
 0x2ce   :  { %v8660_v1 = vadd.f32 %v5665_v31, %v3511_v16  ;;  %6264 = vmatprep.subr.mxu1 %v2221_v44  ;;  %v5588_v59 = vadd.f32 %v5587_v2, %v5586_v27  ;;  %6186 = vmatprep.subr.mxu0 %v2188_v32  ;;  %v5668_v57 = vadd.f32 %v5667_v47, %v5666_v62  ;;  %v10029_v44 = vld [vmem:[#allocation165_spill] sm:$0xff]  ;;  %v2219_v32 = vld [vmem:[#allocation5 + $0x1198] sm:$0xff]  ;;  %v10032_v2 = vld [vmem:[#allocation64_spill] sm:$0xff] }
 0x2cf   :  { %6265 = vmatpush3.msra.mxu1 %v2205_v58  ;;  %v5589_v63 = vpop.f32.mrf.mxu0  ;;  %4389 = vmatmul.mubr.f32.gmra.mxu0 %v10025_v28  ;;  %v5669_v56 = vpop.f32.mrf.mxu1  ;;  %v2186_v16 = vld [vmem:[#allocation5 + $0x1090] sm:$0xff]  ;;  %v2203_v43 = vld [vmem:[#allocation5 + $0x1118] sm:$0xff] }
 0x2d0   :  { %v3516_v18 = vadd.f32 %v5588_v59, %v8509_v12  ;;  %4534 = vmatmul.mubr.f32.gmra.mxu1 %v10026_v50  ;;  %6187 = vmatpush3.msra.mxu0 %v2172_v42  ;;  %v10030_v58 = vld [vmem:[#allocation166_spill] sm:$0xff]  ;;  %v10031_v46 = vld [vmem:[#allocation167_spill] sm:$0xff] }
 0x2d1   :  { %4393 = vmatprep.mubr.f32.mxu0 %v10027_v22  ;;  %4538 = vmatprep.mubr.f32.mxu1 %v10028_v55  ;;  %v5590_v61 = vpop.f32.mrf.mxu0  ;;  %v5670_v27 = vpop.f32.mrf.mxu1  ;;  %v2170_v59 = vld [vmem:[#allocation5 + $0x1010] sm:$0xff]  ;;  %v1608_v55 = vrot.slane %v8538_v33, 1  ;;  %v1605_v33 = vrot.slane %v8542_v25, 1 }
 0x2d2   :  { %v8667_v5 = vadd.f32 %v5668_v57, %v3516_v18  ;;  %6266 = vmatprep.subr.mxu1 %v2220_v39  ;;  %v5591_v31 = vadd.f32 %v5590_v61, %v5589_v63  ;;  %6188 = vmatprep.subr.mxu0 %v2187_v48  ;;  %v5671_v51 = vadd.f32 %v5670_v27, %v5669_v56  ;;  %v10033_v39 = vld [vmem:[#allocation68_spill] sm:$0xff]  ;;  %v2218_v48 = vld [vmem:[#allocation5 + $0x1190] sm:$0xff]  ;;  %v1607_v56 = vrot.slane %v8523_v23, 1 }
 0x2d3   :  { %6267 = vmatpush3.msra.mxu1 %v2204_v38  ;;  %v5592_v12 = vpop.f32.mrf.mxu0  ;;  %4394 = vmatmul.mubr.f32.gmra.mxu0 %v10029_v44  ;;  %v5672_v10 = vpop.f32.mrf.mxu1  ;;  %v2185_v18 = vld [vmem:[#allocation5 + $0x1088] sm:$0xff]  ;;  %v2202_v22 = vld [vmem:[#allocation5 + $0x1110] sm:$0xff]  ;;  %v1613_v61 = vrot.slane %v8529_v14, 1 }
 0x2d4   :  { %v3521_v62 = vadd.f32 %v5591_v31, %v8516_v35  ;;  %4539 = vmatmul.mubr.f32.gmra.mxu1 %v10030_v58  ;;  %6189 = vmatpush3.msra.mxu0 %v2171_v29  ;;  %v1614_v29 = vrot.slane %v8540_v60, 1  ;;  %v10034_v31 = vld [vmem:[#allocation87_spill] sm:$0xff] }
 0x2d5   :  { %4398 = vmatprep.mubr.f32.mxu0 %v10031_v46  ;;  %4543 = vmatprep.mubr.f32.mxu1 %v10032_v2  ;;  %v5593_v42 = vpop.f32.mrf.mxu0  ;;  %v5673_v63 = vpop.f32.mrf.mxu1  ;;  %v10035_v60 = vld [vmem:[#allocation123_spill] sm:$0xff]  ;;  %v2201_v46 = vld [vmem:[#allocation5 + $0x1108] sm:$0xff] }
 0x2d6   :  { %v8674_v47 = vadd.f32 %v5671_v51, %v3521_v62  ;;  %6268 = vmatprep.subr.mxu1 %v2219_v32  ;;  %v5594_v57 = vadd.f32 %v5593_v42, %v5592_v12  ;;  %6190 = vmatprep.subr.mxu0 %v2186_v16  ;;  %v5674_v28 = vadd.f32 %v5673_v63, %v5672_v10  ;;  %v2169_v51 = vld [vmem:[#allocation5 + $0x1008] sm:$0xff]  ;;  %v2184_v32 = vld [vmem:[#allocation5 + $0x1080] sm:$0xff]  ;;  %v1610_v16 = vrot.slane %v8535_v8, 1 }
 0x2d7   :  { %6269 = vmatpush3.msra.mxu1 %v2203_v43  ;;  %v5595_v35 = vpop.f32.mrf.mxu0  ;;  %4399 = vmatmul.mubr.f32.gmra.mxu0 %v10033_v39  ;;  %v5675_v38 = vpop.f32.mrf.mxu1  ;;  %v1611_v62 = vrot.slane %v8548_v3, 1  ;;  %v10036_v43 = vld [vmem:[#allocation126_spill] sm:$0xff]  ;;  %v1615_v25 = vsel %vm982_vm0, %v1613_v61, %v1614_v29  ;;  %v2168_v42 = vld [vmem:[#allocation5 + $0x1000] sm:$0xff] }
 0x2d8   :  { %v3526_v50 = vadd.f32 %v5594_v57, %v8525_v19  ;;  %4544 = vmatmul.mubr.f32.gmra.mxu1 %v9873_v4  ;;  %6191 = vmatpush3.msra.mxu0 %v2170_v59  ;;  %v1604_v4 = vrot.slane %v8531_v24, 1  ;;  %v1609_v24 = vsel %vm982_vm0, %v1607_v56, %v1608_v55  ;;  %v2216_v57 = vld [vmem:[#allocation5 + $0x1180] sm:$0xff] }
 0x2d9   :  { %4403 = vmatprep.mubr.f32.mxu0 %v8219_v11  ;;  %4548 = vmatprep.mubr.f32.mxu1 %v10034_v31  ;;  %v5596_v27 = vpop.f32.mrf.mxu0  ;;  %v5676_v12 = vpop.f32.mrf.mxu1  ;;  %v2217_v11 = vld [vmem:[#allocation5 + $0x1188] sm:$0xff]  ;;  %v2200_v39 = vld [vmem:[#allocation5 + $0x1100] sm:$0xff] }
 0x2da   :  { %v8685_v23 = vadd.f32 %v5674_v28, %v3526_v50  ;;  %6270 = vmatprep.subr.mxu1 %v2218_v48  ;;  %v5597_v19 = vadd.f32 %v5596_v27, %v5595_v35  ;;  %6192 = vmatprep.subr.mxu0 %v2185_v18  ;;  %v5677_v44 = vadd.f32 %v5676_v12, %v5675_v38  ;;  %v10037_v56 = vld [vmem:[#allocation76_spill] sm:$0xff]  ;;  %v10039_v27 = vld [vmem:[#allocation78_spill] sm:$0xff]  ;;  %v10041_v12 = vld [vmem:[#allocation81_spill] sm:$0xff] }
 0x2db   :  { %6271 = vmatpush3.msra.mxu1 %v2202_v22  ;;  %v5598_v14 = vpop.f32.mrf.mxu0  ;;  %4404 = vmatmul.mubr.f32.gmra.mxu0 %v10035_v60  ;;  %v5678_v58 = vpop.f32.mrf.mxu1  ;;  %v1612_v35 = vsel %vm982_vm0, %v1610_v16, %v1611_v62  ;;  %v10038_v22 = vld [vmem:[#allocation77_spill] sm:$0xff]  ;;  %v10043_v16 = vld [vmem:[#allocation84_spill] sm:$0xff] }
 0x2dc   :  { %v3531_v10 = vadd.f32 %v5597_v19, %v8544_v6  ;;  %4549 = vmatmul.mubr.f32.gmra.mxu1 %v10036_v43  ;;  %6193 = vmatpush3.msra.mxu0 %v2169_v51  ;;  %v1606_v6 = vsel %vm982_vm0, %v1604_v4, %v1605_v33  ;;  %v10040_v19 = vld [vmem:[#allocation79_spill] sm:$0xff]  ;;  %v10042_v4 = vld [vmem:[#allocation82_spill] sm:$0xff]  ;;  %v10046_v43 = vld [vmem:[#allocation89_spill] sm:$0xff] }
 0x2dd   :  { %4408 = vmatprep.mubr.f32.mxu0 %v1609_v24  ;;  %4553 = vmatprep.mubr.f32.mxu1 %v1615_v25  ;;  %v5599_v2 = vpop.f32.mrf.mxu0  ;;  %v5679_v3 = vpop.f32.mrf.mxu1 }
 0x2de   :  { %v8696_v59 = vadd.f32 %v5677_v44, %v3531_v10  ;;  %6272 = vmatprep.subr.mxu1 %v2217_v11  ;;  %v5600_v8 = vadd.f32 %v5599_v2, %v5598_v14  ;;  %6194 = vmatprep.subr.mxu0 %v2184_v32  ;;  %v5680_v63 = vadd.f32 %v5679_v3, %v5678_v58  ;;  %v10045_v58 = vld [vmem:[#allocation86_spill] sm:$0xff]  ;;  %v10047_v3 = vld [vmem:[#allocation93_spill] sm:$0xff] }
 0x2df   :  { %6273 = vmatpush3.msra.mxu1 %v2201_v46  ;;  %v5601_v28 = vpop.f32.mrf.mxu0  ;;  %4409 = vmatmul.mubr.f32.gmra.mxu0 %v1606_v6  ;;  %v5681_v18 = vpop.f32.mrf.mxu1 }
 0x2e0   :  { %v3536_v48 = vadd.f32 %v5600_v8, %v8559_v26  ;;  %4554 = vmatmul.mubr.f32.gmra.mxu1 %v1612_v35  ;;  %6195 = vmatpush3.msra.mxu0 %v2168_v42 }
 0x2e1   :  { %4623 = vmatprep.mubr.f32.mxu0 %v10037_v56  ;;  %6274 = vmatprep.subr.mxu1 %v2216_v57  ;;  %v5602_v50 = vpop.f32.mrf.mxu0  ;;  %v5682_v61 = vpop.f32.mrf.mxu1 }
 0x2e2   :  { %v8702_v38 = vadd.f32 %v5680_v63, %v3536_v48  ;;  %4768 = vmatprep.mubr.f32.mxu1 %v10038_v22  ;;  %v5603_v55 = vadd.f32 %v5602_v50, %v5601_v28  ;;  %6275 = vmatpush3.msra.mxu1 %v2200_v39  ;;  %v5683_v29 = vadd.f32 %v5682_v61, %v5681_v18  ;;  %v10049_v63 = vld [vmem:[#allocation168_spill] sm:$0xff]  ;;  %v10050_v28 = vld [vmem:[#allocation101_spill] sm:$0xff] }
 0x2e3   :  { %v5716_v31 = vpop.f32.mrf.mxu0  ;;  %4624 = vmatmul.mubr.f32.vlgmr.msra.gmra.mxu0 %v10039_v27  ;;  %v5796_v51 = vpop.f32.mrf.mxu1  ;;  %v10051_v22 = vld [vmem:[#allocation169_spill] sm:$0xff] }
 0x2e4   :  { %v3541_v26 = vadd.f32 %v5603_v55, %v8580_v30  ;;  %4769 = vmatmul.mubr.f32.vlgmr.msra.gmra.mxu1 %v10040_v19  ;;  %4628 = vmatprep.mubr.f32.mxu0 %v10041_v12  ;;  %v10044_v30 = vld [vmem:[#allocation85_spill] sm:$0xff] }
 0x2e5   :  { %4773 = vmatprep.mubr.f32.mxu1 %v10042_v4  ;;  %v5717_v33 = vpop.f32.mrf.mxu0  ;;  %v5797_v60 = vpop.f32.mrf.mxu1 }
 0x2e6   :  { %v8710_v44 = vadd.f32 %v5683_v29, %v3541_v26  ;;  %v5718_v14 = vadd.f32 %v5717_v33, %v5716_v31  ;;  %v5798_v11 = vadd.f32 %v5797_v60, %v5796_v51  ;;  %v10053_v29 = vld [vmem:[#allocation171_spill] sm:$0xff]  ;;  %v10054_v31 = vld [vmem:[#allocation106_spill] sm:$0xff] }
 0x2e7   :  { %v5719_v32 = vpop.f32.mrf.mxu0  ;;  %4629 = vmatmul.mubr.f32.gmra.mxu0 %v10043_v16  ;;  %v5799_v10 = vpop.f32.mrf.mxu1  ;;  %v10055_v33 = vld [vmem:[#allocation107_spill] sm:$0xff] }
 0x2e8   :  { %v3756_v62 = vadd.f32 %v5718_v14, %v8587_v53  ;;  %4774 = vmatmul.mubr.f32.gmra.mxu1 %v10044_v30  ;;  %4633 = vmatprep.mubr.f32.mxu0 %v10045_v58  ;;  %v10048_v53 = vld [vmem:[#allocation95_spill] sm:$0xff] }
 0x2e9   :  { %4778 = vmatprep.mubr.f32.mxu1 %v10046_v43  ;;  %v5720_v24 = vpop.f32.mrf.mxu0  ;;  %v5800_v2 = vpop.f32.mrf.mxu1 }
 0x2ea   :  { %v8717_v25 = vadd.f32 %v5798_v11, %v3756_v62  ;;  %v5721_v46 = vadd.f32 %v5720_v24, %v5719_v32  ;;  %v5801_v42 = vadd.f32 %v5800_v2, %v5799_v10  ;;  %v10057_v11 = vld [vmem:[#allocation111_spill] sm:$0xff] }
 0x2eb   :  { %v5722_v8 = vpop.f32.mrf.mxu0  ;;  %4634 = vmatmul.mubr.f32.gmra.mxu0 %v10047_v3  ;;  %v5802_v57 = vpop.f32.mrf.mxu1  ;;  %v10058_v3 = vld [vmem:[#allocation127_spill] sm:$0xff] }
 0x2ec   :  { %v3761_v6 = vadd.f32 %v5721_v46, %v8594_v7  ;;  %4779 = vmatmul.mubr.f32.gmra.mxu1 %v10048_v53  ;;  %4638 = vmatprep.mubr.f32.mxu0 %v10049_v63  ;;  %v10052_v7 = vld [vmem:[#allocation170_spill] sm:$0xff] }
 0x2ed   :  { %4783 = vmatprep.mubr.f32.mxu1 %v10050_v28  ;;  %v5723_v35 = vpop.f32.mrf.mxu0  ;;  %v5803_v18 = vpop.f32.mrf.mxu1 }
 0x2ee   :  { %v8724_v39 = vadd.f32 %v5801_v42, %v3761_v6  ;;  %v5724_v48 = vadd.f32 %v5723_v35, %v5722_v8  ;;  %v5804_v56 = vadd.f32 %v5803_v18, %v5802_v57  ;;  %v10060_v57 = vld [vmem:[#allocation74_spill] sm:$0xff] }
 0x2ef   :  { %v5725_v50 = vpop.f32.mrf.mxu0  ;;  %4639 = vmatmul.mubr.f32.gmra.mxu0 %v10051_v22  ;;  %v5805_v61 = vpop.f32.mrf.mxu1  ;;  %v10065_v22 = vld [vmem:[#allocation42_spill] sm:$0xff] }
 0x2f0   :  { %v3766_v55 = vadd.f32 %v5724_v48, %v8601_v17  ;;  %4784 = vmatmul.mubr.f32.gmra.mxu1 %v10052_v7  ;;  %4643 = vmatprep.mubr.f32.mxu0 %v10053_v29  ;;  %v10056_v17 = vld [vmem:[#allocation172_spill] sm:$0xff]  ;;  %v10062_v48 = vld [vmem:[#allocation109_spill] sm:$0xff] }
 0x2f1   :  { %4788 = vmatprep.mubr.f32.mxu1 %v10054_v31  ;;  %v5726_v27 = vpop.f32.mrf.mxu0  ;;  %v5806_v19 = vpop.f32.mrf.mxu1 }
 0x2f2   :  { %v8731_v26 = vadd.f32 %v5804_v56, %v3766_v55  ;;  %v5727_v51 = vadd.f32 %v5726_v27, %v5725_v50  ;;  %v5807_v12 = vadd.f32 %v5806_v19, %v5805_v61  ;;  %v10064_v50 = vld [vmem:[#allocation118_spill] sm:$0xff] }
 0x2f3   :  { %v5728_v4 = vpop.f32.mrf.mxu0  ;;  %4644 = vmatmul.mubr.f32.gmra.mxu0 %v10055_v33  ;;  %v5808_v60 = vpop.f32.mrf.mxu1  ;;  %v10069_v33 = vld [vmem:[#allocation125_spill] sm:$0xff] }
 0x2f4   :  { %v3771_v14 = vadd.f32 %v5727_v51, %v8608_v21  ;;  %4789 = vmatmul.mubr.f32.gmra.mxu1 %v10056_v17  ;;  %4648 = vmatprep.mubr.f32.mxu0 %v9901_v40  ;;  %v10066_v51 = vld [vmem:[#allocation43_spill] sm:$0xff] }
 0x2f5   :  { %4793 = vmatprep.mubr.f32.mxu1 %v10057_v11  ;;  %v5729_v32 = vpop.f32.mrf.mxu0  ;;  %v5809_v10 = vpop.f32.mrf.mxu1 }
 0x2f6   :  { %v8738_v16 = vadd.f32 %v5807_v12, %v3771_v14  ;;  %v5730_v62 = vadd.f32 %v5729_v32, %v5728_v4  ;;  %v5810_v30 = vadd.f32 %v5809_v10, %v5808_v60  ;;  %v10068_v4 = vld [vmem:[#allocation124_spill] sm:$0xff]  ;;  %v10070_v10 = vld [vmem:[#allocation45_spill] sm:$0xff] }
 0x2f7   :  { %v5731_v58 = vpop.f32.mrf.mxu0  ;;  %4649 = vmatmul.mubr.f32.gmra.mxu0 %v9903_v13  ;;  %v5811_v24 = vpop.f32.mrf.mxu1 }
 0x2f8   :  { %v3776_v43 = vadd.f32 %v5730_v62, %v8619_v0  ;;  %4794 = vmatmul.mubr.f32.gmra.mxu1 %v9904_v34  ;;  %4653 = vmatprep.mubr.f32.mxu0 %v8295_v37  ;;  %v10059_v0 = vld [vmem:[#allocation130_spill] sm:$0xff] }
 0x2f9   :  { %4798 = vmatprep.mubr.f32.mxu1 %v8298_v49  ;;  %v5732_v40 = vpop.f32.mrf.mxu0  ;;  %v5812_v2 = vpop.f32.mrf.mxu1  ;;  %v10061_v34 = vld [vmem:[#allocation14_spill] sm:$0xff] }
 0x2fa   :  { %v8745_v21 = vadd.f32 %v5810_v30, %v3776_v43  ;;  %v5733_v46 = vadd.f32 %v5732_v40, %v5731_v58  ;;  %v5813_v42 = vadd.f32 %v5812_v2, %v5811_v24  ;;  %v10072_v43 = vld [vmem:[#allocation128_spill] sm:$0xff]  ;;  %v10073_v24 = vld [vmem:[#allocation129_spill] sm:$0xff] }
 0x2fb   :  { %v5734_v8 = vpop.f32.mrf.mxu0  ;;  %4654 = vmatmul.mubr.f32.gmra.mxu0 %v10058_v3  ;;  %v5814_v6 = vpop.f32.mrf.mxu1 }
 0x2fc   :  { %v3781_v13 = vadd.f32 %v5733_v46, %v8632_v9  ;;  %4799 = vmatmul.mubr.f32.gmra.mxu1 %v10059_v0  ;;  %4658 = vmatprep.mubr.f32.mxu0 %v10060_v57  ;;  %v10063_v9 = vld [vmem:[#allocation113_spill] sm:$0xff]  ;;  %v10076_v57 = vld [vmem:[#allocation136_spill] sm:$0xff] }
 0x2fd   :  { %4803 = vmatprep.mubr.f32.mxu1 %v10061_v34  ;;  %v5735_v37 = vpop.f32.mrf.mxu0  ;;  %v5815_v63 = vpop.f32.mrf.mxu1  ;;  %v10077_v34 = vld [vmem:[#allocation139_spill] sm:$0xff] }
 0x2fe   :  { %v8752_v49 = vadd.f32 %v5813_v42, %v3781_v13  ;;  %v5736_v53 = vadd.f32 %v5735_v37, %v5734_v8  ;;  %v5816_v28 = vadd.f32 %v5815_v63, %v5814_v6  ;;  %v10074_v13 = vld [vmem:[#allocation132_spill] sm:$0xff] }
 0x2ff   :  { %v5737_v35 = vpop.f32.mrf.mxu0  ;;  %4659 = vmatmul.mubr.f32.gmra.mxu0 %v10062_v48  ;;  %v5817_v56 = vpop.f32.mrf.mxu1 }
 0x300   :  { %v3786_v18 = vadd.f32 %v5736_v53, %v8637_v41  ;;  %4804 = vmatmul.mubr.f32.gmra.mxu1 %v10063_v9  ;;  %4663 = vmatprep.mubr.f32.mxu0 %v10064_v50  ;;  %v10067_v41 = vld [vmem:[#allocation44_spill] sm:$0xff] }
 0x301   :  { %4808 = vmatprep.mubr.f32.mxu1 %v10065_v22  ;;  %v5738_v55 = vpop.f32.mrf.mxu0  ;;  %v5818_v29 = vpop.f32.mrf.mxu1  ;;  %v10080_v50 = vld [vmem:[#allocation144_spill] sm:$0xff]  ;;  %v10081_v22 = vld [vmem:[#allocation147_spill] sm:$0xff] }
 0x302   :  { %v8759_v61 = vadd.f32 %v5816_v28, %v3786_v18  ;;  %v5739_v7 = vadd.f32 %v5738_v55, %v5737_v35  ;;  %v5819_v31 = vadd.f32 %v5818_v29, %v5817_v56  ;;  %v10078_v18 = vld [vmem:[#allocation140_spill] sm:$0xff] }
 0x303   :  { %v5740_v27 = vpop.f32.mrf.mxu0  ;;  %4664 = vmatmul.mubr.f32.gmra.mxu0 %v10066_v51  ;;  %v5820_v12 = vpop.f32.mrf.mxu1 }
 0x304   :  { %v3791_v19 = vadd.f32 %v5739_v7, %v8646_v54  ;;  %4809 = vmatmul.mubr.f32.gmra.mxu1 %v10067_v41  ;;  %4668 = vmatprep.mubr.f32.mxu0 %v10068_v4  ;;  %v10071_v54 = vld [vmem:[#allocation46_spill] sm:$0xff]  ;;  %v10084_v4 = vld [vmem:[#allocation152_spill] sm:$0xff] }
 0x305   :  { %4813 = vmatprep.mubr.f32.mxu1 %v10069_v33  ;;  %v5741_v14 = vpop.f32.mrf.mxu0  ;;  %v5821_v11 = vpop.f32.mrf.mxu1  ;;  %v10085_v33 = vld [vmem:[#allocation155_spill] sm:$0xff] }
 0x306   :  { %v8766_v60 = vadd.f32 %v5819_v31, %v3791_v19  ;;  %v5742_v17 = vadd.f32 %v5741_v14, %v5740_v27  ;;  %v5822_v32 = vadd.f32 %v5821_v11, %v5820_v12  ;;  %v10082_v19 = vld [vmem:[#allocation149_spill] sm:$0xff] }
 0x307   :  { %v5743_v62 = vpop.f32.mrf.mxu0  ;;  %4669 = vmatmul.mubr.f32.gmra.mxu0 %v10070_v10  ;;  %v5823_v58 = vpop.f32.mrf.mxu1 }
 0x308   :  { %v3796_v30 = vadd.f32 %v5742_v17, %v8653_v15  ;;  %4814 = vmatmul.mubr.f32.gmra.mxu1 %v10071_v54  ;;  %4673 = vmatprep.mubr.f32.mxu0 %v10072_v43  ;;  %v10075_v15 = vld [vmem:[#allocation134_spill] sm:$0xff]  ;;  %v10088_v43 = vld [vmem:[#allocation131_spill] sm:$0xff] }
 0x309   :  { %4818 = vmatprep.mubr.f32.mxu1 %v10073_v24  ;;  %v5744_v40 = vpop.f32.mrf.mxu0  ;;  %v5824_v42 = vpop.f32.mrf.mxu1  ;;  %v10089_v24 = vld [vmem:[#allocation12_spill] sm:$0xff] }
 0x30a   :  { %v8773_v46 = vadd.f32 %v5822_v32, %v3796_v30  ;;  %v5745_v2 = vadd.f32 %v5744_v40, %v5743_v62  ;;  %v5825_v8 = vadd.f32 %v5824_v42, %v5823_v58  ;;  %v10086_v30 = vld [vmem:[#allocation157_spill] sm:$0xff] }
 0x30b   :  { %v5746_v3 = vpop.f32.mrf.mxu0  ;;  %4674 = vmatmul.mubr.f32.gmra.mxu0 %v10074_v13  ;;  %v5826_v0 = vpop.f32.mrf.mxu1 }
 0x30c   :  { %v3801_v6 = vadd.f32 %v5745_v2, %v8660_v1  ;;  %4819 = vmatmul.mubr.f32.gmra.mxu1 %v10075_v15  ;;  %4678 = vmatprep.mubr.f32.mxu0 %v10076_v57  ;;  %v10079_v1 = vld [vmem:[#allocation142_spill] sm:$0xff] }
 0x30d   :  { %4823 = vmatprep.mubr.f32.mxu1 %v10077_v34  ;;  %v5747_v37 = vpop.f32.mrf.mxu0  ;;  %v5827_v28 = vpop.f32.mrf.mxu1 }
 0x30e   :  { %v8780_v53 = vadd.f32 %v5825_v8, %v3801_v6  ;;  %v5748_v63 = vadd.f32 %v5747_v37, %v5746_v3  ;;  %v5828_v35 = vadd.f32 %v5827_v28, %v5826_v0  ;;  %v10090_v6 = vld [vmem:[#allocation13_spill] sm:$0xff] }
 0x30f   :  { %v5749_v48 = vpop.f32.mrf.mxu0  ;;  %4679 = vmatmul.mubr.f32.gmra.mxu0 %v10078_v18  ;;  %v5829_v9 = vpop.f32.mrf.mxu1 }
 0x310   :  { %v3806_v56 = vadd.f32 %v5748_v63, %v8667_v5  ;;  %4824 = vmatmul.mubr.f32.gmra.mxu1 %v10079_v1  ;;  %4683 = vmatprep.mubr.f32.mxu0 %v10080_v50  ;;  %v10083_v5 = vld [vmem:[#allocation151_spill] sm:$0xff] }
 0x311   :  { %4828 = vmatprep.mubr.f32.mxu1 %v10081_v22  ;;  %v5750_v55 = vpop.f32.mrf.mxu0  ;;  %v5830_v31 = vpop.f32.mrf.mxu1 }
 0x312   :  { %v8787_v7 = vadd.f32 %v5828_v35, %v3806_v56  ;;  %v5751_v29 = vadd.f32 %v5750_v55, %v5749_v48  ;;  %v5831_v27 = vadd.f32 %v5830_v31, %v5829_v9 }
 0x313   :  { %v5752_v51 = vpop.f32.mrf.mxu0  ;;  %4684 = vmatmul.mubr.f32.gmra.mxu0 %v10082_v19  ;;  %v5832_v41 = vpop.f32.mrf.mxu1 }
 0x314   :  { %v3811_v12 = vadd.f32 %v5751_v29, %v8674_v47  ;;  %4829 = vmatmul.mubr.f32.gmra.mxu1 %v10083_v5  ;;  %4688 = vmatprep.mubr.f32.mxu0 %v10084_v4  ;;  %v10087_v47 = vld [vmem:[#allocation159_spill] sm:$0xff] }
 0x315   :  { %4833 = vmatprep.mubr.f32.mxu1 %v10085_v33  ;;  %v5753_v14 = vpop.f32.mrf.mxu0  ;;  %v5833_v32 = vpop.f32.mrf.mxu1 }
 0x316   :  { %v8794_v17 = vadd.f32 %v5831_v27, %v3811_v12  ;;  %v5754_v11 = vadd.f32 %v5753_v14, %v5752_v51  ;;  %v5834_v62 = vadd.f32 %v5833_v32, %v5832_v41 }
 0x317   :  { %v5755_v10 = vpop.f32.mrf.mxu0  ;;  %4689 = vmatmul.mubr.f32.gmra.mxu0 %v10086_v30  ;;  %v5835_v54 = vpop.f32.mrf.mxu1 }
 0x318   :  { %v3816_v58 = vadd.f32 %v5754_v11, %v8685_v23  ;;  %4834 = vmatmul.mubr.f32.gmra.mxu1 %v10087_v47  ;;  %4693 = vmatprep.mubr.f32.mxu0 %v10088_v43  ;;  %v10091_v23 = vld [vmem:[#allocation65_spill] sm:$0xff] }
 0x319   :  { %4838 = vmatprep.mubr.f32.mxu1 %v10089_v24  ;;  %v5756_v40 = vpop.f32.mrf.mxu0  ;;  %v5836_v8 = vpop.f32.mrf.mxu1 }
 0x31a   :  { %v8801_v2 = vadd.f32 %v5834_v62, %v3816_v58  ;;  %v5757_v42 = vadd.f32 %v5756_v40, %v5755_v10  ;;  %v5837_v3 = vadd.f32 %v5836_v8, %v5835_v54 }
 0x31b   :  { %v5758_v13 = vpop.f32.mrf.mxu0  ;;  %4694 = vmatmul.mubr.f32.gmra.mxu0 %v10090_v6  ;;  %v5838_v15 = vpop.f32.mrf.mxu1 }
 0x31c   :  { %v3821_v0 = vadd.f32 %v5757_v42, %v8696_v59  ;;  %4839 = vmatmul.mubr.f32.gmra.mxu1 %v10091_v23  ;;  %4698 = vmatprep.mubr.f32.mxu0 %v8565_v45 }
 0x31d   :  { %4843 = vmatprep.mubr.f32.mxu1 %v8568_v52  ;;  %v5759_v57 = vpop.f32.mrf.mxu0  ;;  %v5839_v63 = vpop.f32.mrf.mxu1 }
 0x31e   :  { %v8808_v34 = vadd.f32 %v5837_v3, %v3821_v0  ;;  %v5760_v37 = vadd.f32 %v5759_v57, %v5758_v13  ;;  %v5840_v28 = vadd.f32 %v5839_v63, %v5838_v15 }
 0x31f   :  { %v5761_v35 = vpop.f32.mrf.mxu0  ;;  %4699 = vmatmul.mubr.f32.gmra.mxu0 %v8574_v20  ;;  %v5841_v18 = vpop.f32.mrf.mxu1 }
 0x320   :  { %v3826_v48 = vadd.f32 %v5760_v37, %v8702_v38  ;;  %4844 = vmatmul.mubr.f32.gmra.mxu1 %v8578_v36 }
 0x321   :  { %v5762_v59 = vpop.f32.mrf.mxu0  ;;  %v5842_v9 = vpop.f32.mrf.mxu1 }
 0x322   :  { %v8813_v56 = vadd.f32 %v5840_v28, %v3826_v48  ;;  %v5763_v45 = vadd.f32 %v5762_v59, %v5761_v35  ;;  %v5843_v52 = vadd.f32 %v5842_v9, %v5841_v18 }
 0x323   :  { %v5876_v1 = vpop.f32.mrf.mxu0  ;;  %v5956_v22 = vpop.f32.mrf.mxu1 }
 0x324   :  { %v3831_v50 = vadd.f32 %v5763_v45, %v8710_v44 }
 0x325   :  { %v5877_v55 = vpop.f32.mrf.mxu0  ;;  %v5957_v20 = vpop.f32.mrf.mxu1 }
 0x326   :  { %v8816_v29 = vadd.f32 %v5843_v52, %v3831_v50  ;;  %v5878_v31 = vadd.f32 %v5877_v55, %v5876_v1  ;;  %v5958_v27 = vadd.f32 %v5957_v20, %v5956_v22 }
 0x327   :  { %v5879_v38 = vpop.f32.mrf.mxu0  ;;  %v5959_v36 = vpop.f32.mrf.mxu1 }
 0x328   :  { %v4046_v51 = vadd.f32 %v5878_v31, %v8717_v25 }
 0x329   :  { %v5880_v19 = vpop.f32.mrf.mxu0  ;;  %v5960_v5 = vpop.f32.mrf.mxu1 }
 0x32a   :  { %v8819_v12 = vadd.f32 %v5958_v27, %v4046_v51  ;;  %v5881_v41 = vadd.f32 %v5880_v19, %v5879_v38  ;;  %v5961_v4 = vadd.f32 %v5960_v5, %v5959_v36 }
 0x32b   :  { %v5882_v33 = vpop.f32.mrf.mxu0  ;;  %v5962_v14 = vpop.f32.mrf.mxu1 }
 0x32c   :  { %v4051_v44 = vadd.f32 %v5881_v41, %v8724_v39 }
 0x32d   :  { %v5883_v11 = vpop.f32.mrf.mxu0  ;;  %v5963_v10 = vpop.f32.mrf.mxu1 }
 0x32e   :  { %v8822_v32 = vadd.f32 %v5961_v4, %v4051_v44  ;;  %v5884_v62 = vadd.f32 %v5883_v11, %v5882_v33  ;;  %v5964_v30 = vadd.f32 %v5963_v10, %v5962_v14 }
 0x32f   :  { %v5885_v58 = vpop.f32.mrf.mxu0  ;;  %v5965_v54 = vpop.f32.mrf.mxu1 }
 0x330   :  { %v4056_v25 = vadd.f32 %v5884_v62, %v8731_v26 }
 0x331   :  { %v5886_v47 = vpop.f32.mrf.mxu0  ;;  %v5966_v40 = vpop.f32.mrf.mxu1 }
 0x332   :  { %v8825_v43 = vadd.f32 %v5964_v30, %v4056_v25  ;;  %v5887_v24 = vadd.f32 %v5886_v47, %v5885_v58  ;;  %v5967_v42 = vadd.f32 %v5966_v40, %v5965_v54 }
 0x333   :  { %v5888_v8 = vpop.f32.mrf.mxu0  ;;  %v5968_v3 = vpop.f32.mrf.mxu1 }
 0x334   :  { %v4061_v39 = vadd.f32 %v5887_v24, %v8738_v16 }
 0x335   :  { %v5889_v13 = vpop.f32.mrf.mxu0  ;;  %v5969_v15 = vpop.f32.mrf.mxu1 }
 0x336   :  { %v8828_v6 = vadd.f32 %v5967_v42, %v4061_v39  ;;  %v5890_v0 = vadd.f32 %v5889_v13, %v5888_v8  ;;  %v5970_v23 = vadd.f32 %v5969_v15, %v5968_v3 }
 0x337   :  { %v5891_v57 = vpop.f32.mrf.mxu0  ;;  %v5971_v37 = vpop.f32.mrf.mxu1 }
 0x338   :  { %v4066_v26 = vadd.f32 %v5890_v0, %v8745_v21 }
 0x339   :  { %v5892_v63 = vpop.f32.mrf.mxu0  ;;  %v5972_v48 = vpop.f32.mrf.mxu1 }
 0x33a   :  { %v8831_v28 = vadd.f32 %v5970_v23, %v4066_v26  ;;  %v5893_v35 = vadd.f32 %v5892_v63, %v5891_v57  ;;  %v5973_v18 = vadd.f32 %v5972_v48, %v5971_v37 }
 0x33b   :  { %v5894_v59 = vpop.f32.mrf.mxu0  ;;  %v5974_v45 = vpop.f32.mrf.mxu1 }
 0x33c   :  { %v4071_v16 = vadd.f32 %v5893_v35, %v8752_v49 }
 0x33d   :  { %v5895_v9 = vpop.f32.mrf.mxu0  ;;  %v5975_v50 = vpop.f32.mrf.mxu1 }
 0x33e   :  { %v8834_v52 = vadd.f32 %v5973_v18, %v4071_v16  ;;  %v5896_v1 = vadd.f32 %v5895_v9, %v5894_v59  ;;  %v5976_v22 = vadd.f32 %v5975_v50, %v5974_v45 }
 0x33f   :  { %v5897_v55 = vpop.f32.mrf.mxu0  ;;  %v5977_v31 = vpop.f32.mrf.mxu1 }
 0x340   :  { %v4076_v21 = vadd.f32 %v5896_v1, %v8759_v61 }
 0x341   :  { %v5898_v20 = vpop.f32.mrf.mxu0  ;;  %v5978_v51 = vpop.f32.mrf.mxu1 }
 0x342   :  { %v8837_v27 = vadd.f32 %v5976_v22, %v4076_v21  ;;  %v5899_v38 = vadd.f32 %v5898_v20, %v5897_v55  ;;  %v5979_v36 = vadd.f32 %v5978_v51, %v5977_v31 }
 0x343   :  { %v5900_v19 = vpop.f32.mrf.mxu0  ;;  %v5980_v41 = vpop.f32.mrf.mxu1 }
 0x344   :  { %v4081_v49 = vadd.f32 %v5899_v38, %v8766_v60 }
 0x345   :  { %v5901_v5 = vpop.f32.mrf.mxu0  ;;  %v5981_v44 = vpop.f32.mrf.mxu1 }
 0x346   :  { %v8840_v4 = vadd.f32 %v5979_v36, %v4081_v49  ;;  %v5902_v33 = vadd.f32 %v5901_v5, %v5900_v19  ;;  %v5982_v14 = vadd.f32 %v5981_v44, %v5980_v41 }
 0x347   :  { %v5903_v11 = vpop.f32.mrf.mxu0  ;;  %v5983_v62 = vpop.f32.mrf.mxu1 }
 0x348   :  { %v4086_v61 = vadd.f32 %v5902_v33, %v8773_v46 }
 0x349   :  { %v5904_v10 = vpop.f32.mrf.mxu0  ;;  %v5984_v25 = vpop.f32.mrf.mxu1 }
 0x34a   :  { %v8843_v30 = vadd.f32 %v5982_v14, %v4086_v61  ;;  %v5905_v58 = vadd.f32 %v5904_v10, %v5903_v11  ;;  %v5985_v54 = vadd.f32 %v5984_v25, %v5983_v62 }
 0x34b   :  { %v5906_v47 = vpop.f32.mrf.mxu0  ;;  %v5986_v24 = vpop.f32.mrf.mxu1 }
 0x34c   :  { %v4091_v60 = vadd.f32 %v5905_v58, %v8780_v53 }
 0x34d   :  { %v5907_v40 = vpop.f32.mrf.mxu0  ;;  %v5987_v39 = vpop.f32.mrf.mxu1 }
 0x34e   :  { %v8846_v42 = vadd.f32 %v5985_v54, %v4091_v60  ;;  %v5908_v8 = vadd.f32 %v5907_v40, %v5906_v47  ;;  %v5988_v3 = vadd.f32 %v5987_v39, %v5986_v24 }
 0x34f   :  { %v5909_v13 = vpop.f32.mrf.mxu0  ;;  %v5989_v0 = vpop.f32.mrf.mxu1 }
 0x350   :  { %v4096_v46 = vadd.f32 %v5908_v8, %v8787_v7 }
 0x351   :  { %v5910_v15 = vpop.f32.mrf.mxu0  ;;  %v5990_v26 = vpop.f32.mrf.mxu1 }
 0x352   :  { %v8849_v23 = vadd.f32 %v5988_v3, %v4096_v46  ;;  %v5911_v57 = vadd.f32 %v5910_v15, %v5909_v13  ;;  %v5991_v37 = vadd.f32 %v5990_v26, %v5989_v0 }
 0x353   :  { %v5912_v63 = vpop.f32.mrf.mxu0  ;;  %v5992_v35 = vpop.f32.mrf.mxu1 }
 0x354   :  { %10092 = vst [vmem:[#allocation39_spill] sm:$0xff] %v8849_v23  ;;  %v4101_v53 = vadd.f32 %v5911_v57, %v8794_v17 }
 0x355   :  { %v5913_v48 = vpop.f32.mrf.mxu0  ;;  %v5993_v16 = vpop.f32.mrf.mxu1 }
 0x356   :  { %v8852_v18 = vadd.f32 %v5991_v37, %v4101_v53  ;;  %v5914_v59 = vadd.f32 %v5913_v48, %v5912_v63  ;;  %v5994_v45 = vadd.f32 %v5993_v16, %v5992_v35 }
 0x357   :  { %v5915_v9 = vpop.f32.mrf.mxu0  ;;  %v5995_v1 = vpop.f32.mrf.mxu1 }
 0x358   :  { %10093 = vst [vmem:[#allocation115_spill] sm:$0xff] %v8852_v18  ;;  %v4106_v7 = vadd.f32 %v5914_v59, %v8801_v2 }
 0x359   :  { %v5916_v50 = vpop.f32.mrf.mxu0  ;;  %v5996_v21 = vpop.f32.mrf.mxu1 }
 0x35a   :  { %v8855_v22 = vadd.f32 %v5994_v45, %v4106_v7  ;;  %v5917_v55 = vadd.f32 %v5916_v50, %v5915_v9  ;;  %v5997_v31 = vadd.f32 %v5996_v21, %v5995_v1 }
 0x35b   :  { %v5918_v20 = vpop.f32.mrf.mxu0  ;;  %v5998_v38 = vpop.f32.mrf.mxu1 }
 0x35c   :  { %10094 = vst [vmem:[#allocation40_spill] sm:$0xff] %v8855_v22  ;;  %v4111_v17 = vadd.f32 %v5917_v55, %v8808_v34 }
 0x35d   :  { %v5919_v51 = vpop.f32.mrf.mxu0  ;;  %v5999_v49 = vpop.f32.mrf.mxu1 }
 0x35e   :  { %v8858_v36 = vadd.f32 %v5997_v31, %v4111_v17  ;;  %v5920_v19 = vadd.f32 %v5919_v51, %v5918_v20  ;;  %v6000_v41 = vadd.f32 %v5999_v49, %v5998_v38 }
 0x35f   :  { %v5921_v5 = vpop.f32.mrf.mxu0 }
 0x360   :  { %10095 = vst [vmem:[#allocation117_spill] sm:$0xff] %v8858_v36  ;;  %v4116_v2 = vadd.f32 %v5920_v19, %v8813_v56  ;;  %v6001_v33 = vpop.f32.mrf.mxu1 }
 0x361   :  { %v5922_v44 = vpop.f32.mrf.mxu0 }
 0x362   :  { %v8861_v14 = vadd.f32 %v6000_v41, %v4116_v2  ;;  %v5923_v11 = vadd.f32 %v5922_v44, %v5921_v5  ;;  %v6002_v61 = vpop.f32.mrf.mxu1 }
 0x363   :  { %v6003_v62 = vadd.f32 %v6002_v61, %v6001_v33  ;;  %v6036_v10 = vpop.f32.mrf.mxu0 }
 0x364   :  { %10096 = vst [vmem:[#allocation41_spill] sm:$0xff] %v8861_v14  ;;  %v4121_v34 = vadd.f32 %v5923_v11, %v8816_v29  ;;  %v8864_v58 = vpop.f32.mrf.mxu1 }
 0x365   :  { %v6037_v25 = vpop.f32.mrf.mxu0 }
 0x366   :  { %v8866_v54 = vadd.f32 %v6003_v62, %v4121_v34  ;;  %v8868_v47 = vpop.f32.mrf.mxu1 }
 0x367   :  { %v6039_v60 = vpop.f32.mrf.mxu0 }
 0x368   :  { %10097 = vst [vmem:[#allocation15_spill] sm:$0xff] %v8866_v54  ;;  %v8870_v24 = vpop.f32.mrf.mxu1 }
 0x369   :  { %v6040_v56 = vpop.f32.mrf.mxu0 }
 0x36a   :  { %v8872_v40 = vpop.f32.mrf.mxu1 }
 0x36b   :  { %v8874_v8 = vpop.f32.mrf.mxu0 }
 0x36c   :  { %v8876_v39 = vpop.f32.mrf.mxu1 }
 0x36d   :  { %v8878_v3 = vpop.f32.mrf.mxu0 }
 0x36e   :  { %v8880_v29 = vpop.f32.mrf.mxu1 }
 0x36f   :  { %v8882_v13 = vpop.f32.mrf.mxu0 }
 0x370   :  { %v8884_v46 = vpop.f32.mrf.mxu1 }
 0x371   :  { %v8886_v0 = vpop.f32.mrf.mxu0 }
 0x372   :  { %v8888_v15 = vpop.f32.mrf.mxu1 }
 0x373   :  { %v8890_v57 = vpop.f32.mrf.mxu0 }
 0x374   :  { %v8892_v26 = vpop.f32.mrf.mxu1 }
 0x375   :  { %v8894_v37 = vpop.f32.mrf.mxu0 }
 0x376   :  { %v8896_v63 = vpop.f32.mrf.mxu1 }
 0x377   :  { %v8898_v53 = vpop.f32.mrf.mxu0 }
 0x378   :  { %v8900_v35 = vpop.f32.mrf.mxu1 }
 0x379   :  { %v8902_v48 = vpop.f32.mrf.mxu0 }
 0x37a   :  { %v8904_v59 = vpop.f32.mrf.mxu1 }
 0x37b   :  { %v8906_v16 = vpop.f32.mrf.mxu0 }
 0x37c   :  { %v8908_v45 = vpop.f32.mrf.mxu1 }
 0x37d   :  { %v8910_v9 = vpop.f32.mrf.mxu0 }
 0x37e   :  { %v8912_v7 = vpop.f32.mrf.mxu1 }
 0x37f   :  { %v8914_v1 = vpop.f32.mrf.mxu0 }
 0x380   :  { %v8916_v50 = vpop.f32.mrf.mxu1 }
 0x381   :  { %v8918_v55 = vpop.f32.mrf.mxu0 }
 0x382   :  { %v8920_v21 = vpop.f32.mrf.mxu1 }
 0x383   :  { %v8922_v31 = vpop.f32.mrf.mxu0 }
 0x384   :  { %v8924_v20 = vpop.f32.mrf.mxu1 }
 0x385   :  { %v8926_v17 = vpop.f32.mrf.mxu0 }
 0x386   :  { %v8928_v38 = vpop.f32.mrf.mxu1 }
 0x387   :  { %v8930_v51 = vpop.f32.mrf.mxu0 }
 0x388   :  { %v8932_v19 = vpop.f32.mrf.mxu1 }
 0x389   :  { %v8934_v49 = vpop.f32.mrf.mxu0 }
 0x38a   :  { %v8936_v41 = vpop.f32.mrf.mxu1 }
 0x38b   :  { %10098 = vst [vmem:[#allocation16_spill] sm:$0xff] %v8936_v41  ;;  %v8938_v5 = vpop.f32.mrf.mxu0 }
 0x38c   :  { %v8940_v2 = vpop.f32.mrf.mxu1 }
 0x38d   :  { %10099 = vst [vmem:[#allocation17_spill] sm:$0xff] %v8940_v2  ;;  %v8942_v33 = vpop.f32.mrf.mxu0 }
 0x38e   :  { %v8944_v44 = vpop.f32.mrf.mxu1 }
 0x38f   :  { %10100 = vst [vmem:[#allocation18_spill] sm:$0xff] %v8944_v44  ;;  %v8946_v11 = vpop.f32.mrf.mxu0 }
 0x390   :  { %10101 = vst [vmem:[#allocation19_spill] sm:$0xff] %v8946_v11  ;;  %v8948_v61 = vpop.f32.mrf.mxu1 }
 0x391   :  { %10102 = vst [vmem:[#allocation20_spill] sm:$0xff] %v8948_v61  ;;  %v8950_v62 = vpop.f32.mrf.mxu0 }
 0x392   :  { %10103 = vst [vmem:[#allocation21_spill] sm:$0xff] %v8950_v62  ;;  %v8952_v34 = vpop.f32.mrf.mxu1 }
 0x393   :  { %10104 = vst [vmem:[#allocation22_spill] sm:$0xff] %v8952_v34  ;;  %v8954_v54 = vpop.f32.mrf.mxu0 }
 0x394   :  { %10105 = vst [vmem:[#allocation23_spill] sm:$0xff] %v8954_v54  ;;  %v8956_v14 = vpop.f32.mrf.mxu1  ;;  %v6038_v54 = vadd.f32 %v6037_v25, %v6036_v10 }
 0x395   :  { %10106 = vst [vmem:[#allocation24_spill] sm:$0xff] %v8956_v14  ;;  %v8958_v36 = vpop.f32.mrf.mxu0 }
 0x396   :  { %10107 = vst [vmem:[#allocation25_spill] sm:$0xff] %v8958_v36  ;;  %v8960_v22 = vpop.f32.mrf.mxu1 }
 0x397   :  { %10108 = vst [vmem:[#allocation26_spill] sm:$0xff] %v8960_v22  ;;  %v8962_v18 = vpop.f32.mrf.mxu0 }
 0x398   :  { %10109 = vst [vmem:[#allocation27_spill] sm:$0xff] %v8962_v18  ;;  %v8964_v2 = vpop.f32.mrf.mxu1  ;;  %v6041_v18 = vadd.f32 %v6040_v56, %v6039_v60  ;;  %v6121_v56 = vadd.f32 %v8872_v40, %v8870_v24 }
 0x399   :  { %10110 = vst [vmem:[#allocation28_spill] sm:$0xff] %v8964_v2  ;;  %v8966_v44 = vpop.f32.mrf.mxu0  ;;  %v4336_v2 = vadd.f32 %v6038_v54, %v8819_v12 }
 0x39a   :  { %10111 = vst [vmem:[#allocation29_spill] sm:$0xff] %v8966_v44  ;;  %v8968_v11 = vpop.f32.mrf.mxu1  ;;  %v4341_v10 = vadd.f32 %v6041_v18, %v8822_v32  ;;  %v6047_v32 = vadd.f32 %v8886_v0, %v8882_v13 }
 0x39b   :  { %10112 = vst [vmem:[#allocation30_spill] sm:$0xff] %v8968_v11  ;;  %v8970_v61 = vpop.f32.mrf.mxu0 }
 0x39c   :  { %10113 = vst [vmem:[#allocation31_spill] sm:$0xff] %v8970_v61  ;;  %v8972_v62 = vpop.f32.mrf.mxu1 }
 0x39d   :  { %10114 = vst [vmem:[#allocation32_spill] sm:$0xff] %v8972_v62  ;;  %v8974_v34 = vpop.f32.mrf.mxu0  ;;  %v6118_v62 = vadd.f32 %v8868_v47, %v8864_v58 }
 0x39e   :  { %10115 = vst [vmem:[#allocation33_spill] sm:$0xff] %v8974_v34  ;;  %v8976_v14 = vpop.f32.mrf.mxu1  ;;  %v4486_v34 = vadd.f32 %v6121_v56, %v4341_v10 }
 0x39f   :  { %10116 = vst [vmem:[#allocation34_spill] sm:$0xff] %v8976_v14  ;;  %v8978_v36 = vpop.f32.mrf.mxu0  ;;  %v4481_v14 = vadd.f32 %v6118_v62, %v4336_v2 }
 0x3a0   :  { %10117 = vst [vmem:[#allocation35_spill] sm:$0xff] %v8978_v36  ;;  %v8980_v22 = vpop.f32.mrf.mxu1  ;;  %v6044_v36 = vadd.f32 %v8878_v3, %v8874_v8  ;;  %v6124_v3 = vadd.f32 %v8880_v29, %v8876_v39 }
 0x3a1   :  { %10118 = vst [vmem:[#allocation36_spill] sm:$0xff] %v8980_v22  ;;  %v8982_v23 = vpop.f32.mrf.mxu0 }
 0x3a2   :  { %10119 = vst [vmem:[#allocation37_spill] sm:$0xff] %v8982_v23  ;;  %v8985_v44 = vpop.f32.mrf.mxu1  ;;  %v4346_v58 = vadd.f32 %v6044_v36, %v8825_v43  ;;  %v4351_v43 = vadd.f32 %v6047_v32, %v8828_v6  ;;  %v6056_v32 = vadd.f32 %v8910_v9, %v8906_v16 }
 0x3a3   :  { %10120 = vst [vmem:[#allocation38_spill] sm:$0xff] %v8985_v44  ;;  %v6196_v11 = vpop.f32.mrf.mxu0 }
 0x3a4   :  { %v6276_v61 = vpop.f32.mrf.mxu1 }
 0x3a5   :  { %v6197_v25 = vpop.f32.mrf.mxu0 }
 0x3a6   :  { %v6198_v22 = vadd.f32 %v6197_v25, %v6196_v11  ;;  %v6277_v60 = vpop.f32.mrf.mxu1 }
 0x3a7   :  { %v6199_v12 = vpop.f32.mrf.mxu0  ;;  %v6278_v44 = vadd.f32 %v6277_v60, %v6276_v61  ;;  %v4491_v61 = vadd.f32 %v6124_v3, %v4346_v58  ;;  %v6130_v60 = vadd.f32 %v8896_v63, %v8892_v26  ;;  %v6059_v3 = vadd.f32 %v8918_v55, %v8914_v1 }
 0x3a8   :  { %v4626_v54 = vadd.f32 %v6198_v22, %v4481_v14  ;;  %v6279_v23 = vpop.f32.mrf.mxu1  ;;  %v6050_v14 = vadd.f32 %v8894_v37, %v8890_v57  ;;  %v6053_v57 = vadd.f32 %v8902_v48, %v8898_v53  ;;  %v6062_v1 = vadd.f32 %v8926_v17, %v8922_v31 }
 0x3a9   :  { %v6200_v41 = vpop.f32.mrf.mxu0 }
 0x3aa   :  { %v4771_v18 = vadd.f32 %v6278_v44, %v4626_v54  ;;  %v6201_v47 = vadd.f32 %v6200_v41, %v6199_v12  ;;  %v6280_v2 = vpop.f32.mrf.mxu1  ;;  %v6127_v44 = vadd.f32 %v8888_v15, %v8884_v46 }
 0x3ab   :  { %v6202_v8 = vpop.f32.mrf.mxu0  ;;  %v6281_v40 = vadd.f32 %v6280_v2, %v6279_v23  ;;  %v4356_v23 = vadd.f32 %v6050_v14, %v8831_v28  ;;  %v4361_v28 = vadd.f32 %v6053_v57, %v8834_v52  ;;  %v6133_v2 = vadd.f32 %v8904_v59, %v8900_v35 }
 0x3ac   :  { %4849 = vst [vmem:[#allocation8] sm:$0xff] %v4771_v18  ;;  %v4631_v24 = vadd.f32 %v6201_v47, %v4486_v34  ;;  %v6282_v22 = vpop.f32.mrf.mxu1  ;;  %v4496_v10 = vadd.f32 %v6127_v44, %v4351_v43  ;;  %v4366_v52 = vadd.f32 %v6056_v32, %v8837_v27  ;;  %v4371_v43 = vadd.f32 %v6059_v3, %v8840_v4 }
 0x3ad   :  { %v6203_v11 = vpop.f32.mrf.mxu0  ;;  %v4501_v54 = vadd.f32 %v6130_v60, %v4356_v23  ;;  %v4376_v4 = vadd.f32 %v6062_v1, %v8843_v30  ;;  %v6065_v23 = vadd.f32 %v8934_v49, %v8930_v51  ;;  %v6142_v57 = vadd.f32 %v8928_v38, %v8924_v20 }
 0x3ae   :  { %v4776_v36 = vadd.f32 %v6281_v40, %v4631_v24  ;;  %v6204_v13 = vadd.f32 %v6203_v11, %v6202_v8  ;;  %v6283_v0 = vpop.f32.mrf.mxu1  ;;  %v4506_v40 = vadd.f32 %v6133_v2, %v4361_v28  ;;  %v6136_v11 = vadd.f32 %v8912_v7, %v8908_v45  ;;  %v10125_v2 = vld [vmem:[#allocation17_spill] sm:$0xff] }
 0x3af   :  { %v6205_v41 = vpop.f32.mrf.mxu0  ;;  %v6284_v29 = vadd.f32 %v6283_v0, %v6282_v22  ;;  %v4521_v60 = vadd.f32 %v6142_v57, %v4376_v4  ;;  %v4381_v30 = vadd.f32 %v6065_v23, %v8846_v42 }
 0x3b0   :  { %4850 = vst [vmem:[#allocation8 + $0x8] sm:$0xff] %v4776_v36  ;;  %v4636_v39 = vadd.f32 %v6204_v13, %v4491_v61  ;;  %v6285_v62 = vpop.f32.mrf.mxu1  ;;  %v4511_v13 = vadd.f32 %v6136_v11, %v4366_v52 }
 0x3b1   :  { %v6206_v34 = vpop.f32.mrf.mxu0 }
 0x3b2   :  { %v4781_v37 = vadd.f32 %v6284_v29, %v4636_v39  ;;  %v6207_v6 = vadd.f32 %v6206_v34, %v6205_v41  ;;  %v6286_v25 = vpop.f32.mrf.mxu1  ;;  %v6139_v41 = vadd.f32 %v8920_v21, %v8916_v50 }
 0x3b3   :  { %v6208_v56 = vpop.f32.mrf.mxu0  ;;  %v6287_v15 = vadd.f32 %v6286_v25, %v6285_v62 }
 0x3b4   :  { %4851 = vst [vmem:[#allocation8 + $0x10] sm:$0xff] %v4781_v37  ;;  %v4641_v46 = vadd.f32 %v6207_v6, %v4496_v10  ;;  %v6288_v12 = vpop.f32.mrf.mxu1  ;;  %v4516_v29 = vadd.f32 %v6139_v41, %v4371_v43  ;;  %v6068_v6 = vadd.f32 %v8942_v33, %v8938_v5  ;;  %v10123_v5 = vld [vmem:[#allocation19_spill] sm:$0xff]  ;;  %v10124_v33 = vld [vmem:[#allocation21_spill] sm:$0xff] }
 0x3b5   :  { %v6209_v58 = vpop.f32.mrf.mxu0  ;;  %v10132_v41 = vld [vmem:[#allocation27_spill] sm:$0xff] }
 0x3b6   :  { %v4786_v18 = vadd.f32 %v6287_v15, %v4641_v46  ;;  %v6210_v53 = vadd.f32 %v6209_v58, %v6208_v56  ;;  %v6289_v48 = vpop.f32.mrf.mxu1  ;;  %v10121_v15 = vld [vmem:[#allocation16_spill] sm:$0xff]  ;;  %v10122_v58 = vld [vmem:[#allocation39_spill] sm:$0xff] }
 0x3b7   :  { %v6211_v47 = vpop.f32.mrf.mxu0  ;;  %v6290_v63 = vadd.f32 %v6289_v48, %v6288_v12  ;;  %v6145_v12 = vadd.f32 %v10121_v15, %v8932_v19  ;;  %v4386_v28 = vadd.f32 %v6068_v6, %v10122_v58  ;;  %v10137_v6 = vld [vmem:[#allocation117_spill] sm:$0xff] }
 0x3b8   :  { %4852 = vst [vmem:[#allocation8 + $0x18] sm:$0xff] %v4786_v18  ;;  %v4646_v26 = vadd.f32 %v6210_v53, %v4501_v54  ;;  %v6291_v8 = vpop.f32.mrf.mxu1  ;;  %v6071_v53 = vadd.f32 %v10124_v33, %v10123_v5 }
 0x3b9   :  { %v6212_v24 = vpop.f32.mrf.mxu0  ;;  %v4526_v18 = vadd.f32 %v6145_v12, %v4381_v30 }
 0x3ba   :  { %v4791_v22 = vadd.f32 %v6290_v63, %v4646_v26  ;;  %v6213_v16 = vadd.f32 %v6212_v24, %v6211_v47  ;;  %v6292_v9 = vpop.f32.mrf.mxu1  ;;  %v10126_v26 = vld [vmem:[#allocation18_spill] sm:$0xff] }
 0x3bb   :  { %v6214_v14 = vpop.f32.mrf.mxu0  ;;  %v6293_v59 = vadd.f32 %v6292_v9, %v6291_v8  ;;  %v6148_v63 = vadd.f32 %v10126_v26, %v10125_v2  ;;  %v10128_v9 = vld [vmem:[#allocation23_spill] sm:$0xff] }
 0x3bc   :  { %4853 = vst [vmem:[#allocation8 + $0x20] sm:$0xff] %v4791_v22  ;;  %v4651_v35 = vadd.f32 %v6213_v16, %v4506_v40  ;;  %v6294_v61 = vpop.f32.mrf.mxu1  ;;  %v10127_v22 = vld [vmem:[#allocation115_spill] sm:$0xff] }
 0x3bd   :  { %v6215_v36 = vpop.f32.mrf.mxu0  ;;  %v4531_v40 = vadd.f32 %v6148_v63, %v4386_v28  ;;  %v4391_v16 = vadd.f32 %v6071_v53, %v10127_v22  ;;  %v10142_v53 = vld [vmem:[#allocation41_spill] sm:$0xff] }
 0x3be   :  { %v4796_v55 = vadd.f32 %v6293_v59, %v4651_v35  ;;  %v6216_v27 = vadd.f32 %v6215_v36, %v6214_v14  ;;  %v6295_v0 = vpop.f32.mrf.mxu1  ;;  %v10129_v14 = vld [vmem:[#allocation25_spill] sm:$0xff]  ;;  %v10130_v36 = vld [vmem:[#allocation20_spill] sm:$0xff] }
 0x3bf   :  { %v6217_v44 = vpop.f32.mrf.mxu0  ;;  %v6296_v7 = vadd.f32 %v6295_v0, %v6294_v61  ;;  %v6074_v11 = vadd.f32 %v10129_v14, %v10128_v9 }
 0x3c0   :  { %4854 = vst [vmem:[#allocation8 + $0x28] sm:$0xff] %v4796_v55  ;;  %v4656_v45 = vadd.f32 %v6216_v27, %v4511_v13  ;;  %v6297_v39 = vpop.f32.mrf.mxu1  ;;  %v10131_v13 = vld [vmem:[#allocation22_spill] sm:$0xff] }
 0x3c1   :  { %v6218_v62 = vpop.f32.mrf.mxu0  ;;  %v6151_v1 = vadd.f32 %v10131_v13, %v10130_v36  ;;  %v10148_v13 = vld [vmem:[#allocation36_spill] sm:$0xff] }
 0x3c2   :  { %v4801_v34 = vadd.f32 %v6296_v7, %v4656_v45  ;;  %v6219_v31 = vadd.f32 %v6218_v62, %v6217_v44  ;;  %v6298_v17 = vpop.f32.mrf.mxu1  ;;  %v10133_v44 = vld [vmem:[#allocation29_spill] sm:$0xff] }
 0x3c3   :  { %v6220_v10 = vpop.f32.mrf.mxu0  ;;  %v6299_v21 = vadd.f32 %v6298_v17, %v6297_v39  ;;  %v6077_v45 = vadd.f32 %v10133_v44, %v10132_v41  ;;  %v4536_v39 = vadd.f32 %v6151_v1, %v4391_v16  ;;  %v10135_v17 = vld [vmem:[#allocation24_spill] sm:$0xff]  ;;  %v10149_v1 = vld [vmem:[#allocation38_spill] sm:$0xff] }
 0x3c4   :  { %4855 = vst [vmem:[#allocation8 + $0x30] sm:$0xff] %v4801_v34  ;;  %v4661_v50 = vadd.f32 %v6219_v31, %v4516_v29  ;;  %v6300_v37 = vpop.f32.mrf.mxu1  ;;  %v10134_v29 = vld [vmem:[#allocation40_spill] sm:$0xff] }
 0x3c5   :  { %v6221_v25 = vpop.f32.mrf.mxu0  ;;  %v4396_v62 = vadd.f32 %v6074_v11, %v10134_v29  ;;  %v10147_v11 = vld [vmem:[#allocation15_spill] sm:$0xff] }
 0x3c6   :  { %v4806_v56 = vadd.f32 %v6299_v21, %v4661_v50  ;;  %v6222_v51 = vadd.f32 %v6221_v25, %v6220_v10  ;;  %v6301_v49 = vpop.f32.mrf.mxu1  ;;  %v10136_v10 = vld [vmem:[#allocation26_spill] sm:$0xff]  ;;  %v4401_v25 = vadd.f32 %v6077_v45, %v10137_v6 }
 0x3c7   :  { %v6223_v46 = vpop.f32.mrf.mxu0  ;;  %v6302_v38 = vadd.f32 %v6301_v49, %v6300_v37  ;;  %v6154_v57 = vadd.f32 %v10136_v10, %v10135_v17 }
 0x3c8   :  { %4856 = vst [vmem:[#allocation8 + $0x38] sm:$0xff] %v4806_v56  ;;  %v4666_v20 = vadd.f32 %v6222_v51, %v4521_v60  ;;  %v6303_v54 = vpop.f32.mrf.mxu1  ;;  %v10138_v56 = vld [vmem:[#allocation31_spill] sm:$0xff]  ;;  %v10139_v51 = vld [vmem:[#allocation33_spill] sm:$0xff] }
 0x3c9   :  { %v6224_v32 = vpop.f32.mrf.mxu0  ;;  %v4541_v30 = vadd.f32 %v6154_v57, %v4396_v62  ;;  %v6080_v49 = vadd.f32 %v10139_v51, %v10138_v56 }
 0x3ca   :  { %v4811_v48 = vadd.f32 %v6302_v38, %v4666_v20  ;;  %v6225_v42 = vadd.f32 %v6224_v32, %v6223_v46  ;;  %v6304_v47 = vpop.f32.mrf.mxu1  ;;  %v10140_v20 = vld [vmem:[#allocation28_spill] sm:$0xff]  ;;  %v10141_v38 = vld [vmem:[#allocation30_spill] sm:$0xff] }
 0x3cb   :  { %v6226_v8 = vpop.f32.mrf.mxu0  ;;  %v6305_v3 = vadd.f32 %v6304_v47, %v6303_v54  ;;  %v6157_v54 = vadd.f32 %v10141_v38, %v10140_v20  ;;  %v10144_v47 = vld [vmem:[#allocation37_spill] sm:$0xff] }
 0x3cc   :  { %4857 = vst [vmem:[#allocation8 + $0x40] sm:$0xff] %v4811_v48  ;;  %v4671_v19 = vadd.f32 %v6225_v42, %v4526_v18  ;;  %v6306_v24 = vpop.f32.mrf.mxu1  ;;  %v4406_v48 = vadd.f32 %v6080_v49, %v10142_v53  ;;  %v10143_v42 = vld [vmem:[#allocation35_spill] sm:$0xff] }
 0x3cd   :  { %v6227_v52 = vpop.f32.mrf.mxu0  ;;  %v4546_v5 = vadd.f32 %v6157_v54, %v4401_v25  ;;  %v6083_v2 = vadd.f32 %v10144_v47, %v10143_v42 }
 0x3ce   :  { %v4816_v35 = vadd.f32 %v6305_v3, %v4671_v19  ;;  %v6228_v59 = vadd.f32 %v6227_v52, %v6226_v8  ;;  %v6307_v61 = vpop.f32.mrf.mxu1  ;;  %v10145_v3 = vld [vmem:[#allocation32_spill] sm:$0xff] }
 0x3cf   :  { %v6229_v43 = vpop.f32.mrf.mxu0  ;;  %v6308_v27 = vadd.f32 %v6307_v61, %v6306_v24  ;;  %v10146_v24 = vld [vmem:[#allocation34_spill] sm:$0xff] }
 0x3d0   :  { %4858 = vst [vmem:[#allocation8 + $0x48] sm:$0xff] %v4816_v35  ;;  %v4676_v55 = vadd.f32 %v6228_v59, %v4531_v40  ;;  %v6309_v0 = vpop.f32.mrf.mxu1  ;;  %v6160_v40 = vadd.f32 %v10146_v24, %v10145_v3  ;;  %v4411_v35 = vadd.f32 %v6083_v2, %v10147_v11 }
 0x3d1   :  { %v6230_v7 = vpop.f32.mrf.mxu0 }
 0x3d2   :  { %v4821_v4 = vadd.f32 %v6308_v27, %v4676_v55  ;;  %v6231_v23 = vadd.f32 %v6230_v7, %v6229_v43  ;;  %v6310_v34 = vpop.f32.mrf.mxu1  ;;  %v4551_v14 = vadd.f32 %v6160_v40, %v4406_v48  ;;  %v6163_v55 = vadd.f32 %v10149_v1, %v10148_v13 }
 0x3d3   :  { %v6232_v31 = vpop.f32.mrf.mxu0  ;;  %v6311_v21 = vadd.f32 %v6310_v34, %v6309_v0 }
 0x3d4   :  { %4859 = vst [vmem:[#allocation8 + $0x50] sm:$0xff] %v4821_v4  ;;  %v4681_v50 = vadd.f32 %v6231_v23, %v4536_v39  ;;  %v6312_v37 = vpop.f32.mrf.mxu1  ;;  %v4556_v45 = vadd.f32 %v6163_v55, %v4411_v35 }
 0x3d5   :  { %v6233_v60 = vpop.f32.mrf.mxu0 }
 0x3d6   :  { %v4826_v46 = vadd.f32 %v6311_v21, %v4681_v50  ;;  %v6234_v15 = vadd.f32 %v6233_v60, %v6232_v31  ;;  %v6313_v12 = vpop.f32.mrf.mxu1 }
 0x3d7   :  { %v6235_v58 = vpop.f32.mrf.mxu0  ;;  %v6314_v32 = vadd.f32 %v6313_v12, %v6312_v37 }
 0x3d8   :  { %4860 = vst [vmem:[#allocation8 + $0x58] sm:$0xff] %v4826_v46  ;;  %v4686_v28 = vadd.f32 %v6234_v15, %v4541_v30  ;;  %v6315_v18 = vpop.f32.mrf.mxu1 }
 0x3d9   :  { %v6236_v33 = vpop.f32.mrf.mxu0 }
 0x3da   :  { %v4831_v26 = vadd.f32 %v6314_v32, %v4686_v28  ;;  %v6237_v63 = vadd.f32 %v6236_v33, %v6235_v58  ;;  %v6316_v8 = vpop.f32.mrf.mxu1 }
 0x3db   :  { %v6238_v19 = vpop.f32.mrf.mxu0  ;;  %v6317_v22 = vadd.f32 %v6316_v8, %v6315_v18 }
 0x3dc   :  { %4861 = vst [vmem:[#allocation8 + $0x60] sm:$0xff] %v4831_v26  ;;  %v4691_v52 = vadd.f32 %v6237_v63, %v4546_v5  ;;  %v6318_v16 = vpop.f32.mrf.mxu1 }
 0x3dd   :  { %v6239_v9 = vpop.f32.mrf.mxu0 }
 0x3de   :  { %v4836_v59 = vadd.f32 %v6317_v22, %v4691_v52  ;;  %v6240_v61 = vadd.f32 %v6239_v9, %v6238_v19  ;;  %v6319_v43 = vpop.f32.mrf.mxu1 }
 0x3df   :  { %v6241_v36 = vpop.f32.mrf.mxu0  ;;  %v6320_v0 = vadd.f32 %v6319_v43, %v6318_v16 }
 0x3e0   :  { %4862 = vst [vmem:[#allocation8 + $0x68] sm:$0xff] %v4836_v59  ;;  %v4696_v27 = vadd.f32 %v6240_v61, %v4551_v14  ;;  %v6321_v41 = vpop.f32.mrf.mxu1 }
 0x3e1   :  { %v6242_v44 = vpop.f32.mrf.mxu0 }
 0x3e2   :  { %v4841_v7 = vadd.f32 %v6320_v0, %v4696_v27  ;;  %v6243_v39 = vadd.f32 %v6242_v44, %v6241_v36  ;;  %v6322_v29 = vpop.f32.mrf.mxu1 }
 0x3e3   :  { %v6323_v4 = vadd.f32 %v6322_v29, %v6321_v41 }
 0x3e4   :  { %4863 = vst [vmem:[#allocation8 + $0x70] sm:$0xff] %v4841_v7  ;;  %v4701_v62 = vadd.f32 %v6243_v39, %v4556_v45 }
 0x3e6   :  { %v4846_v23 = vadd.f32 %v6323_v4, %v4701_v62 }
 0x3e8   :  { %4864 = vst [vmem:[#allocation8 + $0x78] sm:$0xff] %v4846_v23 }
 0x3e9   :  { %6643 = shalt.err (!%p6640_p5)
}
 0x3ea   :  { %4876 = dma.vmem_to_hbm [thread:$0]  %s4871_s2, 2048, %s9071_s3, [#allocation4], %s6659_s15, %s6659_s15, %s6660_s16  }
 0x3eb   :  { %6656 = dma.done.wait [#allocation4], 2048  }
 0x3ec   :  { %6657 = vsyncadd [#allocation4], 4294965248 }
 0x3ed   :  { %4880 = vsyncpa [#allocation3], 1 }
 0x3ee   :  { %4881 = vsyncpa [#allocation6], 1 }
 0x3ef   :  { %4882 = vsyncpa [#allocation4], 1 }

</bundles_post_ra>
